<compile_context>
chip_gen: v5e
topology: v5e:2x2
jax: 0.10.0
libtpu: 0.0.40
codegen_flags: <defaults>
</compile_context>

<pallas_src>
import jax
import jax.numpy as jnp
import numpy as np
from jax.experimental import pallas as pl
from jax.experimental.pallas import tpu as pltpu


# --------------------------- fused GRU + head kernel --------------------------

def make_fused_kernel(T, B, H, num_layers):
    """Kernel args (all VMEM refs, in order):
         x (T*B, I),
         per layer: w_ih_t (in, 3H), w_hh_t (H, 3H), b_x (1, 3H), b_hn (1, H),
         fc1_w_t (H, H1), fc1_b (1, H1), fc2_w_t (H1, Cpad), fc2_b (1, Cpad),
         out (B, Cpad)            [output]
         hseq (T*B, H)            [VMEM scratch: previous-layer outputs]
         gx   (T*B, 3H)           [VMEM scratch: batched input projection]
    """

    def kernel(*refs):
        x_ref = refs[0]
        off = 1
        layer_refs = []
        for _ in range(num_layers):
            layer_refs.append(refs[off:off + 4])
            off += 4
        fc1_w_ref, fc1_b_ref, fc2_w_ref, fc2_b_ref = refs[off:off + 4]
        out_ref = refs[off + 4]
        hseq_ref = refs[off + 5]
        gx_ref = refs[off + 6]

        h = jnp.zeros((B, H), jnp.float32)
        for li, (w_ih_ref, w_hh_ref, bx_ref, bhn_ref) in enumerate(layer_refs):
            # Whole-sequence input projection: one big matmul (M = T*B) into
            # VMEM scratch. r/z biases already fused into bx.
            x_in = x_ref[...] if li == 0 else hseq_ref[...]
            gx_ref[...] = jnp.dot(x_in, w_ih_ref[...],
                                  preferred_element_type=jnp.float32) + bx_ref[...]

            bhn = bhn_ref[...]                         # (1, H) — single vreg
            h = jnp.zeros((B, H), jnp.float32)         # h0 = None -> zeros
            for t in range(T):                          # fully unrolled (T small)
                gx_t = gx_ref[t * B:(t + 1) * B, :]    # (B, 3H) static slice load
                gh = jnp.dot(h, w_hh_ref[...],
                             preferred_element_type=jnp.float32)
                r = jax.nn.sigmoid(gx_t[:, 0:H] + gh[:, 0:H])
                z = jax.nn.sigmoid(gx_t[:, H:2 * H] + gh[:, H:2 * H])
                n = jnp.tanh(gx_t[:, 2 * H:] + r * (gh[:, 2 * H:] + bhn))
                h = (1.0 - z) * n + z * h
                if li < num_layers - 1:                # last layer only needs h_T
                    hseq_ref[t * B:(t + 1) * B, :] = h

        # FC head fused: fc1 -> ReLU -> fc2 (lane-dense padded output).
        a = jnp.dot(h, fc1_w_ref[...],
                    preferred_element_type=jnp.float32) + fc1_b_ref[...]
        a = jnp.maximum(a, 0.0)
        out_ref[...] = jnp.dot(a, fc2_w_ref[...],
                               preferred_element_type=jnp.float32) + fc2_b_ref[...]

    return kernel


# ------------------------------- full forward --------------------------------

def gru_model_forward(x, prepared):
    """x: (B, T, I) batch_first, like the PyTorch module."""
    B, T, I = x.shape
    H = prepared["gru"][0]["w_hh_t"].shape[0]
    num_layers = len(prepared["gru"])
    Cpad = prepared["fc2_w_t"].shape[1]

    # time-major, flattened: row t*B + b  ==  x[b, t, :]
    x_tm = jnp.transpose(x, (1, 0, 2)).reshape(T * B, I)

    args = [x_tm]
    for lyr in prepared["gru"]:
        args += [lyr["w_ih_t"], lyr["w_hh_t"], lyr["b_x"], lyr["b_hn"]]
    args += [prepared["fc1_w_t"], prepared["fc1_b"],
             prepared["fc2_w_t"], prepared["fc2_b_pad"]]

    out_padded = pl.pallas_call(
        make_fused_kernel(T, B, H, num_layers),
        out_shape=jax.ShapeDtypeStruct((B, Cpad), jnp.float32),
        in_specs=[pl.BlockSpec(memory_space=pltpu.MemorySpace.VMEM)] * len(args),
        out_specs=pl.BlockSpec(memory_space=pltpu.MemorySpace.VMEM),
        scratch_shapes=[pltpu.VMEM((T * B, H), jnp.float32),
                        pltpu.VMEM((T * B, 3 * H), jnp.float32)],
    )(*args)
    return out_padded[:, :prepared["num_classes"]]


# ------------------------------ parameter setup -------------------------------

def init_params(key, input_size, hidden, num_layers, hidden1, num_classes):
    """Raw parameters in PyTorch layout (W: (out, in), gate order [r, z, n])."""
    params = {"gru": []}
    k = 1.0 / np.sqrt(hidden)
    for layer in range(num_layers):
        in_sz = input_size if layer == 0 else hidden
        key, k0, k1, k2, k3 = jax.random.split(key, 5)
        params["gru"].append({
            "w_ih": jax.random.uniform(k0, (3 * hidden, in_sz), jnp.float32, -k, k),
            "w_hh": jax.random.uniform(k1, (3 * hidden, hidden), jnp.float32, -k, k),
            "b_ih": jax.random.uniform(k2, (1, 3 * hidden), jnp.float32, -k, k),
            "b_hh": jax.random.uniform(k3, (1, 3 * hidden), jnp.float32, -k, k),
        })
    k1b = 1.0 / np.sqrt(hidden)
    key, ka, kb = jax.random.split(key, 3)
    params["fc1_w"] = jax.random.uniform(ka, (hidden1, hidden), jnp.float32, -k1b, k1b)
    params["fc1_b"] = jax.random.uniform(kb, (1, hidden1), jnp.float32, -k1b, k1b)
    k2b = 1.0 / np.sqrt(hidden1)
    key, kc, kd = jax.random.split(key, 3)
    params["fc2_w"] = jax.random.uniform(kc, (num_classes, hidden1), jnp.float32, -k2b, k2b)
    params["fc2_b"] = jax.random.uniform(kd, (1, num_classes), jnp.float32, -k2b, k2b)
    return params


def prepare_params(raw):
    """One-time wrapper-side prep: pre-transpose weights, fuse r/z biases,
    pad fc2 to a lane-dense (multiple-of-128) output width."""
    prepared = {"gru": [], "num_classes": int(raw["fc2_w"].shape[0])}
    for layer in raw["gru"]:
        w_ih, w_hh = layer["w_ih"], layer["w_hh"]           # (3H, in), (3H, H)
        b_ih, b_hh = layer["b_ih"][0], layer["b_hh"][0]     # (3H,)
        H = w_hh.shape[1]
        # Fuse b_ir+b_hr and b_iz+b_hz; keep b_in in gx, b_hn separate (n gate).
        b_x = jnp.concatenate([b_ih[:2 * H] + b_hh[:2 * H], b_ih[2 * H:]])
        prepared["gru"].append({
            "w_ih_t": jnp.asarray(w_ih.T),                  # (in, 3H)
            "w_hh_t": jnp.asarray(w_hh.T),                  # (H, 3H)
            "b_x": b_x[None, :],                            # (1, 3H)
            "b_hn": b_hh[2 * H:][None, :],                  # (1, H)
        })
    C = raw["fc2_w"].shape[0]
    Cpad = int(pl.cdiv(C, 128)) * 128
    prepared["fc1_w_t"] = jnp.asarray(raw["fc1_w"].T)       # (H, H1)
    prepared["fc1_b"] = raw["fc1_b"]                        # (1, H1)
    prepared["fc2_w_t"] = jnp.pad(jnp.asarray(raw["fc2_w"].T),
                                  ((0, 0), (0, Cpad - C)))  # (H1, Cpad)
    prepared["fc2_b_pad"] = jnp.pad(raw["fc2_b"], ((0, 0), (0, Cpad - C)))
    return prepared


# ---------------------------- pure-JAX reference ------------------------------

def ref_forward(x, params):
    h_seq = jnp.transpose(x, (1, 0, 2))
    B = x.shape[0]
    for layer in params["gru"]:
        H = layer["w_hh"].shape[1]
        h = jnp.zeros((B, H), jnp.float32)
        outs = []
        for t in range(h_seq.shape[0]):
            gx = h_seq[t] @ layer["w_ih"].T + layer["b_ih"][0]
            gh = h @ layer["w_hh"].T + layer["b_hh"][0]
            r = jax.nn.sigmoid(gx[:, :H] + gh[:, :H])
            z = jax.nn.sigmoid(gx[:, H:2 * H] + gh[:, H:2 * H])
            n = jnp.tanh(gx[:, 2 * H:] + r * gh[:, 2 * H:])
            h = (1.0 - z) * n + z * h
            outs.append(h)
        h_seq = jnp.stack(outs)
    last = h_seq[-1]
    a = jnp.maximum(last @ params["fc1_w"].T + params["fc1_b"][0], 0.0)
    return a @ params["fc2_w"].T + params["fc2_b"][0]


# ----------------------------------- main -------------------------------------

if __name__ == "__main__":
    # Small shapes consistent with the module's forward (scaled-down dims).
    B, T = 8, 8
    INPUT, HIDDEN, LAYERS = 128, 128, 3
    HIDDEN1, CLASSES = 128, 100

    key = jax.random.PRNGKey(0)
    key, kx = jax.random.split(key)
    x = jax.random.normal(kx, (B, T, INPUT), jnp.float32)

    raw_params = init_params(key, INPUT, HIDDEN, LAYERS, HIDDEN1, CLASSES)
    prepared = prepare_params(raw_params)

    fwd = jax.jit(lambda xx: gru_model_forward(xx, prepared))
    out = jax.block_until_ready(fwd(x))
    ref = jax.block_until_ready(ref_forward(x, raw_params))

    assert out.shape == (B, CLASSES), out.shape
    np.testing.assert_allclose(np.asarray(out), np.asarray(ref),
                               rtol=1e-4, atol=1e-4)
    print("KERNEL_OK")
</pallas_src>

<mosaic_0001>
module attributes {stable_mosaic.version = 11 : i64} {
  func.func @kernel(%arg0: memref<64x128xf32, #tpu.memory_space<vmem>>, %arg1: memref<128x384xf32, #tpu.memory_space<vmem>>, %arg2: memref<128x384xf32, #tpu.memory_space<vmem>>, %arg3: memref<1x384xf32, #tpu.memory_space<vmem>>, %arg4: memref<1x128xf32, #tpu.memory_space<vmem>>, %arg5: memref<128x384xf32, #tpu.memory_space<vmem>>, %arg6: memref<128x384xf32, #tpu.memory_space<vmem>>, %arg7: memref<1x384xf32, #tpu.memory_space<vmem>>, %arg8: memref<1x128xf32, #tpu.memory_space<vmem>>, %arg9: memref<128x384xf32, #tpu.memory_space<vmem>>, %arg10: memref<128x384xf32, #tpu.memory_space<vmem>>, %arg11: memref<1x384xf32, #tpu.memory_space<vmem>>, %arg12: memref<1x128xf32, #tpu.memory_space<vmem>>, %arg13: memref<128x128xf32, #tpu.memory_space<vmem>>, %arg14: memref<1x128xf32, #tpu.memory_space<vmem>>, %arg15: memref<128x128xf32, #tpu.memory_space<vmem>>, %arg16: memref<1x128xf32, #tpu.memory_space<vmem>>, %arg17: memref<8x128xf32, #tpu.memory_space<vmem>>, %arg18: memref<64x128xf32, #tpu.memory_space<vmem>>, %arg19: memref<64x384xf32, #tpu.memory_space<vmem>>) attributes {dimension_semantics = [], scalar_prefetch = 0 : i64, scratch_operands = 2 : i64, tpu.core_type = #tpu.core_type<tc>} {
    %c0 = arith.constant 0 : index
    %c0_0 = arith.constant 0 : index
    %0 = vector.load %arg0[%c0, %c0_0] : memref<64x128xf32, #tpu.memory_space<vmem>>, vector<64x128xf32>
    %c0_1 = arith.constant 0 : index
    %c0_2 = arith.constant 0 : index
    %1 = vector.load %arg1[%c0_1, %c0_2] : memref<128x384xf32, #tpu.memory_space<vmem>>, vector<128x384xf32>
    %cst = arith.constant dense<0.000000e+00> : vector<64x384xf32>
    %2 = tpu.matmul %0, %1, %cst {dimension_numbers = #tpu.dot_dimension_numbers<[1], [0], [0], [1], [0, 0, 1, 1], [], []>} : vector<64x128xf32>, vector<128x384xf32>, vector<64x384xf32> -> vector<64x384xf32>
    %c0_3 = arith.constant 0 : index
    %c0_4 = arith.constant 0 : index
    %3 = vector.load %arg3[%c0_3, %c0_4] : memref<1x384xf32, #tpu.memory_space<vmem>>, vector<1x384xf32>
    %4 = vector.broadcast %3 : vector<1x384xf32> to vector<64x384xf32>
    %5 = arith.addf %2, %4 : vector<64x384xf32>
    %c0_5 = arith.constant 0 : index
    %c0_6 = arith.constant 0 : index
    %6 = vector.load %arg19[%c0_5, %c0_6] : memref<64x384xf32, #tpu.memory_space<vmem>>, vector<64x384xf32>
    tpu.vector_store %arg19[%c0_5, %c0_6], %5 {strides = array<i32>} : memref<64x384xf32, #tpu.memory_space<vmem>>, vector<64x384xf32>,
    %c0_7 = arith.constant 0 : index
    %c0_8 = arith.constant 0 : index
    %7 = vector.load %arg4[%c0_7, %c0_8] : memref<1x128xf32, #tpu.memory_space<vmem>>, vector<1x128xf32>
    %cst_9 = arith.constant 0.000000e+00 : f32
    %8 = vector.broadcast %cst_9 : f32 to vector<8x128xf32>
    %c0_10 = arith.constant 0 : index
    %c0_11 = arith.constant 0 : index
    %9 = vector.load %arg19[%c0_10, %c0_11] : memref<64x384xf32, #tpu.memory_space<vmem>>, vector<8x384xf32>
    %c0_12 = arith.constant 0 : index
    %c0_13 = arith.constant 0 : index
    %10 = vector.load %arg2[%c0_12, %c0_13] : memref<128x384xf32, #tpu.memory_space<vmem>>, vector<128x384xf32>
    %cst_14 = arith.constant dense<0.000000e+00> : vector<8x384xf32>
    %11 = tpu.matmul %8, %10, %cst_14 {dimension_numbers = #tpu.dot_dimension_numbers<[1], [0], [0], [1], [0, 0, 1, 1], [], []>} : vector<8x128xf32>, vector<128x384xf32>, vector<8x384xf32> -> vector<8x384xf32>
    %12 = vector.extract_strided_slice %9 {offsets = [0, 0], sizes = [8, 128], strides = [1, 1]} : vector<8x384xf32> to vector<8x128xf32>
    %13 = vector.extract_strided_slice %11 {offsets = [0, 0], sizes = [8, 128], strides = [1, 1]} : vector<8x384xf32> to vector<8x128xf32>
    %14 = arith.addf %12, %13 : vector<8x128xf32>
    %15 = arith.negf %14 : vector<8x128xf32>
    %16 = math.exp %15 : vector<8x128xf32>
    %cst_15 = arith.constant 1.000000e+00 : f32
    %17 = vector.broadcast %cst_15 : f32 to vector<8x128xf32>
    %18 = arith.addf %17, %16 : vector<8x128xf32>
    %19 = arith.divf %17, %18 : vector<8x128xf32>
    %20 = vector.extract_strided_slice %9 {offsets = [0, 128], sizes = [8, 128], strides = [1, 1]} : vector<8x384xf32> to vector<8x128xf32>
    %21 = vector.extract_strided_slice %11 {offsets = [0, 128], sizes = [8, 128], strides = [1, 1]} : vector<8x384xf32> to vector<8x128xf32>
    %22 = arith.addf %20, %21 : vector<8x128xf32>
    %23 = arith.negf %22 : vector<8x128xf32>
    %24 = math.exp %23 : vector<8x128xf32>
    %cst_16 = arith.constant 1.000000e+00 : f32
    %25 = vector.broadcast %cst_16 : f32 to vector<8x128xf32>
    %26 = arith.addf %25, %24 : vector<8x128xf32>
    %27 = arith.divf %25, %26 : vector<8x128xf32>
    %28 = vector.extract_strided_slice %9 {offsets = [0, 256], sizes = [8, 128], strides = [1, 1]} : vector<8x384xf32> to vector<8x128xf32>
    %29 = vector.extract_strided_slice %11 {offsets = [0, 256], sizes = [8, 128], strides = [1, 1]} : vector<8x384xf32> to vector<8x128xf32>
    %30 = vector.broadcast %7 : vector<1x128xf32> to vector<8x128xf32>
    %31 = arith.addf %29, %30 : vector<8x128xf32>
    %32 = arith.mulf %19, %31 : vector<8x128xf32>
    %33 = arith.addf %28, %32 : vector<8x128xf32>
    %34 = math.tanh %33 : vector<8x128xf32>
    %cst_17 = arith.constant 1.000000e+00 : f32
    %35 = vector.broadcast %cst_17 : f32 to vector<8x128xf32>
    %36 = arith.subf %35, %27 : vector<8x128xf32>
    %37 = arith.mulf %36, %34 : vector<8x128xf32>
    %38 = arith.mulf %27, %8 : vector<8x128xf32>
    %39 = arith.addf %37, %38 : vector<8x128xf32>
    %c0_18 = arith.constant 0 : index
    %c0_19 = arith.constant 0 : index
    %40 = vector.load %arg18[%c0_18, %c0_19] : memref<64x128xf32, #tpu.memory_space<vmem>>, vector<8x128xf32>
    tpu.vector_store %arg18[%c0_18, %c0_19], %39 {strides = array<i32>} : memref<64x128xf32, #tpu.memory_space<vmem>>, vector<8x128xf32>,
    %c8 = arith.constant 8 : index
    %c0_20 = arith.constant 0 : index
    %41 = vector.load %arg19[%c8, %c0_20] : memref<64x384xf32, #tpu.memory_space<vmem>>, vector<8x384xf32>
    %c0_21 = arith.constant 0 : index
    %c0_22 = arith.constant 0 : index
    %42 = vector.load %arg2[%c0_21, %c0_22] : memref<128x384xf32, #tpu.memory_space<vmem>>, vector<128x384xf32>
    %cst_23 = arith.constant dense<0.000000e+00> : vector<8x384xf32>
    %43 = tpu.matmul %39, %42, %cst_23 {dimension_numbers = #tpu.dot_dimension_numbers<[1], [0], [0], [1], [0, 0, 1, 1], [], []>} : vector<8x128xf32>, vector<128x384xf32>, vector<8x384xf32> -> vector<8x384xf32>
    %44 = vector.extract_strided_slice %41 {offsets = [0, 0], sizes = [8, 128], strides = [1, 1]} : vector<8x384xf32> to vector<8x128xf32>
    %45 = vector.extract_strided_slice %43 {offsets = [0, 0], sizes = [8, 128], strides = [1, 1]} : vector<8x384xf32> to vector<8x128xf32>
    %46 = arith.addf %44, %45 : vector<8x128xf32>
    %47 = arith.negf %46 : vector<8x128xf32>
    %48 = math.exp %47 : vector<8x128xf32>
    %cst_24 = arith.constant 1.000000e+00 : f32
    %49 = vector.broadcast %cst_24 : f32 to vector<8x128xf32>
    %50 = arith.addf %49, %48 : vector<8x128xf32>
    %51 = arith.divf %49, %50 : vector<8x128xf32>
    %52 = vector.extract_strided_slice %41 {offsets = [0, 128], sizes = [8, 128], strides = [1, 1]} : vector<8x384xf32> to vector<8x128xf32>
    %53 = vector.extract_strided_slice %43 {offsets = [0, 128], sizes = [8, 128], strides = [1, 1]} : vector<8x384xf32> to vector<8x128xf32>
    %54 = arith.addf %52, %53 : vector<8x128xf32>
    %55 = arith.negf %54 : vector<8x128xf32>
    %56 = math.exp %55 : vector<8x128xf32>
    %cst_25 = arith.constant 1.000000e+00 : f32
    %57 = vector.broadcast %cst_25 : f32 to vector<8x128xf32>
    %58 = arith.addf %57, %56 : vector<8x128xf32>
    %59 = arith.divf %57, %58 : vector<8x128xf32>
    %60 = vector.extract_strided_slice %41 {offsets = [0, 256], sizes = [8, 128], strides = [1, 1]} : vector<8x384xf32> to vector<8x128xf32>
    %61 = vector.extract_strided_slice %43 {offsets = [0, 256], sizes = [8, 128], strides = [1, 1]} : vector<8x384xf32> to vector<8x128xf32>
    %62 = vector.broadcast %7 : vector<1x128xf32> to vector<8x128xf32>
    %63 = arith.addf %61, %62 : vector<8x128xf32>
    %64 = arith.mulf %51, %63 : vector<8x128xf32>
    %65 = arith.addf %60, %64 : vector<8x128xf32>
    %66 = math.tanh %65 : vector<8x128xf32>
    %cst_26 = arith.constant 1.000000e+00 : f32
    %67 = vector.broadcast %cst_26 : f32 to vector<8x128xf32>
    %68 = arith.subf %67, %59 : vector<8x128xf32>
    %69 = arith.mulf %68, %66 : vector<8x128xf32>
    %70 = arith.mulf %59, %39 : vector<8x128xf32>
    %71 = arith.addf %69, %70 : vector<8x128xf32>
    %c8_27 = arith.constant 8 : index
    %c0_28 = arith.constant 0 : index
    %72 = vector.load %arg18[%c8_27, %c0_28] : memref<64x128xf32, #tpu.memory_space<vmem>>, vector<8x128xf32>
    tpu.vector_store %arg18[%c8_27, %c0_28], %71 {strides = array<i32>} : memref<64x128xf32, #tpu.memory_space<vmem>>, vector<8x128xf32>,
    %c16 = arith.constant 16 : index
    %c0_29 = arith.constant 0 : index
    %73 = vector.load %arg19[%c16, %c0_29] : memref<64x384xf32, #tpu.memory_space<vmem>>, vector<8x384xf32>
    %c0_30 = arith.constant 0 : index
    %c0_31 = arith.constant 0 : index
    %74 = vector.load %arg2[%c0_30, %c0_31] : memref<128x384xf32, #tpu.memory_space<vmem>>, vector<128x384xf32>
    %cst_32 = arith.constant dense<0.000000e+00> : vector<8x384xf32>
    %75 = tpu.matmul %71, %74, %cst_32 {dimension_numbers = #tpu.dot_dimension_numbers<[1], [0], [0], [1], [0, 0, 1, 1], [], []>} : vector<8x128xf32>, vector<128x384xf32>, vector<8x384xf32> -> vector<8x384xf32>
    %76 = vector.extract_strided_slice %73 {offsets = [0, 0], sizes = [8, 128], strides = [1, 1]} : vector<8x384xf32> to vector<8x128xf32>
    %77 = vector.extract_strided_slice %75 {offsets = [0, 0], sizes = [8, 128], strides = [1, 1]} : vector<8x384xf32> to vector<8x128xf32>
    %78 = arith.addf %76, %77 : vector<8x128xf32>
    %79 = arith.negf %78 : vector<8x128xf32>
    %80 = math.exp %79 : vector<8x128xf32>
    %cst_33 = arith.constant 1.000000e+00 : f32
    %81 = vector.broadcast %cst_33 : f32 to vector<8x128xf32>
    %82 = arith.addf %81, %80 : vector<8x128xf32>
    %83 = arith.divf %81, %82 : vector<8x128xf32>
    %84 = vector.extract_strided_slice %73 {offsets = [0, 128], sizes = [8, 128], strides = [1, 1]} : vector<8x384xf32> to vector<8x128xf32>
    %85 = vector.extract_strided_slice %75 {offsets = [0, 128], sizes = [8, 128], strides = [1, 1]} : vector<8x384xf32> to vector<8x128xf32>
    %86 = arith.addf %84, %85 : vector<8x128xf32>
    %87 = arith.negf %86 : vector<8x128xf32>
    %88 = math.exp %87 : vector<8x128xf32>
    %cst_34 = arith.constant 1.000000e+00 : f32
    %89 = vector.broadcast %cst_34 : f32 to vector<8x128xf32>
    %90 = arith.addf %89, %88 : vector<8x128xf32>
    %91 = arith.divf %89, %90 : vector<8x128xf32>
    %92 = vector.extract_strided_slice %73 {offsets = [0, 256], sizes = [8, 128], strides = [1, 1]} : vector<8x384xf32> to vector<8x128xf32>
    %93 = vector.extract_strided_slice %75 {offsets = [0, 256], sizes = [8, 128], strides = [1, 1]} : vector<8x384xf32> to vector<8x128xf32>
    %94 = vector.broadcast %7 : vector<1x128xf32> to vector<8x128xf32>
    %95 = arith.addf %93, %94 : vector<8x128xf32>
    %96 = arith.mulf %83, %95 : vector<8x128xf32>
    %97 = arith.addf %92, %96 : vector<8x128xf32>
    %98 = math.tanh %97 : vector<8x128xf32>
    %cst_35 = arith.constant 1.000000e+00 : f32
    %99 = vector.broadcast %cst_35 : f32 to vector<8x128xf32>
    %100 = arith.subf %99, %91 : vector<8x128xf32>
    %101 = arith.mulf %100, %98 : vector<8x128xf32>
    %102 = arith.mulf %91, %71 : vector<8x128xf32>
    %103 = arith.addf %101, %102 : vector<8x128xf32>
    %c16_36 = arith.constant 16 : index
    %c0_37 = arith.constant 0 : index
    %104 = vector.load %arg18[%c16_36, %c0_37] : memref<64x128xf32, #tpu.memory_space<vmem>>, vector<8x128xf32>
    tpu.vector_store %arg18[%c16_36, %c0_37], %103 {strides = array<i32>} : memref<64x128xf32, #tpu.memory_space<vmem>>, vector<8x128xf32>,
    %c24 = arith.constant 24 : index
    %c0_38 = arith.constant 0 : index
    %105 = vector.load %arg19[%c24, %c0_38] : memref<64x384xf32, #tpu.memory_space<vmem>>, vector<8x384xf32>
    %c0_39 = arith.constant 0 : index
    %c0_40 = arith.constant 0 : index
    %106 = vector.load %arg2[%c0_39, %c0_40] : memref<128x384xf32, #tpu.memory_space<vmem>>, vector<128x384xf32>
    %cst_41 = arith.constant dense<0.000000e+00> : vector<8x384xf32>
    %107 = tpu.matmul %103, %106, %cst_41 {dimension_numbers = #tpu.dot_dimension_numbers<[1], [0], [0], [1], [0, 0, 1, 1], [], []>} : vector<8x128xf32>, vector<128x384xf32>, vector<8x384xf32> -> vector<8x384xf32>
    %108 = vector.extract_strided_slice %105 {offsets = [0, 0], sizes = [8, 128], strides = [1, 1]} : vector<8x384xf32> to vector<8x128xf32>
    %109 = vector.extract_strided_slice %107 {offsets = [0, 0], sizes = [8, 128], strides = [1, 1]} : vector<8x384xf32> to vector<8x128xf32>
    %110 = arith.addf %108, %109 : vector<8x128xf32>
    %111 = arith.negf %110 : vector<8x128xf32>
    %112 = math.exp %111 : vector<8x128xf32>
    %cst_42 = arith.constant 1.000000e+00 : f32
    %113 = vector.broadcast %cst_42 : f32 to vector<8x128xf32>
    %114 = arith.addf %113, %112 : vector<8x128xf32>
    %115 = arith.divf %113, %114 : vector<8x128xf32>
    %116 = vector.extract_strided_slice %105 {offsets = [0, 128], sizes = [8, 128], strides = [1, 1]} : vector<8x384xf32> to vector<8x128xf32>
    %117 = vector.extract_strided_slice %107 {offsets = [0, 128], sizes = [8, 128], strides = [1, 1]} : vector<8x384xf32> to vector<8x128xf32>
    %118 = arith.addf %116, %117 : vector<8x128xf32>
    %119 = arith.negf %118 : vector<8x128xf32>
    %120 = math.exp %119 : vector<8x128xf32>
    %cst_43 = arith.constant 1.000000e+00 : f32
    %121 = vector.broadcast %cst_43 : f32 to vector<8x128xf32>
    %122 = arith.addf %121, %120 : vector<8x128xf32>
    %123 = arith.divf %121, %122 : vector<8x128xf32>
    %124 = vector.extract_strided_slice %105 {offsets = [0, 256], sizes = [8, 128], strides = [1, 1]} : vector<8x384xf32> to vector<8x128xf32>
    %125 = vector.extract_strided_slice %107 {offsets = [0, 256], sizes = [8, 128], strides = [1, 1]} : vector<8x384xf32> to vector<8x128xf32>
    %126 = vector.broadcast %7 : vector<1x128xf32> to vector<8x128xf32>
    %127 = arith.addf %125, %126 : vector<8x128xf32>
    %128 = arith.mulf %115, %127 : vector<8x128xf32>
    %129 = arith.addf %124, %128 : vector<8x128xf32>
    %130 = math.tanh %129 : vector<8x128xf32>
    %cst_44 = arith.constant 1.000000e+00 : f32
    %131 = vector.broadcast %cst_44 : f32 to vector<8x128xf32>
    %132 = arith.subf %131, %123 : vector<8x128xf32>
    %133 = arith.mulf %132, %130 : vector<8x128xf32>
    %134 = arith.mulf %123, %103 : vector<8x128xf32>
    %135 = arith.addf %133, %134 : vector<8x128xf32>
    %c24_45 = arith.constant 24 : index
    %c0_46 = arith.constant 0 : index
    %136 = vector.load %arg18[%c24_45, %c0_46] : memref<64x128xf32, #tpu.memory_space<vmem>>, vector<8x128xf32>
    tpu.vector_store %arg18[%c24_45, %c0_46], %135 {strides = array<i32>} : memref<64x128xf32, #tpu.memory_space<vmem>>, vector<8x128xf32>,
    %c32 = arith.constant 32 : index
    %c0_47 = arith.constant 0 : index
    %137 = vector.load %arg19[%c32, %c0_47] : memref<64x384xf32, #tpu.memory_space<vmem>>, vector<8x384xf32>
    %c0_48 = arith.constant 0 : index
    %c0_49 = arith.constant 0 : index
    %138 = vector.load %arg2[%c0_48, %c0_49] : memref<128x384xf32, #tpu.memory_space<vmem>>, vector<128x384xf32>
    %cst_50 = arith.constant dense<0.000000e+00> : vector<8x384xf32>
    %139 = tpu.matmul %135, %138, %cst_50 {dimension_numbers = #tpu.dot_dimension_numbers<[1], [0], [0], [1], [0, 0, 1, 1], [], []>} : vector<8x128xf32>, vector<128x384xf32>, vector<8x384xf32> -> vector<8x384xf32>
    %140 = vector.extract_strided_slice %137 {offsets = [0, 0], sizes = [8, 128], strides = [1, 1]} : vector<8x384xf32> to vector<8x128xf32>
    %141 = vector.extract_strided_slice %139 {offsets = [0, 0], sizes = [8, 128], strides = [1, 1]} : vector<8x384xf32> to vector<8x128xf32>
    %142 = arith.addf %140, %141 : vector<8x128xf32>
    %143 = arith.negf %142 : vector<8x128xf32>
    %144 = math.exp %143 : vector<8x128xf32>
    %cst_51 = arith.constant 1.000000e+00 : f32
    %145 = vector.broadcast %cst_51 : f32 to vector<8x128xf32>
    %146 = arith.addf %145, %144 : vector<8x128xf32>
    %147 = arith.divf %145, %146 : vector<8x128xf32>
    %148 = vector.extract_strided_slice %137 {offsets = [0, 128], sizes = [8, 128], strides = [1, 1]} : vector<8x384xf32> to vector<8x128xf32>
    %149 = vector.extract_strided_slice %139 {offsets = [0, 128], sizes = [8, 128], strides = [1, 1]} : vector<8x384xf32> to vector<8x128xf32>
    %150 = arith.addf %148, %149 : vector<8x128xf32>
    %151 = arith.negf %150 : vector<8x128xf32>
    %152 = math.exp %151 : vector<8x128xf32>
    %cst_52 = arith.constant 1.000000e+00 : f32
    %153 = vector.broadcast %cst_52 : f32 to vector<8x128xf32>
    %154 = arith.addf %153, %152 : vector<8x128xf32>
    %155 = arith.divf %153, %154 : vector<8x128xf32>
    %156 = vector.extract_strided_slice %137 {offsets = [0, 256], sizes = [8, 128], strides = [1, 1]} : vector<8x384xf32> to vector<8x128xf32>
    %157 = vector.extract_strided_slice %139 {offsets = [0, 256], sizes = [8, 128], strides = [1, 1]} : vector<8x384xf32> to vector<8x128xf32>
    %158 = vector.broadcast %7 : vector<1x128xf32> to vector<8x128xf32>
    %159 = arith.addf %157, %158 : vector<8x128xf32>
    %160 = arith.mulf %147, %159 : vector<8x128xf32>
    %161 = arith.addf %156, %160 : vector<8x128xf32>
    %162 = math.tanh %161 : vector<8x128xf32>
    %cst_53 = arith.constant 1.000000e+00 : f32
    %163 = vector.broadcast %cst_53 : f32 to vector<8x128xf32>
    %164 = arith.subf %163, %155 : vector<8x128xf32>
    %165 = arith.mulf %164, %162 : vector<8x128xf32>
    %166 = arith.mulf %155, %135 : vector<8x128xf32>
    %167 = arith.addf %165, %166 : vector<8x128xf32>
    %c32_54 = arith.constant 32 : index
    %c0_55 = arith.constant 0 : index
    %168 = vector.load %arg18[%c32_54, %c0_55] : memref<64x128xf32, #tpu.memory_space<vmem>>, vector<8x128xf32>
    tpu.vector_store %arg18[%c32_54, %c0_55], %167 {strides = array<i32>} : memref<64x128xf32, #tpu.memory_space<vmem>>, vector<8x128xf32>,
    %c40 = arith.constant 40 : index
    %c0_56 = arith.constant 0 : index
    %169 = vector.load %arg19[%c40, %c0_56] : memref<64x384xf32, #tpu.memory_space<vmem>>, vector<8x384xf32>
    %c0_57 = arith.constant 0 : index
    %c0_58 = arith.constant 0 : index
    %170 = vector.load %arg2[%c0_57, %c0_58] : memref<128x384xf32, #tpu.memory_space<vmem>>, vector<128x384xf32>
    %cst_59 = arith.constant dense<0.000000e+00> : vector<8x384xf32>
    %171 = tpu.matmul %167, %170, %cst_59 {dimension_numbers = #tpu.dot_dimension_numbers<[1], [0], [0], [1], [0, 0, 1, 1], [], []>} : vector<8x128xf32>, vector<128x384xf32>, vector<8x384xf32> -> vector<8x384xf32>
    %172 = vector.extract_strided_slice %169 {offsets = [0, 0], sizes = [8, 128], strides = [1, 1]} : vector<8x384xf32> to vector<8x128xf32>
    %173 = vector.extract_strided_slice %171 {offsets = [0, 0], sizes = [8, 128], strides = [1, 1]} : vector<8x384xf32> to vector<8x128xf32>
    %174 = arith.addf %172, %173 : vector<8x128xf32>
    %175 = arith.negf %174 : vector<8x128xf32>
    %176 = math.exp %175 : vector<8x128xf32>
    %cst_60 = arith.constant 1.000000e+00 : f32
    %177 = vector.broadcast %cst_60 : f32 to vector<8x128xf32>
    %178 = arith.addf %177, %176 : vector<8x128xf32>
    %179 = arith.divf %177, %178 : vector<8x128xf32>
    %180 = vector.extract_strided_slice %169 {offsets = [0, 128], sizes = [8, 128], strides = [1, 1]} : vector<8x384xf32> to vector<8x128xf32>
    %181 = vector.extract_strided_slice %171 {offsets = [0, 128], sizes = [8, 128], strides = [1, 1]} : vector<8x384xf32> to vector<8x128xf32>
    %182 = arith.addf %180, %181 : vector<8x128xf32>
    %183 = arith.negf %182 : vector<8x128xf32>
    %184 = math.exp %183 : vector<8x128xf32>
    %cst_61 = arith.constant 1.000000e+00 : f32
    %185 = vector.broadcast %cst_61 : f32 to vector<8x128xf32>
    %186 = arith.addf %185, %184 : vector<8x128xf32>
    %187 = arith.divf %185, %186 : vector<8x128xf32>
    %188 = vector.extract_strided_slice %169 {offsets = [0, 256], sizes = [8, 128], strides = [1, 1]} : vector<8x384xf32> to vector<8x128xf32>
    %189 = vector.extract_strided_slice %171 {offsets = [0, 256], sizes = [8, 128], strides = [1, 1]} : vector<8x384xf32> to vector<8x128xf32>
    %190 = vector.broadcast %7 : vector<1x128xf32> to vector<8x128xf32>
    %191 = arith.addf %189, %190 : vector<8x128xf32>
    %192 = arith.mulf %179, %191 : vector<8x128xf32>
    %193 = arith.addf %188, %192 : vector<8x128xf32>
    %194 = math.tanh %193 : vector<8x128xf32>
    %cst_62 = arith.constant 1.000000e+00 : f32
    %195 = vector.broadcast %cst_62 : f32 to vector<8x128xf32>
    %196 = arith.subf %195, %187 : vector<8x128xf32>
    %197 = arith.mulf %196, %194 : vector<8x128xf32>
    %198 = arith.mulf %187, %167 : vector<8x128xf32>
    %199 = arith.addf %197, %198 : vector<8x128xf32>
    %c40_63 = arith.constant 40 : index
    %c0_64 = arith.constant 0 : index
    %200 = vector.load %arg18[%c40_63, %c0_64] : memref<64x128xf32, #tpu.memory_space<vmem>>, vector<8x128xf32>
    tpu.vector_store %arg18[%c40_63, %c0_64], %199 {strides = array<i32>} : memref<64x128xf32, #tpu.memory_space<vmem>>, vector<8x128xf32>,
    %c48 = arith.constant 48 : index
    %c0_65 = arith.constant 0 : index
    %201 = vector.load %arg19[%c48, %c0_65] : memref<64x384xf32, #tpu.memory_space<vmem>>, vector<8x384xf32>
    %c0_66 = arith.constant 0 : index
    %c0_67 = arith.constant 0 : index
    %202 = vector.load %arg2[%c0_66, %c0_67] : memref<128x384xf32, #tpu.memory_space<vmem>>, vector<128x384xf32>
    %cst_68 = arith.constant dense<0.000000e+00> : vector<8x384xf32>
    %203 = tpu.matmul %199, %202, %cst_68 {dimension_numbers = #tpu.dot_dimension_numbers<[1], [0], [0], [1], [0, 0, 1, 1], [], []>} : vector<8x128xf32>, vector<128x384xf32>, vector<8x384xf32> -> vector<8x384xf32>
    %204 = vector.extract_strided_slice %201 {offsets = [0, 0], sizes = [8, 128], strides = [1, 1]} : vector<8x384xf32> to vector<8x128xf32>
    %205 = vector.extract_strided_slice %203 {offsets = [0, 0], sizes = [8, 128], strides = [1, 1]} : vector<8x384xf32> to vector<8x128xf32>
    %206 = arith.addf %204, %205 : vector<8x128xf32>
    %207 = arith.negf %206 : vector<8x128xf32>
    %208 = math.exp %207 : vector<8x128xf32>
    %cst_69 = arith.constant 1.000000e+00 : f32
    %209 = vector.broadcast %cst_69 : f32 to vector<8x128xf32>
    %210 = arith.addf %209, %208 : vector<8x128xf32>
    %211 = arith.divf %209, %210 : vector<8x128xf32>
    %212 = vector.extract_strided_slice %201 {offsets = [0, 128], sizes = [8, 128], strides = [1, 1]} : vector<8x384xf32> to vector<8x128xf32>
    %213 = vector.extract_strided_slice %203 {offsets = [0, 128], sizes = [8, 128], strides = [1, 1]} : vector<8x384xf32> to vector<8x128xf32>
    %214 = arith.addf %212, %213 : vector<8x128xf32>
    %215 = arith.negf %214 : vector<8x128xf32>
    %216 = math.exp %215 : vector<8x128xf32>
    %cst_70 = arith.constant 1.000000e+00 : f32
    %217 = vector.broadcast %cst_70 : f32 to vector<8x128xf32>
    %218 = arith.addf %217, %216 : vector<8x128xf32>
    %219 = arith.divf %217, %218 : vector<8x128xf32>
    %220 = vector.extract_strided_slice %201 {offsets = [0, 256], sizes = [8, 128], strides = [1, 1]} : vector<8x384xf32> to vector<8x128xf32>
    %221 = vector.extract_strided_slice %203 {offsets = [0, 256], sizes = [8, 128], strides = [1, 1]} : vector<8x384xf32> to vector<8x128xf32>
    %222 = vector.broadcast %7 : vector<1x128xf32> to vector<8x128xf32>
    %223 = arith.addf %221, %222 : vector<8x128xf32>
    %224 = arith.mulf %211, %223 : vector<8x128xf32>
    %225 = arith.addf %220, %224 : vector<8x128xf32>
    %226 = math.tanh %225 : vector<8x128xf32>
    %cst_71 = arith.constant 1.000000e+00 : f32
    %227 = vector.broadcast %cst_71 : f32 to vector<8x128xf32>
    %228 = arith.subf %227, %219 : vector<8x128xf32>
    %229 = arith.mulf %228, %226 : vector<8x128xf32>
    %230 = arith.mulf %219, %199 : vector<8x128xf32>
    %231 = arith.addf %229, %230 : vector<8x128xf32>
    %c48_72 = arith.constant 48 : index
    %c0_73 = arith.constant 0 : index
    %232 = vector.load %arg18[%c48_72, %c0_73] : memref<64x128xf32, #tpu.memory_space<vmem>>, vector<8x128xf32>
    tpu.vector_store %arg18[%c48_72, %c0_73], %231 {strides = array<i32>} : memref<64x128xf32, #tpu.memory_space<vmem>>, vector<8x128xf32>,
    %c56 = arith.constant 56 : index
    %c0_74 = arith.constant 0 : index
    %233 = vector.load %arg19[%c56, %c0_74] : memref<64x384xf32, #tpu.memory_space<vmem>>, vector<8x384xf32>
    %c0_75 = arith.constant 0 : index
    %c0_76 = arith.constant 0 : index
    %234 = vector.load %arg2[%c0_75, %c0_76] : memref<128x384xf32, #tpu.memory_space<vmem>>, vector<128x384xf32>
    %cst_77 = arith.constant dense<0.000000e+00> : vector<8x384xf32>
    %235 = tpu.matmul %231, %234, %cst_77 {dimension_numbers = #tpu.dot_dimension_numbers<[1], [0], [0], [1], [0, 0, 1, 1], [], []>} : vector<8x128xf32>, vector<128x384xf32>, vector<8x384xf32> -> vector<8x384xf32>
    %236 = vector.extract_strided_slice %233 {offsets = [0, 0], sizes = [8, 128], strides = [1, 1]} : vector<8x384xf32> to vector<8x128xf32>
    %237 = vector.extract_strided_slice %235 {offsets = [0, 0], sizes = [8, 128], strides = [1, 1]} : vector<8x384xf32> to vector<8x128xf32>
    %238 = arith.addf %236, %237 : vector<8x128xf32>
    %239 = arith.negf %238 : vector<8x128xf32>
    %240 = math.exp %239 : vector<8x128xf32>
    %cst_78 = arith.constant 1.000000e+00 : f32
    %241 = vector.broadcast %cst_78 : f32 to vector<8x128xf32>
    %242 = arith.addf %241, %240 : vector<8x128xf32>
    %243 = arith.divf %241, %242 : vector<8x128xf32>
    %244 = vector.extract_strided_slice %233 {offsets = [0, 128], sizes = [8, 128], strides = [1, 1]} : vector<8x384xf32> to vector<8x128xf32>
    %245 = vector.extract_strided_slice %235 {offsets = [0, 128], sizes = [8, 128], strides = [1, 1]} : vector<8x384xf32> to vector<8x128xf32>
    %246 = arith.addf %244, %245 : vector<8x128xf32>
    %247 = arith.negf %246 : vector<8x128xf32>
    %248 = math.exp %247 : vector<8x128xf32>
    %cst_79 = arith.constant 1.000000e+00 : f32
    %249 = vector.broadcast %cst_79 : f32 to vector<8x128xf32>
    %250 = arith.addf %249, %248 : vector<8x128xf32>
    %251 = arith.divf %249, %250 : vector<8x128xf32>
    %252 = vector.extract_strided_slice %233 {offsets = [0, 256], sizes = [8, 128], strides = [1, 1]} : vector<8x384xf32> to vector<8x128xf32>
    %253 = vector.extract_strided_slice %235 {offsets = [0, 256], sizes = [8, 128], strides = [1, 1]} : vector<8x384xf32> to vector<8x128xf32>
    %254 = vector.broadcast %7 : vector<1x128xf32> to vector<8x128xf32>
    %255 = arith.addf %253, %254 : vector<8x128xf32>
    %256 = arith.mulf %243, %255 : vector<8x128xf32>
    %257 = arith.addf %252, %256 : vector<8x128xf32>
    %258 = math.tanh %257 : vector<8x128xf32>
    %cst_80 = arith.constant 1.000000e+00 : f32
    %259 = vector.broadcast %cst_80 : f32 to vector<8x128xf32>
    %260 = arith.subf %259, %251 : vector<8x128xf32>
    %261 = arith.mulf %260, %258 : vector<8x128xf32>
    %262 = arith.mulf %251, %231 : vector<8x128xf32>
    %263 = arith.addf %261, %262 : vector<8x128xf32>
    %c56_81 = arith.constant 56 : index
    %c0_82 = arith.constant 0 : index
    %264 = vector.load %arg18[%c56_81, %c0_82] : memref<64x128xf32, #tpu.memory_space<vmem>>, vector<8x128xf32>
    tpu.vector_store %arg18[%c56_81, %c0_82], %263 {strides = array<i32>} : memref<64x128xf32, #tpu.memory_space<vmem>>, vector<8x128xf32>,
    %c0_83 = arith.constant 0 : index
    %c0_84 = arith.constant 0 : index
    %265 = vector.load %arg18[%c0_83, %c0_84] : memref<64x128xf32, #tpu.memory_space<vmem>>, vector<64x128xf32>
    %c0_85 = arith.constant 0 : index
    %c0_86 = arith.constant 0 : index
    %266 = vector.load %arg5[%c0_85, %c0_86] : memref<128x384xf32, #tpu.memory_space<vmem>>, vector<128x384xf32>
    %cst_87 = arith.constant dense<0.000000e+00> : vector<64x384xf32>
    %267 = tpu.matmul %265, %266, %cst_87 {dimension_numbers = #tpu.dot_dimension_numbers<[1], [0], [0], [1], [0, 0, 1, 1], [], []>} : vector<64x128xf32>, vector<128x384xf32>, vector<64x384xf32> -> vector<64x384xf32>
    %c0_88 = arith.constant 0 : index
    %c0_89 = arith.constant 0 : index
    %268 = vector.load %arg7[%c0_88, %c0_89] : memref<1x384xf32, #tpu.memory_space<vmem>>, vector<1x384xf32>
    %269 = vector.broadcast %268 : vector<1x384xf32> to vector<64x384xf32>
    %270 = arith.addf %267, %269 : vector<64x384xf32>
    %c0_90 = arith.constant 0 : index
    %c0_91 = arith.constant 0 : index
    %271 = vector.load %arg19[%c0_90, %c0_91] : memref<64x384xf32, #tpu.memory_space<vmem>>, vector<64x384xf32>
    tpu.vector_store %arg19[%c0_90, %c0_91], %270 {strides = array<i32>} : memref<64x384xf32, #tpu.memory_space<vmem>>, vector<64x384xf32>,
    %c0_92 = arith.constant 0 : index
    %c0_93 = arith.constant 0 : index
    %272 = vector.load %arg8[%c0_92, %c0_93] : memref<1x128xf32, #tpu.memory_space<vmem>>, vector<1x128xf32>
    %cst_94 = arith.constant 0.000000e+00 : f32
    %273 = vector.broadcast %cst_94 : f32 to vector<8x128xf32>
    %c0_95 = arith.constant 0 : index
    %c0_96 = arith.constant 0 : index
    %274 = vector.load %arg19[%c0_95, %c0_96] : memref<64x384xf32, #tpu.memory_space<vmem>>, vector<8x384xf32>
    %c0_97 = arith.constant 0 : index
    %c0_98 = arith.constant 0 : index
    %275 = vector.load %arg6[%c0_97, %c0_98] : memref<128x384xf32, #tpu.memory_space<vmem>>, vector<128x384xf32>
    %cst_99 = arith.constant dense<0.000000e+00> : vector<8x384xf32>
    %276 = tpu.matmul %273, %275, %cst_99 {dimension_numbers = #tpu.dot_dimension_numbers<[1], [0], [0], [1], [0, 0, 1, 1], [], []>} : vector<8x128xf32>, vector<128x384xf32>, vector<8x384xf32> -> vector<8x384xf32>
    %277 = vector.extract_strided_slice %274 {offsets = [0, 0], sizes = [8, 128], strides = [1, 1]} : vector<8x384xf32> to vector<8x128xf32>
    %278 = vector.extract_strided_slice %276 {offsets = [0, 0], sizes = [8, 128], strides = [1, 1]} : vector<8x384xf32> to vector<8x128xf32>
    %279 = arith.addf %277, %278 : vector<8x128xf32>
    %280 = arith.negf %279 : vector<8x128xf32>
    %281 = math.exp %280 : vector<8x128xf32>
    %cst_100 = arith.constant 1.000000e+00 : f32
    %282 = vector.broadcast %cst_100 : f32 to vector<8x128xf32>
    %283 = arith.addf %282, %281 : vector<8x128xf32>
    %284 = arith.divf %282, %283 : vector<8x128xf32>
    %285 = vector.extract_strided_slice %274 {offsets = [0, 128], sizes = [8, 128], strides = [1, 1]} : vector<8x384xf32> to vector<8x128xf32>
    %286 = vector.extract_strided_slice %276 {offsets = [0, 128], sizes = [8, 128], strides = [1, 1]} : vector<8x384xf32> to vector<8x128xf32>
    %287 = arith.addf %285, %286 : vector<8x128xf32>
    %288 = arith.negf %287 : vector<8x128xf32>
    %289 = math.exp %288 : vector<8x128xf32>
    %cst_101 = arith.constant 1.000000e+00 : f32
    %290 = vector.broadcast %cst_101 : f32 to vector<8x128xf32>
    %291 = arith.addf %290, %289 : vector<8x128xf32>
    %292 = arith.divf %290, %291 : vector<8x128xf32>
    %293 = vector.extract_strided_slice %274 {offsets = [0, 256], sizes = [8, 128], strides = [1, 1]} : vector<8x384xf32> to vector<8x128xf32>
    %294 = vector.extract_strided_slice %276 {offsets = [0, 256], sizes = [8, 128], strides = [1, 1]} : vector<8x384xf32> to vector<8x128xf32>
    %295 = vector.broadcast %272 : vector<1x128xf32> to vector<8x128xf32>
    %296 = arith.addf %294, %295 : vector<8x128xf32>
    %297 = arith.mulf %284, %296 : vector<8x128xf32>
    %298 = arith.addf %293, %297 : vector<8x128xf32>
    %299 = math.tanh %298 : vector<8x128xf32>
    %cst_102 = arith.constant 1.000000e+00 : f32
    %300 = vector.broadcast %cst_102 : f32 to vector<8x128xf32>
    %301 = arith.subf %300, %292 : vector<8x128xf32>
    %302 = arith.mulf %301, %299 : vector<8x128xf32>
    %303 = arith.mulf %292, %273 : vector<8x128xf32>
    %304 = arith.addf %302, %303 : vector<8x128xf32>
    %c0_103 = arith.constant 0 : index
    %c0_104 = arith.constant 0 : index
    %305 = vector.load %arg18[%c0_103, %c0_104] : memref<64x128xf32, #tpu.memory_space<vmem>>, vector<8x128xf32>
    tpu.vector_store %arg18[%c0_103, %c0_104], %304 {strides = array<i32>} : memref<64x128xf32, #tpu.memory_space<vmem>>, vector<8x128xf32>,
    %c8_105 = arith.constant 8 : index
    %c0_106 = arith.constant 0 : index
    %306 = vector.load %arg19[%c8_105, %c0_106] : memref<64x384xf32, #tpu.memory_space<vmem>>, vector<8x384xf32>
    %c0_107 = arith.constant 0 : index
    %c0_108 = arith.constant 0 : index
    %307 = vector.load %arg6[%c0_107, %c0_108] : memref<128x384xf32, #tpu.memory_space<vmem>>, vector<128x384xf32>
    %cst_109 = arith.constant dense<0.000000e+00> : vector<8x384xf32>
    %308 = tpu.matmul %304, %307, %cst_109 {dimension_numbers = #tpu.dot_dimension_numbers<[1], [0], [0], [1], [0, 0, 1, 1], [], []>} : vector<8x128xf32>, vector<128x384xf32>, vector<8x384xf32> -> vector<8x384xf32>
    %309 = vector.extract_strided_slice %306 {offsets = [0, 0], sizes = [8, 128], strides = [1, 1]} : vector<8x384xf32> to vector<8x128xf32>
    %310 = vector.extract_strided_slice %308 {offsets = [0, 0], sizes = [8, 128], strides = [1, 1]} : vector<8x384xf32> to vector<8x128xf32>
    %311 = arith.addf %309, %310 : vector<8x128xf32>
    %312 = arith.negf %311 : vector<8x128xf32>
    %313 = math.exp %312 : vector<8x128xf32>
    %cst_110 = arith.constant 1.000000e+00 : f32
    %314 = vector.broadcast %cst_110 : f32 to vector<8x128xf32>
    %315 = arith.addf %314, %313 : vector<8x128xf32>
    %316 = arith.divf %314, %315 : vector<8x128xf32>
    %317 = vector.extract_strided_slice %306 {offsets = [0, 128], sizes = [8, 128], strides = [1, 1]} : vector<8x384xf32> to vector<8x128xf32>
    %318 = vector.extract_strided_slice %308 {offsets = [0, 128], sizes = [8, 128], strides = [1, 1]} : vector<8x384xf32> to vector<8x128xf32>
    %319 = arith.addf %317, %318 : vector<8x128xf32>
    %320 = arith.negf %319 : vector<8x128xf32>
    %321 = math.exp %320 : vector<8x128xf32>
    %cst_111 = arith.constant 1.000000e+00 : f32
    %322 = vector.broadcast %cst_111 : f32 to vector<8x128xf32>
    %323 = arith.addf %322, %321 : vector<8x128xf32>
    %324 = arith.divf %322, %323 : vector<8x128xf32>
    %325 = vector.extract_strided_slice %306 {offsets = [0, 256], sizes = [8, 128], strides = [1, 1]} : vector<8x384xf32> to vector<8x128xf32>
    %326 = vector.extract_strided_slice %308 {offsets = [0, 256], sizes = [8, 128], strides = [1, 1]} : vector<8x384xf32> to vector<8x128xf32>
    %327 = vector.broadcast %272 : vector<1x128xf32> to vector<8x128xf32>
    %328 = arith.addf %326, %327 : vector<8x128xf32>
    %329 = arith.mulf %316, %328 : vector<8x128xf32>
    %330 = arith.addf %325, %329 : vector<8x128xf32>
    %331 = math.tanh %330 : vector<8x128xf32>
    %cst_112 = arith.constant 1.000000e+00 : f32
    %332 = vector.broadcast %cst_112 : f32 to vector<8x128xf32>
    %333 = arith.subf %332, %324 : vector<8x128xf32>
    %334 = arith.mulf %333, %331 : vector<8x128xf32>
    %335 = arith.mulf %324, %304 : vector<8x128xf32>
    %336 = arith.addf %334, %335 : vector<8x128xf32>
    %c8_113 = arith.constant 8 : index
    %c0_114 = arith.constant 0 : index
    %337 = vector.load %arg18[%c8_113, %c0_114] : memref<64x128xf32, #tpu.memory_space<vmem>>, vector<8x128xf32>
    tpu.vector_store %arg18[%c8_113, %c0_114], %336 {strides = array<i32>} : memref<64x128xf32, #tpu.memory_space<vmem>>, vector<8x128xf32>,
    %c16_115 = arith.constant 16 : index
    %c0_116 = arith.constant 0 : index
    %338 = vector.load %arg19[%c16_115, %c0_116] : memref<64x384xf32, #tpu.memory_space<vmem>>, vector<8x384xf32>
    %c0_117 = arith.constant 0 : index
    %c0_118 = arith.constant 0 : index
    %339 = vector.load %arg6[%c0_117, %c0_118] : memref<128x384xf32, #tpu.memory_space<vmem>>, vector<128x384xf32>
    %cst_119 = arith.constant dense<0.000000e+00> : vector<8x384xf32>
    %340 = tpu.matmul %336, %339, %cst_119 {dimension_numbers = #tpu.dot_dimension_numbers<[1], [0], [0], [1], [0, 0, 1, 1], [], []>} : vector<8x128xf32>, vector<128x384xf32>, vector<8x384xf32> -> vector<8x384xf32>
    %341 = vector.extract_strided_slice %338 {offsets = [0, 0], sizes = [8, 128], strides = [1, 1]} : vector<8x384xf32> to vector<8x128xf32>
    %342 = vector.extract_strided_slice %340 {offsets = [0, 0], sizes = [8, 128], strides = [1, 1]} : vector<8x384xf32> to vector<8x128xf32>
    %343 = arith.addf %341, %342 : vector<8x128xf32>
    %344 = arith.negf %343 : vector<8x128xf32>
    %345 = math.exp %344 : vector<8x128xf32>
    %cst_120 = arith.constant 1.000000e+00 : f32
    %346 = vector.broadcast %cst_120 : f32 to vector<8x128xf32>
    %347 = arith.addf %346, %345 : vector<8x128xf32>
    %348 = arith.divf %346, %347 : vector<8x128xf32>
    %349 = vector.extract_strided_slice %338 {offsets = [0, 128], sizes = [8, 128], strides = [1, 1]} : vector<8x384xf32> to vector<8x128xf32>
    %350 = vector.extract_strided_slice %340 {offsets = [0, 128], sizes = [8, 128], strides = [1, 1]} : vector<8x384xf32> to vector<8x128xf32>
    %351 = arith.addf %349, %350 : vector<8x128xf32>
    %352 = arith.negf %351 : vector<8x128xf32>
    %353 = math.exp %352 : vector<8x128xf32>
    %cst_121 = arith.constant 1.000000e+00 : f32
    %354 = vector.broadcast %cst_121 : f32 to vector<8x128xf32>
    %355 = arith.addf %354, %353 : vector<8x128xf32>
    %356 = arith.divf %354, %355 : vector<8x128xf32>
    %357 = vector.extract_strided_slice %338 {offsets = [0, 256], sizes = [8, 128], strides = [1, 1]} : vector<8x384xf32> to vector<8x128xf32>
    %358 = vector.extract_strided_slice %340 {offsets = [0, 256], sizes = [8, 128], strides = [1, 1]} : vector<8x384xf32> to vector<8x128xf32>
    %359 = vector.broadcast %272 : vector<1x128xf32> to vector<8x128xf32>
    %360 = arith.addf %358, %359 : vector<8x128xf32>
    %361 = arith.mulf %348, %360 : vector<8x128xf32>
    %362 = arith.addf %357, %361 : vector<8x128xf32>
    %363 = math.tanh %362 : vector<8x128xf32>
    %cst_122 = arith.constant 1.000000e+00 : f32
    %364 = vector.broadcast %cst_122 : f32 to vector<8x128xf32>
    %365 = arith.subf %364, %356 : vector<8x128xf32>
    %366 = arith.mulf %365, %363 : vector<8x128xf32>
    %367 = arith.mulf %356, %336 : vector<8x128xf32>
    %368 = arith.addf %366, %367 : vector<8x128xf32>
    %c16_123 = arith.constant 16 : index
    %c0_124 = arith.constant 0 : index
    %369 = vector.load %arg18[%c16_123, %c0_124] : memref<64x128xf32, #tpu.memory_space<vmem>>, vector<8x128xf32>
    tpu.vector_store %arg18[%c16_123, %c0_124], %368 {strides = array<i32>} : memref<64x128xf32, #tpu.memory_space<vmem>>, vector<8x128xf32>,
    %c24_125 = arith.constant 24 : index
    %c0_126 = arith.constant 0 : index
    %370 = vector.load %arg19[%c24_125, %c0_126] : memref<64x384xf32, #tpu.memory_space<vmem>>, vector<8x384xf32>
    %c0_127 = arith.constant 0 : index
    %c0_128 = arith.constant 0 : index
    %371 = vector.load %arg6[%c0_127, %c0_128] : memref<128x384xf32, #tpu.memory_space<vmem>>, vector<128x384xf32>
    %cst_129 = arith.constant dense<0.000000e+00> : vector<8x384xf32>
    %372 = tpu.matmul %368, %371, %cst_129 {dimension_numbers = #tpu.dot_dimension_numbers<[1], [0], [0], [1], [0, 0, 1, 1], [], []>} : vector<8x128xf32>, vector<128x384xf32>, vector<8x384xf32> -> vector<8x384xf32>
    %373 = vector.extract_strided_slice %370 {offsets = [0, 0], sizes = [8, 128], strides = [1, 1]} : vector<8x384xf32> to vector<8x128xf32>
    %374 = vector.extract_strided_slice %372 {offsets = [0, 0], sizes = [8, 128], strides = [1, 1]} : vector<8x384xf32> to vector<8x128xf32>
    %375 = arith.addf %373, %374 : vector<8x128xf32>
    %376 = arith.negf %375 : vector<8x128xf32>
    %377 = math.exp %376 : vector<8x128xf32>
    %cst_130 = arith.constant 1.000000e+00 : f32
    %378 = vector.broadcast %cst_130 : f32 to vector<8x128xf32>
    %379 = arith.addf %378, %377 : vector<8x128xf32>
    %380 = arith.divf %378, %379 : vector<8x128xf32>
    %381 = vector.extract_strided_slice %370 {offsets = [0, 128], sizes = [8, 128], strides = [1, 1]} : vector<8x384xf32> to vector<8x128xf32>
    %382 = vector.extract_strided_slice %372 {offsets = [0, 128], sizes = [8, 128], strides = [1, 1]} : vector<8x384xf32> to vector<8x128xf32>
    %383 = arith.addf %381, %382 : vector<8x128xf32>
    %384 = arith.negf %383 : vector<8x128xf32>
    %385 = math.exp %384 : vector<8x128xf32>
    %cst_131 = arith.constant 1.000000e+00 : f32
    %386 = vector.broadcast %cst_131 : f32 to vector<8x128xf32>
    %387 = arith.addf %386, %385 : vector<8x128xf32>
    %388 = arith.divf %386, %387 : vector<8x128xf32>
    %389 = vector.extract_strided_slice %370 {offsets = [0, 256], sizes = [8, 128], strides = [1, 1]} : vector<8x384xf32> to vector<8x128xf32>
    %390 = vector.extract_strided_slice %372 {offsets = [0, 256], sizes = [8, 128], strides = [1, 1]} : vector<8x384xf32> to vector<8x128xf32>
    %391 = vector.broadcast %272 : vector<1x128xf32> to vector<8x128xf32>
    %392 = arith.addf %390, %391 : vector<8x128xf32>
    %393 = arith.mulf %380, %392 : vector<8x128xf32>
    %394 = arith.addf %389, %393 : vector<8x128xf32>
    %395 = math.tanh %394 : vector<8x128xf32>
    %cst_132 = arith.constant 1.000000e+00 : f32
    %396 = vector.broadcast %cst_132 : f32 to vector<8x128xf32>
    %397 = arith.subf %396, %388 : vector<8x128xf32>
    %398 = arith.mulf %397, %395 : vector<8x128xf32>
    %399 = arith.mulf %388, %368 : vector<8x128xf32>
    %400 = arith.addf %398, %399 : vector<8x128xf32>
    %c24_133 = arith.constant 24 : index
    %c0_134 = arith.constant 0 : index
    %401 = vector.load %arg18[%c24_133, %c0_134] : memref<64x128xf32, #tpu.memory_space<vmem>>, vector<8x128xf32>
    tpu.vector_store %arg18[%c24_133, %c0_134], %400 {strides = array<i32>} : memref<64x128xf32, #tpu.memory_space<vmem>>, vector<8x128xf32>,
    %c32_135 = arith.constant 32 : index
    %c0_136 = arith.constant 0 : index
    %402 = vector.load %arg19[%c32_135, %c0_136] : memref<64x384xf32, #tpu.memory_space<vmem>>, vector<8x384xf32>
    %c0_137 = arith.constant 0 : index
    %c0_138 = arith.constant 0 : index
    %403 = vector.load %arg6[%c0_137, %c0_138] : memref<128x384xf32, #tpu.memory_space<vmem>>, vector<128x384xf32>
    %cst_139 = arith.constant dense<0.000000e+00> : vector<8x384xf32>
    %404 = tpu.matmul %400, %403, %cst_139 {dimension_numbers = #tpu.dot_dimension_numbers<[1], [0], [0], [1], [0, 0, 1, 1], [], []>} : vector<8x128xf32>, vector<128x384xf32>, vector<8x384xf32> -> vector<8x384xf32>
    %405 = vector.extract_strided_slice %402 {offsets = [0, 0], sizes = [8, 128], strides = [1, 1]} : vector<8x384xf32> to vector<8x128xf32>
    %406 = vector.extract_strided_slice %404 {offsets = [0, 0], sizes = [8, 128], strides = [1, 1]} : vector<8x384xf32> to vector<8x128xf32>
    %407 = arith.addf %405, %406 : vector<8x128xf32>
    %408 = arith.negf %407 : vector<8x128xf32>
    %409 = math.exp %408 : vector<8x128xf32>
    %cst_140 = arith.constant 1.000000e+00 : f32
    %410 = vector.broadcast %cst_140 : f32 to vector<8x128xf32>
    %411 = arith.addf %410, %409 : vector<8x128xf32>
    %412 = arith.divf %410, %411 : vector<8x128xf32>
    %413 = vector.extract_strided_slice %402 {offsets = [0, 128], sizes = [8, 128], strides = [1, 1]} : vector<8x384xf32> to vector<8x128xf32>
    %414 = vector.extract_strided_slice %404 {offsets = [0, 128], sizes = [8, 128], strides = [1, 1]} : vector<8x384xf32> to vector<8x128xf32>
    %415 = arith.addf %413, %414 : vector<8x128xf32>
    %416 = arith.negf %415 : vector<8x128xf32>
    %417 = math.exp %416 : vector<8x128xf32>
    %cst_141 = arith.constant 1.000000e+00 : f32
    %418 = vector.broadcast %cst_141 : f32 to vector<8x128xf32>
    %419 = arith.addf %418, %417 : vector<8x128xf32>
    %420 = arith.divf %418, %419 : vector<8x128xf32>
    %421 = vector.extract_strided_slice %402 {offsets = [0, 256], sizes = [8, 128], strides = [1, 1]} : vector<8x384xf32> to vector<8x128xf32>
    %422 = vector.extract_strided_slice %404 {offsets = [0, 256], sizes = [8, 128], strides = [1, 1]} : vector<8x384xf32> to vector<8x128xf32>
    %423 = vector.broadcast %272 : vector<1x128xf32> to vector<8x128xf32>
    %424 = arith.addf %422, %423 : vector<8x128xf32>
    %425 = arith.mulf %412, %424 : vector<8x128xf32>
    %426 = arith.addf %421, %425 : vector<8x128xf32>
    %427 = math.tanh %426 : vector<8x128xf32>
    %cst_142 = arith.constant 1.000000e+00 : f32
    %428 = vector.broadcast %cst_142 : f32 to vector<8x128xf32>
    %429 = arith.subf %428, %420 : vector<8x128xf32>
    %430 = arith.mulf %429, %427 : vector<8x128xf32>
    %431 = arith.mulf %420, %400 : vector<8x128xf32>
    %432 = arith.addf %430, %431 : vector<8x128xf32>
    %c32_143 = arith.constant 32 : index
    %c0_144 = arith.constant 0 : index
    %433 = vector.load %arg18[%c32_143, %c0_144] : memref<64x128xf32, #tpu.memory_space<vmem>>, vector<8x128xf32>
    tpu.vector_store %arg18[%c32_143, %c0_144], %432 {strides = array<i32>} : memref<64x128xf32, #tpu.memory_space<vmem>>, vector<8x128xf32>,
    %c40_145 = arith.constant 40 : index
    %c0_146 = arith.constant 0 : index
    %434 = vector.load %arg19[%c40_145, %c0_146] : memref<64x384xf32, #tpu.memory_space<vmem>>, vector<8x384xf32>
    %c0_147 = arith.constant 0 : index
    %c0_148 = arith.constant 0 : index
    %435 = vector.load %arg6[%c0_147, %c0_148] : memref<128x384xf32, #tpu.memory_space<vmem>>, vector<128x384xf32>
    %cst_149 = arith.constant dense<0.000000e+00> : vector<8x384xf32>
    %436 = tpu.matmul %432, %435, %cst_149 {dimension_numbers = #tpu.dot_dimension_numbers<[1], [0], [0], [1], [0, 0, 1, 1], [], []>} : vector<8x128xf32>, vector<128x384xf32>, vector<8x384xf32> -> vector<8x384xf32>
    %437 = vector.extract_strided_slice %434 {offsets = [0, 0], sizes = [8, 128], strides = [1, 1]} : vector<8x384xf32> to vector<8x128xf32>
    %438 = vector.extract_strided_slice %436 {offsets = [0, 0], sizes = [8, 128], strides = [1, 1]} : vector<8x384xf32> to vector<8x128xf32>
    %439 = arith.addf %437, %438 : vector<8x128xf32>
    %440 = arith.negf %439 : vector<8x128xf32>
    %441 = math.exp %440 : vector<8x128xf32>
    %cst_150 = arith.constant 1.000000e+00 : f32
    %442 = vector.broadcast %cst_150 : f32 to vector<8x128xf32>
    %443 = arith.addf %442, %441 : vector<8x128xf32>
    %444 = arith.divf %442, %443 : vector<8x128xf32>
    %445 = vector.extract_strided_slice %434 {offsets = [0, 128], sizes = [8, 128], strides = [1, 1]} : vector<8x384xf32> to vector<8x128xf32>
    %446 = vector.extract_strided_slice %436 {offsets = [0, 128], sizes = [8, 128], strides = [1, 1]} : vector<8x384xf32> to vector<8x128xf32>
    %447 = arith.addf %445, %446 : vector<8x128xf32>
    %448 = arith.negf %447 : vector<8x128xf32>
    %449 = math.exp %448 : vector<8x128xf32>
    %cst_151 = arith.constant 1.000000e+00 : f32
    %450 = vector.broadcast %cst_151 : f32 to vector<8x128xf32>
    %451 = arith.addf %450, %449 : vector<8x128xf32>
    %452 = arith.divf %450, %451 : vector<8x128xf32>
    %453 = vector.extract_strided_slice %434 {offsets = [0, 256], sizes = [8, 128], strides = [1, 1]} : vector<8x384xf32> to vector<8x128xf32>
    %454 = vector.extract_strided_slice %436 {offsets = [0, 256], sizes = [8, 128], strides = [1, 1]} : vector<8x384xf32> to vector<8x128xf32>
    %455 = vector.broadcast %272 : vector<1x128xf32> to vector<8x128xf32>
    %456 = arith.addf %454, %455 : vector<8x128xf32>
    %457 = arith.mulf %444, %456 : vector<8x128xf32>
    %458 = arith.addf %453, %457 : vector<8x128xf32>
    %459 = math.tanh %458 : vector<8x128xf32>
    %cst_152 = arith.constant 1.000000e+00 : f32
    %460 = vector.broadcast %cst_152 : f32 to vector<8x128xf32>
    %461 = arith.subf %460, %452 : vector<8x128xf32>
    %462 = arith.mulf %461, %459 : vector<8x128xf32>
    %463 = arith.mulf %452, %432 : vector<8x128xf32>
    %464 = arith.addf %462, %463 : vector<8x128xf32>
    %c40_153 = arith.constant 40 : index
    %c0_154 = arith.constant 0 : index
    %465 = vector.load %arg18[%c40_153, %c0_154] : memref<64x128xf32, #tpu.memory_space<vmem>>, vector<8x128xf32>
    tpu.vector_store %arg18[%c40_153, %c0_154], %464 {strides = array<i32>} : memref<64x128xf32, #tpu.memory_space<vmem>>, vector<8x128xf32>,
    %c48_155 = arith.constant 48 : index
    %c0_156 = arith.constant 0 : index
    %466 = vector.load %arg19[%c48_155, %c0_156] : memref<64x384xf32, #tpu.memory_space<vmem>>, vector<8x384xf32>
    %c0_157 = arith.constant 0 : index
    %c0_158 = arith.constant 0 : index
    %467 = vector.load %arg6[%c0_157, %c0_158] : memref<128x384xf32, #tpu.memory_space<vmem>>, vector<128x384xf32>
    %cst_159 = arith.constant dense<0.000000e+00> : vector<8x384xf32>
    %468 = tpu.matmul %464, %467, %cst_159 {dimension_numbers = #tpu.dot_dimension_numbers<[1], [0], [0], [1], [0, 0, 1, 1], [], []>} : vector<8x128xf32>, vector<128x384xf32>, vector<8x384xf32> -> vector<8x384xf32>
    %469 = vector.extract_strided_slice %466 {offsets = [0, 0], sizes = [8, 128], strides = [1, 1]} : vector<8x384xf32> to vector<8x128xf32>
    %470 = vector.extract_strided_slice %468 {offsets = [0, 0], sizes = [8, 128], strides = [1, 1]} : vector<8x384xf32> to vector<8x128xf32>
    %471 = arith.addf %469, %470 : vector<8x128xf32>
    %472 = arith.negf %471 : vector<8x128xf32>
    %473 = math.exp %472 : vector<8x128xf32>
    %cst_160 = arith.constant 1.000000e+00 : f32
    %474 = vector.broadcast %cst_160 : f32 to vector<8x128xf32>
    %475 = arith.addf %474, %473 : vector<8x128xf32>
    %476 = arith.divf %474, %475 : vector<8x128xf32>
    %477 = vector.extract_strided_slice %466 {offsets = [0, 128], sizes = [8, 128], strides = [1, 1]} : vector<8x384xf32> to vector<8x128xf32>
    %478 = vector.extract_strided_slice %468 {offsets = [0, 128], sizes = [8, 128], strides = [1, 1]} : vector<8x384xf32> to vector<8x128xf32>
    %479 = arith.addf %477, %478 : vector<8x128xf32>
    %480 = arith.negf %479 : vector<8x128xf32>
    %481 = math.exp %480 : vector<8x128xf32>
    %cst_161 = arith.constant 1.000000e+00 : f32
    %482 = vector.broadcast %cst_161 : f32 to vector<8x128xf32>
    %483 = arith.addf %482, %481 : vector<8x128xf32>
    %484 = arith.divf %482, %483 : vector<8x128xf32>
    %485 = vector.extract_strided_slice %466 {offsets = [0, 256], sizes = [8, 128], strides = [1, 1]} : vector<8x384xf32> to vector<8x128xf32>
    %486 = vector.extract_strided_slice %468 {offsets = [0, 256], sizes = [8, 128], strides = [1, 1]} : vector<8x384xf32> to vector<8x128xf32>
    %487 = vector.broadcast %272 : vector<1x128xf32> to vector<8x128xf32>
    %488 = arith.addf %486, %487 : vector<8x128xf32>
    %489 = arith.mulf %476, %488 : vector<8x128xf32>
    %490 = arith.addf %485, %489 : vector<8x128xf32>
    %491 = math.tanh %490 : vector<8x128xf32>
    %cst_162 = arith.constant 1.000000e+00 : f32
    %492 = vector.broadcast %cst_162 : f32 to vector<8x128xf32>
    %493 = arith.subf %492, %484 : vector<8x128xf32>
    %494 = arith.mulf %493, %491 : vector<8x128xf32>
    %495 = arith.mulf %484, %464 : vector<8x128xf32>
    %496 = arith.addf %494, %495 : vector<8x128xf32>
    %c48_163 = arith.constant 48 : index
    %c0_164 = arith.constant 0 : index
    %497 = vector.load %arg18[%c48_163, %c0_164] : memref<64x128xf32, #tpu.memory_space<vmem>>, vector<8x128xf32>
    tpu.vector_store %arg18[%c48_163, %c0_164], %496 {strides = array<i32>} : memref<64x128xf32, #tpu.memory_space<vmem>>, vector<8x128xf32>,
    %c56_165 = arith.constant 56 : index
    %c0_166 = arith.constant 0 : index
    %498 = vector.load %arg19[%c56_165, %c0_166] : memref<64x384xf32, #tpu.memory_space<vmem>>, vector<8x384xf32>
    %c0_167 = arith.constant 0 : index
    %c0_168 = arith.constant 0 : index
    %499 = vector.load %arg6[%c0_167, %c0_168] : memref<128x384xf32, #tpu.memory_space<vmem>>, vector<128x384xf32>
    %cst_169 = arith.constant dense<0.000000e+00> : vector<8x384xf32>
    %500 = tpu.matmul %496, %499, %cst_169 {dimension_numbers = #tpu.dot_dimension_numbers<[1], [0], [0], [1], [0, 0, 1, 1], [], []>} : vector<8x128xf32>, vector<128x384xf32>, vector<8x384xf32> -> vector<8x384xf32>
    %501 = vector.extract_strided_slice %498 {offsets = [0, 0], sizes = [8, 128], strides = [1, 1]} : vector<8x384xf32> to vector<8x128xf32>
    %502 = vector.extract_strided_slice %500 {offsets = [0, 0], sizes = [8, 128], strides = [1, 1]} : vector<8x384xf32> to vector<8x128xf32>
    %503 = arith.addf %501, %502 : vector<8x128xf32>
    %504 = arith.negf %503 : vector<8x128xf32>
    %505 = math.exp %504 : vector<8x128xf32>
    %cst_170 = arith.constant 1.000000e+00 : f32
    %506 = vector.broadcast %cst_170 : f32 to vector<8x128xf32>
    %507 = arith.addf %506, %505 : vector<8x128xf32>
    %508 = arith.divf %506, %507 : vector<8x128xf32>
    %509 = vector.extract_strided_slice %498 {offsets = [0, 128], sizes = [8, 128], strides = [1, 1]} : vector<8x384xf32> to vector<8x128xf32>
    %510 = vector.extract_strided_slice %500 {offsets = [0, 128], sizes = [8, 128], strides = [1, 1]} : vector<8x384xf32> to vector<8x128xf32>
    %511 = arith.addf %509, %510 : vector<8x128xf32>
    %512 = arith.negf %511 : vector<8x128xf32>
    %513 = math.exp %512 : vector<8x128xf32>
    %cst_171 = arith.constant 1.000000e+00 : f32
    %514 = vector.broadcast %cst_171 : f32 to vector<8x128xf32>
    %515 = arith.addf %514, %513 : vector<8x128xf32>
    %516 = arith.divf %514, %515 : vector<8x128xf32>
    %517 = vector.extract_strided_slice %498 {offsets = [0, 256], sizes = [8, 128], strides = [1, 1]} : vector<8x384xf32> to vector<8x128xf32>
    %518 = vector.extract_strided_slice %500 {offsets = [0, 256], sizes = [8, 128], strides = [1, 1]} : vector<8x384xf32> to vector<8x128xf32>
    %519 = vector.broadcast %272 : vector<1x128xf32> to vector<8x128xf32>
    %520 = arith.addf %518, %519 : vector<8x128xf32>
    %521 = arith.mulf %508, %520 : vector<8x128xf32>
    %522 = arith.addf %517, %521 : vector<8x128xf32>
    %523 = math.tanh %522 : vector<8x128xf32>
    %cst_172 = arith.constant 1.000000e+00 : f32
    %524 = vector.broadcast %cst_172 : f32 to vector<8x128xf32>
    %525 = arith.subf %524, %516 : vector<8x128xf32>
    %526 = arith.mulf %525, %523 : vector<8x128xf32>
    %527 = arith.mulf %516, %496 : vector<8x128xf32>
    %528 = arith.addf %526, %527 : vector<8x128xf32>
    %c56_173 = arith.constant 56 : index
    %c0_174 = arith.constant 0 : index
    %529 = vector.load %arg18[%c56_173, %c0_174] : memref<64x128xf32, #tpu.memory_space<vmem>>, vector<8x128xf32>
    tpu.vector_store %arg18[%c56_173, %c0_174], %528 {strides = array<i32>} : memref<64x128xf32, #tpu.memory_space<vmem>>, vector<8x128xf32>,
    %c0_175 = arith.constant 0 : index
    %c0_176 = arith.constant 0 : index
    %530 = vector.load %arg18[%c0_175, %c0_176] : memref<64x128xf32, #tpu.memory_space<vmem>>, vector<64x128xf32>
    %c0_177 = arith.constant 0 : index
    %c0_178 = arith.constant 0 : index
    %531 = vector.load %arg9[%c0_177, %c0_178] : memref<128x384xf32, #tpu.memory_space<vmem>>, vector<128x384xf32>
    %cst_179 = arith.constant dense<0.000000e+00> : vector<64x384xf32>
    %532 = tpu.matmul %530, %531, %cst_179 {dimension_numbers = #tpu.dot_dimension_numbers<[1], [0], [0], [1], [0, 0, 1, 1], [], []>} : vector<64x128xf32>, vector<128x384xf32>, vector<64x384xf32> -> vector<64x384xf32>
    %c0_180 = arith.constant 0 : index
    %c0_181 = arith.constant 0 : index
    %533 = vector.load %arg11[%c0_180, %c0_181] : memref<1x384xf32, #tpu.memory_space<vmem>>, vector<1x384xf32>
    %534 = vector.broadcast %533 : vector<1x384xf32> to vector<64x384xf32>
    %535 = arith.addf %532, %534 : vector<64x384xf32>
    %c0_182 = arith.constant 0 : index
    %c0_183 = arith.constant 0 : index
    %536 = vector.load %arg19[%c0_182, %c0_183] : memref<64x384xf32, #tpu.memory_space<vmem>>, vector<64x384xf32>
    tpu.vector_store %arg19[%c0_182, %c0_183], %535 {strides = array<i32>} : memref<64x384xf32, #tpu.memory_space<vmem>>, vector<64x384xf32>,
    %c0_184 = arith.constant 0 : index
    %c0_185 = arith.constant 0 : index
    %537 = vector.load %arg12[%c0_184, %c0_185] : memref<1x128xf32, #tpu.memory_space<vmem>>, vector<1x128xf32>
    %cst_186 = arith.constant 0.000000e+00 : f32
    %538 = vector.broadcast %cst_186 : f32 to vector<8x128xf32>
    %c0_187 = arith.constant 0 : index
    %c0_188 = arith.constant 0 : index
    %539 = vector.load %arg19[%c0_187, %c0_188] : memref<64x384xf32, #tpu.memory_space<vmem>>, vector<8x384xf32>
    %c0_189 = arith.constant 0 : index
    %c0_190 = arith.constant 0 : index
    %540 = vector.load %arg10[%c0_189, %c0_190] : memref<128x384xf32, #tpu.memory_space<vmem>>, vector<128x384xf32>
    %cst_191 = arith.constant dense<0.000000e+00> : vector<8x384xf32>
    %541 = tpu.matmul %538, %540, %cst_191 {dimension_numbers = #tpu.dot_dimension_numbers<[1], [0], [0], [1], [0, 0, 1, 1], [], []>} : vector<8x128xf32>, vector<128x384xf32>, vector<8x384xf32> -> vector<8x384xf32>
    %542 = vector.extract_strided_slice %539 {offsets = [0, 0], sizes = [8, 128], strides = [1, 1]} : vector<8x384xf32> to vector<8x128xf32>
    %543 = vector.extract_strided_slice %541 {offsets = [0, 0], sizes = [8, 128], strides = [1, 1]} : vector<8x384xf32> to vector<8x128xf32>
    %544 = arith.addf %542, %543 : vector<8x128xf32>
    %545 = arith.negf %544 : vector<8x128xf32>
    %546 = math.exp %545 : vector<8x128xf32>
    %cst_192 = arith.constant 1.000000e+00 : f32
    %547 = vector.broadcast %cst_192 : f32 to vector<8x128xf32>
    %548 = arith.addf %547, %546 : vector<8x128xf32>
    %549 = arith.divf %547, %548 : vector<8x128xf32>
    %550 = vector.extract_strided_slice %539 {offsets = [0, 128], sizes = [8, 128], strides = [1, 1]} : vector<8x384xf32> to vector<8x128xf32>
    %551 = vector.extract_strided_slice %541 {offsets = [0, 128], sizes = [8, 128], strides = [1, 1]} : vector<8x384xf32> to vector<8x128xf32>
    %552 = arith.addf %550, %551 : vector<8x128xf32>
    %553 = arith.negf %552 : vector<8x128xf32>
    %554 = math.exp %553 : vector<8x128xf32>
    %cst_193 = arith.constant 1.000000e+00 : f32
    %555 = vector.broadcast %cst_193 : f32 to vector<8x128xf32>
    %556 = arith.addf %555, %554 : vector<8x128xf32>
    %557 = arith.divf %555, %556 : vector<8x128xf32>
    %558 = vector.extract_strided_slice %539 {offsets = [0, 256], sizes = [8, 128], strides = [1, 1]} : vector<8x384xf32> to vector<8x128xf32>
    %559 = vector.extract_strided_slice %541 {offsets = [0, 256], sizes = [8, 128], strides = [1, 1]} : vector<8x384xf32> to vector<8x128xf32>
    %560 = vector.broadcast %537 : vector<1x128xf32> to vector<8x128xf32>
    %561 = arith.addf %559, %560 : vector<8x128xf32>
    %562 = arith.mulf %549, %561 : vector<8x128xf32>
    %563 = arith.addf %558, %562 : vector<8x128xf32>
    %564 = math.tanh %563 : vector<8x128xf32>
    %cst_194 = arith.constant 1.000000e+00 : f32
    %565 = vector.broadcast %cst_194 : f32 to vector<8x128xf32>
    %566 = arith.subf %565, %557 : vector<8x128xf32>
    %567 = arith.mulf %566, %564 : vector<8x128xf32>
    %568 = arith.mulf %557, %538 : vector<8x128xf32>
    %569 = arith.addf %567, %568 : vector<8x128xf32>
    %c8_195 = arith.constant 8 : index
    %c0_196 = arith.constant 0 : index
    %570 = vector.load %arg19[%c8_195, %c0_196] : memref<64x384xf32, #tpu.memory_space<vmem>>, vector<8x384xf32>
    %c0_197 = arith.constant 0 : index
    %c0_198 = arith.constant 0 : index
    %571 = vector.load %arg10[%c0_197, %c0_198] : memref<128x384xf32, #tpu.memory_space<vmem>>, vector<128x384xf32>
    %cst_199 = arith.constant dense<0.000000e+00> : vector<8x384xf32>
    %572 = tpu.matmul %569, %571, %cst_199 {dimension_numbers = #tpu.dot_dimension_numbers<[1], [0], [0], [1], [0, 0, 1, 1], [], []>} : vector<8x128xf32>, vector<128x384xf32>, vector<8x384xf32> -> vector<8x384xf32>
    %573 = vector.extract_strided_slice %570 {offsets = [0, 0], sizes = [8, 128], strides = [1, 1]} : vector<8x384xf32> to vector<8x128xf32>
    %574 = vector.extract_strided_slice %572 {offsets = [0, 0], sizes = [8, 128], strides = [1, 1]} : vector<8x384xf32> to vector<8x128xf32>
    %575 = arith.addf %573, %574 : vector<8x128xf32>
    %576 = arith.negf %575 : vector<8x128xf32>
    %577 = math.exp %576 : vector<8x128xf32>
    %cst_200 = arith.constant 1.000000e+00 : f32
    %578 = vector.broadcast %cst_200 : f32 to vector<8x128xf32>
    %579 = arith.addf %578, %577 : vector<8x128xf32>
    %580 = arith.divf %578, %579 : vector<8x128xf32>
    %581 = vector.extract_strided_slice %570 {offsets = [0, 128], sizes = [8, 128], strides = [1, 1]} : vector<8x384xf32> to vector<8x128xf32>
    %582 = vector.extract_strided_slice %572 {offsets = [0, 128], sizes = [8, 128], strides = [1, 1]} : vector<8x384xf32> to vector<8x128xf32>
    %583 = arith.addf %581, %582 : vector<8x128xf32>
    %584 = arith.negf %583 : vector<8x128xf32>
    %585 = math.exp %584 : vector<8x128xf32>
    %cst_201 = arith.constant 1.000000e+00 : f32
    %586 = vector.broadcast %cst_201 : f32 to vector<8x128xf32>
    %587 = arith.addf %586, %585 : vector<8x128xf32>
    %588 = arith.divf %586, %587 : vector<8x128xf32>
    %589 = vector.extract_strided_slice %570 {offsets = [0, 256], sizes = [8, 128], strides = [1, 1]} : vector<8x384xf32> to vector<8x128xf32>
    %590 = vector.extract_strided_slice %572 {offsets = [0, 256], sizes = [8, 128], strides = [1, 1]} : vector<8x384xf32> to vector<8x128xf32>
    %591 = vector.broadcast %537 : vector<1x128xf32> to vector<8x128xf32>
    %592 = arith.addf %590, %591 : vector<8x128xf32>
    %593 = arith.mulf %580, %592 : vector<8x128xf32>
    %594 = arith.addf %589, %593 : vector<8x128xf32>
    %595 = math.tanh %594 : vector<8x128xf32>
    %cst_202 = arith.constant 1.000000e+00 : f32
    %596 = vector.broadcast %cst_202 : f32 to vector<8x128xf32>
    %597 = arith.subf %596, %588 : vector<8x128xf32>
    %598 = arith.mulf %597, %595 : vector<8x128xf32>
    %599 = arith.mulf %588, %569 : vector<8x128xf32>
    %600 = arith.addf %598, %599 : vector<8x128xf32>
    %c16_203 = arith.constant 16 : index
    %c0_204 = arith.constant 0 : index
    %601 = vector.load %arg19[%c16_203, %c0_204] : memref<64x384xf32, #tpu.memory_space<vmem>>, vector<8x384xf32>
    %c0_205 = arith.constant 0 : index
    %c0_206 = arith.constant 0 : index
    %602 = vector.load %arg10[%c0_205, %c0_206] : memref<128x384xf32, #tpu.memory_space<vmem>>, vector<128x384xf32>
    %cst_207 = arith.constant dense<0.000000e+00> : vector<8x384xf32>
    %603 = tpu.matmul %600, %602, %cst_207 {dimension_numbers = #tpu.dot_dimension_numbers<[1], [0], [0], [1], [0, 0, 1, 1], [], []>} : vector<8x128xf32>, vector<128x384xf32>, vector<8x384xf32> -> vector<8x384xf32>
    %604 = vector.extract_strided_slice %601 {offsets = [0, 0], sizes = [8, 128], strides = [1, 1]} : vector<8x384xf32> to vector<8x128xf32>
    %605 = vector.extract_strided_slice %603 {offsets = [0, 0], sizes = [8, 128], strides = [1, 1]} : vector<8x384xf32> to vector<8x128xf32>
    %606 = arith.addf %604, %605 : vector<8x128xf32>
    %607 = arith.negf %606 : vector<8x128xf32>
    %608 = math.exp %607 : vector<8x128xf32>
    %cst_208 = arith.constant 1.000000e+00 : f32
    %609 = vector.broadcast %cst_208 : f32 to vector<8x128xf32>
    %610 = arith.addf %609, %608 : vector<8x128xf32>
    %611 = arith.divf %609, %610 : vector<8x128xf32>
    %612 = vector.extract_strided_slice %601 {offsets = [0, 128], sizes = [8, 128], strides = [1, 1]} : vector<8x384xf32> to vector<8x128xf32>
    %613 = vector.extract_strided_slice %603 {offsets = [0, 128], sizes = [8, 128], strides = [1, 1]} : vector<8x384xf32> to vector<8x128xf32>
    %614 = arith.addf %612, %613 : vector<8x128xf32>
    %615 = arith.negf %614 : vector<8x128xf32>
    %616 = math.exp %615 : vector<8x128xf32>
    %cst_209 = arith.constant 1.000000e+00 : f32
    %617 = vector.broadcast %cst_209 : f32 to vector<8x128xf32>
    %618 = arith.addf %617, %616 : vector<8x128xf32>
    %619 = arith.divf %617, %618 : vector<8x128xf32>
    %620 = vector.extract_strided_slice %601 {offsets = [0, 256], sizes = [8, 128], strides = [1, 1]} : vector<8x384xf32> to vector<8x128xf32>
    %621 = vector.extract_strided_slice %603 {offsets = [0, 256], sizes = [8, 128], strides = [1, 1]} : vector<8x384xf32> to vector<8x128xf32>
    %622 = vector.broadcast %537 : vector<1x128xf32> to vector<8x128xf32>
    %623 = arith.addf %621, %622 : vector<8x128xf32>
    %624 = arith.mulf %611, %623 : vector<8x128xf32>
    %625 = arith.addf %620, %624 : vector<8x128xf32>
    %626 = math.tanh %625 : vector<8x128xf32>
    %cst_210 = arith.constant 1.000000e+00 : f32
    %627 = vector.broadcast %cst_210 : f32 to vector<8x128xf32>
    %628 = arith.subf %627, %619 : vector<8x128xf32>
    %629 = arith.mulf %628, %626 : vector<8x128xf32>
    %630 = arith.mulf %619, %600 : vector<8x128xf32>
    %631 = arith.addf %629, %630 : vector<8x128xf32>
    %c24_211 = arith.constant 24 : index
    %c0_212 = arith.constant 0 : index
    %632 = vector.load %arg19[%c24_211, %c0_212] : memref<64x384xf32, #tpu.memory_space<vmem>>, vector<8x384xf32>
    %c0_213 = arith.constant 0 : index
    %c0_214 = arith.constant 0 : index
    %633 = vector.load %arg10[%c0_213, %c0_214] : memref<128x384xf32, #tpu.memory_space<vmem>>, vector<128x384xf32>
    %cst_215 = arith.constant dense<0.000000e+00> : vector<8x384xf32>
    %634 = tpu.matmul %631, %633, %cst_215 {dimension_numbers = #tpu.dot_dimension_numbers<[1], [0], [0], [1], [0, 0, 1, 1], [], []>} : vector<8x128xf32>, vector<128x384xf32>, vector<8x384xf32> -> vector<8x384xf32>
    %635 = vector.extract_strided_slice %632 {offsets = [0, 0], sizes = [8, 128], strides = [1, 1]} : vector<8x384xf32> to vector<8x128xf32>
    %636 = vector.extract_strided_slice %634 {offsets = [0, 0], sizes = [8, 128], strides = [1, 1]} : vector<8x384xf32> to vector<8x128xf32>
    %637 = arith.addf %635, %636 : vector<8x128xf32>
    %638 = arith.negf %637 : vector<8x128xf32>
    %639 = math.exp %638 : vector<8x128xf32>
    %cst_216 = arith.constant 1.000000e+00 : f32
    %640 = vector.broadcast %cst_216 : f32 to vector<8x128xf32>
    %641 = arith.addf %640, %639 : vector<8x128xf32>
    %642 = arith.divf %640, %641 : vector<8x128xf32>
    %643 = vector.extract_strided_slice %632 {offsets = [0, 128], sizes = [8, 128], strides = [1, 1]} : vector<8x384xf32> to vector<8x128xf32>
    %644 = vector.extract_strided_slice %634 {offsets = [0, 128], sizes = [8, 128], strides = [1, 1]} : vector<8x384xf32> to vector<8x128xf32>
    %645 = arith.addf %643, %644 : vector<8x128xf32>
    %646 = arith.negf %645 : vector<8x128xf32>
    %647 = math.exp %646 : vector<8x128xf32>
    %cst_217 = arith.constant 1.000000e+00 : f32
    %648 = vector.broadcast %cst_217 : f32 to vector<8x128xf32>
    %649 = arith.addf %648, %647 : vector<8x128xf32>
    %650 = arith.divf %648, %649 : vector<8x128xf32>
    %651 = vector.extract_strided_slice %632 {offsets = [0, 256], sizes = [8, 128], strides = [1, 1]} : vector<8x384xf32> to vector<8x128xf32>
    %652 = vector.extract_strided_slice %634 {offsets = [0, 256], sizes = [8, 128], strides = [1, 1]} : vector<8x384xf32> to vector<8x128xf32>
    %653 = vector.broadcast %537 : vector<1x128xf32> to vector<8x128xf32>
    %654 = arith.addf %652, %653 : vector<8x128xf32>
    %655 = arith.mulf %642, %654 : vector<8x128xf32>
    %656 = arith.addf %651, %655 : vector<8x128xf32>
    %657 = math.tanh %656 : vector<8x128xf32>
    %cst_218 = arith.constant 1.000000e+00 : f32
    %658 = vector.broadcast %cst_218 : f32 to vector<8x128xf32>
    %659 = arith.subf %658, %650 : vector<8x128xf32>
    %660 = arith.mulf %659, %657 : vector<8x128xf32>
    %661 = arith.mulf %650, %631 : vector<8x128xf32>
    %662 = arith.addf %660, %661 : vector<8x128xf32>
    %c32_219 = arith.constant 32 : index
    %c0_220 = arith.constant 0 : index
    %663 = vector.load %arg19[%c32_219, %c0_220] : memref<64x384xf32, #tpu.memory_space<vmem>>, vector<8x384xf32>
    %c0_221 = arith.constant 0 : index
    %c0_222 = arith.constant 0 : index
    %664 = vector.load %arg10[%c0_221, %c0_222] : memref<128x384xf32, #tpu.memory_space<vmem>>, vector<128x384xf32>
    %cst_223 = arith.constant dense<0.000000e+00> : vector<8x384xf32>
    %665 = tpu.matmul %662, %664, %cst_223 {dimension_numbers = #tpu.dot_dimension_numbers<[1], [0], [0], [1], [0, 0, 1, 1], [], []>} : vector<8x128xf32>, vector<128x384xf32>, vector<8x384xf32> -> vector<8x384xf32>
    %666 = vector.extract_strided_slice %663 {offsets = [0, 0], sizes = [8, 128], strides = [1, 1]} : vector<8x384xf32> to vector<8x128xf32>
    %667 = vector.extract_strided_slice %665 {offsets = [0, 0], sizes = [8, 128], strides = [1, 1]} : vector<8x384xf32> to vector<8x128xf32>
    %668 = arith.addf %666, %667 : vector<8x128xf32>
    %669 = arith.negf %668 : vector<8x128xf32>
    %670 = math.exp %669 : vector<8x128xf32>
    %cst_224 = arith.constant 1.000000e+00 : f32
    %671 = vector.broadcast %cst_224 : f32 to vector<8x128xf32>
    %672 = arith.addf %671, %670 : vector<8x128xf32>
    %673 = arith.divf %671, %672 : vector<8x128xf32>
    %674 = vector.extract_strided_slice %663 {offsets = [0, 128], sizes = [8, 128], strides = [1, 1]} : vector<8x384xf32> to vector<8x128xf32>
    %675 = vector.extract_strided_slice %665 {offsets = [0, 128], sizes = [8, 128], strides = [1, 1]} : vector<8x384xf32> to vector<8x128xf32>
    %676 = arith.addf %674, %675 : vector<8x128xf32>
    %677 = arith.negf %676 : vector<8x128xf32>
    %678 = math.exp %677 : vector<8x128xf32>
    %cst_225 = arith.constant 1.000000e+00 : f32
    %679 = vector.broadcast %cst_225 : f32 to vector<8x128xf32>
    %680 = arith.addf %679, %678 : vector<8x128xf32>
    %681 = arith.divf %679, %680 : vector<8x128xf32>
    %682 = vector.extract_strided_slice %663 {offsets = [0, 256], sizes = [8, 128], strides = [1, 1]} : vector<8x384xf32> to vector<8x128xf32>
    %683 = vector.extract_strided_slice %665 {offsets = [0, 256], sizes = [8, 128], strides = [1, 1]} : vector<8x384xf32> to vector<8x128xf32>
    %684 = vector.broadcast %537 : vector<1x128xf32> to vector<8x128xf32>
    %685 = arith.addf %683, %684 : vector<8x128xf32>
    %686 = arith.mulf %673, %685 : vector<8x128xf32>
    %687 = arith.addf %682, %686 : vector<8x128xf32>
    %688 = math.tanh %687 : vector<8x128xf32>
    %cst_226 = arith.constant 1.000000e+00 : f32
    %689 = vector.broadcast %cst_226 : f32 to vector<8x128xf32>
    %690 = arith.subf %689, %681 : vector<8x128xf32>
    %691 = arith.mulf %690, %688 : vector<8x128xf32>
    %692 = arith.mulf %681, %662 : vector<8x128xf32>
    %693 = arith.addf %691, %692 : vector<8x128xf32>
    %c40_227 = arith.constant 40 : index
    %c0_228 = arith.constant 0 : index
    %694 = vector.load %arg19[%c40_227, %c0_228] : memref<64x384xf32, #tpu.memory_space<vmem>>, vector<8x384xf32>
    %c0_229 = arith.constant 0 : index
    %c0_230 = arith.constant 0 : index
    %695 = vector.load %arg10[%c0_229, %c0_230] : memref<128x384xf32, #tpu.memory_space<vmem>>, vector<128x384xf32>
    %cst_231 = arith.constant dense<0.000000e+00> : vector<8x384xf32>
    %696 = tpu.matmul %693, %695, %cst_231 {dimension_numbers = #tpu.dot_dimension_numbers<[1], [0], [0], [1], [0, 0, 1, 1], [], []>} : vector<8x128xf32>, vector<128x384xf32>, vector<8x384xf32> -> vector<8x384xf32>
    %697 = vector.extract_strided_slice %694 {offsets = [0, 0], sizes = [8, 128], strides = [1, 1]} : vector<8x384xf32> to vector<8x128xf32>
    %698 = vector.extract_strided_slice %696 {offsets = [0, 0], sizes = [8, 128], strides = [1, 1]} : vector<8x384xf32> to vector<8x128xf32>
    %699 = arith.addf %697, %698 : vector<8x128xf32>
    %700 = arith.negf %699 : vector<8x128xf32>
    %701 = math.exp %700 : vector<8x128xf32>
    %cst_232 = arith.constant 1.000000e+00 : f32
    %702 = vector.broadcast %cst_232 : f32 to vector<8x128xf32>
    %703 = arith.addf %702, %701 : vector<8x128xf32>
    %704 = arith.divf %702, %703 : vector<8x128xf32>
    %705 = vector.extract_strided_slice %694 {offsets = [0, 128], sizes = [8, 128], strides = [1, 1]} : vector<8x384xf32> to vector<8x128xf32>
    %706 = vector.extract_strided_slice %696 {offsets = [0, 128], sizes = [8, 128], strides = [1, 1]} : vector<8x384xf32> to vector<8x128xf32>
    %707 = arith.addf %705, %706 : vector<8x128xf32>
    %708 = arith.negf %707 : vector<8x128xf32>
    %709 = math.exp %708 : vector<8x128xf32>
    %cst_233 = arith.constant 1.000000e+00 : f32
    %710 = vector.broadcast %cst_233 : f32 to vector<8x128xf32>
    %711 = arith.addf %710, %709 : vector<8x128xf32>
    %712 = arith.divf %710, %711 : vector<8x128xf32>
    %713 = vector.extract_strided_slice %694 {offsets = [0, 256], sizes = [8, 128], strides = [1, 1]} : vector<8x384xf32> to vector<8x128xf32>
    %714 = vector.extract_strided_slice %696 {offsets = [0, 256], sizes = [8, 128], strides = [1, 1]} : vector<8x384xf32> to vector<8x128xf32>
    %715 = vector.broadcast %537 : vector<1x128xf32> to vector<8x128xf32>
    %716 = arith.addf %714, %715 : vector<8x128xf32>
    %717 = arith.mulf %704, %716 : vector<8x128xf32>
    %718 = arith.addf %713, %717 : vector<8x128xf32>
    %719 = math.tanh %718 : vector<8x128xf32>
    %cst_234 = arith.constant 1.000000e+00 : f32
    %720 = vector.broadcast %cst_234 : f32 to vector<8x128xf32>
    %721 = arith.subf %720, %712 : vector<8x128xf32>
    %722 = arith.mulf %721, %719 : vector<8x128xf32>
    %723 = arith.mulf %712, %693 : vector<8x128xf32>
    %724 = arith.addf %722, %723 : vector<8x128xf32>
    %c48_235 = arith.constant 48 : index
    %c0_236 = arith.constant 0 : index
    %725 = vector.load %arg19[%c48_235, %c0_236] : memref<64x384xf32, #tpu.memory_space<vmem>>, vector<8x384xf32>
    %c0_237 = arith.constant 0 : index
    %c0_238 = arith.constant 0 : index
    %726 = vector.load %arg10[%c0_237, %c0_238] : memref<128x384xf32, #tpu.memory_space<vmem>>, vector<128x384xf32>
    %cst_239 = arith.constant dense<0.000000e+00> : vector<8x384xf32>
    %727 = tpu.matmul %724, %726, %cst_239 {dimension_numbers = #tpu.dot_dimension_numbers<[1], [0], [0], [1], [0, 0, 1, 1], [], []>} : vector<8x128xf32>, vector<128x384xf32>, vector<8x384xf32> -> vector<8x384xf32>
    %728 = vector.extract_strided_slice %725 {offsets = [0, 0], sizes = [8, 128], strides = [1, 1]} : vector<8x384xf32> to vector<8x128xf32>
    %729 = vector.extract_strided_slice %727 {offsets = [0, 0], sizes = [8, 128], strides = [1, 1]} : vector<8x384xf32> to vector<8x128xf32>
    %730 = arith.addf %728, %729 : vector<8x128xf32>
    %731 = arith.negf %730 : vector<8x128xf32>
    %732 = math.exp %731 : vector<8x128xf32>
    %cst_240 = arith.constant 1.000000e+00 : f32
    %733 = vector.broadcast %cst_240 : f32 to vector<8x128xf32>
    %734 = arith.addf %733, %732 : vector<8x128xf32>
    %735 = arith.divf %733, %734 : vector<8x128xf32>
    %736 = vector.extract_strided_slice %725 {offsets = [0, 128], sizes = [8, 128], strides = [1, 1]} : vector<8x384xf32> to vector<8x128xf32>
    %737 = vector.extract_strided_slice %727 {offsets = [0, 128], sizes = [8, 128], strides = [1, 1]} : vector<8x384xf32> to vector<8x128xf32>
    %738 = arith.addf %736, %737 : vector<8x128xf32>
    %739 = arith.negf %738 : vector<8x128xf32>
    %740 = math.exp %739 : vector<8x128xf32>
    %cst_241 = arith.constant 1.000000e+00 : f32
    %741 = vector.broadcast %cst_241 : f32 to vector<8x128xf32>
    %742 = arith.addf %741, %740 : vector<8x128xf32>
    %743 = arith.divf %741, %742 : vector<8x128xf32>
    %744 = vector.extract_strided_slice %725 {offsets = [0, 256], sizes = [8, 128], strides = [1, 1]} : vector<8x384xf32> to vector<8x128xf32>
    %745 = vector.extract_strided_slice %727 {offsets = [0, 256], sizes = [8, 128], strides = [1, 1]} : vector<8x384xf32> to vector<8x128xf32>
    %746 = vector.broadcast %537 : vector<1x128xf32> to vector<8x128xf32>
    %747 = arith.addf %745, %746 : vector<8x128xf32>
    %748 = arith.mulf %735, %747 : vector<8x128xf32>
    %749 = arith.addf %744, %748 : vector<8x128xf32>
    %750 = math.tanh %749 : vector<8x128xf32>
    %cst_242 = arith.constant 1.000000e+00 : f32
    %751 = vector.broadcast %cst_242 : f32 to vector<8x128xf32>
    %752 = arith.subf %751, %743 : vector<8x128xf32>
    %753 = arith.mulf %752, %750 : vector<8x128xf32>
    %754 = arith.mulf %743, %724 : vector<8x128xf32>
    %755 = arith.addf %753, %754 : vector<8x128xf32>
    %c56_243 = arith.constant 56 : index
    %c0_244 = arith.constant 0 : index
    %756 = vector.load %arg19[%c56_243, %c0_244] : memref<64x384xf32, #tpu.memory_space<vmem>>, vector<8x384xf32>
    %c0_245 = arith.constant 0 : index
    %c0_246 = arith.constant 0 : index
    %757 = vector.load %arg10[%c0_245, %c0_246] : memref<128x384xf32, #tpu.memory_space<vmem>>, vector<128x384xf32>
    %cst_247 = arith.constant dense<0.000000e+00> : vector<8x384xf32>
    %758 = tpu.matmul %755, %757, %cst_247 {dimension_numbers = #tpu.dot_dimension_numbers<[1], [0], [0], [1], [0, 0, 1, 1], [], []>} : vector<8x128xf32>, vector<128x384xf32>, vector<8x384xf32> -> vector<8x384xf32>
    %759 = vector.extract_strided_slice %756 {offsets = [0, 0], sizes = [8, 128], strides = [1, 1]} : vector<8x384xf32> to vector<8x128xf32>
    %760 = vector.extract_strided_slice %758 {offsets = [0, 0], sizes = [8, 128], strides = [1, 1]} : vector<8x384xf32> to vector<8x128xf32>
    %761 = arith.addf %759, %760 : vector<8x128xf32>
    %762 = arith.negf %761 : vector<8x128xf32>
    %763 = math.exp %762 : vector<8x128xf32>
    %cst_248 = arith.constant 1.000000e+00 : f32
    %764 = vector.broadcast %cst_248 : f32 to vector<8x128xf32>
    %765 = arith.addf %764, %763 : vector<8x128xf32>
    %766 = arith.divf %764, %765 : vector<8x128xf32>
    %767 = vector.extract_strided_slice %756 {offsets = [0, 128], sizes = [8, 128], strides = [1, 1]} : vector<8x384xf32> to vector<8x128xf32>
    %768 = vector.extract_strided_slice %758 {offsets = [0, 128], sizes = [8, 128], strides = [1, 1]} : vector<8x384xf32> to vector<8x128xf32>
    %769 = arith.addf %767, %768 : vector<8x128xf32>
    %770 = arith.negf %769 : vector<8x128xf32>
    %771 = math.exp %770 : vector<8x128xf32>
    %cst_249 = arith.constant 1.000000e+00 : f32
    %772 = vector.broadcast %cst_249 : f32 to vector<8x128xf32>
    %773 = arith.addf %772, %771 : vector<8x128xf32>
    %774 = arith.divf %772, %773 : vector<8x128xf32>
    %775 = vector.extract_strided_slice %756 {offsets = [0, 256], sizes = [8, 128], strides = [1, 1]} : vector<8x384xf32> to vector<8x128xf32>
    %776 = vector.extract_strided_slice %758 {offsets = [0, 256], sizes = [8, 128], strides = [1, 1]} : vector<8x384xf32> to vector<8x128xf32>
    %777 = vector.broadcast %537 : vector<1x128xf32> to vector<8x128xf32>
    %778 = arith.addf %776, %777 : vector<8x128xf32>
    %779 = arith.mulf %766, %778 : vector<8x128xf32>
    %780 = arith.addf %775, %779 : vector<8x128xf32>
    %781 = math.tanh %780 : vector<8x128xf32>
    %cst_250 = arith.constant 1.000000e+00 : f32
    %782 = vector.broadcast %cst_250 : f32 to vector<8x128xf32>
    %783 = arith.subf %782, %774 : vector<8x128xf32>
    %784 = arith.mulf %783, %781 : vector<8x128xf32>
    %785 = arith.mulf %774, %755 : vector<8x128xf32>
    %786 = arith.addf %784, %785 : vector<8x128xf32>
    %c0_251 = arith.constant 0 : index
    %c0_252 = arith.constant 0 : index
    %787 = vector.load %arg13[%c0_251, %c0_252] : memref<128x128xf32, #tpu.memory_space<vmem>>, vector<128x128xf32>
    %cst_253 = arith.constant dense<0.000000e+00> : vector<8x128xf32>
    %788 = tpu.matmul %786, %787, %cst_253 {dimension_numbers = #tpu.dot_dimension_numbers<[1], [0], [0], [1], [0, 0, 1, 1], [], []>} : vector<8x128xf32>, vector<128x128xf32>, vector<8x128xf32> -> vector<8x128xf32>
    %c0_254 = arith.constant 0 : index
    %c0_255 = arith.constant 0 : index
    %789 = vector.load %arg14[%c0_254, %c0_255] : memref<1x128xf32, #tpu.memory_space<vmem>>, vector<1x128xf32>
    %790 = vector.broadcast %789 : vector<1x128xf32> to vector<8x128xf32>
    %791 = arith.addf %788, %790 : vector<8x128xf32>
    %cst_256 = arith.constant 0.000000e+00 : f32
    %792 = vector.broadcast %cst_256 : f32 to vector<8x128xf32>
    %793 = arith.maximumf %791, %792 : vector<8x128xf32>
    %c0_257 = arith.constant 0 : index
    %c0_258 = arith.constant 0 : index
    %794 = vector.load %arg15[%c0_257, %c0_258] : memref<128x128xf32, #tpu.memory_space<vmem>>, vector<128x128xf32>
    %cst_259 = arith.constant dense<0.000000e+00> : vector<8x128xf32>
    %795 = tpu.matmul %793, %794, %cst_259 {dimension_numbers = #tpu.dot_dimension_numbers<[1], [0], [0], [1], [0, 0, 1, 1], [], []>} : vector<8x128xf32>, vector<128x128xf32>, vector<8x128xf32> -> vector<8x128xf32>
    %c0_260 = arith.constant 0 : index
    %c0_261 = arith.constant 0 : index
    %796 = vector.load %arg16[%c0_260, %c0_261] : memref<1x128xf32, #tpu.memory_space<vmem>>, vector<1x128xf32>
    %797 = vector.broadcast %796 : vector<1x128xf32> to vector<8x128xf32>
    %798 = arith.addf %795, %797 : vector<8x128xf32>
    %c0_262 = arith.constant 0 : index
    %c0_263 = arith.constant 0 : index
    %799 = vector.load %arg17[%c0_262, %c0_263] : memref<8x128xf32, #tpu.memory_space<vmem>>, vector<8x128xf32>
    tpu.vector_store %arg17[%c0_262, %c0_263], %798 {strides = array<i32>} : memref<8x128xf32, #tpu.memory_space<vmem>>, vector<8x128xf32>,
    return
  }
}

</mosaic_0001>

<bundles_post_ra>
// kernel: _lambda_.1
= control target key start
LH: loop header
LB: loop body
LE: loop exit
PB: predicated region body
PF: predicated region fallthrough
CT: control target
= control target key end

     0   :  { %s7376_s0 = inlined_call_operand.vmem [shape: f32[64,128], index: 0, kind: input, shape index: {}]   ;;  %s7377_s1 = inlined_call_operand.hbm [shape: f32[128,384], index: 1, kind: input, shape index: {}]   ;;  %s7378_s2 = inlined_call_operand.hbm [shape: f32[128,384], index: 2, kind: input, shape index: {}]   ;;  %s7379_s3 = inlined_call_operand.vmem [shape: f32[1,384], index: 3, kind: input, shape index: {}]   ;;  %s7380_s4 = inlined_call_operand.vmem [shape: f32[1,128], index: 4, kind: input, shape index: {}]   ;;  %s7381_s5 = inlined_call_operand.hbm [shape: f32[128,384], index: 5, kind: input, shape index: {}]   ;;  %s7382_s6 = inlined_call_operand.hbm [shape: f32[128,384], index: 6, kind: input, shape index: {}]   ;;  %s7383_s7 = inlined_call_operand.vmem [shape: f32[1,384], index: 7, kind: input, shape index: {}]   ;;  %s7384_s8 = inlined_call_operand.vmem [shape: f32[1,128], index: 8, kind: input, shape index: {}]   ;;  %s7385_s9 = inlined_call_operand.hbm [shape: f32[128,384], index: 9, kind: input, shape index: {}]   ;;  %s7386_s10 = inlined_call_operand.hbm [shape: f32[128,384], index: 10, kind: input, shape index: {}]   ;;  %s7387_s11 = inlined_call_operand.vmem [shape: f32[1,384], index: 11, kind: input, shape index: {}]   ;;  %s7388_s12 = inlined_call_operand.vmem [shape: f32[1,128], index: 12, kind: input, shape index: {}]   ;;  %s7389_s13 = inlined_call_operand.hbm [shape: f32[128,128], index: 13, kind: input, shape index: {}]   ;;  %s7390_s14 = inlined_call_operand.vmem [shape: f32[1,128], index: 14, kind: input, shape index: {}]   ;;  %s7391_s15 = inlined_call_operand.vmem [shape: f32[128,128], index: 15, kind: input, shape index: {}]   ;;  %s7392_s16 = inlined_call_operand.vmem [shape: f32[1,128], index: 16, kind: input, shape index: {}]   ;;  %s7393_s17 = inlined_call_operand.hbm [shape: f32[8,128], index: 17, kind: output, shape index: {}]  }
   0x1   :  { %7416 = sst [smem:[#allocation40_spill]] %s7376_s0 }
   0x2   :  { %7417 = sst [smem:[#allocation41_spill]] %s7377_s1 }
   0x3   :  { %22 = vsyncpa [#allocation5], 0 }
   0x4   :  { %23 = vsyncpa [#allocation8], 0 }
   0x5   :  { %24 = vsyncpa [#allocation11], 0 }
   0x6   :  { %25 = vsyncpa [#allocation14], 0 }
   0x7   :  { %26 = vsyncpa [#allocation6], 0  ;;  %s46_s26 = sshll.u32 %s7378_s2, 4  ;;  %s4968_s27 = smov [#allocation7]   ;;  %s47_s26 = int_to_ptr.hbm [resolvable:$true] %s46_s26 }
   0x8   :  { %s48_s28 = sshll.u32 %s4968_s27, 4  ;;  %s76_s30 = sshll.u32 %s7382_s6, 4  ;;  %s49_s28 = int_to_ptr.vmem [resolvable:$true] %s48_s28  ;;  %s77_s30 = int_to_ptr.hbm [resolvable:$true] %s76_s30 }
   0x9   :  { %s4969_s18 = smov 384   ;;  %s4970_s19 = smov 24  }
   0xa   :  { %54 = dma.hbm_to_vmem [thread:$0]  %s47_s26, 6144, %s49_s28, [#allocation8], %s4969_s18, %s4969_s18, %s4970_s19  }
   0xb   :  { %s4971_s1 = smov [#allocation10]   ;;  %s106_s2 = sshll.u32 %s7386_s10, 4  ;;  %s107_s2 = int_to_ptr.hbm [resolvable:$true] %s106_s2 }
   0xc   :  { %s78_s20 = sshll.u32 %s4971_s1, 4  ;;  %s7418_s24 = sld [smem:[#allocation41_spill]]  ;;  %s79_s20 = int_to_ptr.vmem [resolvable:$true] %s78_s20 }
   0xd   :  { %84 = dma.hbm_to_vmem [thread:$0]  %s77_s30, 6144, %s79_s20, [#allocation11], %s4969_s18, %s4969_s18, %s4970_s19  }
   0xe   :  { %s4972_s27 = smov [#allocation13]   ;;  %s4973_s26 = smov [#allocation4]  }
   0xf   :  { %s108_s29 = sshll.u32 %s4972_s27, 4  ;;  %s35_s10 = sshll.u32 %s4973_s26, 4  ;;  %s109_s29 = int_to_ptr.vmem [resolvable:$true] %s108_s29  ;;  %s36_s10 = int_to_ptr.vmem [resolvable:$true] %s35_s10 }
  0x10   :  { %114 = dma.hbm_to_vmem [thread:$0]  %s107_s2, 6144, %s109_s29, [#allocation14], %s4969_s18, %s4969_s18, %s4970_s19  }
  0x11   :  { %s63_s1 = sshll.u32 %s7381_s5, 4  ;;  %s93_s21 = sshll.u32 %s7385_s9, 4  ;;  %s64_s1 = int_to_ptr.hbm [resolvable:$true] %s63_s1  ;;  %s94_s21 = int_to_ptr.hbm [resolvable:$true] %s93_s21 }
  0x12   :  { %s33_s25 = sshll.u32 %s7418_s24, 4  ;;  %s4974_s22 = smov [#allocation9]   ;;  %s34_s25 = int_to_ptr.hbm [resolvable:$true] %s33_s25 }
  0x13   :  { %41 = dma.hbm_to_vmem [thread:$0]  %s34_s25, 6144, %s36_s10, [#allocation5], %s4969_s18, %s4969_s18, %s4970_s19  }
  0x14   :  { %s65_s6 = sshll.u32 %s4974_s22, 4  ;;  %s4975_s2 = smov [#allocation12]   ;;  %s66_s6 = int_to_ptr.vmem [resolvable:$true] %s65_s6 }
  0x15   :  { %71 = dma.hbm_to_vmem [thread:$0]  %s64_s1, 6144, %s66_s6, [#allocation8], %s4969_s18, %s4969_s18, %s4970_s19  }
  0x16   :  { %s95_s5 = sshll.u32 %s4975_s2, 4  ;;  %s123_s27 = sshll.u32 %s7389_s13, 4  ;;  %s96_s5 = int_to_ptr.vmem [resolvable:$true] %s95_s5  ;;  %s124_s27 = int_to_ptr.hbm [resolvable:$true] %s123_s27 }
  0x17   :  { %101 = dma.hbm_to_vmem [thread:$0]  %s94_s21, 6144, %s96_s5, [#allocation11], %s4969_s18, %s4969_s18, %s4970_s19  }
  0x18   :  { %s4976_s9 = smov [#allocation15]   ;;  %s4977_s29 = smov 128  }
  0x19   :  { %s125_s25 = sshll.u32 %s4976_s9, 4  ;;  %s4978_s26 = smov 8   ;;  %s126_s25 = int_to_ptr.vmem [resolvable:$true] %s125_s25 }
  0x1a   :  { %131 = dma.hbm_to_vmem [thread:$0]  %s124_s27, 2048, %s126_s25, [#allocation14], %s4977_s29, %s4977_s29, %s4978_s26  }
  0x1b   :  { %4958 = dma.done.wait [#allocation5], 6144  }
  0x1c   :  { %4959 = vsyncadd [#allocation5], 4294961152 }
  0x1d   :  { %4960 = dma.done.wait [#allocation8], 12288  }
  0x1e   :  { %4961 = vsyncadd [#allocation8], 4294955008 }
  0x1f   :  { %4962 = dma.done.wait [#allocation11], 12288  }
  0x20   :  { %4963 = vsyncadd [#allocation11], 4294955008 }
  0x21   :  { %4964 = dma.done.wait [#allocation14], 8192  }
  0x22   :  { %4965 = vsyncadd [#allocation14], 4294959104  ;;  %v219_v0 = vld [vmem:[#allocation4 + $0x168] sm:$0xff]  ;;  %v216_v2 = vld [vmem:[#allocation4 + $0x150] sm:$0xff]  ;;  %s7419_s19 = sld [smem:[#allocation40_spill]]  ;;  %v7395_v47 = vmov 0.0  }
  0x23   :  { %v5110_v1 = vld [vmem:[#allocation7 + $0x168] sm:$0xff]  ;;  %230 = vmatpush.msra.mxu0 %v219_v0  ;;  %v5113_v3 = vld [vmem:[#allocation7 + $0x150] sm:$0xff]  ;;  %v213_v4 = vld [vmem:[#allocation4 + $0x138] sm:$0xff]  ;;  %s4980_s9 = smov [#allocation16]  }
  0x24   :  { %429 = vmatpush.msra.mxu3 %v5110_v1  ;;  %v5115_v5 = vld [vmem:[#allocation7 + $0x138] sm:$0xff]  ;;  %v210_v6 = vld [vmem:[#allocation4 + $0x120] sm:$0xff]  ;;  %v207_v8 = vld [vmem:[#allocation4 + $0x108] sm:$0xff]  ;;  %s4394_s25 = sshll.u32 %s4980_s9, 4  ;;  %s4395_s25 = int_to_ptr.vmem [resolvable:$true] %s4394_s25 }
  0x25   :  { %231 = vmatpush.msra.mxu0 %v216_v2  ;;  %v5118_v7 = vld [vmem:[#allocation7 + $0x120] sm:$0xff]  ;;  %v5121_v9 = vld [vmem:[#allocation7 + $0x108] sm:$0xff]  ;;  %v204_v10 = vld [vmem:[#allocation4 + $0xf0] sm:$0xff] }
  0x26   :  { %430 = vmatpush.msra.mxu3 %v5113_v3  ;;  %v5124_v11 = vld [vmem:[#allocation7 + $0xf0] sm:$0xff]  ;;  %v201_v12 = vld [vmem:[#allocation4 + $0xd8] sm:$0xff]  ;;  %v198_v14 = vld [vmem:[#allocation4 + $0xc0] sm:$0xff] }
  0x27   :  { %232 = vmatpush.msra.mxu0 %v213_v4  ;;  %v5127_v13 = vld [vmem:[#allocation7 + $0xd8] sm:$0xff]  ;;  %v5130_v15 = vld [vmem:[#allocation7 + $0xc0] sm:$0xff]  ;;  %v220_v16 = vld [vmem:[#allocation4 + $0x170] sm:$0xff] }
  0x28   :  { %431 = vmatpush.msra.mxu3 %v5115_v5  ;;  %v217_v17 = vld [vmem:[#allocation4 + $0x158] sm:$0xff]  ;;  %v195_v18 = vld [vmem:[#allocation4 + $0xa8] sm:$0xff]  ;;  %271 = vmatpush.msra.mxu1 %v220_v16  ;;  %v214_v20 = vld [vmem:[#allocation4 + $0x140] sm:$0xff] }
  0x29   :  { %233 = vmatpush.msra.mxu0 %v210_v6  ;;  %v5133_v19 = vld [vmem:[#allocation7 + $0xa8] sm:$0xff]  ;;  %v192_v21 = vld [vmem:[#allocation4 + $0x90] sm:$0xff]  ;;  %v189_v24 = vld [vmem:[#allocation4 + $0x78] sm:$0xff] }
  0x2a   :  { %432 = vmatpush.msra.mxu3 %v5118_v7  ;;  %v5136_v22 = vld [vmem:[#allocation7 + $0x90] sm:$0xff]  ;;  %272 = vmatpush.msra.mxu1 %v217_v17  ;;  %v211_v23 = vld [vmem:[#allocation4 + $0x128] sm:$0xff]  ;;  %v5139_v25 = vld [vmem:[#allocation7 + $0x78] sm:$0xff] }
  0x2b   :  { %234 = vmatpush.msra.mxu0 %v207_v8  ;;  %v186_v26 = vld [vmem:[#allocation4 + $0x60] sm:$0xff]  ;;  %v208_v28 = vld [vmem:[#allocation4 + $0x110] sm:$0xff]  ;;  %v183_v29 = vld [vmem:[#allocation4 + $0x48] sm:$0xff] }
  0x2c   :  { %433 = vmatpush.msra.mxu3 %v5121_v9  ;;  %273 = vmatpush.msra.mxu1 %v214_v20  ;;  %v5142_v27 = vld [vmem:[#allocation7 + $0x60] sm:$0xff]  ;;  %v205_v30 = vld [vmem:[#allocation4 + $0xf8] sm:$0xff]  ;;  %v5145_v31 = vld [vmem:[#allocation7 + $0x48] sm:$0xff] }
  0x2d   :  { %235 = vmatpush.msra.mxu0 %v204_v10  ;;  %v202_v32 = vld [vmem:[#allocation4 + $0xe0] sm:$0xff]  ;;  %v180_v33 = vld [vmem:[#allocation4 + $0x30] sm:$0xff]  ;;  %v199_v35 = vld [vmem:[#allocation4 + $0xc8] sm:$0xff] }
  0x2e   :  { %434 = vmatpush.msra.mxu3 %v5124_v11  ;;  %274 = vmatpush.msra.mxu1 %v211_v23  ;;  %v5148_v34 = vld [vmem:[#allocation7 + $0x30] sm:$0xff]  ;;  %v177_v36 = vld [vmem:[#allocation4 + $0x18] sm:$0xff]  ;;  %v174_v39 = vld [vmem:[#allocation4] sm:$0xff] }
  0x2f   :  { %236 = vmatpush.msra.mxu0 %v201_v12  ;;  %v5151_v37 = vld [vmem:[#allocation7 + $0x18] sm:$0xff]  ;;  %v196_v38 = vld [vmem:[#allocation4 + $0xb0] sm:$0xff]  ;;  %v5154_v40 = vld [vmem:[#allocation7] sm:$0xff] }
  0x30   :  { %435 = vmatpush.msra.mxu3 %v5127_v13  ;;  %275 = vmatpush.msra.mxu1 %v208_v28  ;;  %v5160_v41 = vld [vmem:[%s7419_s19] sm:$0xff]  ;;  %v221_v42 = vld [vmem:[#allocation4 + $0x178] sm:$0xff]  ;;  %v5162_v43 = vld [vmem:[#allocation7 + $0x170] sm:$0xff] }
  0x31   :  { %237 = vmatpush.msra.mxu0 %v198_v14  ;;  %v5164_v44 = vld [vmem:[#allocation7 + $0x178] sm:$0xff]  ;;  %312 = vmatpush.msra.mxu2 %v221_v42  ;;  %v218_v46 = vld [vmem:[#allocation4 + $0x160] sm:$0xff]  ;;  %v215_v51 = vld [vmem:[#allocation4 + $0x148] sm:$0xff] }
  0x32   :  { %436 = vmatpush.msra.mxu3 %v5130_v15  ;;  %276 = vmatpush.msra.mxu1 %v205_v30  ;;  %v193_v45 = vld [vmem:[#allocation4 + $0x98] sm:$0xff]  ;;  %v5171_v49 = vld [vmem:[#allocation7 + $0x160] sm:$0xff]  ;;  %v5177_v53 = vld [vmem:[#allocation7 + $0x148] sm:$0xff] }
  0x33   :  { %238 = vmatpush.msra.mxu0 %v195_v18  ;;  %v5169_v48 = vld [vmem:[#allocation7 + $0x158] sm:$0xff]  ;;  %v190_v50 = vld [vmem:[#allocation4 + $0x80] sm:$0xff]  ;;  %313 = vmatpush.msra.mxu2 %v218_v46  ;;  %v187_v54 = vld [vmem:[#allocation4 + $0x68] sm:$0xff] }
  0x34   :  { %437 = vmatpush.msra.mxu3 %v5133_v19  ;;  %277 = vmatpush.msra.mxu1 %v202_v32  ;;  %v5175_v52 = vld [vmem:[#allocation7 + $0x140] sm:$0xff]  ;;  %v212_v55 = vld [vmem:[#allocation4 + $0x130] sm:$0xff]  ;;  %v5181_v56 = vld [vmem:[#allocation7 + $0x128] sm:$0xff] }
  0x35   :  { %239 = vmatpush.msra.mxu0 %v192_v21  ;;  %v5183_v57 = vld [vmem:[#allocation7 + $0x130] sm:$0xff]  ;;  %314 = vmatpush.msra.mxu2 %v215_v51  ;;  %v5189_v58 = vld [vmem:[%s7419_s19 + $0x8] sm:$0xff]  ;;  %v5194_v61 = vld [vmem:[#allocation7 + $0x118] sm:$0xff] }
  0x36   :  { %438 = vmatpush.msra.mxu3 %v5136_v22  ;;  %278 = vmatpush.msra.mxu1 %v199_v35  ;;  %v184_v59 = vld [vmem:[#allocation4 + $0x50] sm:$0xff]  ;;  %v181_v62 = vld [vmem:[#allocation4 + $0x38] sm:$0xff]  ;;  %v5201_v2 = vld [vmem:[#allocation7 + $0x100] sm:$0xff] }
  0x37   :  { %240 = vmatpush.msra.mxu0 %v189_v24  ;;  %v5192_v60 = vld [vmem:[#allocation7 + $0x110] sm:$0xff]  ;;  %315 = vmatpush.msra.mxu2 %v212_v55  ;;  %v209_v63 = vld [vmem:[#allocation4 + $0x118] sm:$0xff]  ;;  %v178_v4 = vld [vmem:[#allocation4 + $0x20] sm:$0xff] }
  0x38   :  { %439 = vmatpush.msra.mxu3 %v5139_v25  ;;  %279 = vmatpush.msra.mxu1 %v196_v38  ;;  %v5199_v0 = vld [vmem:[#allocation7 + $0xf8] sm:$0xff]  ;;  %v206_v6 = vld [vmem:[#allocation4 + $0x100] sm:$0xff]  ;;  %v5207_v10 = vld [vmem:[#allocation7 + $0xe8] sm:$0xff] }
  0x39   :  { %241 = vmatpush.msra.mxu0 %v186_v26  ;;  %v5205_v8 = vld [vmem:[#allocation7 + $0xe0] sm:$0xff]  ;;  %316 = vmatpush.msra.mxu2 %v209_v63  ;;  %v175_v12 = vld [vmem:[#allocation4 + $0x8] sm:$0xff]  ;;  %v5213_v17 = vld [vmem:[#allocation7 + $0xd0] sm:$0xff] }
  0x3a   :  { %440 = vmatpush.msra.mxu3 %v5142_v27  ;;  %280 = vmatpush.msra.mxu1 %v193_v45  ;;  %v203_v14 = vld [vmem:[#allocation4 + $0xe8] sm:$0xff]  ;;  %v5219_v18 = vld [vmem:[%s7419_s19 + $0x10] sm:$0xff]  ;;  %v5224_v21 = vld [vmem:[#allocation7 + $0xb8] sm:$0xff] }
  0x3b   :  { %242 = vmatpush.msra.mxu0 %v183_v29  ;;  %v5211_v16 = vld [vmem:[#allocation7 + $0xc8] sm:$0xff]  ;;  %317 = vmatpush.msra.mxu2 %v206_v6  ;;  %v5222_v20 = vld [vmem:[#allocation7 + $0xb0] sm:$0xff]  ;;  %v5229_v24 = vld [vmem:[#allocation7 + $0x98] sm:$0xff] }
  0x3c   :  { %441 = vmatpush.msra.mxu3 %v5145_v31  ;;  %281 = vmatpush.msra.mxu1 %v190_v50  ;;  %v200_v23 = vld [vmem:[#allocation4 + $0xd0] sm:$0xff]  ;;  %v5232_v26 = vld [vmem:[#allocation7 + $0xa0] sm:$0xff]  ;;  %v197_v28 = vld [vmem:[#allocation4 + $0xb8] sm:$0xff] }
  0x3d   :  { %243 = vmatpush.msra.mxu0 %v180_v33  ;;  %318 = vmatpush.msra.mxu2 %v203_v14  ;;  %v5236_v29 = vld [vmem:[#allocation7 + $0x80] sm:$0xff]  ;;  %v5238_v30 = vld [vmem:[#allocation7 + $0x88] sm:$0xff]  ;;  %v5245_v35 = vld [vmem:[#allocation7 + $0x70] sm:$0xff] }
  0x3e   :  { %442 = vmatpush.msra.mxu3 %v5148_v34  ;;  %282 = vmatpush.msra.mxu1 %v187_v54  ;;  %v194_v32 = vld [vmem:[#allocation4 + $0xa0] sm:$0xff]  ;;  %v5243_v33 = vld [vmem:[#allocation7 + $0x68] sm:$0xff]  ;;  %v5257_v42 = vld [vmem:[#allocation7 + $0x58] sm:$0xff] }
  0x3f   :  { %244 = vmatpush.msra.mxu0 %v177_v36  ;;  %319 = vmatpush.msra.mxu2 %v200_v23  ;;  %v5252_v36 = vld [vmem:[%s7419_s19 + $0x18] sm:$0xff]  ;;  %v191_v38 = vld [vmem:[#allocation4 + $0x88] sm:$0xff]  ;;  %v188_v45 = vld [vmem:[#allocation4 + $0x70] sm:$0xff] }
  0x40   :  { %443 = vmatpush.msra.mxu3 %v5151_v37  ;;  %283 = vmatpush.msra.mxu1 %v184_v59  ;;  %v5263_v46 = vld [vmem:[#allocation7 + $0x38] sm:$0xff]  ;;  %v5265_v50 = vld [vmem:[#allocation7 + $0x40] sm:$0xff]  ;;  %v5271_v55 = vld [vmem:[#allocation7 + $0x28] sm:$0xff] }
  0x41   :  { %245 = vmatpush.msra.mxu0 %v174_v39  ;;  %320 = vmatpush.msra.mxu2 %v197_v28  ;;  %v5255_v39 = vld [vmem:[#allocation7 + $0x50] sm:$0xff]  ;;  %v185_v51 = vld [vmem:[#allocation4 + $0x58] sm:$0xff]  ;;  %v5269_v54 = vld [vmem:[#allocation7 + $0x20] sm:$0xff] }
  0x42   :  { %444 = vmatpush.msra.mxu3 %v5154_v40  ;;  %246 = vmatmul.f32.vlgmr.msra.gmra.mxu0 %v5160_v41  ;;  %v182_v59 = vld [vmem:[#allocation4 + $0x40] sm:$0xff]  ;;  %v5278_v63 = vld [vmem:[#allocation7 + $0x10] sm:$0xff]  ;;  %v179_v6 = vld [vmem:[#allocation4 + $0x28] sm:$0xff] }
  0x43   :  { %445 = vmatmul.f32.vlgmr.msra.gmra.mxu3 %v7395_v47  ;;  %469 = vmatpush.msrb.mxu0 %v5164_v44  ;;  %v5302_v14 = vld [vmem:[%s7419_s19 + $0x28] sm:$0xff] }
  0x44   :  { %449 = vmatpush.msrb.mxu3 %v5162_v43  ;;  %284 = vmatpush.msra.mxu1 %v181_v62  ;;  %v5276_v62 = vld [vmem:[#allocation7 + $0x8] sm:$0xff] }
  0x45   :  { %470 = vmatpush.msrb.mxu0 %v5171_v49  ;;  %321 = vmatpush.msra.mxu2 %v194_v32 }
  0x46   :  { %450 = vmatpush.msrb.mxu3 %v5169_v48  ;;  %285 = vmatpush.msra.mxu1 %v178_v4  ;;  %v5285_v4 = vld [vmem:[%s7419_s19 + $0x20] sm:$0xff] }
  0x47   :  { %471 = vmatpush.msrb.mxu0 %v5177_v53  ;;  %322 = vmatpush.msra.mxu2 %v191_v38 }
  0x48   :  { %451 = vmatpush.msrb.mxu3 %v5175_v52  ;;  %286 = vmatpush.msra.mxu1 %v175_v12  ;;  %v176_v12 = vld [vmem:[#allocation4 + $0x10] sm:$0xff] }
  0x49   :  { %472 = vmatpush.msrb.mxu0 %v5183_v57  ;;  %287 = vmatmul.f32.vlgmr.msra.gmra.mxu1 %v5160_v41 }
  0x4a   :  { %452 = vmatpush.msrb.mxu3 %v5181_v56  ;;  %249 = vmatmul.f32.gmra.mxu0 %v5189_v58 }
  0x4b   :  { %473 = vmatpush.msrb.mxu0 %v5194_v61  ;;  %592 = vmatpush.msrb.mxu1 %v5110_v1 }
  0x4c   :  { %453 = vmatpush.msrb.mxu3 %v5192_v60  ;;  %323 = vmatpush.msra.mxu2 %v188_v45 }
  0x4d   :  { %474 = vmatpush.msrb.mxu0 %v5201_v2  ;;  %593 = vmatpush.msrb.mxu1 %v5113_v3 }
  0x4e   :  { %454 = vmatpush.msrb.mxu3 %v5199_v0  ;;  %324 = vmatpush.msra.mxu2 %v185_v51 }
  0x4f   :  { %475 = vmatpush.msrb.mxu0 %v5207_v10  ;;  %594 = vmatpush.msrb.mxu1 %v5115_v5 }
  0x50   :  { %455 = vmatpush.msrb.mxu3 %v5205_v8  ;;  %325 = vmatpush.msra.mxu2 %v182_v59 }
  0x51   :  { %476 = vmatpush.msrb.mxu0 %v5213_v17  ;;  %290 = vmatmul.f32.gmra.mxu1 %v5189_v58 }
  0x52   :  { %456 = vmatpush.msrb.mxu3 %v5211_v16  ;;  %252 = vmatmul.f32.gmra.mxu0 %v5219_v18 }
  0x53   :  { %477 = vmatpush.msrb.mxu0 %v5224_v21  ;;  %595 = vmatpush.msrb.mxu1 %v5118_v7 }
  0x54   :  { %457 = vmatpush.msrb.mxu3 %v5222_v20  ;;  %326 = vmatpush.msra.mxu2 %v179_v6 }
  0x55   :  { %478 = vmatpush.msrb.mxu0 %v5232_v26  ;;  %596 = vmatpush.msrb.mxu1 %v5121_v9 }
  0x56   :  { %458 = vmatpush.msrb.mxu3 %v5229_v24  ;;  %327 = vmatpush.msra.mxu2 %v176_v12 }
  0x57   :  { %479 = vmatpush.msrb.mxu0 %v5238_v30  ;;  %597 = vmatpush.msrb.mxu1 %v5124_v11 }
  0x58   :  { %459 = vmatpush.msrb.mxu3 %v5236_v29  ;;  %328 = vmatmul.f32.vlgmr.msra.gmra.mxu2 %v5160_v41 }
  0x59   :  { %480 = vmatpush.msrb.mxu0 %v5245_v35  ;;  %293 = vmatmul.f32.gmra.mxu1 %v5219_v18 }
  0x5a   :  { %460 = vmatpush.msrb.mxu3 %v5243_v33  ;;  %255 = vmatmul.f32.gmra.mxu0 %v5252_v36 }
  0x5b   :  { %481 = vmatpush.msrb.mxu0 %v5257_v42  ;;  %598 = vmatpush.msrb.mxu1 %v5127_v13 }
  0x5c   :  { %461 = vmatpush.msrb.mxu3 %v5255_v39  ;;  %612 = vmatpush.msrb.mxu2 %v5162_v43 }
  0x5d   :  { %482 = vmatpush.msrb.mxu0 %v5265_v50  ;;  %599 = vmatpush.msrb.mxu1 %v5130_v15 }
  0x5e   :  { %462 = vmatpush.msrb.mxu3 %v5263_v46  ;;  %613 = vmatpush.msrb.mxu2 %v5169_v48 }
  0x5f   :  { %483 = vmatpush.msrb.mxu0 %v5271_v55  ;;  %600 = vmatpush.msrb.mxu1 %v5133_v19 }
  0x60   :  { %463 = vmatpush.msrb.mxu3 %v5269_v54  ;;  %614 = vmatpush.msrb.mxu2 %v5175_v52 }
  0x61   :  { %484 = vmatpush.msrb.mxu0 %v5278_v63  ;;  %601 = vmatpush.msrb.mxu1 %v5136_v22 }
  0x62   :  { %464 = vmatpush.msrb.mxu3 %v5276_v62  ;;  %258 = vmatmul.f32.gmra.mxu0 %v5285_v4 }
  0x63   :  { %465 = vmatmul.f32.vlgmr.msrb.gmra.mxu3 %v7395_v47  ;;  %752 = vmatpush.msra.mxu0 %v5110_v1  ;;  %v5323_v1 = vld [vmem:[%s7419_s19 + $0x30] sm:$0xff] }
  0x64   :  { %632 = vmatpush.msra.mxu3 %v5164_v44  ;;  %296 = vmatmul.f32.gmra.mxu1 %v5252_v36 }
  0x65   :  { %615 = vmatpush.msrb.mxu2 %v5181_v56  ;;  %602 = vmatpush.msrb.mxu1 %v5139_v25 }
  0x66   :  { %633 = vmatpush.msra.mxu3 %v5171_v49  ;;  %331 = vmatmul.f32.gmra.mxu2 %v5189_v58 }
  0x67   :  { %616 = vmatpush.msrb.mxu2 %v5192_v60  ;;  %603 = vmatpush.msrb.mxu1 %v5142_v27 }
  0x68   :  { %634 = vmatpush.msra.mxu3 %v5177_v53  ;;  %753 = vmatpush.msra.mxu0 %v5113_v3  ;;  %v5344_v3 = vld [vmem:[%s7419_s19 + $0x38] sm:$0xff] }
  0x69   :  { %617 = vmatpush.msrb.mxu2 %v5199_v0  ;;  %604 = vmatpush.msrb.mxu1 %v5145_v31 }
  0x6a   :  { %261 = vmatmul.f32.gmra.mxu0 %v5302_v14  ;;  %635 = vmatpush.msra.mxu3 %v5183_v57 }
  0x6b   :  { %618 = vmatpush.msrb.mxu2 %v5205_v8  ;;  %605 = vmatpush.msrb.mxu1 %v5148_v34 }
  0x6c   :  { %636 = vmatpush.msra.mxu3 %v5194_v61  ;;  %299 = vmatmul.f32.gmra.mxu1 %v5285_v4 }
  0x6d   :  { %619 = vmatpush.msrb.mxu2 %v5211_v16  ;;  %606 = vmatpush.msrb.mxu1 %v5151_v37 }
  0x6e   :  { %637 = vmatpush.msra.mxu3 %v5201_v2  ;;  %334 = vmatmul.f32.gmra.mxu2 %v5219_v18 }
  0x6f   :  { %620 = vmatpush.msrb.mxu2 %v5222_v20  ;;  %607 = vmatpush.msrb.mxu1 %v5154_v40 }
  0x70   :  { %638 = vmatpush.msra.mxu3 %v5207_v10  ;;  %754 = vmatpush.msra.mxu0 %v5115_v5 }
  0x71   :  { %772 = vmatpush.msra.mxu1 %v5162_v43  ;;  %621 = vmatpush.msrb.mxu2 %v5229_v24 }
  0x72   :  { %264 = vmatmul.f32.gmra.mxu0 %v5323_v1  ;;  %639 = vmatpush.msra.mxu3 %v5213_v17 }
  0x73   :  { %622 = vmatpush.msrb.mxu2 %v5236_v29  ;;  %773 = vmatpush.msra.mxu1 %v5169_v48 }
  0x74   :  { %640 = vmatpush.msra.mxu3 %v5224_v21  ;;  %302 = vmatmul.f32.gmra.mxu1 %v5302_v14 }
  0x75   :  { %623 = vmatpush.msrb.mxu2 %v5243_v33  ;;  %774 = vmatpush.msra.mxu1 %v5175_v52 }
  0x76   :  { %641 = vmatpush.msra.mxu3 %v5232_v26  ;;  %337 = vmatmul.f32.gmra.mxu2 %v5252_v36 }
  0x77   :  { %624 = vmatpush.msrb.mxu2 %v5255_v39  ;;  %755 = vmatpush.msra.mxu0 %v5118_v7  ;;  %v222_v7 = vld [vmem:[%s7379_s3] sm:$0x7] }
  0x78   :  { %642 = vmatpush.msra.mxu3 %v5238_v30  ;;  %775 = vmatpush.msra.mxu1 %v5181_v56  ;;  %v5445_v23 = vperm.slane %v222_v7, 2 }
  0x79   :  { %625 = vmatpush.msrb.mxu2 %v5263_v46  ;;  %756 = vmatpush.msra.mxu0 %v5121_v9 }
  0x7a   :  { %267 = vmatmul.f32.gmra.mxu0 %v5344_v3  ;;  %643 = vmatpush.msra.mxu3 %v5245_v35 }
  0x7b   :  { %626 = vmatpush.msrb.mxu2 %v5269_v54  ;;  %776 = vmatpush.msra.mxu1 %v5192_v60 }
  0x7c   :  { %644 = vmatpush.msra.mxu3 %v5257_v42  ;;  %305 = vmatmul.f32.gmra.mxu1 %v5323_v1 }
  0x7d   :  { %757 = vmatpush.msra.mxu0 %v5124_v11  ;;  %627 = vmatpush.msrb.mxu2 %v5276_v62  ;;  %v5422_v11 = vperm.slane %v222_v7, 0 }
  0x7e   :  { %645 = vmatpush.msra.mxu3 %v5265_v50  ;;  %777 = vmatpush.msra.mxu1 %v5199_v0 }
  0x7f   :  { %340 = vmatmul.f32.gmra.mxu2 %v5285_v4  ;;  %758 = vmatpush.msra.mxu0 %v5127_v13 }
  0x80   :  { %646 = vmatpush.msra.mxu3 %v5271_v55  ;;  %792 = vmatpush.msra.mxu2 %v5164_v44 }
  0x81   :  { %778 = vmatpush.msra.mxu1 %v5205_v8  ;;  %759 = vmatpush.msra.mxu0 %v5130_v15 }
  0x82   :  { %485 = vmatmul.f32.vlgmr.msrb.gmra.mxu0 %v7395_v47  ;;  %647 = vmatpush.msra.mxu3 %v5278_v63  ;;  %v5584_v47 = vld [vmem:[#allocation7 + $0x98] sm:$0xff] }
  0x83   :  { %793 = vmatpush.msra.mxu2 %v5171_v49  ;;  %779 = vmatpush.msra.mxu1 %v5211_v16 }
  0x84   :  { %760 = vmatpush.msra.mxu0 %v5133_v19  ;;  %308 = vmatmul.f32.gmra.mxu1 %v5344_v3 }
  0x85   :  { %794 = vmatpush.msra.mxu2 %v5177_v53  ;;  %780 = vmatpush.msra.mxu1 %v5222_v20 }
  0x86   :  { %761 = vmatpush.msra.mxu0 %v5136_v22 }
  0x87   :  { %795 = vmatpush.msra.mxu2 %v5183_v57  ;;  %781 = vmatpush.msra.mxu1 %v5229_v24 }
  0x88   :  { %343 = vmatmul.f32.gmra.mxu2 %v5302_v14  ;;  %762 = vmatpush.msra.mxu0 %v5139_v25 }
  0x89   :  { %796 = vmatpush.msra.mxu2 %v5194_v61  ;;  %782 = vmatpush.msra.mxu1 %v5236_v29 }
  0x8a   :  { %763 = vmatpush.msra.mxu0 %v5142_v27 }
  0x8b   :  { %797 = vmatpush.msra.mxu2 %v5201_v2  ;;  %783 = vmatpush.msra.mxu1 %v5243_v33 }
  0x8c   :  { %764 = vmatpush.msra.mxu0 %v5145_v31 }
  0x8d   :  { %798 = vmatpush.msra.mxu2 %v5207_v10  ;;  %784 = vmatpush.msra.mxu1 %v5255_v39 }
  0x8e   :  { %765 = vmatpush.msra.mxu0 %v5148_v34  ;;  %v5429_v34 = vperm.slane %v222_v7, 1 }
  0x8f   :  { %799 = vmatpush.msra.mxu2 %v5213_v17  ;;  %785 = vmatpush.msra.mxu1 %v5263_v46 }
  0x90   :  { %346 = vmatmul.f32.gmra.mxu2 %v5323_v1  ;;  %766 = vmatpush.msra.mxu0 %v5151_v37 }
  0x91   :  { %800 = vmatpush.msra.mxu2 %v5224_v21  ;;  %786 = vmatpush.msra.mxu1 %v5269_v54  ;;  %v5443_v21 = vld [vmem:[%s7380_s4] ss:$0 sm:$0xff] }
  0x92   :  { %767 = vmatpush.msra.mxu0 %v5154_v40 }
  0x93   :  { %801 = vmatpush.msra.mxu2 %v5232_v26  ;;  %787 = vmatpush.msra.mxu1 %v5276_v62 }
  0x95   :  { %802 = vmatpush.msra.mxu2 %v5238_v30 }
  0x97   :  { %803 = vmatpush.msra.mxu2 %v5245_v35 }
  0x98   :  { %349 = vmatmul.f32.gmra.mxu2 %v5344_v3 }
  0x99   :  { %804 = vmatpush.msra.mxu2 %v5257_v42 }
  0x9b   :  { %805 = vmatpush.msra.mxu2 %v5265_v50 }
  0x9d   :  { %806 = vmatpush.msra.mxu2 %v5271_v55 }
  0x9f   :  { %807 = vmatpush.msra.mxu2 %v5278_v63 }
  0xbf   :  { %v247_v5 = vpop.f32.mrf.mxu0 }
  0xc0   :  { %v248_v15 = vadd.f32 %v247_v5, %v5422_v11 }
  0xc6   :  { %v446_v13 = vpop.f32.mrf.mxu3  ;;  %v288_v40 = vpop.f32.mrf.mxu1 }
  0xc7   :  { %v5420_v9 = vpop.f32.mrf.mxu0  ;;  %v489_v22 = vadd.f32 %v446_v13, %v248_v15  ;;  %v289_v43 = vadd.f32 %v288_v40, %v5429_v34 }
  0xc9   :  { %v4409_v25 = vmul.f32 -1.442695, %v489_v22 }
  0xcb   :  { %4475 = vpow2.f32 %v4409_v25 }
  0xce   :  { %v291_v7 = vpop.f32.mrf.mxu1 }
  0xcf   :  { %v5425_v19 = vpop.f32.mrf.mxu0 }
  0xd1   :  { %v4476_v31 = vpop.eup %4475 }
  0xd2   :  { %v493_v41 = vadd.f32 1.0, %v4476_v31 }
  0xd4   :  { %4477 = vrcp.f32 %v493_v41  ;;  %v505_v17 = vand.u32 2147483648, %v493_v41  ;;  %vm499_vm1 = vweird.f32 %v493_v41  ;;  %v503_v20 = vand.u32 2147483647, %v493_v41 }
  0xd6   :  { %v506_v33 = vor.u32 1.1754944e-38, %v505_v17  ;;  %vm504_vm3 = vcmp.eq.f32.partialorder %v503_v20, 8.507059e+37  ;;  %v5454_v15 = vpop.f32.mrf.mxu1 }
  0xd7   :  { %v5427_v27 = vpop.f32.mrf.mxu0 }
  0xda   :  { %v4478_v53 = vpop.eup %4477 }
  0xdb   :  { %v495_v56 = vmul.f32 %v4478_v53, %v493_v41  ;;  %vm500_vm0 = vweird.f32 %v4478_v53  ;;  %v329_v24 = vpop.f32.mrf.mxu2 }
  0xdc   :  { %vm501_vm2 = vmor %vm499_vm1, %vm500_vm0  ;;  %v330_v38 = vadd.f32 %v329_v24, %v5445_v23 }
  0xdd   :  { %v496_v61 = vsub.f32 1.0, %v495_v56 }
  0xdf   :  { %v5431_v37 = vpop.f32.mrf.mxu0  ;;  %v497_v0 = vmul.f32 %v4478_v53, %v496_v61 }
  0xe1   :  { %v498_v16 = vadd.f32 %v4478_v53, %v497_v0  ;;  %v5458_v25 = vpop.f32.mrf.mxu1 }
  0xe3   :  { %v502_v29 = vsel %vm501_vm2, %v4478_v53, %v498_v16 }
  0xe4   :  { %v507_v39 = vsel %vm504_vm3, %v506_v33, %v502_v29 }
  0xe6   :  { %v466_v44 = vpop.f32.mrf.mxu3 }
  0xe7   :  { %v509_v48 = vadd.f32 %v466_v44, %v289_v43  ;;  %v5434_v49 = vpop.f32.mrf.mxu0 }
  0xe8   :  { %7420 = vst [vmem:[#allocation22_spill] sm:$0xff] %v5434_v49 }
  0xe9   :  { %v4410_v52 = vmul.f32 -1.442695, %v509_v48  ;;  %v332_v13 = vpop.f32.mrf.mxu2  ;;  %v5462_v40 = vpop.f32.mrf.mxu1 }
  0xea   :  { %7424 = vst [vmem:[#allocation26_spill] sm:$0xff] %v5462_v40 }
  0xeb   :  { %4479 = vpow2.f32 %v4410_v52 }
  0xef   :  { %v5436_v57 = vpop.f32.mrf.mxu0 }
  0xf0   :  { %7421 = vst [vmem:[#allocation23_spill] sm:$0xff] %v5436_v57 }
  0xf1   :  { %v4480_v58 = vpop.eup %4479  ;;  %v5456_v22 = vpop.f32.mrf.mxu2 }
  0xf2   :  { %v513_v60 = vadd.f32 1.0, %v4480_v58  ;;  %v5466_v43 = vpop.f32.mrf.mxu1  ;;  %v251_v58 = vadd.f32 %v5420_v9, %v5422_v11 }
  0xf3   :  { %7426 = vst [vmem:[#allocation28_spill] sm:$0xff] %v5466_v43 }
  0xf4   :  { %4481 = vrcp.f32 %v513_v60  ;;  %vm519_vm4 = vweird.f32 %v513_v60  ;;  %v525_v46 = vand.u32 2147483648, %v513_v60  ;;  %v523_v54 = vand.u32 2147483647, %v513_v60 }
  0xf6   :  { %v526_v4 = vor.u32 1.1754944e-38, %v525_v46  ;;  %vm524_vm7 = vcmp.eq.f32.partialorder %v523_v54, 8.507059e+37 }
  0xf7   :  { %v5438_v2 = vpop.f32.mrf.mxu0 }
  0xf8   :  { %7422 = vst [vmem:[#allocation24_spill] sm:$0xff] %v5438_v2 }
  0xf9   :  { %v5460_v31 = vpop.f32.mrf.mxu2 }
  0xfa   :  { %v4482_v8 = vpop.eup %4481  ;;  %v5470_v48 = vpop.f32.mrf.mxu1 }
  0xfb   :  { %v515_v10 = vmul.f32 %v4482_v8, %v513_v60  ;;  %vm520_vm5 = vweird.f32 %v4482_v8  ;;  %7428 = vst [vmem:[#allocation30_spill] sm:$0xff] %v5470_v48  ;;  %v5631_v48 = vld [vmem:[#allocation7 + $0x8] sm:$0xff] }
  0xfc   :  { %vm521_vm6 = vmor %vm519_vm4, %vm520_vm5 }
  0xfd   :  { %v516_v18 = vsub.f32 1.0, %v515_v10 }
  0xff   :  { %v517_v28 = vmul.f32 %v4482_v8, %v516_v18  ;;  %v486_v32 = vpop.f32.mrf.mxu0 }
 0x100   :  { %v532_v36 = vadd.f32 %v5443_v21, %v486_v32 }
 0x101   :  { %v518_v45 = vadd.f32 %v4482_v8, %v517_v28 }
 0x102   :  { %v533_v51 = vmul.f32 %v532_v36, %v507_v39  ;;  %v5464_v41 = vpop.f32.mrf.mxu2  ;;  %v5474_v53 = vpop.f32.mrf.mxu1 }
 0x103   :  { %v522_v62 = vsel %vm521_vm6, %v4482_v8, %v518_v45  ;;  %7425 = vst [vmem:[#allocation27_spill] sm:$0xff] %v5464_v41  ;;  %v292_v8 = vadd.f32 %v291_v7, %v5429_v34 }
 0x104   :  { %v534_v59 = vadd.f32 %v533_v51, %v330_v38  ;;  %v527_v6 = vsel %vm524_vm7, %v526_v4, %v522_v62  ;;  %7430 = vst [vmem:[#allocation32_spill] sm:$0xff] %v5474_v53  ;;  %v5590_v53 = vld [vmem:[#allocation7 + $0x78] sm:$0xff] }
 0x105   :  { %v536_v12 = vsub.f32 1.0, %v527_v6  ;;  %v538_v3 = vmul.f32 0.0, %v527_v6  ;;  %v333_v6 = vadd.f32 %v332_v13, %v5445_v23 }
 0x106   :  { %4483 = vtanh.f32 %v534_v59 }
 0x10b   :  { %v5468_v44 = vpop.f32.mrf.mxu2 }
 0x10c   :  { %v4484_v14 = vpop.eup %4483  ;;  %7427 = vst [vmem:[#allocation29_spill] sm:$0xff] %v5468_v44 }
 0x10d   :  { %v537_v1 = vmul.f32 %v4484_v14, %v536_v12 }
 0x10f   :  { %v5449_v5 = vadd.f32 %v538_v3, %v537_v1 }
 0x111   :  { %7423 = vst [vmem:[#allocation25_spill] sm:$0xff] %v5449_v5  ;;  %608 = vmatmul.f32.vlgmr.msrb.gmra.mxu1 %v5449_v5  ;;  %628 = vmatmul.f32.vlgmr.msrb.gmra.mxu2 %v5449_v5 }
 0x112   :  { %648 = vmatmul.f32.vlgmr.msra.gmra.mxu3 %v5449_v5 }
 0x113   :  { %v5472_v52 = vpop.f32.mrf.mxu2 }
 0x114   :  { %7429 = vst [vmem:[#allocation31_spill] sm:$0xff] %v5472_v52  ;;  %v5629_v52 = vld [vmem:[#allocation7] sm:$0xff] }
 0x11b   :  { %v5476_v56 = vpop.f32.mrf.mxu2 }
 0x11c   :  { %7431 = vst [vmem:[#allocation33_spill] sm:$0xff] %v5476_v56 }
 0x18e   :  { %v609_v60 = vpop.f32.mrf.mxu1 }
 0x18f   :  { %v652_v61 = vadd.f32 %v609_v60, %v251_v58 }
 0x191   :  { %v4411_v0 = vmul.f32 -1.442695, %v652_v61 }
 0x193   :  { %4485 = vpow2.f32 %v4411_v0 }
 0x194   :  { %v629_v10 = vpop.f32.mrf.mxu2 }
 0x195   :  { %v672_v16 = vadd.f32 %v629_v10, %v292_v8  ;;  %v649_v45 = vpop.f32.mrf.mxu3 }
 0x196   :  { %v692_v4 = vadd.f32 %v5443_v21, %v649_v45  ;;  %v5520_v45 = vld [vmem:[#allocation7 + $0x128] sm:$0xff] }
 0x197   :  { %v4412_v17 = vmul.f32 -1.442695, %v672_v16 }
 0x199   :  { %v4486_v18 = vpop.eup %4485  ;;  %4487 = vpow2.f32 %v4412_v17 }
 0x19a   :  { %v656_v20 = vadd.f32 1.0, %v4486_v18 }
 0x19c   :  { %4489 = vrcp.f32 %v656_v20  ;;  %v668_v9 = vand.u32 2147483648, %v656_v20  ;;  %v666_v38 = vand.u32 2147483647, %v656_v20  ;;  %vm662_vm9 = vweird.f32 %v656_v20 }
 0x19e   :  { %v669_v54 = vor.u32 1.1754944e-38, %v668_v9  ;;  %vm667_vm11 = vcmp.eq.f32.partialorder %v666_v38, 8.507059e+37  ;;  %v5508_v9 = vld [vmem:[#allocation7 + $0x138] sm:$0xff]  ;;  %v5512_v38 = vld [vmem:[#allocation7 + $0x148] sm:$0xff] }
 0x19f   :  { %v4488_v24 = vpop.eup %4487 }
 0x1a0   :  { %v676_v28 = vadd.f32 1.0, %v4488_v24  ;;  %v5491_v24 = vld [vmem:[#allocation7 + $0x170] sm:$0xff] }
 0x1a1   :  { %932 = vmatpush.msrb.mxu0 %v5491_v24 }
 0x1a2   :  { %v4490_v29 = vpop.eup %4489  ;;  %4491 = vrcp.f32 %v676_v28  ;;  %v688_v1 = vand.u32 2147483648, %v676_v28  ;;  %v686_v7 = vand.u32 2147483647, %v676_v28  ;;  %vm682_vm13 = vweird.f32 %v676_v28 }
 0x1a3   :  { %v658_v32 = vmul.f32 %v4490_v29, %v656_v20  ;;  %vm663_vm8 = vweird.f32 %v4490_v29  ;;  %v5489_v20 = vld [vmem:[#allocation7 + $0x168] sm:$0xff] }
 0x1a4   :  { %vm664_vm10 = vmor %vm662_vm9, %vm663_vm8  ;;  %v689_v61 = vor.u32 1.1754944e-38, %v688_v1  ;;  %vm687_vm15 = vcmp.eq.f32.partialorder %v686_v7, 8.507059e+37  ;;  %912 = vmatpush.msrb.mxu3 %v5489_v20  ;;  %1072 = vmatpush.msrb.mxu2 %v5489_v20  ;;  %v5552_v1 = vld [vmem:[#allocation7 + $0xe8] sm:$0xff] }
 0x1a5   :  { %v659_v33 = vsub.f32 1.0, %v658_v32  ;;  %v5500_v32 = vld [vmem:[#allocation7 + $0x158] sm:$0xff]  ;;  %v5560_v7 = vld [vmem:[#allocation7 + $0xc8] sm:$0xff] }
 0x1a6   :  { %933 = vmatpush.msrb.mxu0 %v5500_v32 }
 0x1a7   :  { %v660_v36 = vmul.f32 %v4490_v29, %v659_v33  ;;  %v5502_v33 = vld [vmem:[#allocation7 + $0x160] sm:$0xff] }
 0x1a8   :  { %v4492_v39 = vpop.eup %4491 }
 0x1a9   :  { %v678_v46 = vmul.f32 %v4492_v39, %v676_v28  ;;  %v661_v51 = vadd.f32 %v4490_v29, %v660_v36  ;;  %vm683_vm12 = vweird.f32 %v4492_v39  ;;  %v5493_v28 = vld [vmem:[#allocation7 + $0x178] sm:$0xff]  ;;  %v5510_v36 = vld [vmem:[#allocation7 + $0x140] sm:$0xff] }
 0x1aa   :  { %vm684_vm14 = vmor %vm682_vm13, %vm683_vm12  ;;  %952 = vmatpush.msrb.mxu1 %v5493_v28  ;;  %934 = vmatpush.msrb.mxu0 %v5510_v36 }
 0x1ab   :  { %v679_v59 = vsub.f32 1.0, %v678_v46  ;;  %v665_v62 = vsel %vm664_vm10, %v4490_v29, %v661_v51  ;;  %v5498_v29 = vld [vmem:[#allocation7 + $0x150] sm:$0xff]  ;;  %v5528_v51 = vld [vmem:[#allocation7 + $0x108] sm:$0xff] }
 0x1ac   :  { %v670_v12 = vsel %vm667_vm11, %v669_v54, %v665_v62  ;;  %913 = vmatpush.msrb.mxu3 %v5498_v29  ;;  %953 = vmatpush.msrb.mxu1 %v5502_v33  ;;  %v5522_v46 = vld [vmem:[#allocation7 + $0x130] sm:$0xff] }
 0x1ad   :  { %v680_v14 = vmul.f32 %v4492_v39, %v679_v59  ;;  %v693_v3 = vmul.f32 %v692_v4, %v670_v12  ;;  %1073 = vmatpush.msrb.mxu2 %v5498_v29  ;;  %935 = vmatpush.msrb.mxu0 %v5520_v45  ;;  %v5530_v54 = vld [vmem:[#allocation7 + $0x110] sm:$0xff]  ;;  %v5532_v59 = vld [vmem:[#allocation7 + $0x118] sm:$0xff] }
 0x1ae   :  { %914 = vmatpush.msrb.mxu3 %v5508_v9  ;;  %954 = vmatpush.msrb.mxu1 %v5512_v38  ;;  %v5538_v62 = vld [vmem:[#allocation7 + $0xf0] sm:$0xff]  ;;  %v5540_v4 = vld [vmem:[#allocation7 + $0xf8] sm:$0xff] }
 0x1af   :  { %v681_v58 = vadd.f32 %v4492_v39, %v680_v14  ;;  %v694_v60 = vadd.f32 %v693_v3, %v333_v6  ;;  %1074 = vmatpush.msrb.mxu2 %v5508_v9  ;;  %936 = vmatpush.msrb.mxu0 %v5530_v54  ;;  %v5542_v6 = vld [vmem:[#allocation7 + $0x100] sm:$0xff]  ;;  %v5548_v12 = vld [vmem:[#allocation7 + $0xd8] sm:$0xff] }
 0x1b0   :  { %955 = vmatpush.msrb.mxu1 %v5522_v46  ;;  %v5550_v14 = vld [vmem:[#allocation7 + $0xe0] sm:$0xff] }
 0x1b1   :  { %v685_v0 = vsel %vm684_vm14, %v4492_v39, %v681_v58  ;;  %4493 = vtanh.f32 %v694_v60  ;;  %v5518_v39 = vld [vmem:[#allocation7 + $0x120] sm:$0xff]  ;;  %937 = vmatpush.msrb.mxu0 %v5540_v4  ;;  %v5562_v58 = vld [vmem:[#allocation7 + $0xd0] sm:$0xff]  ;;  %v254_v60 = vadd.f32 %v5425_v19, %v5422_v11 }
 0x1b2   :  { %v690_v8 = vsel %vm687_vm15, %v689_v61, %v685_v0  ;;  %915 = vmatpush.msrb.mxu3 %v5518_v39  ;;  %1075 = vmatpush.msrb.mxu2 %v5518_v39  ;;  %v5558_v3 = vld [vmem:[#allocation7 + $0xc0] sm:$0xff]  ;;  %v295_v61 = vadd.f32 %v5454_v15, %v5429_v34  ;;  %v5572_v0 = vld [vmem:[#allocation7 + $0xa8] sm:$0xff]  ;;  %v5582_v15 = vld [vmem:[#allocation7 + $0x90] sm:$0xff] }
 0x1b3   :  { %v696_v10 = vsub.f32 1.0, %v690_v8  ;;  %v698_v13 = vmul.f32 %v690_v8, %v5449_v5  ;;  %956 = vmatpush.msrb.mxu1 %v5532_v59  ;;  %938 = vmatpush.msrb.mxu0 %v5550_v14  ;;  %v5574_v8 = vld [vmem:[#allocation7 + $0xb0] sm:$0xff] }
 0x1b4   :  { %916 = vmatpush.msrb.mxu3 %v5528_v51  ;;  %1076 = vmatpush.msrb.mxu2 %v5528_v51 }
 0x1b5   :  { %957 = vmatpush.msrb.mxu1 %v5542_v6  ;;  %939 = vmatpush.msrb.mxu0 %v5560_v7 }
 0x1b6   :  { %917 = vmatpush.msrb.mxu3 %v5538_v62  ;;  %1077 = vmatpush.msrb.mxu2 %v5538_v62 }
 0x1b7   :  { %v4494_v16 = vpop.eup %4493  ;;  %958 = vmatpush.msrb.mxu1 %v5552_v1  ;;  %940 = vmatpush.msrb.mxu0 %v5574_v8 }
 0x1b8   :  { %v697_v17 = vmul.f32 %v4494_v16, %v696_v10  ;;  %918 = vmatpush.msrb.mxu3 %v5548_v12  ;;  %1078 = vmatpush.msrb.mxu2 %v5548_v12  ;;  %v5576_v10 = vld [vmem:[#allocation7 + $0xb8] sm:$0xff] }
 0x1b9   :  { %959 = vmatpush.msrb.mxu1 %v5562_v58  ;;  %941 = vmatpush.msrb.mxu0 %v5584_v47 }
 0x1ba   :  { %v5484_v18 = vadd.f32 %v698_v13, %v697_v17  ;;  %919 = vmatpush.msrb.mxu3 %v5558_v3  ;;  %1079 = vmatpush.msrb.mxu2 %v5558_v3 }
 0x1bb   :  { %960 = vmatpush.msrb.mxu1 %v5576_v10 }
 0x1bc   :  { %768 = vmatmul.f32.vlgmr.msra.gmra.mxu0 %v5484_v18  ;;  %788 = vmatmul.f32.vlgmr.msra.gmra.mxu1 %v5484_v18 }
 0x1bd   :  { %808 = vmatmul.f32.vlgmr.msra.gmra.mxu2 %v5484_v18  ;;  %920 = vmatpush.msrb.mxu3 %v5572_v0 }
 0x1be   :  { %1080 = vmatpush.msrb.mxu2 %v5572_v0  ;;  %961 = vmatpush.msrb.mxu1 %v5232_v26  ;;  %v5606_v26 = vld [vmem:[#allocation7 + $0x48] sm:$0xff] }
 0x1bf   :  { %921 = vmatpush.msrb.mxu3 %v5582_v15 }
 0x1c0   :  { %1081 = vmatpush.msrb.mxu2 %v5582_v15  ;;  %962 = vmatpush.msrb.mxu1 %v5238_v30  ;;  %v5614_v30 = vld [vmem:[#allocation7 + $0x30] sm:$0xff] }
 0x1c1   :  { %922 = vmatpush.msrb.mxu3 %v5590_v53 }
 0x1c2   :  { %1082 = vmatpush.msrb.mxu2 %v5590_v53  ;;  %963 = vmatpush.msrb.mxu1 %v5245_v35 }
 0x1c4   :  { %964 = vmatpush.msrb.mxu1 %v5257_v42 }
 0x1c6   :  { %965 = vmatpush.msrb.mxu1 %v5265_v50 }
 0x1c8   :  { %966 = vmatpush.msrb.mxu1 %v5271_v55 }
 0x1ca   :  { %967 = vmatpush.msrb.mxu1 %v5278_v63 }
 0x1cc   :  { %1232 = vmatpush.msra.mxu1 %v5489_v20 }
 0x1ce   :  { %1233 = vmatpush.msra.mxu1 %v5498_v29 }
 0x1d0   :  { %1234 = vmatpush.msra.mxu1 %v5508_v9 }
 0x1d2   :  { %1235 = vmatpush.msra.mxu1 %v5518_v39 }
 0x1d4   :  { %1236 = vmatpush.msra.mxu1 %v5528_v51 }
 0x1d6   :  { %1237 = vmatpush.msra.mxu1 %v5538_v62 }
 0x1d8   :  { %1238 = vmatpush.msra.mxu1 %v5548_v12 }
 0x1da   :  { %1239 = vmatpush.msra.mxu1 %v5558_v3 }
 0x1dc   :  { %1240 = vmatpush.msra.mxu1 %v5572_v0 }
 0x1de   :  { %1241 = vmatpush.msra.mxu1 %v5582_v15 }
 0x1e0   :  { %1242 = vmatpush.msra.mxu1 %v5590_v53 }
 0x239   :  { %v769_v16 = vpop.f32.mrf.mxu0  ;;  %v789_v17 = vpop.f32.mrf.mxu1 }
 0x23a   :  { %v812_v19 = vadd.f32 %v769_v16, %v254_v60  ;;  %v832_v13 = vadd.f32 %v789_v17, %v295_v61  ;;  %v5592_v60 = vld [vmem:[#allocation7 + $0x80] sm:$0xff]  ;;  %v5600_v16 = vld [vmem:[#allocation7 + $0x68] sm:$0xff]  ;;  %v5608_v17 = vld [vmem:[#allocation7 + $0x50] sm:$0xff] }
 0x23b   :  { %942 = vmatpush.msrb.mxu0 %v5592_v60  ;;  %v5598_v61 = vld [vmem:[#allocation7 + $0x60] sm:$0xff] }
 0x23c   :  { %v4413_v56 = vmul.f32 -1.442695, %v812_v19  ;;  %v4414_v2 = vmul.f32 -1.442695, %v832_v13  ;;  %923 = vmatpush.msrb.mxu3 %v5598_v61  ;;  %1083 = vmatpush.msrb.mxu2 %v5598_v61  ;;  %v5624_v19 = vld [vmem:[#allocation7 + $0x20] sm:$0xff] }
 0x23d   :  { %943 = vmatpush.msrb.mxu0 %v5600_v16  ;;  %1243 = vmatpush.msra.mxu1 %v5598_v61 }
 0x23e   :  { %4495 = vpow2.f32 %v4413_v56  ;;  %924 = vmatpush.msrb.mxu3 %v5606_v26  ;;  %1084 = vmatpush.msrb.mxu2 %v5606_v26  ;;  %v5622_v56 = vld [vmem:[#allocation7 + $0x18] sm:$0xff] }
 0x23f   :  { %4497 = vpow2.f32 %v4414_v2  ;;  %944 = vmatpush.msrb.mxu0 %v5608_v17  ;;  %v5616_v2 = vld [vmem:[#allocation7 + $0x38] sm:$0xff]  ;;  %1244 = vmatpush.msra.mxu1 %v5606_v26 }
 0x240   :  { %925 = vmatpush.msrb.mxu3 %v5614_v30  ;;  %1085 = vmatpush.msrb.mxu2 %v5614_v30 }
 0x241   :  { %945 = vmatpush.msrb.mxu0 %v5616_v2  ;;  %1245 = vmatpush.msra.mxu1 %v5614_v30 }
 0x242   :  { %926 = vmatpush.msrb.mxu3 %v5622_v56  ;;  %1086 = vmatpush.msrb.mxu2 %v5622_v56 }
 0x243   :  { %946 = vmatpush.msrb.mxu0 %v5624_v19  ;;  %1246 = vmatpush.msra.mxu1 %v5622_v56 }
 0x244   :  { %v4496_v35 = vpop.eup %4495  ;;  %927 = vmatpush.msrb.mxu3 %v5629_v52  ;;  %1087 = vmatpush.msrb.mxu2 %v5629_v52 }
 0x245   :  { %v4498_v42 = vpop.eup %4497  ;;  %v816_v13 = vadd.f32 1.0, %v4496_v35  ;;  %947 = vmatpush.msrb.mxu0 %v5631_v48  ;;  %1247 = vmatpush.msra.mxu1 %v5629_v52 }
 0x246   :  { %v5633_v57 = vadd.f32 1.0, %v4498_v42  ;;  %1092 = vmatpush.msra.mxu3 %v5491_v24  ;;  %1252 = vmatpush.msra.mxu2 %v5491_v24 }
 0x247   :  { %4499 = vrcp.f32 %v816_v13  ;;  %1112 = vmatpush.msra.mxu0 %v5493_v28  ;;  %v828_v44 = vand.u32 2147483648, %v816_v13  ;;  %v826_v49 = vand.u32 2147483647, %v816_v13  ;;  %vm822_vm1 = vweird.f32 %v816_v13 }
 0x248   :  { %4501 = vrcp.f32 %v5633_v57  ;;  %1093 = vmatpush.msra.mxu3 %v5500_v32  ;;  %1253 = vmatpush.msra.mxu2 %v5500_v32  ;;  %vm842_vm5 = vweird.f32 %v5633_v57 }
 0x249   :  { %1113 = vmatpush.msra.mxu0 %v5502_v33  ;;  %vm827_vm3 = vcmp.eq.f32.partialorder %v826_v49, 8.507059e+37  ;;  %v848_v49 = vand.u32 2147483648, %v5633_v57 }
 0x24a   :  { %1094 = vmatpush.msra.mxu3 %v5510_v36  ;;  %1254 = vmatpush.msra.mxu2 %v5510_v36 }
 0x24b   :  { %1114 = vmatpush.msra.mxu0 %v5512_v38 }
 0x24c   :  { %1095 = vmatpush.msra.mxu3 %v5520_v45  ;;  %1255 = vmatpush.msra.mxu2 %v5520_v45 }
 0x24d   :  { %v4500_v50 = vpop.eup %4499  ;;  %1115 = vmatpush.msra.mxu0 %v5522_v46 }
 0x24e   :  { %v5652_v55 = vpop.eup %4501  ;;  %v818_v63 = vmul.f32 %v4500_v50, %v816_v13  ;;  %1096 = vmatpush.msra.mxu3 %v5530_v54  ;;  %vm823_vm0 = vweird.f32 %v4500_v50  ;;  %1256 = vmatpush.msra.mxu2 %v5530_v54 }
 0x24f   :  { %v838_v35 = vmul.f32 %v5652_v55, %v5633_v57  ;;  %1116 = vmatpush.msra.mxu0 %v5532_v59  ;;  %vm824_vm2 = vmor %vm822_vm1, %vm823_vm0  ;;  %vm843_vm4 = vweird.f32 %v5652_v55 }
 0x250   :  { %v819_v42 = vsub.f32 1.0, %v818_v63  ;;  %1097 = vmatpush.msra.mxu3 %v5540_v4  ;;  %v809_v63 = vpop.f32.mrf.mxu2  ;;  %1257 = vmatpush.msra.mxu2 %v5540_v4  ;;  %vm844_vm6 = vmor %vm842_vm5, %vm843_vm4 }
 0x251   :  { %v839_v5 = vsub.f32 1.0, %v838_v35  ;;  %1117 = vmatpush.msra.mxu0 %v5542_v6 }
 0x252   :  { %v820_v43 = vmul.f32 %v4500_v50, %v819_v42  ;;  %1098 = vmatpush.msra.mxu3 %v5550_v14  ;;  %v829_v42 = vor.u32 1.1754944e-38, %v828_v44  ;;  %1258 = vmatpush.msra.mxu2 %v5550_v14  ;;  %v336_v44 = vadd.f32 %v5456_v22, %v5445_v23 }
 0x253   :  { %v840_v41 = vmul.f32 %v5652_v55, %v839_v5  ;;  %1118 = vmatpush.msra.mxu0 %v5552_v1  ;;  %v852_v5 = vadd.f32 %v5443_v21, %v809_v63  ;;  %v849_v63 = vor.u32 1.1754944e-38, %v848_v49 }
 0x254   :  { %v821_v35 = vadd.f32 %v4500_v50, %v820_v43  ;;  %1099 = vmatpush.msra.mxu3 %v5560_v7  ;;  %1259 = vmatpush.msra.mxu2 %v5560_v7 }
 0x255   :  { %v841_v43 = vadd.f32 %v5652_v55, %v840_v41  ;;  %1119 = vmatpush.msra.mxu0 %v5562_v58  ;;  %v846_v41 = vand.u32 2147483647, %v5633_v57 }
 0x256   :  { %v825_v40 = vsel %vm824_vm2, %v4500_v50, %v821_v35  ;;  %1100 = vmatpush.msra.mxu3 %v5574_v8  ;;  %1260 = vmatpush.msra.mxu2 %v5574_v8 }
 0x257   :  { %v830_v13 = vsel %vm827_vm3, %v829_v42, %v825_v40  ;;  %1120 = vmatpush.msra.mxu0 %v5576_v10  ;;  %v845_v22 = vsel %vm844_vm6, %v5652_v55, %v841_v43  ;;  %vm847_vm7 = vcmp.eq.f32.partialorder %v846_v41, 8.507059e+37 }
 0x258   :  { %v853_v50 = vmul.f32 %v852_v5, %v830_v13  ;;  %1101 = vmatpush.msra.mxu3 %v5584_v47  ;;  %1261 = vmatpush.msra.mxu2 %v5584_v47  ;;  %v850_v57 = vsel %vm847_vm7, %v849_v63, %v845_v22 }
 0x259   :  { %v856_v55 = vsub.f32 1.0, %v850_v57  ;;  %v858_v5 = vmul.f32 %v850_v57, %v5484_v18 }
 0x25a   :  { %v854_v40 = vadd.f32 %v853_v50, %v336_v44  ;;  %1102 = vmatpush.msra.mxu3 %v5592_v60  ;;  %1262 = vmatpush.msra.mxu2 %v5592_v60 }
 0x25c   :  { %4503 = vtanh.f32 %v854_v40  ;;  %1103 = vmatpush.msra.mxu3 %v5600_v16  ;;  %1263 = vmatpush.msra.mxu2 %v5600_v16 }
 0x25e   :  { %1104 = vmatpush.msra.mxu3 %v5608_v17  ;;  %1264 = vmatpush.msra.mxu2 %v5608_v17 }
 0x260   :  { %1105 = vmatpush.msra.mxu3 %v5616_v2  ;;  %1265 = vmatpush.msra.mxu2 %v5616_v2 }
 0x262   :  { %v4504_v35 = vpop.eup %4503  ;;  %1106 = vmatpush.msra.mxu3 %v5624_v19  ;;  %1266 = vmatpush.msra.mxu2 %v5624_v19 }
 0x263   :  { %v857_v42 = vmul.f32 %v4504_v35, %v856_v55 }
 0x264   :  { %1107 = vmatpush.msra.mxu3 %v5631_v48  ;;  %1267 = vmatpush.msra.mxu2 %v5631_v48 }
 0x265   :  { %v5708_v43 = vadd.f32 %v858_v5, %v857_v42 }
 0x267   :  { %928 = vmatmul.f32.vlgmr.msrb.gmra.mxu3 %v5708_v43  ;;  %948 = vmatmul.f32.vlgmr.msrb.gmra.mxu0 %v5708_v43 }
 0x268   :  { %968 = vmatmul.f32.vlgmr.msrb.gmra.mxu1 %v5708_v43  ;;  %1272 = vmatpush.msrb.mxu3 %v5493_v28 }
 0x269   :  { %1412 = vmatpush.msrb.mxu1 %v5491_v24  ;;  %v298_v24 = vadd.f32 %v5458_v25, %v5429_v34 }
 0x26a   :  { %1273 = vmatpush.msrb.mxu3 %v5502_v33 }
 0x26b   :  { %1413 = vmatpush.msrb.mxu1 %v5500_v32 }
 0x26c   :  { %1274 = vmatpush.msrb.mxu3 %v5512_v38 }
 0x26d   :  { %1414 = vmatpush.msrb.mxu1 %v5510_v36 }
 0x26e   :  { %1275 = vmatpush.msrb.mxu3 %v5522_v46 }
 0x26f   :  { %1415 = vmatpush.msrb.mxu1 %v5520_v45 }
 0x270   :  { %1276 = vmatpush.msrb.mxu3 %v5532_v59 }
 0x271   :  { %1416 = vmatpush.msrb.mxu1 %v5530_v54 }
 0x272   :  { %1277 = vmatpush.msrb.mxu3 %v5542_v6 }
 0x273   :  { %1417 = vmatpush.msrb.mxu1 %v5540_v4 }
 0x274   :  { %1278 = vmatpush.msrb.mxu3 %v5552_v1 }
 0x275   :  { %1418 = vmatpush.msrb.mxu1 %v5550_v14  ;;  %v5748_v14 = vld [vmem:[#allocation7 + $0xa0] sm:$0xff] }
 0x276   :  { %1279 = vmatpush.msrb.mxu3 %v5562_v58  ;;  %1121 = vmatpush.msra.mxu0 %v5748_v14 }
 0x277   :  { %1419 = vmatpush.msrb.mxu1 %v5560_v7 }
 0x278   :  { %1280 = vmatpush.msrb.mxu3 %v5576_v10 }
 0x279   :  { %1420 = vmatpush.msrb.mxu1 %v5574_v8  ;;  %v5754_v8 = vld [vmem:[#allocation7 + $0x70] sm:$0xff] }
 0x27a   :  { %1281 = vmatpush.msrb.mxu3 %v5748_v14 }
 0x27b   :  { %1421 = vmatpush.msrb.mxu1 %v5584_v47  ;;  %v257_v47 = vadd.f32 %v5427_v27, %v5422_v11  ;;  %v5758_v27 = vld [vmem:[#allocation7 + $0x58] sm:$0xff] }
 0x27d   :  { %1422 = vmatpush.msrb.mxu1 %v5592_v60 }
 0x27f   :  { %1423 = vmatpush.msrb.mxu1 %v5600_v16  ;;  %v5762_v16 = vld [vmem:[#allocation7 + $0x40] sm:$0xff] }
 0x281   :  { %1424 = vmatpush.msrb.mxu1 %v5608_v17  ;;  %v5766_v17 = vld [vmem:[#allocation7 + $0x28] sm:$0xff] }
 0x283   :  { %1425 = vmatpush.msrb.mxu1 %v5616_v2 }
 0x285   :  { %1426 = vmatpush.msrb.mxu1 %v5624_v19  ;;  %v5770_v19 = vld [vmem:[#allocation7 + $0x10] sm:$0xff] }
 0x287   :  { %1427 = vmatpush.msrb.mxu1 %v5631_v48  ;;  %v5752_v48 = vld [vmem:[#allocation7 + $0x88] sm:$0xff] }
 0x288   :  { %1122 = vmatpush.msra.mxu0 %v5752_v48  ;;  %1282 = vmatpush.msrb.mxu3 %v5752_v48 }
 0x28a   :  { %1123 = vmatpush.msra.mxu0 %v5754_v8  ;;  %1283 = vmatpush.msrb.mxu3 %v5754_v8 }
 0x28c   :  { %1124 = vmatpush.msra.mxu0 %v5758_v27  ;;  %1284 = vmatpush.msrb.mxu3 %v5758_v27 }
 0x28e   :  { %1125 = vmatpush.msra.mxu0 %v5762_v16  ;;  %1285 = vmatpush.msrb.mxu3 %v5762_v16 }
 0x290   :  { %1126 = vmatpush.msra.mxu0 %v5766_v17  ;;  %1286 = vmatpush.msrb.mxu3 %v5766_v17 }
 0x292   :  { %1127 = vmatpush.msra.mxu0 %v5770_v19  ;;  %1287 = vmatpush.msrb.mxu3 %v5770_v19 }
 0x294   :  { %1392 = vmatpush.msrb.mxu0 %v5489_v20 }
 0x296   :  { %1393 = vmatpush.msrb.mxu0 %v5498_v29 }
 0x298   :  { %1394 = vmatpush.msrb.mxu0 %v5508_v9 }
 0x29a   :  { %1395 = vmatpush.msrb.mxu0 %v5518_v39 }
 0x29c   :  { %1396 = vmatpush.msrb.mxu0 %v5528_v51 }
 0x29e   :  { %1397 = vmatpush.msrb.mxu0 %v5538_v62  ;;  %v339_v62 = vadd.f32 %v5460_v31, %v5445_v23 }
 0x2a0   :  { %1398 = vmatpush.msrb.mxu0 %v5548_v12 }
 0x2a2   :  { %1399 = vmatpush.msrb.mxu0 %v5558_v3 }
 0x2a4   :  { %1400 = vmatpush.msrb.mxu0 %v5572_v0 }
 0x2a6   :  { %1401 = vmatpush.msrb.mxu0 %v5582_v15 }
 0x2a8   :  { %1402 = vmatpush.msrb.mxu0 %v5590_v53  ;;  %v7432_v53 = vld [vmem:[#allocation26_spill] sm:$0xff] }
 0x2aa   :  { %1403 = vmatpush.msrb.mxu0 %v5598_v61 }
 0x2ac   :  { %1404 = vmatpush.msrb.mxu0 %v5606_v26 }
 0x2ae   :  { %1405 = vmatpush.msrb.mxu0 %v5614_v30 }
 0x2b0   :  { %1406 = vmatpush.msrb.mxu0 %v5622_v56 }
 0x2b2   :  { %1407 = vmatpush.msrb.mxu0 %v5629_v52  ;;  %v260_v52 = vadd.f32 %v5431_v37, %v5422_v11 }
 0x2e4   :  { %v949_v32 = vpop.f32.mrf.mxu0 }
 0x2e5   :  { %v992_v36 = vadd.f32 %v949_v32, %v298_v24  ;;  %v969_v35 = vpop.f32.mrf.mxu1 }
 0x2e6   :  { %v1012_v39 = vadd.f32 %v5443_v21, %v969_v35 }
 0x2e7   :  { %v4416_v45 = vmul.f32 -1.442695, %v992_v36 }
 0x2e9   :  { %4505 = vpow2.f32 %v4416_v45 }
 0x2ea   :  { %v929_v54 = vpop.f32.mrf.mxu3 }
 0x2eb   :  { %v972_v4 = vadd.f32 %v929_v54, %v257_v47 }
 0x2ed   :  { %v4415_v7 = vmul.f32 -1.442695, %v972_v4 }
 0x2ef   :  { %v4506_v25 = vpop.eup %4505  ;;  %4507 = vpow2.f32 %v4415_v7 }
 0x2f0   :  { %v996_v60 = vadd.f32 1.0, %v4506_v25 }
 0x2f2   :  { %4509 = vrcp.f32 %v996_v60  ;;  %v1008_v24 = vand.u32 2147483648, %v996_v60  ;;  %vm1002_vm13 = vweird.f32 %v996_v60  ;;  %v1006_v12 = vand.u32 2147483647, %v996_v60 }
 0x2f4   :  { %v1009_v47 = vor.u32 1.1754944e-38, %v1008_v24  ;;  %vm1007_vm15 = vcmp.eq.f32.partialorder %v1006_v12, 8.507059e+37 }
 0x2f5   :  { %v4508_v2 = vpop.eup %4507 }
 0x2f6   :  { %v976_v13 = vadd.f32 1.0, %v4508_v2 }
 0x2f8   :  { %4511 = vrcp.f32 %v976_v13  ;;  %v4510_v44 = vpop.eup %4509  ;;  %v988_v63 = vand.u32 2147483648, %v976_v13  ;;  %v986_v55 = vand.u32 2147483647, %v976_v13  ;;  %vm982_vm9 = vweird.f32 %v976_v13 }
 0x2f9   :  { %v998_v49 = vmul.f32 %v4510_v44, %v996_v60  ;;  %vm1003_vm12 = vweird.f32 %v4510_v44 }
 0x2fa   :  { %v989_v9 = vor.u32 1.1754944e-38, %v988_v63  ;;  %vm987_vm11 = vcmp.eq.f32.partialorder %v986_v55, 8.507059e+37  ;;  %vm1004_vm14 = vmor %vm1002_vm13, %vm1003_vm12 }
 0x2fb   :  { %v999_v40 = vsub.f32 1.0, %v998_v49 }
 0x2fd   :  { %v1000_v20 = vmul.f32 %v4510_v44, %v999_v40 }
 0x2fe   :  { %v4512_v50 = vpop.eup %4511 }
 0x2ff   :  { %v978_v41 = vmul.f32 %v4512_v50, %v976_v13  ;;  %vm983_vm8 = vweird.f32 %v4512_v50  ;;  %v1001_v51 = vadd.f32 %v4510_v44, %v1000_v20  ;;  %v7433_v20 = vld [vmem:[#allocation27_spill] sm:$0xff] }
 0x300   :  { %vm984_vm10 = vmor %vm982_vm9, %vm983_vm8  ;;  %v342_v35 = vadd.f32 %v7433_v20, %v5445_v23 }
 0x301   :  { %v979_v22 = vsub.f32 1.0, %v978_v41  ;;  %v1005_v45 = vsel %vm1004_vm14, %v4510_v44, %v1001_v51 }
 0x302   :  { %v1010_v3 = vsel %vm1007_vm15, %v1009_v47, %v1005_v45  ;;  %v1714_v45 = vld [vmem:[#allocation9 + $0x168] sm:$0xff]  ;;  %v1711_v47 = vld [vmem:[#allocation9 + $0x150] sm:$0xff] }
 0x303   :  { %v980_v57 = vmul.f32 %v4512_v50, %v979_v22  ;;  %v1016_v31 = vsub.f32 1.0, %v1010_v3  ;;  %v1018_v0 = vmul.f32 %v1010_v3, %v5708_v43  ;;  %v1708_v3 = vld [vmem:[#allocation9 + $0x138] sm:$0xff] }
 0x305   :  { %v981_v29 = vadd.f32 %v4512_v50, %v980_v57 }
 0x307   :  { %v985_v42 = vsel %vm984_vm10, %v4512_v50, %v981_v29 }
 0x308   :  { %v990_v5 = vsel %vm987_vm11, %v989_v9, %v985_v42 }
 0x309   :  { %v1013_v32 = vmul.f32 %v1012_v39, %v990_v5 }
 0x30b   :  { %v1014_v36 = vadd.f32 %v1013_v32, %v339_v62 }
 0x30d   :  { %4513 = vtanh.f32 %v1014_v36 }
 0x313   :  { %v4514_v54 = vpop.eup %4513 }
 0x314   :  { %v1017_v4 = vmul.f32 %v4514_v54, %v1016_v31  ;;  %v1705_v31 = vld [vmem:[#allocation9 + $0x120] sm:$0xff]  ;;  %v7434_v54 = vld [vmem:[#allocation22_spill] sm:$0xff] }
 0x316   :  { %v5795_v15 = vadd.f32 %v1018_v0, %v1017_v4  ;;  %v263_v0 = vadd.f32 %v7434_v54, %v5422_v11  ;;  %v1702_v4 = vld [vmem:[#allocation9 + $0x108] sm:$0xff] }
 0x318   :  { %1088 = vmatmul.f32.vlgmr.msrb.gmra.mxu2 %v5795_v15  ;;  %1108 = vmatmul.f32.vlgmr.msra.gmra.mxu3 %v5795_v15 }
 0x319   :  { %1128 = vmatmul.f32.vlgmr.msra.gmra.mxu0 %v5795_v15  ;;  %1432 = vmatpush.msrb.mxu2 %v5493_v28  ;;  %v301_v28 = vadd.f32 %v7432_v53, %v5429_v34 }
 0x31b   :  { %1433 = vmatpush.msrb.mxu2 %v5502_v33 }
 0x31d   :  { %1434 = vmatpush.msrb.mxu2 %v5512_v38 }
 0x31f   :  { %1435 = vmatpush.msrb.mxu2 %v5522_v46 }
 0x321   :  { %1436 = vmatpush.msrb.mxu2 %v5532_v59 }
 0x323   :  { %1437 = vmatpush.msrb.mxu2 %v5542_v6 }
 0x325   :  { %1438 = vmatpush.msrb.mxu2 %v5552_v1 }
 0x327   :  { %1439 = vmatpush.msrb.mxu2 %v5562_v58 }
 0x329   :  { %1440 = vmatpush.msrb.mxu2 %v5576_v10 }
 0x32b   :  { %1441 = vmatpush.msrb.mxu2 %v5748_v14 }
 0x32d   :  { %1442 = vmatpush.msrb.mxu2 %v5752_v48 }
 0x32f   :  { %1443 = vmatpush.msrb.mxu2 %v5754_v8 }
 0x331   :  { %1444 = vmatpush.msrb.mxu2 %v5758_v27 }
 0x333   :  { %1445 = vmatpush.msrb.mxu2 %v5762_v16 }
 0x335   :  { %1446 = vmatpush.msrb.mxu2 %v5766_v17 }
 0x337   :  { %1447 = vmatpush.msrb.mxu2 %v5770_v19 }
 0x396   :  { %v1129_v49 = vpop.f32.mrf.mxu0 }
 0x397   :  { %v1172_v22 = vadd.f32 %v5443_v21, %v1129_v49  ;;  %v1669_v49 = vld [vmem:[#allocation9] sm:$0xff] }
 0x39b   :  { %v1089_v33 = vpop.f32.mrf.mxu2  ;;  %v1109_v38 = vpop.f32.mrf.mxu3 }
 0x39c   :  { %v1132_v46 = vadd.f32 %v1089_v33, %v260_v52  ;;  %v1152_v59 = vadd.f32 %v1109_v38, %v301_v28  ;;  %v1699_v28 = vld [vmem:[#allocation9 + $0xf0] sm:$0xff]  ;;  %v1696_v38 = vld [vmem:[#allocation9 + $0xd8] sm:$0xff] }
 0x39e   :  { %v4417_v6 = vmul.f32 -1.442695, %v1132_v46  ;;  %v4418_v1 = vmul.f32 -1.442695, %v1152_v59  ;;  %v7435_v46 = vld [vmem:[#allocation28_spill] sm:$0xff] }
 0x39f   :  { %v304_v59 = vadd.f32 %v7435_v46, %v5429_v34  ;;  %v7437_v46 = vld [vmem:[#allocation25_spill] sm:$0xff] }
 0x3a0   :  { %4515 = vpow2.f32 %v4417_v6  ;;  %v1693_v6 = vld [vmem:[#allocation9 + $0xc0] sm:$0xff] }
 0x3a1   :  { %4517 = vpow2.f32 %v4418_v1 }
 0x3a6   :  { %v4516_v58 = vpop.eup %4515 }
 0x3a7   :  { %v4518_v10 = vpop.eup %4517  ;;  %v1136_v61 = vadd.f32 1.0, %v4516_v58 }
 0x3a8   :  { %v1156_v26 = vadd.f32 1.0, %v4518_v10  ;;  %v1690_v10 = vld [vmem:[#allocation9 + $0xa8] sm:$0xff] }
 0x3a9   :  { %4519 = vrcp.f32 %v1136_v61  ;;  %v1148_v60 = vand.u32 2147483648, %v1136_v61  ;;  %v1146_v44 = vand.u32 2147483647, %v1136_v61  ;;  %vm1142_vm1 = vweird.f32 %v1136_v61 }
 0x3aa   :  { %4521 = vrcp.f32 %v1156_v26  ;;  %v1168_v9 = vand.u32 2147483648, %v1156_v26  ;;  %vm1162_vm5 = vweird.f32 %v1156_v26  ;;  %v1166_v39 = vand.u32 2147483647, %v1156_v26 }
 0x3ab   :  { %v1149_v40 = vor.u32 1.1754944e-38, %v1148_v60  ;;  %vm1147_vm3 = vcmp.eq.f32.partialorder %v1146_v44, 8.507059e+37  ;;  %v1675_v60 = vld [vmem:[#allocation9 + $0x30] sm:$0xff] }
 0x3ac   :  { %v1169_v5 = vor.u32 1.1754944e-38, %v1168_v9  ;;  %vm1167_vm7 = vcmp.eq.f32.partialorder %v1166_v39, 8.507059e+37 }
 0x3af   :  { %v4520_v30 = vpop.eup %4519 }
 0x3b0   :  { %v4522_v56 = vpop.eup %4521  ;;  %v1138_v37 = vmul.f32 %v4520_v30, %v1136_v61  ;;  %vm1143_vm0 = vweird.f32 %v4520_v30 }
 0x3b1   :  { %v1158_v7 = vmul.f32 %v4522_v56, %v1156_v26  ;;  %vm1144_vm2 = vmor %vm1142_vm1, %vm1143_vm0  ;;  %vm1163_vm4 = vweird.f32 %v4522_v56  ;;  %v1687_v26 = vld [vmem:[#allocation9 + $0x90] sm:$0xff] }
 0x3b2   :  { %v1139_v25 = vsub.f32 1.0, %v1138_v37  ;;  %vm1164_vm6 = vmor %vm1162_vm5, %vm1163_vm4 }
 0x3b3   :  { %v1159_v2 = vsub.f32 1.0, %v1158_v7  ;;  %v1681_v7 = vld [vmem:[#allocation9 + $0x60] sm:$0xff] }
 0x3b4   :  { %v1140_v13 = vmul.f32 %v4520_v30, %v1139_v25  ;;  %v1678_v25 = vld [vmem:[#allocation9 + $0x48] sm:$0xff] }
 0x3b5   :  { %v1160_v50 = vmul.f32 %v4522_v56, %v1159_v2 }
 0x3b6   :  { %v1141_v41 = vadd.f32 %v4520_v30, %v1140_v13  ;;  %v1672_v13 = vld [vmem:[#allocation9 + $0x18] sm:$0xff] }
 0x3b7   :  { %v1161_v55 = vadd.f32 %v4522_v56, %v1160_v50 }
 0x3b8   :  { %v1145_v63 = vsel %vm1144_vm2, %v4520_v30, %v1141_v41 }
 0x3b9   :  { %v1150_v57 = vsel %vm1147_vm3, %v1149_v40, %v1145_v63  ;;  %v1165_v51 = vsel %vm1164_vm6, %v4522_v56, %v1161_v55  ;;  %v1684_v56 = vld [vmem:[#allocation9 + $0x78] sm:$0xff] }
 0x3ba   :  { %v1173_v29 = vmul.f32 %v1172_v22, %v1150_v57  ;;  %v1170_v62 = vsel %vm1167_vm7, %v1169_v5, %v1165_v51  ;;  %v5837_v51 = vld [vmem:[%s7380_s4] ss:$0 sm:$0xff] }
 0x3bb   :  { %v1176_v21 = vsub.f32 1.0, %v1170_v62  ;;  %v1178_v12 = vmul.f32 %v1170_v62, %v5795_v15  ;;  %v7436_v62 = vld [vmem:[#allocation29_spill] sm:$0xff] }
 0x3bc   :  { %v1174_v42 = vadd.f32 %v1173_v29, %v342_v35 }
 0x3be   :  { %4523 = vtanh.f32 %v1174_v42 }
 0x3c4   :  { %v4524_v24 = vpop.eup %4523 }
 0x3c5   :  { %v1177_v32 = vmul.f32 %v4524_v24, %v1176_v21  ;;  %v345_v21 = vadd.f32 %v7436_v62, %v5445_v23  ;;  %v1514_v62 = vld [vmem:[#allocation7 + $0x50] sm:$0xff] }
 0x3c7   :  { %v5825_v36 = vadd.f32 %v1178_v12, %v1177_v32 }
 0x3c9   :  { %1248 = vmatmul.f32.vlgmr.msra.gmra.mxu1 %v5825_v36  ;;  %1268 = vmatmul.f32.vlgmr.msra.gmra.mxu2 %v5825_v36 }
 0x3ca   :  { %1288 = vmatmul.f32.vlgmr.msrb.gmra.mxu3 %v5825_v36  ;;  %1725 = vmatpush.msra.mxu2 %v1714_v45 }
 0x3cc   :  { %1726 = vmatpush.msra.mxu2 %v1711_v47 }
 0x3ce   :  { %1727 = vmatpush.msra.mxu2 %v1708_v3 }
 0x3d0   :  { %1728 = vmatpush.msra.mxu2 %v1705_v31 }
 0x3d2   :  { %1729 = vmatpush.msra.mxu2 %v1702_v4 }
 0x3d4   :  { %1730 = vmatpush.msra.mxu2 %v1699_v28 }
 0x3d6   :  { %1731 = vmatpush.msra.mxu2 %v1696_v38 }
 0x3d8   :  { %1732 = vmatpush.msra.mxu2 %v1693_v6  ;;  %v1548_v6 = vld [vmem:[#allocation7 + $0x160] sm:$0xff] }
 0x3da   :  { %1733 = vmatpush.msra.mxu2 %v1690_v10  ;;  %v1545_v10 = vld [vmem:[#allocation7 + $0x148] sm:$0xff] }
 0x3dc   :  { %1734 = vmatpush.msra.mxu2 %v1687_v26  ;;  %v1547_v26 = vld [vmem:[#allocation7 + $0x158] sm:$0xff] }
 0x3de   :  { %1735 = vmatpush.msra.mxu2 %v1684_v56  ;;  %v1544_v56 = vld [vmem:[#allocation7 + $0x140] sm:$0xff] }
 0x3e0   :  { %1736 = vmatpush.msra.mxu2 %v1681_v7  ;;  %v1540_v7 = vld [vmem:[#allocation7 + $0x120] sm:$0xff] }
 0x3e2   :  { %1737 = vmatpush.msra.mxu2 %v1678_v25  ;;  %v1539_v25 = vld [vmem:[#allocation7 + $0x118] sm:$0xff] }
 0x3e4   :  { %1738 = vmatpush.msra.mxu2 %v1675_v60  ;;  %v1541_v60 = vld [vmem:[#allocation7 + $0x128] sm:$0xff] }
 0x3e6   :  { %1739 = vmatpush.msra.mxu2 %v1672_v13  ;;  %v1533_v13 = vld [vmem:[#allocation7 + $0xe8] sm:$0xff] }
 0x3e8   :  { %1740 = vmatpush.msra.mxu2 %v1669_v49  ;;  %v1537_v49 = vld [vmem:[#allocation7 + $0x108] sm:$0xff] }
 0x446   :  { %v1249_v52 = vpop.f32.mrf.mxu1 }
 0x447   :  { %v1292_v53 = vadd.f32 %v1249_v52, %v263_v0 }
 0x449   :  { %v4419_v33 = vmul.f32 -1.442695, %v1292_v53 }
 0x44b   :  { %4525 = vpow2.f32 %v4419_v33 }
 0x44c   :  { %v1269_v1 = vpop.f32.mrf.mxu2 }
 0x44d   :  { %v1312_v58 = vadd.f32 %v1269_v1, %v304_v59  ;;  %v1289_v20 = vpop.f32.mrf.mxu3  ;;  %v1551_v59 = vld [vmem:[#allocation7 + $0x178] sm:$0xff]  ;;  %v1549_v1 = vld [vmem:[#allocation7 + $0x168] sm:$0xff] }
 0x44e   :  { %v1332_v5 = vadd.f32 %v5837_v51, %v1289_v20  ;;  %1592 = vmatpush.msra.mxu1 %v1551_v59  ;;  %1552 = vmatpush.msra.mxu3 %v1549_v1  ;;  %v1529_v20 = vld [vmem:[#allocation7 + $0xc8] sm:$0xff]  ;;  %v5882_v1 = vld [vmem:[#allocation10 + $0xc0] sm:$0xff] }
 0x44f   :  { %v4420_v61 = vmul.f32 -1.442695, %v1312_v58  ;;  %v1550_v58 = vld [vmem:[#allocation7 + $0x170] sm:$0xff]  ;;  %v1706_v59 = vld [vmem:[#allocation9 + $0x128] sm:$0xff] }
 0x450   :  { %1572 = vmatpush.msra.mxu0 %v1550_v58  ;;  %1593 = vmatpush.msra.mxu1 %v1548_v6  ;;  %v1707_v6 = vld [vmem:[#allocation9 + $0x130] sm:$0xff] }
 0x451   :  { %v4526_v30 = vpop.eup %4525  ;;  %4527 = vpow2.f32 %v4420_v61  ;;  %v1546_v61 = vld [vmem:[#allocation7 + $0x150] sm:$0xff] }
 0x452   :  { %v1296_v37 = vadd.f32 1.0, %v4526_v30  ;;  %v1543_v30 = vld [vmem:[#allocation7 + $0x138] sm:$0xff]  ;;  %1553 = vmatpush.msra.mxu3 %v1546_v61  ;;  %1573 = vmatpush.msra.mxu0 %v1547_v26  ;;  %v7438_v58 = vld [vmem:[#allocation23_spill] sm:$0xff]  ;;  %v7439_v61 = vld [vmem:[#allocation30_spill] sm:$0xff] }
 0x453   :  { %1594 = vmatpush.msra.mxu1 %v1545_v10  ;;  %v266_v10 = vadd.f32 %v7438_v58, %v5422_v11  ;;  %v307_v26 = vadd.f32 %v7439_v61, %v5429_v34  ;;  %v1670_v61 = vld [vmem:[#allocation9 + $0x8] sm:$0xff] }
 0x454   :  { %4529 = vrcp.f32 %v1296_v37  ;;  %v1308_v22 = vand.u32 2147483648, %v1296_v37  ;;  %v1306_v57 = vand.u32 2147483647, %v1296_v37  ;;  %vm1302_vm9 = vweird.f32 %v1296_v37  ;;  %1554 = vmatpush.msra.mxu3 %v1543_v30  ;;  %1574 = vmatpush.msra.mxu0 %v1544_v56  ;;  %v1703_v30 = vld [vmem:[#allocation9 + $0x110] sm:$0xff]  ;;  %v1704_v56 = vld [vmem:[#allocation9 + $0x118] sm:$0xff] }
 0x456   :  { %v1309_v9 = vor.u32 1.1754944e-38, %v1308_v22  ;;  %vm1307_vm11 = vcmp.eq.f32.partialorder %v1306_v57, 8.507059e+37  ;;  %1555 = vmatpush.msra.mxu3 %v1540_v7  ;;  %1575 = vmatpush.msra.mxu0 %v1541_v60  ;;  %v1535_v22 = vld [vmem:[#allocation7 + $0xf8] sm:$0xff]  ;;  %v1532_v57 = vld [vmem:[#allocation7 + $0xe0] sm:$0xff] }
 0x457   :  { %v4528_v2 = vpop.eup %4527 }
 0x458   :  { %v1316_v44 = vadd.f32 1.0, %v4528_v2  ;;  %v1536_v2 = vld [vmem:[#allocation7 + $0x100] sm:$0xff]  ;;  %1556 = vmatpush.msra.mxu3 %v1537_v49  ;;  %v5892_v49 = vld [vmem:[#allocation10 + $0x90] sm:$0xff] }
 0x45a   :  { %v4530_v50 = vpop.eup %4529  ;;  %4531 = vrcp.f32 %v1316_v44  ;;  %v1328_v12 = vand.u32 2147483648, %v1316_v44  ;;  %v1326_v47 = vand.u32 2147483647, %v1316_v44  ;;  %vm1322_vm13 = vweird.f32 %v1316_v44 }
 0x45b   :  { %v1298_v41 = vmul.f32 %v4530_v50, %v1296_v37  ;;  %vm1303_vm8 = vweird.f32 %v4530_v50  ;;  %v1542_v37 = vld [vmem:[#allocation7 + $0x130] sm:$0xff] }
 0x45c   :  { %vm1304_vm10 = vmor %vm1302_vm9, %vm1303_vm8  ;;  %v1329_v54 = vor.u32 1.1754944e-38, %v1328_v12  ;;  %vm1327_vm15 = vcmp.eq.f32.partialorder %v1326_v47, 8.507059e+37  ;;  %1595 = vmatpush.msra.mxu1 %v1542_v37  ;;  %v1508_v12 = vld [vmem:[#allocation7 + $0x20] sm:$0xff]  ;;  %v1505_v47 = vld [vmem:[#allocation7 + $0x8] sm:$0xff] }
 0x45d   :  { %v1299_v40 = vsub.f32 1.0, %v1298_v41  ;;  %v1527_v41 = vld [vmem:[#allocation7 + $0xb8] sm:$0xff]  ;;  %v5889_v37 = vld [vmem:[#allocation10 + $0xa8] sm:$0xff] }
 0x45e   :  { %1596 = vmatpush.msra.mxu1 %v1539_v25 }
 0x45f   :  { %v1300_v63 = vmul.f32 %v4530_v50, %v1299_v40  ;;  %v1534_v40 = vld [vmem:[#allocation7 + $0xf0] sm:$0xff] }
 0x460   :  { %v4532_v55 = vpop.eup %4531  ;;  %1597 = vmatpush.msra.mxu1 %v1536_v2  ;;  %1557 = vmatpush.msra.mxu3 %v1534_v40  ;;  %v1697_v40 = vld [vmem:[#allocation9 + $0xe0] sm:$0xff] }
 0x461   :  { %v1318_v35 = vmul.f32 %v4532_v55, %v1316_v44  ;;  %v1301_v29 = vadd.f32 %v4530_v50, %v1300_v63  ;;  %vm1323_vm12 = vweird.f32 %v4532_v55  ;;  %v1530_v44 = vld [vmem:[#allocation7 + $0xd0] sm:$0xff]  ;;  %v1531_v63 = vld [vmem:[#allocation7 + $0xd8] sm:$0xff] }
 0x462   :  { %vm1324_vm14 = vmor %vm1322_vm13, %vm1323_vm12  ;;  %1598 = vmatpush.msra.mxu1 %v1533_v13  ;;  %1558 = vmatpush.msra.mxu3 %v1531_v63  ;;  %v1700_v13 = vld [vmem:[#allocation9 + $0xf8] sm:$0xff] }
 0x463   :  { %v1319_v39 = vsub.f32 1.0, %v1318_v35  ;;  %v1305_v42 = vsel %vm1304_vm10, %v4530_v50, %v1301_v29  ;;  %v1538_v50 = vld [vmem:[#allocation7 + $0x110] sm:$0xff]  ;;  %v1525_v35 = vld [vmem:[#allocation7 + $0xa8] sm:$0xff]  ;;  %v5895_v63 = vld [vmem:[#allocation10 + $0x78] sm:$0xff] }
 0x464   :  { %v1310_v24 = vsel %vm1307_vm11, %v1309_v9, %v1305_v42  ;;  %1599 = vmatpush.msra.mxu1 %v1530_v44  ;;  %1576 = vmatpush.msra.mxu0 %v1538_v50  ;;  %v1526_v29 = vld [vmem:[#allocation7 + $0xb0] sm:$0xff]  ;;  %v1516_v42 = vld [vmem:[#allocation7 + $0x60] sm:$0xff] }
 0x465   :  { %v1320_v32 = vmul.f32 %v4532_v55, %v1319_v39  ;;  %v1333_v45 = vmul.f32 %v1332_v5, %v1310_v24  ;;  %v1522_v9 = vld [vmem:[#allocation7 + $0x90] sm:$0xff]  ;;  %v1519_v39 = vld [vmem:[#allocation7 + $0x78] sm:$0xff]  ;;  %v5860_v5 = vld [vmem:[#allocation10 + $0x168] sm:$0xff] }
 0x466   :  { %1600 = vmatpush.msra.mxu1 %v1527_v41  ;;  %1577 = vmatpush.msra.mxu0 %v1535_v22  ;;  %v1511_v24 = vld [vmem:[#allocation7 + $0x38] sm:$0xff]  ;;  %v1701_v44 = vld [vmem:[#allocation9 + $0x100] sm:$0xff]  ;;  %v1698_v22 = vld [vmem:[#allocation9 + $0xe8] sm:$0xff] }
 0x467   :  { %v1321_v3 = vadd.f32 %v4532_v55, %v1320_v32  ;;  %v1334_v31 = vadd.f32 %v1333_v45, %v345_v21  ;;  %v1510_v21 = vld [vmem:[#allocation7 + $0x30] sm:$0xff]  ;;  %v1507_v32 = vld [vmem:[#allocation7 + $0x18] sm:$0xff]  ;;  %v1504_v45 = vld [vmem:[#allocation7] sm:$0xff] }
 0x468   :  { %1601 = vmatpush.msra.mxu1 %v5748_v14  ;;  %1578 = vmatpush.msra.mxu0 %v1532_v57  ;;  %v1523_v14 = vld [vmem:[#allocation7 + $0x98] sm:$0xff]  ;;  %v1694_v57 = vld [vmem:[#allocation9 + $0xc8] sm:$0xff] }
 0x469   :  { %v1325_v0 = vsel %vm1324_vm14, %v4532_v55, %v1321_v3  ;;  %4533 = vtanh.f32 %v1334_v31  ;;  %v1528_v55 = vld [vmem:[#allocation7 + $0xc0] sm:$0xff]  ;;  %v1715_v3 = vld [vmem:[#allocation9 + $0x170] sm:$0xff]  ;;  %v1716_v31 = vld [vmem:[#allocation9 + $0x178] sm:$0xff] }
 0x46a   :  { %v1330_v4 = vsel %vm1327_vm15, %v1329_v54, %v1325_v0  ;;  %1602 = vmatpush.msra.mxu1 %v5752_v48  ;;  %1559 = vmatpush.msra.mxu3 %v1528_v55  ;;  %v1520_v48 = vld [vmem:[#allocation7 + $0x80] sm:$0xff]  ;;  %v5873_v54 = vld [vmem:[#allocation10 + $0x108] sm:$0xff]  ;;  %v1712_v0 = vld [vmem:[#allocation9 + $0x158] sm:$0xff] }
 0x46b   :  { %v1336_v52 = vsub.f32 1.0, %v1330_v4  ;;  %v1338_v33 = vmul.f32 %v1330_v4, %v5825_v36  ;;  %1579 = vmatpush.msra.mxu0 %v1529_v20  ;;  %v1713_v4 = vld [vmem:[#allocation9 + $0x160] sm:$0xff]  ;;  %v1695_v55 = vld [vmem:[#allocation9 + $0xd0] sm:$0xff] }
 0x46c   :  { %1603 = vmatpush.msra.mxu1 %v5754_v8  ;;  %1560 = vmatpush.msra.mxu3 %v1525_v35  ;;  %v1517_v8 = vld [vmem:[#allocation7 + $0x68] sm:$0xff]  ;;  %v5898_v20 = vld [vmem:[#allocation10 + $0x60] sm:$0xff]  ;;  %v1691_v35 = vld [vmem:[#allocation9 + $0xb0] sm:$0xff] }
 0x46d   :  { %1580 = vmatpush.msra.mxu0 %v1526_v29  ;;  %v1692_v29 = vld [vmem:[#allocation9 + $0xb8] sm:$0xff] }
 0x46e   :  { %1604 = vmatpush.msra.mxu1 %v5758_v27  ;;  %1561 = vmatpush.msra.mxu3 %v1522_v9  ;;  %v1513_v27 = vld [vmem:[#allocation7 + $0x48] sm:$0xff] }
 0x46f   :  { %v4534_v53 = vpop.eup %4533  ;;  %1581 = vmatpush.msra.mxu0 %v1523_v14  ;;  %v5901_v9 = vld [vmem:[#allocation10 + $0x48] sm:$0xff]  ;;  %v1688_v14 = vld [vmem:[#allocation9 + $0x98] sm:$0xff] }
 0x470   :  { %v1337_v28 = vmul.f32 %v4534_v53, %v1336_v52  ;;  %1605 = vmatpush.msra.mxu1 %v5762_v16  ;;  %1562 = vmatpush.msra.mxu3 %v1519_v39  ;;  %v5864_v16 = vld [vmem:[#allocation10 + $0x150] sm:$0xff]  ;;  %v1709_v53 = vld [vmem:[#allocation9 + $0x140] sm:$0xff] }
 0x471   :  { %1582 = vmatpush.msra.mxu0 %v1520_v48  ;;  %v5876_v52 = vld [vmem:[#allocation10 + $0xf0] sm:$0xff]  ;;  %v1689_v39 = vld [vmem:[#allocation9 + $0xa0] sm:$0xff] }
 0x472   :  { %v5843_v38 = vadd.f32 %v1338_v33, %v1337_v28  ;;  %1606 = vmatpush.msra.mxu1 %v5766_v17  ;;  %1563 = vmatpush.msra.mxu3 %v1516_v42  ;;  %v5867_v17 = vld [vmem:[#allocation10 + $0x138] sm:$0xff]  ;;  %v1710_v28 = vld [vmem:[#allocation9 + $0x148] sm:$0xff]  ;;  %v5904_v48 = vld [vmem:[#allocation10 + $0x30] sm:$0xff] }
 0x473   :  { %1583 = vmatpush.msra.mxu0 %v1517_v8  ;;  %v5879_v33 = vld [vmem:[#allocation10 + $0xd8] sm:$0xff]  ;;  %v1685_v8 = vld [vmem:[#allocation9 + $0x80] sm:$0xff] }
 0x474   :  { %1408 = vmatmul.f32.vlgmr.msrb.gmra.mxu0 %v5843_v38  ;;  %1428 = vmatmul.f32.vlgmr.msrb.gmra.mxu1 %v5843_v38 }
 0x475   :  { %1448 = vmatmul.f32.vlgmr.msrb.gmra.mxu2 %v5843_v38  ;;  %1607 = vmatpush.msra.mxu1 %v5770_v19  ;;  %v5870_v19 = vld [vmem:[#allocation10 + $0x120] sm:$0xff] }
 0x476   :  { %1564 = vmatpush.msra.mxu3 %v1513_v27  ;;  %1584 = vmatpush.msra.mxu0 %v1514_v62  ;;  %v1686_v27 = vld [vmem:[#allocation9 + $0x88] sm:$0xff]  ;;  %v5907_v62 = vld [vmem:[#allocation10 + $0x18] sm:$0xff] }
 0x477   :  { %1924 = vmatpush.msrb.mxu1 %v5860_v5 }
 0x478   :  { %1565 = vmatpush.msra.mxu3 %v1510_v21  ;;  %1585 = vmatpush.msra.mxu0 %v1511_v24 }
 0x479   :  { %1925 = vmatpush.msrb.mxu1 %v5864_v16 }
 0x47a   :  { %1566 = vmatpush.msra.mxu3 %v1507_v32  ;;  %1586 = vmatpush.msra.mxu0 %v1508_v12  ;;  %v1682_v32 = vld [vmem:[#allocation9 + $0x68] sm:$0xff]  ;;  %v1683_v12 = vld [vmem:[#allocation9 + $0x70] sm:$0xff] }
 0x47b   :  { %1926 = vmatpush.msrb.mxu1 %v5867_v17 }
 0x47c   :  { %1567 = vmatpush.msra.mxu3 %v1504_v45  ;;  %1587 = vmatpush.msra.mxu0 %v1505_v47  ;;  %v5909_v45 = vld [vmem:[#allocation10] sm:$0xff] }
 0x47d   :  { %1741 = vmatmul.f32.vlgmr.msra.gmra.mxu2 %v7437_v46  ;;  %1927 = vmatpush.msrb.mxu1 %v5870_v19 }
 0x47e   :  { %1766 = vmatpush.msrb.mxu3 %v1715_v3  ;;  %1807 = vmatpush.msrb.mxu0 %v1716_v31  ;;  %v1679_v3 = vld [vmem:[#allocation9 + $0x50] sm:$0xff]  ;;  %v1680_v31 = vld [vmem:[#allocation9 + $0x58] sm:$0xff] }
 0x47f   :  { %1928 = vmatpush.msrb.mxu1 %v5873_v54 }
 0x480   :  { %1767 = vmatpush.msrb.mxu3 %v1712_v0  ;;  %1808 = vmatpush.msrb.mxu0 %v1713_v4  ;;  %v1676_v0 = vld [vmem:[#allocation9 + $0x38] sm:$0xff]  ;;  %v1677_v4 = vld [vmem:[#allocation9 + $0x40] sm:$0xff] }
 0x481   :  { %1929 = vmatpush.msrb.mxu1 %v5876_v52 }
 0x482   :  { %1768 = vmatpush.msrb.mxu3 %v1709_v53  ;;  %1809 = vmatpush.msrb.mxu0 %v1710_v28  ;;  %v1673_v28 = vld [vmem:[#allocation9 + $0x20] sm:$0xff] }
 0x483   :  { %1930 = vmatpush.msrb.mxu1 %v5879_v33 }
 0x484   :  { %1769 = vmatpush.msrb.mxu3 %v1706_v59  ;;  %1810 = vmatpush.msrb.mxu0 %v1707_v6  ;;  %v1674_v59 = vld [vmem:[#allocation9 + $0x28] sm:$0xff] }
 0x485   :  { %1744 = vmatmul.f32.gmra.mxu2 %v5484_v18  ;;  %1931 = vmatpush.msrb.mxu1 %v5882_v1 }
 0x486   :  { %1770 = vmatpush.msrb.mxu3 %v1703_v30  ;;  %1811 = vmatpush.msrb.mxu0 %v1704_v56 }
 0x487   :  { %1932 = vmatpush.msrb.mxu1 %v5889_v37 }
 0x488   :  { %1771 = vmatpush.msrb.mxu3 %v1700_v13  ;;  %1812 = vmatpush.msrb.mxu0 %v1701_v44 }
 0x489   :  { %1933 = vmatpush.msrb.mxu1 %v5892_v49 }
 0x48a   :  { %1772 = vmatpush.msrb.mxu3 %v1697_v40  ;;  %1813 = vmatpush.msrb.mxu0 %v1698_v22 }
 0x48b   :  { %1934 = vmatpush.msrb.mxu1 %v5895_v63 }
 0x48c   :  { %1773 = vmatpush.msrb.mxu3 %v1694_v57  ;;  %1814 = vmatpush.msrb.mxu0 %v1695_v55  ;;  %v7440_v55 = vld [vmem:[#allocation31_spill] sm:$0xff] }
 0x48d   :  { %1747 = vmatmul.f32.gmra.mxu2 %v5708_v43  ;;  %1935 = vmatpush.msrb.mxu1 %v5898_v20 }
 0x48e   :  { %1774 = vmatpush.msrb.mxu3 %v1691_v35  ;;  %1815 = vmatpush.msrb.mxu0 %v1692_v29  ;;  %v348_v35 = vadd.f32 %v7440_v55, %v5445_v23 }
 0x48f   :  { %1936 = vmatpush.msrb.mxu1 %v5901_v9 }
 0x490   :  { %1775 = vmatpush.msrb.mxu3 %v1688_v14  ;;  %1816 = vmatpush.msrb.mxu0 %v1689_v39 }
 0x491   :  { %1937 = vmatpush.msrb.mxu1 %v5904_v48 }
 0x492   :  { %1776 = vmatpush.msrb.mxu3 %v1685_v8  ;;  %1817 = vmatpush.msrb.mxu0 %v1686_v27 }
 0x493   :  { %1938 = vmatpush.msrb.mxu1 %v5907_v62 }
 0x494   :  { %1777 = vmatpush.msrb.mxu3 %v1682_v32  ;;  %1818 = vmatpush.msrb.mxu0 %v1683_v12 }
 0x495   :  { %1750 = vmatmul.f32.gmra.mxu2 %v5795_v15  ;;  %1939 = vmatpush.msrb.mxu1 %v5909_v45 }
 0x496   :  { %1778 = vmatpush.msrb.mxu3 %v1679_v3  ;;  %1819 = vmatpush.msrb.mxu0 %v1680_v31 }
 0x498   :  { %1779 = vmatpush.msrb.mxu3 %v1676_v0  ;;  %1820 = vmatpush.msrb.mxu0 %v1677_v4  ;;  %v5919_v0 = vld [vmem:[#allocation10 + $0x170] sm:$0xff]  ;;  %v5929_v4 = vld [vmem:[#allocation10 + $0x140] sm:$0xff] }
 0x49a   :  { %1780 = vmatpush.msrb.mxu3 %v1673_v28  ;;  %1821 = vmatpush.msrb.mxu0 %v1674_v59  ;;  %v5939_v28 = vld [vmem:[#allocation10 + $0x110] sm:$0xff]  ;;  %v7441_v59 = vmov 0.0  }
 0x49c   :  { %1781 = vmatpush.msrb.mxu3 %v1670_v61  ;;  %v1895_v61 = vld [vmem:[#allocation10 + $0x98] sm:$0xff] }
 0x49d   :  { %1753 = vmatmul.f32.gmra.mxu2 %v5825_v36 }
 0x4a5   :  { %1756 = vmatmul.f32.gmra.mxu2 %v5843_v38 }
 0x4f1   :  { %v1409_v7 = vpop.f32.mrf.mxu0  ;;  %v1429_v25 = vpop.f32.mrf.mxu1 }
 0x4f2   :  { %v1452_v60 = vadd.f32 %v1409_v7, %v266_v10  ;;  %v1472_v2 = vadd.f32 %v1429_v25, %v307_v26  ;;  %v1671_v26 = vld [vmem:[#allocation9 + $0x10] sm:$0xff] }
 0x4f3   :  { %1822 = vmatpush.msrb.mxu0 %v1671_v26  ;;  %v1892_v26 = vld [vmem:[#allocation10 + $0x80] sm:$0xff] }
 0x4f4   :  { %v4421_v50 = vmul.f32 -1.442695, %v1452_v60  ;;  %v4422_v41 = vmul.f32 -1.442695, %v1472_v2 }
 0x4f6   :  { %4535 = vpow2.f32 %v4421_v50 }
 0x4f7   :  { %4537 = vpow2.f32 %v4422_v41 }
 0x4f8   :  { %v1449_v13 = vpop.f32.mrf.mxu2 }
 0x4f9   :  { %v1492_v40 = vadd.f32 %v5837_v51, %v1449_v13 }
 0x4fc   :  { %v4536_v42 = vpop.eup %4535 }
 0x4fd   :  { %v4538_v21 = vpop.eup %4537  ;;  %v1456_v24 = vadd.f32 1.0, %v4536_v42 }
 0x4fe   :  { %v1476_v47 = vadd.f32 1.0, %v4538_v21 }
 0x4ff   :  { %4539 = vrcp.f32 %v1456_v24  ;;  %v1468_v7 = vand.u32 2147483648, %v1456_v24  ;;  %v1466_v60 = vand.u32 2147483647, %v1456_v24  ;;  %vm1462_vm1 = vweird.f32 %v1456_v24 }
 0x500   :  { %4541 = vrcp.f32 %v1476_v47  ;;  %v1488_v29 = vand.u32 2147483648, %v1476_v47  ;;  %vm1482_vm5 = vweird.f32 %v1476_v47  ;;  %v1486_v39 = vand.u32 2147483647, %v1476_v47 }
 0x501   :  { %v1469_v50 = vor.u32 1.1754944e-38, %v1468_v7  ;;  %vm1467_vm3 = vcmp.eq.f32.partialorder %v1466_v60, 8.507059e+37  ;;  %v5972_v7 = vld [vmem:[#allocation10 + $0x178] sm:$0xff]  ;;  %v1877_v60 = vld [vmem:[#allocation10 + $0x8] sm:$0xff] }
 0x502   :  { %v1489_v27 = vor.u32 1.1754944e-38, %v1488_v29  ;;  %vm1487_vm7 = vcmp.eq.f32.partialorder %v1486_v39, 8.507059e+37  ;;  %1964 = vmatpush.msrb.mxu2 %v5972_v7  ;;  %v6030_v29 = vld [vmem:[#allocation10 + $0xd0] sm:$0xff] }
 0x505   :  { %v4540_v53 = vpop.eup %4539 }
 0x506   :  { %v4542_v6 = vpop.eup %4541  ;;  %v1458_v58 = vmul.f32 %v4540_v53, %v1456_v24  ;;  %vm1463_vm0 = vweird.f32 %v4540_v53 }
 0x507   :  { %v1478_v10 = vmul.f32 %v4542_v6, %v1476_v47  ;;  %vm1464_vm2 = vmor %vm1462_vm1, %vm1463_vm0  ;;  %vm1483_vm4 = vweird.f32 %v4542_v6  ;;  %v5925_v47 = vld [vmem:[#allocation10 + $0x158] sm:$0xff] }
 0x508   :  { %v1459_v30 = vsub.f32 1.0, %v1458_v58  ;;  %vm1484_vm6 = vmor %vm1482_vm5, %vm1483_vm4  ;;  %v5950_v58 = vld [vmem:[#allocation10 + $0xe0] sm:$0xff] }
 0x509   :  { %v1479_v56 = vsub.f32 1.0, %v1478_v10  ;;  %v5955_v10 = vld [vmem:[#allocation10 + $0xc8] sm:$0xff] }
 0x50a   :  { %v1460_v25 = vmul.f32 %v4540_v53, %v1459_v30  ;;  %v1889_v30 = vld [vmem:[#allocation10 + $0x68] sm:$0xff] }
 0x50b   :  { %v1480_v2 = vmul.f32 %v4542_v6, %v1479_v56  ;;  %v1886_v56 = vld [vmem:[#allocation10 + $0x50] sm:$0xff] }
 0x50c   :  { %v1461_v44 = vadd.f32 %v4540_v53, %v1460_v25  ;;  %v1880_v25 = vld [vmem:[#allocation10 + $0x20] sm:$0xff] }
 0x50d   :  { %v1481_v22 = vadd.f32 %v4542_v6, %v1480_v2 }
 0x50e   :  { %v1465_v41 = vsel %vm1464_vm2, %v4540_v53, %v1461_v44  ;;  %v5934_v53 = vld [vmem:[#allocation10 + $0x128] sm:$0xff]  ;;  %v6012_v44 = vld [vmem:[#allocation10 + $0x130] sm:$0xff] }
 0x50f   :  { %v1470_v57 = vsel %vm1467_vm3, %v1469_v50, %v1465_v41  ;;  %v1485_v8 = vsel %vm1484_vm6, %v4542_v6, %v1481_v22  ;;  %v5946_v6 = vld [vmem:[#allocation10 + $0xf8] sm:$0xff] }
 0x510   :  { %v1493_v14 = vmul.f32 %v1492_v40, %v1470_v57  ;;  %v1490_v21 = vsel %vm1487_vm7, %v1489_v27, %v1485_v8  ;;  %v6014_v50 = vld [vmem:[#allocation10 + $0x118] sm:$0xff]  ;;  %v6018_v40 = vld [vmem:[#allocation10 + $0x100] sm:$0xff]  ;;  %v6025_v57 = vld [vmem:[#allocation10 + $0xe8] sm:$0xff] }
 0x511   :  { %v1496_v24 = vsub.f32 1.0, %v1490_v21  ;;  %v1498_v3 = vmul.f32 %v1490_v21, %v5843_v38  ;;  %v6047_v8 = vld [vmem:[#allocation10 + $0xa0] sm:$0xff] }
 0x512   :  { %v1494_v42 = vadd.f32 %v1493_v14, %v348_v35  ;;  %v6035_v14 = vld [vmem:[#allocation10 + $0xb8] sm:$0xff] }
 0x514   :  { %4543 = vtanh.f32 %v1494_v42 }
 0x51a   :  { %v4544_v32 = vpop.eup %4543 }
 0x51b   :  { %v1497_v12 = vmul.f32 %v4544_v32, %v1496_v24  ;;  %v6051_v24 = vld [vmem:[#allocation10 + $0x88] sm:$0xff]  ;;  %v6056_v32 = vld [vmem:[#allocation10 + $0x70] sm:$0xff] }
 0x51d   :  { %v5917_v31 = vadd.f32 %v1498_v3, %v1497_v12  ;;  %v6061_v3 = vld [vmem:[#allocation10 + $0x58] sm:$0xff] }
 0x51f   :  { %1568 = vmatmul.f32.vlgmr.msra.gmra.mxu3 %v5917_v31  ;;  %1588 = vmatmul.f32.vlgmr.msra.gmra.mxu0 %v5917_v31 }
 0x520   :  { %1608 = vmatmul.f32.vlgmr.msra.gmra.mxu1 %v5917_v31  ;;  %1759 = vmatmul.f32.gmra.mxu2 %v5917_v31 }
 0x521   :  { %1944 = vmatpush.msra.mxu1 %v5919_v0  ;;  %2087 = vmatpush.msra.mxu3 %v5860_v5 }
 0x522   :  { %2107 = vmatpush.msra.mxu0 %v5919_v0 }
 0x523   :  { %1945 = vmatpush.msra.mxu1 %v5925_v47  ;;  %2088 = vmatpush.msra.mxu3 %v5864_v16 }
 0x524   :  { %2108 = vmatpush.msra.mxu0 %v5925_v47 }
 0x525   :  { %1946 = vmatpush.msra.mxu1 %v5929_v4  ;;  %2089 = vmatpush.msra.mxu3 %v5867_v17 }
 0x526   :  { %2109 = vmatpush.msra.mxu0 %v5929_v4 }
 0x527   :  { %1947 = vmatpush.msra.mxu1 %v5934_v53  ;;  %1782 = vmatmul.f32.vlgmr.msrb.gmra.mxu3 %v7437_v46 }
 0x528   :  { %1823 = vmatmul.f32.vlgmr.msrb.gmra.mxu0 %v7437_v46  ;;  %1940 = vmatmul.f32.vlgmr.msrb.gmra.mxu1 %v7441_v59  ;;  %v1898_v46 = vld [vmem:[#allocation10 + $0xb0] sm:$0xff] }
 0x529   :  { %1948 = vmatpush.msra.mxu1 %v5939_v28  ;;  %2090 = vmatpush.msra.mxu3 %v5870_v19 }
 0x52a   :  { %2110 = vmatpush.msra.mxu0 %v5934_v53 }
 0x52b   :  { %1949 = vmatpush.msra.mxu1 %v5946_v6  ;;  %2091 = vmatpush.msra.mxu3 %v5873_v54 }
 0x52c   :  { %2111 = vmatpush.msra.mxu0 %v5939_v28 }
 0x52d   :  { %1950 = vmatpush.msra.mxu1 %v5950_v58  ;;  %2092 = vmatpush.msra.mxu3 %v5876_v52 }
 0x52e   :  { %2112 = vmatpush.msra.mxu0 %v5946_v6 }
 0x52f   :  { %1951 = vmatpush.msra.mxu1 %v5955_v10  ;;  %1785 = vmatmul.f32.gmra.mxu3 %v5484_v18 }
 0x530   :  { %1826 = vmatmul.f32.gmra.mxu0 %v5484_v18  ;;  %2093 = vmatpush.msra.mxu3 %v5879_v33  ;;  %v1883_v18 = vld [vmem:[#allocation10 + $0x38] sm:$0xff] }
 0x531   :  { %1952 = vmatpush.msra.mxu1 %v1898_v46  ;;  %2113 = vmatpush.msra.mxu0 %v5950_v58 }
 0x532   :  { %2094 = vmatpush.msra.mxu3 %v5882_v1 }
 0x533   :  { %1953 = vmatpush.msra.mxu1 %v1895_v61  ;;  %2114 = vmatpush.msra.mxu0 %v5955_v10 }
 0x534   :  { %2095 = vmatpush.msra.mxu3 %v5889_v37 }
 0x535   :  { %1954 = vmatpush.msra.mxu1 %v1892_v26  ;;  %2115 = vmatpush.msra.mxu0 %v1898_v46 }
 0x536   :  { %2096 = vmatpush.msra.mxu3 %v5892_v49 }
 0x537   :  { %1955 = vmatpush.msra.mxu1 %v1889_v30  ;;  %1788 = vmatmul.f32.gmra.mxu3 %v5708_v43 }
 0x538   :  { %1829 = vmatmul.f32.gmra.mxu0 %v5708_v43  ;;  %2097 = vmatpush.msra.mxu3 %v5895_v63  ;;  %v6000_v43 = vld [vmem:[#allocation10 + $0x160] sm:$0xff] }
 0x539   :  { %1956 = vmatpush.msra.mxu1 %v1886_v56  ;;  %2116 = vmatpush.msra.mxu0 %v1895_v61 }
 0x53a   :  { %2098 = vmatpush.msra.mxu3 %v5898_v20  ;;  %1965 = vmatpush.msrb.mxu2 %v6000_v43 }
 0x53b   :  { %1957 = vmatpush.msra.mxu1 %v1883_v18  ;;  %2117 = vmatpush.msra.mxu0 %v1892_v26 }
 0x53c   :  { %2099 = vmatpush.msra.mxu3 %v5901_v9 }
 0x53d   :  { %1958 = vmatpush.msra.mxu1 %v1880_v25  ;;  %2118 = vmatpush.msra.mxu0 %v1889_v30 }
 0x53e   :  { %2100 = vmatpush.msra.mxu3 %v5904_v48 }
 0x53f   :  { %1959 = vmatpush.msra.mxu1 %v1877_v60  ;;  %1791 = vmatmul.f32.gmra.mxu3 %v5795_v15 }
 0x540   :  { %1960 = vmatmul.f32.vlgmr.msra.gmra.mxu1 %v7441_v59  ;;  %1832 = vmatmul.f32.gmra.mxu0 %v5795_v15  ;;  %v6002_v15 = vld [vmem:[#allocation10 + $0x148] sm:$0xff] }
 0x541   :  { %2127 = vmatpush.msrb.mxu1 %v5972_v7  ;;  %2101 = vmatpush.msra.mxu3 %v5907_v62 }
 0x542   :  { %2119 = vmatpush.msra.mxu0 %v1886_v56  ;;  %1966 = vmatpush.msrb.mxu2 %v6002_v15 }
 0x543   :  { %2102 = vmatpush.msra.mxu3 %v5909_v45  ;;  %2128 = vmatpush.msrb.mxu1 %v6000_v43 }
 0x544   :  { %2120 = vmatpush.msra.mxu0 %v1883_v18  ;;  %1967 = vmatpush.msrb.mxu2 %v6012_v44 }
 0x545   :  { %2267 = vmatpush.msrb.mxu3 %v5919_v0  ;;  %2129 = vmatpush.msrb.mxu1 %v6002_v15 }
 0x546   :  { %2121 = vmatpush.msra.mxu0 %v1880_v25  ;;  %1968 = vmatpush.msrb.mxu2 %v6014_v50 }
 0x547   :  { %2268 = vmatpush.msrb.mxu3 %v5925_v47  ;;  %2130 = vmatpush.msrb.mxu1 %v6012_v44  ;;  %v6067_v47 = vld [vmem:[#allocation10 + $0x40] sm:$0xff] }
 0x548   :  { %1794 = vmatmul.f32.gmra.mxu3 %v5825_v36  ;;  %1835 = vmatmul.f32.gmra.mxu0 %v5825_v36  ;;  %v7442_v36 = vld [vmem:[#allocation32_spill] sm:$0xff] }
 0x549   :  { %2269 = vmatpush.msrb.mxu3 %v5929_v4  ;;  %2122 = vmatpush.msra.mxu0 %v1877_v60 }
 0x54a   :  { %2131 = vmatpush.msrb.mxu1 %v6014_v50  ;;  %1969 = vmatpush.msrb.mxu2 %v6018_v40 }
 0x54b   :  { %2287 = vmatpush.msrb.mxu0 %v5972_v7  ;;  %2270 = vmatpush.msrb.mxu3 %v5934_v53  ;;  %v6072_v53 = vld [vmem:[#allocation10 + $0x28] sm:$0xff] }
 0x54c   :  { %2132 = vmatpush.msrb.mxu1 %v6018_v40  ;;  %1970 = vmatpush.msrb.mxu2 %v6025_v57 }
 0x54d   :  { %2271 = vmatpush.msrb.mxu3 %v5939_v28  ;;  %2288 = vmatpush.msrb.mxu0 %v6000_v43 }
 0x54e   :  { %2133 = vmatpush.msrb.mxu1 %v6025_v57  ;;  %1971 = vmatpush.msrb.mxu2 %v6030_v29 }
 0x54f   :  { %2272 = vmatpush.msrb.mxu3 %v5946_v6  ;;  %2289 = vmatpush.msrb.mxu0 %v6002_v15 }
 0x550   :  { %1797 = vmatmul.f32.gmra.mxu3 %v5843_v38  ;;  %1838 = vmatmul.f32.gmra.mxu0 %v5843_v38  ;;  %v310_v38 = vadd.f32 %v7442_v36, %v5429_v34  ;;  %v7443_v34 = vld [vmem:[#allocation24_spill] sm:$0xff] }
 0x551   :  { %2273 = vmatpush.msrb.mxu3 %v5950_v58  ;;  %2290 = vmatpush.msrb.mxu0 %v6012_v44  ;;  %v269_v22 = vadd.f32 %v7443_v34, %v5422_v11  ;;  %v6077_v58 = vld [vmem:[#allocation10 + $0x10] sm:$0xff] }
 0x552   :  { %2134 = vmatpush.msrb.mxu1 %v6030_v29  ;;  %1972 = vmatpush.msrb.mxu2 %v6035_v14 }
 0x553   :  { %2274 = vmatpush.msrb.mxu3 %v5955_v10  ;;  %2291 = vmatpush.msrb.mxu0 %v6014_v50 }
 0x554   :  { %2135 = vmatpush.msrb.mxu1 %v6035_v14  ;;  %1973 = vmatpush.msrb.mxu2 %v6047_v8 }
 0x555   :  { %2275 = vmatpush.msrb.mxu3 %v1898_v46  ;;  %2292 = vmatpush.msrb.mxu0 %v6018_v40 }
 0x556   :  { %2136 = vmatpush.msrb.mxu1 %v6047_v8  ;;  %1974 = vmatpush.msrb.mxu2 %v6051_v24 }
 0x557   :  { %2276 = vmatpush.msrb.mxu3 %v1895_v61  ;;  %2293 = vmatpush.msrb.mxu0 %v6025_v57 }
 0x558   :  { %1800 = vmatmul.f32.gmra.mxu3 %v5917_v31  ;;  %1841 = vmatmul.f32.gmra.mxu0 %v5917_v31 }
 0x559   :  { %2277 = vmatpush.msrb.mxu3 %v1892_v26  ;;  %2294 = vmatpush.msrb.mxu0 %v6030_v29 }
 0x55a   :  { %2137 = vmatpush.msrb.mxu1 %v6051_v24  ;;  %1975 = vmatpush.msrb.mxu2 %v6056_v32 }
 0x55b   :  { %2278 = vmatpush.msrb.mxu3 %v1889_v30  ;;  %2295 = vmatpush.msrb.mxu0 %v6035_v14 }
 0x55c   :  { %2138 = vmatpush.msrb.mxu1 %v6056_v32  ;;  %1976 = vmatpush.msrb.mxu2 %v6061_v3 }
 0x55d   :  { %2279 = vmatpush.msrb.mxu3 %v1886_v56  ;;  %2296 = vmatpush.msrb.mxu0 %v6047_v8 }
 0x55e   :  { %2139 = vmatpush.msrb.mxu1 %v6061_v3  ;;  %1977 = vmatpush.msrb.mxu2 %v6067_v47 }
 0x55f   :  { %2280 = vmatpush.msrb.mxu3 %v1883_v18  ;;  %2297 = vmatpush.msrb.mxu0 %v6051_v24 }
 0x560   :  { %2140 = vmatpush.msrb.mxu1 %v6067_v47  ;;  %1978 = vmatpush.msrb.mxu2 %v6072_v53 }
 0x561   :  { %2281 = vmatpush.msrb.mxu3 %v1880_v25  ;;  %2298 = vmatpush.msrb.mxu0 %v6056_v32 }
 0x562   :  { %2141 = vmatpush.msrb.mxu1 %v6072_v53  ;;  %1979 = vmatpush.msrb.mxu2 %v6077_v58 }
 0x563   :  { %2282 = vmatpush.msrb.mxu3 %v1877_v60  ;;  %2299 = vmatpush.msrb.mxu0 %v6061_v3 }
 0x564   :  { %2142 = vmatpush.msrb.mxu1 %v6077_v58  ;;  %2247 = vmatpush.msra.mxu2 %v5860_v5 }
 0x565   :  { %2300 = vmatpush.msrb.mxu0 %v6067_v47 }
 0x566   :  { %2248 = vmatpush.msra.mxu2 %v5864_v16 }
 0x567   :  { %2301 = vmatpush.msrb.mxu0 %v6072_v53 }
 0x568   :  { %2249 = vmatpush.msra.mxu2 %v5867_v17 }
 0x569   :  { %2302 = vmatpush.msrb.mxu0 %v6077_v58 }
 0x56a   :  { %2250 = vmatpush.msra.mxu2 %v5870_v19 }
 0x56c   :  { %2251 = vmatpush.msra.mxu2 %v5873_v54 }
 0x56e   :  { %2252 = vmatpush.msra.mxu2 %v5876_v52  ;;  %v1742_v52 = vpop.f32.mrf.mxu2 }
 0x570   :  { %2253 = vmatpush.msra.mxu2 %v5879_v33 }
 0x572   :  { %2254 = vmatpush.msra.mxu2 %v5882_v1  ;;  %v1717_v1 = vld [vmem:[%s7383_s7] sm:$0x7] }
 0x574   :  { %2255 = vmatpush.msra.mxu2 %v5889_v37 }
 0x576   :  { %2256 = vmatpush.msra.mxu2 %v5892_v49  ;;  %v6107_v33 = vpop.f32.mrf.mxu2  ;;  %v6114_v49 = vperm.slane %v1717_v1, 0 }
 0x578   :  { %2257 = vmatpush.msra.mxu2 %v5895_v63 }
 0x57a   :  { %2258 = vmatpush.msra.mxu2 %v5898_v20  ;;  %v1743_v20 = vadd.f32 %v1742_v52, %v6114_v49 }
 0x57c   :  { %2259 = vmatpush.msra.mxu2 %v5901_v9 }
 0x57e   :  { %2260 = vmatpush.msra.mxu2 %v5904_v48  ;;  %v6112_v37 = vpop.f32.mrf.mxu2  ;;  %v6117_v48 = vperm.slane %v1717_v1, 1 }
 0x580   :  { %2261 = vmatpush.msra.mxu2 %v5907_v62 }
 0x582   :  { %2262 = vmatpush.msra.mxu2 %v5909_v45 }
 0x59c   :  { %v1589_v2 = vpop.f32.mrf.mxu0 }
 0x59d   :  { %v1632_v13 = vadd.f32 %v1589_v2, %v310_v38  ;;  %v1609_v30 = vpop.f32.mrf.mxu1  ;;  %v7444_v2 = vld [vmem:[#allocation33_spill] sm:$0xff] }
 0x59e   :  { %v1652_v60 = vadd.f32 %v5837_v51, %v1609_v30 }
 0x59f   :  { %v4424_v41 = vmul.f32 -1.442695, %v1632_v13  ;;  %v351_v13 = vadd.f32 %v7444_v2, %v5445_v23 }
 0x5a1   :  { %4545 = vpow2.f32 %v4424_v41 }
 0x5a2   :  { %v1569_v55 = vpop.f32.mrf.mxu3 }
 0x5a3   :  { %v1612_v35 = vadd.f32 %v1569_v55, %v269_v22 }
 0x5a5   :  { %v4423_v11 = vmul.f32 -1.442695, %v1612_v35  ;;  %v1941_v63 = vpop.f32.mrf.mxu1 }
 0x5a6   :  { %v1984_v9 = vadd.f32 %v1941_v63, %v1743_v20 }
 0x5a7   :  { %v4546_v39 = vpop.eup %4545  ;;  %4547 = vpow2.f32 %v4423_v11 }
 0x5a8   :  { %v6041_v42 = vadd.f32 1.0, %v4546_v39  ;;  %v4425_v45 = vmul.f32 -1.442695, %v1984_v9 }
 0x5aa   :  { %4549 = vrcp.f32 %v6041_v42  ;;  %v1648_v16 = vand.u32 2147483648, %v6041_v42  ;;  %vm1642_vm13 = vweird.f32 %v6041_v42  ;;  %v1646_v34 = vand.u32 2147483647, %v6041_v42  ;;  %v1783_v62 = vpop.f32.mrf.mxu3 }
 0x5ac   :  { %v1649_v22 = vor.u32 1.1754944e-38, %v1648_v16  ;;  %vm1647_vm15 = vcmp.eq.f32.partialorder %v1646_v34, 8.507059e+37 }
 0x5ad   :  { %v4548_v27 = vpop.eup %4547 }
 0x5ae   :  { %v1616_v21 = vadd.f32 1.0, %v4548_v27 }
 0x5b0   :  { %4551 = vrcp.f32 %v1616_v21  ;;  %v4550_v12 = vpop.eup %4549  ;;  %v1628_v46 = vand.u32 2147483648, %v1616_v21  ;;  %v1626_v26 = vand.u32 2147483647, %v1616_v21  ;;  %vm1622_vm9 = vweird.f32 %v1616_v21 }
 0x5b1   :  { %v1638_v0 = vmul.f32 %v4550_v12, %v6041_v42  ;;  %vm1643_vm12 = vweird.f32 %v4550_v12  ;;  %v1784_v42 = vadd.f32 %v1783_v62, %v6117_v48 }
 0x5b2   :  { %v1629_v25 = vor.u32 1.1754944e-38, %v1628_v46  ;;  %vm1627_vm11 = vcmp.eq.f32.partialorder %v1626_v26, 8.507059e+37  ;;  %vm1644_vm14 = vmor %vm1642_vm13, %vm1643_vm12 }
 0x5b3   :  { %v1639_v6 = vsub.f32 1.0, %v1638_v0 }
 0x5b5   :  { %v1640_v56 = vmul.f32 %v4550_v12, %v1639_v6 }
 0x5b6   :  { %v4552_v4 = vpop.eup %4551 }
 0x5b7   :  { %v1618_v28 = vmul.f32 %v4552_v4, %v1616_v21  ;;  %vm1623_vm8 = vweird.f32 %v4552_v4  ;;  %v1641_v38 = vadd.f32 %v4550_v12, %v1640_v56 }
 0x5b8   :  { %vm1624_vm10 = vmor %vm1622_vm9, %vm1623_vm8 }
 0x5b9   :  { %v1619_v10 = vsub.f32 1.0, %v1618_v28  ;;  %v1645_v17 = vsel %vm1644_vm14, %v4550_v12, %v1641_v38 }
 0x5ba   :  { %v1650_v23 = vsel %vm1647_vm15, %v1649_v22, %v1645_v17 }
 0x5bb   :  { %v1620_v61 = vmul.f32 %v4552_v4, %v1619_v10  ;;  %v1656_v19 = vsub.f32 1.0, %v1650_v23  ;;  %v1658_v54 = vmul.f32 %v1650_v23, %v5917_v31  ;;  %v6119_v31 = vpop.f32.mrf.mxu2 }
 0x5bd   :  { %v1621_v18 = vadd.f32 %v4552_v4, %v1620_v61  ;;  %v1961_v39 = vpop.f32.mrf.mxu1 }
 0x5be   :  { %v2004_v27 = vadd.f32 %v1961_v39, %v1784_v42 }
 0x5bf   :  { %v1625_v36 = vsel %vm1624_vm10, %v4552_v4, %v1621_v18 }
 0x5c0   :  { %v1630_v5 = vsel %vm1627_vm11, %v1629_v25, %v1625_v36  ;;  %v4426_v21 = vmul.f32 -1.442695, %v2004_v27 }
 0x5c1   :  { %v1653_v41 = vmul.f32 %v1652_v60, %v1630_v5 }
 0x5c3   :  { %v1654_v51 = vadd.f32 %v1653_v41, %v351_v13  ;;  %v6122_v12 = vpop.f32.mrf.mxu2  ;;  %v6133_v13 = vld [vmem:[%s7384_s8] ss:$0 sm:$0xff]  ;;  %v6135_v41 = vperm.slane %v1717_v1, 2 }
 0x5c5   :  { %4553 = vtanh.f32 %v1654_v51  ;;  %v1824_v51 = vpop.f32.mrf.mxu0 }
 0x5c6   :  { %4555 = vpow2.f32 %v4425_v45 }
 0x5c7   :  { %4557 = vpow2.f32 %v4426_v21 }
 0x5cb   :  { %v4554_v55 = vpop.eup %4553  ;;  %v6124_v6 = vpop.f32.mrf.mxu2 }
 0x5cc   :  { %v1657_v35 = vmul.f32 %v4554_v55, %v1656_v19  ;;  %v4556_v0 = vpop.eup %4555 }
 0x5cd   :  { %v1988_v4 = vadd.f32 1.0, %v4556_v0  ;;  %v4558_v28 = vpop.eup %4557 }
 0x5ce   :  { %v1659_v11 = vadd.f32 %v1658_v54, %v1657_v35  ;;  %v2008_v10 = vadd.f32 1.0, %v4558_v28  ;;  %v1825_v35 = vadd.f32 %v1824_v51, %v6135_v41 }
 0x5cf   :  { %4559 = vrcp.f32 %v1988_v4  ;;  %v2000_v38 = vand.u32 2147483648, %v1988_v4  ;;  %vm1994_vm1 = vweird.f32 %v1988_v4  ;;  %v1998_v2 = vand.u32 2147483647, %v1988_v4 }
 0x5d0   :  { %1762 = vmatmul.f32.gmra.mxu2 %v1659_v11  ;;  %1803 = vmatmul.f32.gmra.mxu3 %v1659_v11  ;;  %4561 = vrcp.f32 %v2008_v10  ;;  %v2020_v54 = vand.u32 2147483648, %v2008_v10  ;;  %vm2014_vm5 = vweird.f32 %v2008_v10  ;;  %v2018_v52 = vand.u32 2147483647, %v2008_v10 }
 0x5d1   :  { %1844 = vmatmul.f32.gmra.mxu0 %v1659_v11  ;;  %v2001_v22 = vor.u32 1.1754944e-38, %v2000_v38  ;;  %vm1999_vm3 = vcmp.eq.f32.partialorder %v1998_v2, 8.507059e+37 }
 0x5d2   :  { %v2021_v20 = vor.u32 1.1754944e-38, %v2020_v54  ;;  %vm2019_vm7 = vcmp.eq.f32.partialorder %v2018_v52, 8.507059e+37 }
 0x5d3   :  { %v6126_v26 = vpop.f32.mrf.mxu2 }
 0x5d4   :  { %7445 = vst [vmem:[#allocation26_spill] sm:$0xff] %v6126_v26 }
 0x5d5   :  { %v4560_v46 = vpop.eup %4559 }
 0x5d6   :  { %v1990_v61 = vmul.f32 %v4560_v46, %v1988_v4  ;;  %v4562_v30 = vpop.eup %4561  ;;  %vm1995_vm0 = vweird.f32 %v4560_v46  ;;  %v1746_v4 = vadd.f32 %v6107_v33, %v6114_v49 }
 0x5d7   :  { %v2010_v18 = vmul.f32 %v4562_v30, %v2008_v10  ;;  %vm1996_vm2 = vmor %vm1994_vm1, %vm1995_vm0  ;;  %vm2015_vm4 = vweird.f32 %v4562_v30 }
 0x5d8   :  { %1980 = vmatmul.f32.vlgmr.msrb.gmra.mxu2 %v7441_v59  ;;  %v1991_v56 = vsub.f32 1.0, %v1990_v61  ;;  %vm2016_vm6 = vmor %vm2014_vm5, %vm2015_vm4 }
 0x5d9   :  { %v2011_v36 = vsub.f32 1.0, %v2010_v18 }
 0x5da   :  { %v1992_v25 = vmul.f32 %v4560_v46, %v1991_v56 }
 0x5db   :  { %v2012_v16 = vmul.f32 %v4562_v30, %v2011_v36 }
 0x5dc   :  { %v1993_v5 = vadd.f32 %v4560_v46, %v1992_v25 }
 0x5dd   :  { %v2013_v19 = vadd.f32 %v4562_v30, %v2012_v16 }
 0x5de   :  { %v1997_v34 = vsel %vm1996_vm2, %v4560_v46, %v1993_v5 }
 0x5df   :  { %v2002_v55 = vsel %vm1999_vm3, %v2001_v22, %v1997_v34  ;;  %v2017_v1 = vsel %vm2016_vm6, %v4562_v30, %v2013_v19 }
 0x5e0   :  { %v2022_v9 = vsel %vm2019_vm7, %v2021_v20, %v2017_v1 }
 0x5e1   :  { %v2031_v62 = vsub.f32 1.0, %v2022_v9  ;;  %v2033_v42 = vmul.f32 0.0, %v2022_v9 }
 0x653   :  { %v6128_v60 = vpop.f32.mrf.mxu2 }
 0x654   :  { %7446 = vst [vmem:[#allocation27_spill] sm:$0xff] %v6128_v60 }
 0x65b   :  { %v1981_v17 = vpop.f32.mrf.mxu2 }
 0x65c   :  { %v2027_v23 = vadd.f32 %v6133_v13, %v1981_v17 }
 0x65e   :  { %v2028_v11 = vmul.f32 %v2027_v23, %v2002_v55 }
 0x660   :  { %v2029_v63 = vadd.f32 %v2028_v11, %v1825_v35 }
 0x662   :  { %4563 = vtanh.f32 %v2029_v63 }
 0x668   :  { %v4564_v45 = vpop.eup %4563 }
 0x669   :  { %v2032_v39 = vmul.f32 %v4564_v45, %v2031_v62 }
 0x66b   :  { %v6139_v27 = vadd.f32 %v2033_v42, %v2032_v39 }
 0x66d   :  { %2103 = vmatmul.f32.vlgmr.msra.gmra.mxu3 %v6139_v27  ;;  %2123 = vmatmul.f32.vlgmr.msra.gmra.mxu0 %v6139_v27 }
 0x66e   :  { %2143 = vmatmul.f32.vlgmr.msrb.gmra.mxu1 %v6139_v27  ;;  %2447 = vmatpush.msra.mxu3 %v5972_v7  ;;  %v1827_v7 = vpop.f32.mrf.mxu0 }
 0x66f   :  { %v1828_v52 = vadd.f32 %v1827_v7, %v6135_v41  ;;  %v6195_v7 = vld [vmem:[#allocation10 + $0x168] sm:$0xff] }
 0x670   :  { %2448 = vmatpush.msra.mxu3 %v6000_v43  ;;  %v1786_v43 = vpop.f32.mrf.mxu3  ;;  %2407 = vmatpush.msra.mxu1 %v6195_v7 }
 0x671   :  { %2567 = vmatpush.msra.mxu0 %v6195_v7 }
 0x672   :  { %2449 = vmatpush.msra.mxu3 %v6002_v15 }
 0x674   :  { %2450 = vmatpush.msra.mxu3 %v6012_v44 }
 0x676   :  { %2451 = vmatpush.msra.mxu3 %v6014_v50  ;;  %v6160_v15 = vpop.f32.mrf.mxu0 }
 0x678   :  { %2452 = vmatpush.msra.mxu3 %v6018_v40  ;;  %v6162_v44 = vpop.f32.mrf.mxu3 }
 0x67a   :  { %2453 = vmatpush.msra.mxu3 %v6025_v57 }
 0x67c   :  { %2454 = vmatpush.msra.mxu3 %v6030_v29 }
 0x67e   :  { %2455 = vmatpush.msra.mxu3 %v6035_v14  ;;  %v6164_v50 = vpop.f32.mrf.mxu0 }
 0x680   :  { %2456 = vmatpush.msra.mxu3 %v6047_v8  ;;  %v6166_v40 = vpop.f32.mrf.mxu3 }
 0x682   :  { %2457 = vmatpush.msra.mxu3 %v6051_v24 }
 0x684   :  { %2458 = vmatpush.msra.mxu3 %v6056_v32 }
 0x686   :  { %2459 = vmatpush.msra.mxu3 %v6061_v3  ;;  %v6168_v57 = vpop.f32.mrf.mxu0 }
 0x688   :  { %2460 = vmatpush.msra.mxu3 %v6067_v47  ;;  %v6170_v29 = vpop.f32.mrf.mxu3 }
 0x68a   :  { %2461 = vmatpush.msra.mxu3 %v6072_v53  ;;  %v1787_v53 = vadd.f32 %v1786_v43, %v6117_v48 }
 0x68c   :  { %2462 = vmatpush.msra.mxu3 %v6077_v58 }
 0x68e   :  { %v6172_v14 = vpop.f32.mrf.mxu0 }
 0x690   :  { %v6174_v8 = vpop.f32.mrf.mxu3 }
 0x696   :  { %v6176_v24 = vpop.f32.mrf.mxu0 }
 0x697   :  { %7447 = vst [vmem:[#allocation22_spill] sm:$0xff] %v6176_v24 }
 0x698   :  { %v6178_v32 = vpop.f32.mrf.mxu3 }
 0x699   :  { %7448 = vst [vmem:[#allocation28_spill] sm:$0xff] %v6178_v32 }
 0x69e   :  { %v6180_v3 = vpop.f32.mrf.mxu0 }
 0x69f   :  { %7449 = vst [vmem:[#allocation29_spill] sm:$0xff] %v6180_v3 }
 0x6a0   :  { %v6182_v47 = vpop.f32.mrf.mxu3 }
 0x6a1   :  { %7450 = vst [vmem:[#allocation25_spill] sm:$0xff] %v6182_v47 }
 0x6ea   :  { %v2124_v58 = vpop.f32.mrf.mxu0 }
 0x6eb   :  { %v2167_v21 = vadd.f32 %v2124_v58, %v1787_v53  ;;  %v2144_v22 = vpop.f32.mrf.mxu1 }
 0x6ec   :  { %v2187_v55 = vadd.f32 %v6133_v13, %v2144_v22 }
 0x6ed   :  { %v4428_v0 = vmul.f32 -1.442695, %v2167_v21 }
 0x6ef   :  { %4565 = vpow2.f32 %v4428_v0  ;;  %v6197_v0 = vld [vmem:[#allocation10 + $0x170] sm:$0xff] }
 0x6f0   :  { %v2104_v28 = vpop.f32.mrf.mxu3  ;;  %2427 = vmatpush.msrb.mxu2 %v6197_v0 }
 0x6f1   :  { %v2147_v10 = vadd.f32 %v2104_v28, %v1746_v4  ;;  %v6201_v4 = vld [vmem:[#allocation10 + $0x150] sm:$0xff]  ;;  %v6203_v28 = vld [vmem:[#allocation10 + $0x158] sm:$0xff] }
 0x6f2   :  { %2408 = vmatpush.msra.mxu1 %v6201_v4  ;;  %2428 = vmatpush.msrb.mxu2 %v6203_v28 }
 0x6f3   :  { %v4427_v46 = vmul.f32 -1.442695, %v2147_v10  ;;  %v6209_v10 = vld [vmem:[#allocation10 + $0x138] sm:$0xff]  ;;  %2568 = vmatpush.msra.mxu0 %v6201_v4 }
 0x6f4   :  { %2409 = vmatpush.msra.mxu1 %v6209_v10 }
 0x6f5   :  { %v4566_v61 = vpop.eup %4565  ;;  %4567 = vpow2.f32 %v4427_v46  ;;  %v6211_v46 = vld [vmem:[#allocation10 + $0x140] sm:$0xff]  ;;  %2569 = vmatpush.msra.mxu0 %v6209_v10 }
 0x6f6   :  { %v2171_v30 = vadd.f32 1.0, %v4566_v61  ;;  %2429 = vmatpush.msrb.mxu2 %v6211_v46  ;;  %v6217_v61 = vld [vmem:[#allocation10 + $0x120] sm:$0xff] }
 0x6f7   :  { %2410 = vmatpush.msra.mxu1 %v6217_v61  ;;  %2570 = vmatpush.msra.mxu0 %v6217_v61 }
 0x6f8   :  { %4569 = vrcp.f32 %v2171_v30  ;;  %v2183_v63 = vand.u32 2147483648, %v2171_v30  ;;  %vm2177_vm13 = vweird.f32 %v2171_v30  ;;  %v2181_v20 = vand.u32 2147483647, %v2171_v30 }
 0x6fa   :  { %v2184_v45 = vor.u32 1.1754944e-38, %v2183_v63  ;;  %vm2182_vm15 = vcmp.eq.f32.partialorder %v2181_v20, 8.507059e+37  ;;  %v6285_v63 = vld [vmem:[#allocation10 + $0x60] sm:$0xff]  ;;  %v6293_v20 = vld [vmem:[#allocation10 + $0x48] sm:$0xff] }
 0x6fb   :  { %v4568_v56 = vpop.eup %4567 }
 0x6fc   :  { %v2151_v18 = vadd.f32 1.0, %v4568_v56  ;;  %v6225_v56 = vld [vmem:[#allocation10 + $0x108] sm:$0xff] }
 0x6fd   :  { %2411 = vmatpush.msra.mxu1 %v6225_v56  ;;  %2571 = vmatpush.msra.mxu0 %v6225_v56 }
 0x6fe   :  { %4571 = vrcp.f32 %v2151_v18  ;;  %v4570_v25 = vpop.eup %4569  ;;  %v2163_v34 = vand.u32 2147483648, %v2151_v18  ;;  %v2161_v33 = vand.u32 2147483647, %v2151_v18  ;;  %vm2157_vm9 = vweird.f32 %v2151_v18 }
 0x6ff   :  { %v2173_v36 = vmul.f32 %v4570_v25, %v2171_v30  ;;  %vm2178_vm12 = vweird.f32 %v4570_v25  ;;  %v6219_v30 = vld [vmem:[#allocation10 + $0x128] sm:$0xff] }
 0x700   :  { %v2164_v19 = vor.u32 1.1754944e-38, %v2163_v34  ;;  %vm2162_vm11 = vcmp.eq.f32.partialorder %v2161_v33, 8.507059e+37  ;;  %vm2179_vm14 = vmor %vm2177_vm13, %vm2178_vm12  ;;  %2430 = vmatpush.msrb.mxu2 %v6219_v30  ;;  %v6253_v34 = vld [vmem:[#allocation10 + $0xc0] sm:$0xff] }
 0x701   :  { %v2174_v2 = vsub.f32 1.0, %v2173_v36  ;;  %v6235_v36 = vld [vmem:[#allocation10 + $0xf8] sm:$0xff] }
 0x703   :  { %v2175_v17 = vmul.f32 %v4570_v25, %v2174_v2  ;;  %v1749_v2 = vadd.f32 %v6112_v37, %v6114_v49  ;;  %v6261_v37 = vld [vmem:[#allocation10 + $0xa8] sm:$0xff] }
 0x704   :  { %v4572_v5 = vpop.eup %4571 }
 0x705   :  { %v2153_v38 = vmul.f32 %v4572_v5, %v2151_v18  ;;  %vm2158_vm8 = vweird.f32 %v4572_v5  ;;  %v2176_v54 = vadd.f32 %v4570_v25, %v2175_v17  ;;  %v6227_v18 = vld [vmem:[#allocation10 + $0x110] sm:$0xff] }
 0x706   :  { %vm2159_vm10 = vmor %vm2157_vm9, %vm2158_vm8  ;;  %2431 = vmatpush.msrb.mxu2 %v6227_v18 }
 0x707   :  { %v2154_v16 = vsub.f32 1.0, %v2153_v38  ;;  %v2180_v62 = vsel %vm2179_vm14, %v4570_v25, %v2176_v54  ;;  %v6233_v25 = vld [vmem:[#allocation10 + $0xf0] sm:$0xff]  ;;  %v6243_v38 = vld [vmem:[#allocation10 + $0xe0] sm:$0xff]  ;;  %v6271_v54 = vld [vmem:[#allocation10 + $0x98] sm:$0xff] }
 0x708   :  { %v2185_v39 = vsel %vm2182_vm15, %v2184_v45, %v2180_v62  ;;  %2412 = vmatpush.msra.mxu1 %v6233_v25  ;;  %2432 = vmatpush.msrb.mxu2 %v6235_v36  ;;  %v6301_v45 = vld [vmem:[#allocation10 + $0x30] sm:$0xff] }
 0x709   :  { %v2155_v51 = vmul.f32 %v4572_v5, %v2154_v16  ;;  %v2191_v42 = vsub.f32 1.0, %v2185_v39  ;;  %v2193_v53 = vmul.f32 %v2185_v39, %v6139_v27  ;;  %2572 = vmatpush.msra.mxu0 %v6233_v25  ;;  %v1790_v16 = vadd.f32 %v6162_v44, %v6117_v48  ;;  %v6303_v39 = vld [vmem:[#allocation10 + $0x38] sm:$0xff] }
 0x70a   :  { %2433 = vmatpush.msrb.mxu2 %v6243_v38 }
 0x70b   :  { %v2156_v23 = vadd.f32 %v4572_v5, %v2155_v51  ;;  %v6255_v51 = vld [vmem:[#allocation10 + $0xc8] sm:$0xff] }
 0x70c   :  { %2434 = vmatpush.msrb.mxu2 %v6255_v51 }
 0x70d   :  { %v2160_v35 = vsel %vm2159_vm10, %v4572_v5, %v2156_v23  ;;  %v6241_v5 = vld [vmem:[#allocation10 + $0xd8] sm:$0xff] }
 0x70e   :  { %v2165_v11 = vsel %vm2162_vm11, %v2164_v19, %v2160_v35  ;;  %2413 = vmatpush.msra.mxu1 %v6241_v5  ;;  %2573 = vmatpush.msra.mxu0 %v6241_v5  ;;  %v6263_v19 = vld [vmem:[#allocation10 + $0xb0] sm:$0xff] }
 0x70f   :  { %v2188_v1 = vmul.f32 %v2187_v55, %v2165_v11  ;;  %2435 = vmatpush.msrb.mxu2 %v6263_v19  ;;  %v6269_v35 = vld [vmem:[#allocation10 + $0x90] sm:$0xff]  ;;  %v6277_v11 = vld [vmem:[#allocation10 + $0x78] sm:$0xff] }
 0x710   :  { %2414 = vmatpush.msra.mxu1 %v6253_v34  ;;  %2574 = vmatpush.msra.mxu0 %v6253_v34 }
 0x711   :  { %v2189_v9 = vadd.f32 %v2188_v1, %v1828_v52  ;;  %2436 = vmatpush.msrb.mxu2 %v6271_v54  ;;  %v6279_v52 = vld [vmem:[#allocation10 + $0x80] sm:$0xff]  ;;  %v6287_v1 = vld [vmem:[#allocation10 + $0x68] sm:$0xff] }
 0x712   :  { %2415 = vmatpush.msra.mxu1 %v6261_v37  ;;  %2575 = vmatpush.msra.mxu0 %v6261_v37 }
 0x713   :  { %4573 = vtanh.f32 %v2189_v9  ;;  %2437 = vmatpush.msrb.mxu2 %v6279_v52  ;;  %v6295_v9 = vld [vmem:[#allocation10 + $0x50] sm:$0xff] }
 0x714   :  { %2416 = vmatpush.msra.mxu1 %v6269_v35  ;;  %2576 = vmatpush.msra.mxu0 %v6269_v35 }
 0x715   :  { %2438 = vmatpush.msrb.mxu2 %v6287_v1 }
 0x716   :  { %2417 = vmatpush.msra.mxu1 %v6277_v11  ;;  %2577 = vmatpush.msra.mxu0 %v6277_v11 }
 0x717   :  { %2439 = vmatpush.msrb.mxu2 %v6295_v9 }
 0x718   :  { %2418 = vmatpush.msra.mxu1 %v6285_v63  ;;  %2578 = vmatpush.msra.mxu0 %v6285_v63 }
 0x719   :  { %v4574_v43 = vpop.eup %4573  ;;  %2440 = vmatpush.msrb.mxu2 %v6303_v39 }
 0x71a   :  { %v2192_v58 = vmul.f32 %v4574_v43, %v2191_v42  ;;  %2419 = vmatpush.msra.mxu1 %v6293_v20  ;;  %2579 = vmatpush.msra.mxu0 %v6293_v20 }
 0x71c   :  { %v6190_v21 = vadd.f32 %v2193_v53, %v2192_v58  ;;  %2420 = vmatpush.msra.mxu1 %v6301_v45  ;;  %v6309_v53 = vld [vmem:[#allocation10 + $0x18] sm:$0xff]  ;;  %v6311_v58 = vld [vmem:[#allocation10 + $0x20] sm:$0xff]  ;;  %2580 = vmatpush.msra.mxu0 %v6301_v45 }
 0x71d   :  { %2441 = vmatpush.msrb.mxu2 %v6311_v58 }
 0x71e   :  { %2263 = vmatmul.f32.vlgmr.msra.gmra.mxu2 %v6190_v21  ;;  %2283 = vmatmul.f32.vlgmr.msrb.gmra.mxu3 %v6190_v21 }
 0x71f   :  { %2303 = vmatmul.f32.vlgmr.msrb.gmra.mxu0 %v6190_v21  ;;  %2727 = vmatpush.msrb.mxu3 %v6195_v7 }
 0x720   :  { %2421 = vmatpush.msra.mxu1 %v6309_v53  ;;  %2581 = vmatpush.msra.mxu0 %v6309_v53 }
 0x721   :  { %2728 = vmatpush.msrb.mxu3 %v6201_v4 }
 0x723   :  { %2729 = vmatpush.msrb.mxu3 %v6209_v10 }
 0x725   :  { %2730 = vmatpush.msrb.mxu3 %v6217_v61 }
 0x727   :  { %2731 = vmatpush.msrb.mxu3 %v6225_v56 }
 0x729   :  { %2732 = vmatpush.msrb.mxu3 %v6233_v25 }
 0x72b   :  { %2733 = vmatpush.msrb.mxu3 %v6241_v5 }
 0x72d   :  { %2734 = vmatpush.msrb.mxu3 %v6253_v34 }
 0x72f   :  { %2735 = vmatpush.msrb.mxu3 %v6261_v37 }
 0x731   :  { %2736 = vmatpush.msrb.mxu3 %v6269_v35 }
 0x733   :  { %2737 = vmatpush.msrb.mxu3 %v6277_v11 }
 0x735   :  { %2738 = vmatpush.msrb.mxu3 %v6285_v63 }
 0x737   :  { %2739 = vmatpush.msrb.mxu3 %v6293_v20 }
 0x739   :  { %2740 = vmatpush.msrb.mxu3 %v6301_v45 }
 0x73b   :  { %2741 = vmatpush.msrb.mxu3 %v6309_v53 }
 0x79c   :  { %v2304_v60 = vpop.f32.mrf.mxu0 }
 0x7a1   :  { %v2264_v33 = vpop.f32.mrf.mxu2  ;;  %v2284_v17 = vpop.f32.mrf.mxu3 }
 0x7a2   :  { %v2307_v22 = vadd.f32 %v2264_v33, %v1749_v2  ;;  %v2327_v23 = vadd.f32 %v2284_v17, %v1790_v16  ;;  %v6315_v16 = vld [vmem:[#allocation10] sm:$0xff]  ;;  %v6317_v33 = vld [vmem:[#allocation10 + $0x8] sm:$0xff] }
 0x7a3   :  { %2422 = vmatpush.msra.mxu1 %v6315_v16  ;;  %2442 = vmatpush.msrb.mxu2 %v6317_v33 }
 0x7a4   :  { %v4429_v44 = vmul.f32 -1.442695, %v2307_v22  ;;  %v4430_v55 = vmul.f32 -1.442695, %v2327_v23  ;;  %2582 = vmatpush.msra.mxu0 %v6315_v16  ;;  %2742 = vmatpush.msrb.mxu3 %v6315_v16 }
 0x7a5   :  { %2587 = vmatpush.msrb.mxu1 %v6197_v0 }
 0x7a6   :  { %4575 = vpow2.f32 %v4429_v44  ;;  %2747 = vmatpush.msrb.mxu0 %v6197_v0 }
 0x7a7   :  { %4577 = vpow2.f32 %v4430_v55  ;;  %2588 = vmatpush.msrb.mxu1 %v6203_v28 }
 0x7a8   :  { %2748 = vmatpush.msrb.mxu0 %v6203_v28 }
 0x7a9   :  { %2589 = vmatpush.msrb.mxu1 %v6211_v46 }
 0x7aa   :  { %2749 = vmatpush.msrb.mxu0 %v6211_v46 }
 0x7ab   :  { %2590 = vmatpush.msrb.mxu1 %v6219_v30 }
 0x7ac   :  { %v4576_v62 = vpop.eup %4575  ;;  %2750 = vmatpush.msrb.mxu0 %v6219_v30 }
 0x7ad   :  { %v4578_v42 = vpop.eup %4577  ;;  %v2311_v43 = vadd.f32 1.0, %v4576_v62  ;;  %2591 = vmatpush.msrb.mxu1 %v6227_v18 }
 0x7ae   :  { %v6313_v2 = vadd.f32 1.0, %v4578_v42  ;;  %2751 = vmatpush.msrb.mxu0 %v6227_v18 }
 0x7af   :  { %4579 = vrcp.f32 %v2311_v43  ;;  %v2323_v62 = vand.u32 2147483648, %v2311_v43  ;;  %v2321_v47 = vand.u32 2147483647, %v2311_v43  ;;  %vm2317_vm1 = vweird.f32 %v2311_v43  ;;  %2592 = vmatpush.msrb.mxu1 %v6235_v36 }
 0x7b0   :  { %4581 = vrcp.f32 %v6313_v2  ;;  %2752 = vmatpush.msrb.mxu0 %v6235_v36  ;;  %vm2337_vm5 = vweird.f32 %v6313_v2 }
 0x7b1   :  { %vm2322_vm3 = vcmp.eq.f32.partialorder %v2321_v47, 8.507059e+37  ;;  %2593 = vmatpush.msrb.mxu1 %v6243_v38 }
 0x7b2   :  { %2753 = vmatpush.msrb.mxu0 %v6243_v38 }
 0x7b3   :  { %2594 = vmatpush.msrb.mxu1 %v6255_v51 }
 0x7b4   :  { %2754 = vmatpush.msrb.mxu0 %v6255_v51 }
 0x7b5   :  { %v4580_v17 = vpop.eup %4579  ;;  %2595 = vmatpush.msrb.mxu1 %v6263_v19 }
 0x7b6   :  { %v4582_v22 = vpop.eup %4581  ;;  %v2313_v23 = vmul.f32 %v4580_v17, %v2311_v43  ;;  %vm2318_vm0 = vweird.f32 %v4580_v17  ;;  %2755 = vmatpush.msrb.mxu0 %v6263_v19 }
 0x7b7   :  { %v2333_v44 = vmul.f32 %v4582_v22, %v6313_v2  ;;  %vm2319_vm2 = vmor %vm2317_vm1, %vm2318_vm0  ;;  %vm2338_vm4 = vweird.f32 %v4582_v22  ;;  %2596 = vmatpush.msrb.mxu1 %v6271_v54 }
 0x7b8   :  { %v2314_v55 = vsub.f32 1.0, %v2313_v23  ;;  %v2324_v23 = vor.u32 1.1754944e-38, %v2323_v62  ;;  %vm2339_vm6 = vmor %vm2337_vm5, %vm2338_vm4  ;;  %2756 = vmatpush.msrb.mxu0 %v6271_v54 }
 0x7b9   :  { %v2334_v42 = vsub.f32 1.0, %v2333_v44  ;;  %v2347_v44 = vadd.f32 %v6133_v13, %v2304_v60  ;;  %v2341_v60 = vand.u32 2147483647, %v6313_v2  ;;  %2597 = vmatpush.msrb.mxu1 %v6279_v52 }
 0x7ba   :  { %v2315_v3 = vmul.f32 %v4580_v17, %v2314_v55  ;;  %2757 = vmatpush.msrb.mxu0 %v6279_v52 }
 0x7bb   :  { %v2335_v59 = vmul.f32 %v4582_v22, %v2334_v42  ;;  %v2343_v42 = vand.u32 2147483648, %v6313_v2  ;;  %vm2342_vm7 = vcmp.eq.f32.partialorder %v2341_v60, 8.507059e+37  ;;  %2598 = vmatpush.msrb.mxu1 %v6287_v1  ;;  %v6453_v60 = vld [vmem:[#allocation10 + $0x10] sm:$0xff] }
 0x7bc   :  { %v2316_v24 = vadd.f32 %v4580_v17, %v2315_v3  ;;  %v1831_v3 = vadd.f32 %v6160_v15, %v6135_v41  ;;  %2758 = vmatpush.msrb.mxu0 %v6287_v1 }
 0x7bd   :  { %v2336_v26 = vadd.f32 %v4582_v22, %v2335_v59  ;;  %v2344_v15 = vor.u32 1.1754944e-38, %v2343_v42  ;;  %2599 = vmatpush.msrb.mxu1 %v6295_v9  ;;  %v6450_v42 = vld [vmem:[#allocation10 + $0x28] sm:$0xff] }
 0x7be   :  { %v2320_v32 = vsel %vm2319_vm2, %v4580_v17, %v2316_v24  ;;  %2759 = vmatpush.msrb.mxu0 %v6295_v9 }
 0x7bf   :  { %v2325_v55 = vsel %vm2322_vm3, %v2324_v23, %v2320_v32  ;;  %v2340_v59 = vsel %vm2339_vm6, %v4582_v22, %v2336_v26  ;;  %2600 = vmatpush.msrb.mxu1 %v6303_v39  ;;  %v6439_v23 = vld [vmem:[#allocation10 + $0x70] sm:$0xff] }
 0x7c0   :  { %v2348_v43 = vmul.f32 %v2347_v44, %v2325_v55  ;;  %v2345_v32 = vsel %vm2342_vm7, %v2344_v15, %v2340_v59  ;;  %2760 = vmatpush.msrb.mxu0 %v6303_v39  ;;  %v6443_v55 = vld [vmem:[#allocation10 + $0x58] sm:$0xff] }
 0x7c1   :  { %v2351_v47 = vsub.f32 1.0, %v2345_v32  ;;  %v2353_v17 = vmul.f32 %v2345_v32, %v6190_v21  ;;  %2601 = vmatpush.msrb.mxu1 %v6311_v58 }
 0x7c2   :  { %v2349_v24 = vadd.f32 %v2348_v43, %v1831_v3  ;;  %2761 = vmatpush.msrb.mxu0 %v6311_v58  ;;  %v6447_v3 = vld [vmem:[#allocation10 + $0x40] sm:$0xff] }
 0x7c3   :  { %2602 = vmatpush.msrb.mxu1 %v6317_v33 }
 0x7c4   :  { %4583 = vtanh.f32 %v2349_v24  ;;  %2762 = vmatpush.msrb.mxu0 %v6317_v33 }
 0x7ca   :  { %v4584_v26 = vpop.eup %4583 }
 0x7cb   :  { %v2352_v2 = vmul.f32 %v4584_v26, %v2351_v47 }
 0x7cd   :  { %v6365_v22 = vadd.f32 %v2353_v17, %v2352_v2 }
 0x7cf   :  { %2423 = vmatmul.f32.vlgmr.msra.gmra.mxu1 %v6365_v22  ;;  %2443 = vmatmul.f32.vlgmr.msrb.gmra.mxu2 %v6365_v22 }
 0x7d0   :  { %2463 = vmatmul.f32.vlgmr.msra.gmra.mxu3 %v6365_v22 }
 0x7d1   :  { %2907 = vmatpush.msra.mxu3 %v6197_v0  ;;  %v6391_v0 = vld [vmem:[#allocation10 + $0x178] sm:$0xff] }
 0x7d2   :  { %2607 = vmatpush.msra.mxu2 %v6391_v0  ;;  %2767 = vmatpush.msra.mxu1 %v6391_v0 }
 0x7d3   :  { %2908 = vmatpush.msra.mxu3 %v6203_v28  ;;  %v6395_v28 = vld [vmem:[#allocation10 + $0x160] sm:$0xff] }
 0x7d4   :  { %2608 = vmatpush.msra.mxu2 %v6395_v28  ;;  %2768 = vmatpush.msra.mxu1 %v6395_v28 }
 0x7d5   :  { %2909 = vmatpush.msra.mxu3 %v6211_v46  ;;  %v6399_v46 = vld [vmem:[#allocation10 + $0x148] sm:$0xff] }
 0x7d6   :  { %2609 = vmatpush.msra.mxu2 %v6399_v46  ;;  %2769 = vmatpush.msra.mxu1 %v6399_v46 }
 0x7d7   :  { %2910 = vmatpush.msra.mxu3 %v6219_v30  ;;  %v6403_v30 = vld [vmem:[#allocation10 + $0x130] sm:$0xff] }
 0x7d8   :  { %2610 = vmatpush.msra.mxu2 %v6403_v30  ;;  %2770 = vmatpush.msra.mxu1 %v6403_v30 }
 0x7d9   :  { %2911 = vmatpush.msra.mxu3 %v6227_v18  ;;  %v6407_v18 = vld [vmem:[#allocation10 + $0x118] sm:$0xff] }
 0x7da   :  { %2611 = vmatpush.msra.mxu2 %v6407_v18  ;;  %2771 = vmatpush.msra.mxu1 %v6407_v18 }
 0x7db   :  { %2912 = vmatpush.msra.mxu3 %v6235_v36  ;;  %v6411_v36 = vld [vmem:[#allocation10 + $0x100] sm:$0xff] }
 0x7dc   :  { %2612 = vmatpush.msra.mxu2 %v6411_v36  ;;  %2772 = vmatpush.msra.mxu1 %v6411_v36 }
 0x7dd   :  { %2913 = vmatpush.msra.mxu3 %v6243_v38  ;;  %v6415_v38 = vld [vmem:[#allocation10 + $0xe8] sm:$0xff] }
 0x7de   :  { %2613 = vmatpush.msra.mxu2 %v6415_v38  ;;  %2773 = vmatpush.msra.mxu1 %v6415_v38 }
 0x7df   :  { %2914 = vmatpush.msra.mxu3 %v6255_v51  ;;  %v1752_v51 = vadd.f32 %v6119_v31, %v6114_v49  ;;  %v1793_v31 = vadd.f32 %v6166_v40, %v6117_v48 }
 0x7e1   :  { %2915 = vmatpush.msra.mxu3 %v6263_v19  ;;  %v6421_v19 = vld [vmem:[#allocation10 + $0xd0] sm:$0xff] }
 0x7e2   :  { %2614 = vmatpush.msra.mxu2 %v6421_v19  ;;  %2774 = vmatpush.msra.mxu1 %v6421_v19 }
 0x7e3   :  { %2916 = vmatpush.msra.mxu3 %v6271_v54 }
 0x7e5   :  { %2917 = vmatpush.msra.mxu3 %v6279_v52 }
 0x7e7   :  { %2918 = vmatpush.msra.mxu3 %v6287_v1  ;;  %v6425_v1 = vld [vmem:[#allocation10 + $0xb8] sm:$0xff] }
 0x7e8   :  { %2615 = vmatpush.msra.mxu2 %v6425_v1  ;;  %2775 = vmatpush.msra.mxu1 %v6425_v1 }
 0x7e9   :  { %2919 = vmatpush.msra.mxu3 %v6295_v9 }
 0x7eb   :  { %2920 = vmatpush.msra.mxu3 %v6303_v39  ;;  %v6429_v39 = vld [vmem:[#allocation10 + $0xa0] sm:$0xff] }
 0x7ec   :  { %2616 = vmatpush.msra.mxu2 %v6429_v39  ;;  %2776 = vmatpush.msra.mxu1 %v6429_v39 }
 0x7ed   :  { %2921 = vmatpush.msra.mxu3 %v6311_v58  ;;  %v6435_v58 = vld [vmem:[#allocation10 + $0x88] sm:$0xff] }
 0x7ee   :  { %2617 = vmatpush.msra.mxu2 %v6435_v58  ;;  %2777 = vmatpush.msra.mxu1 %v6435_v58 }
 0x7ef   :  { %2922 = vmatpush.msra.mxu3 %v6317_v33 }
 0x7f0   :  { %2618 = vmatpush.msra.mxu2 %v6439_v23  ;;  %2778 = vmatpush.msra.mxu1 %v6439_v23 }
 0x7f2   :  { %2619 = vmatpush.msra.mxu2 %v6443_v55  ;;  %2779 = vmatpush.msra.mxu1 %v6443_v55 }
 0x7f4   :  { %2620 = vmatpush.msra.mxu2 %v6447_v3  ;;  %2780 = vmatpush.msra.mxu1 %v6447_v3 }
 0x7f6   :  { %2621 = vmatpush.msra.mxu2 %v6450_v42  ;;  %2781 = vmatpush.msra.mxu1 %v6450_v42 }
 0x7f8   :  { %2622 = vmatpush.msra.mxu2 %v6453_v60  ;;  %2782 = vmatpush.msra.mxu1 %v6453_v60 }
 0x7fa   :  { %2887 = vmatpush.msrb.mxu2 %v6195_v7 }
 0x7fc   :  { %2888 = vmatpush.msrb.mxu2 %v6201_v4 }
 0x7fe   :  { %2889 = vmatpush.msrb.mxu2 %v6209_v10 }
 0x800   :  { %2890 = vmatpush.msrb.mxu2 %v6217_v61 }
 0x802   :  { %2891 = vmatpush.msrb.mxu2 %v6225_v56 }
 0x804   :  { %2892 = vmatpush.msrb.mxu2 %v6233_v25 }
 0x806   :  { %2893 = vmatpush.msrb.mxu2 %v6241_v5 }
 0x808   :  { %2894 = vmatpush.msrb.mxu2 %v6253_v34 }
 0x80a   :  { %2895 = vmatpush.msrb.mxu2 %v6261_v37 }
 0x80c   :  { %2896 = vmatpush.msrb.mxu2 %v6269_v35  ;;  %v1755_v35 = vadd.f32 %v6122_v12, %v6114_v49 }
 0x80e   :  { %2897 = vmatpush.msrb.mxu2 %v6277_v11  ;;  %v1796_v11 = vadd.f32 %v6170_v29, %v6117_v48 }
 0x810   :  { %2898 = vmatpush.msrb.mxu2 %v6285_v63 }
 0x812   :  { %2899 = vmatpush.msrb.mxu2 %v6293_v20 }
 0x814   :  { %2900 = vmatpush.msrb.mxu2 %v6301_v45 }
 0x816   :  { %2901 = vmatpush.msrb.mxu2 %v6309_v53 }
 0x818   :  { %2902 = vmatpush.msrb.mxu2 %v6315_v16 }
 0x84c   :  { %v2424_v54 = vpop.f32.mrf.mxu1 }
 0x84d   :  { %v2467_v52 = vadd.f32 %v2424_v54, %v1752_v51 }
 0x84f   :  { %v4431_v9 = vmul.f32 -1.442695, %v2467_v52 }
 0x851   :  { %4585 = vpow2.f32 %v4431_v9 }
 0x852   :  { %v2444_v33 = vpop.f32.mrf.mxu2 }
 0x853   :  { %v2487_v62 = vadd.f32 %v2444_v33, %v1793_v31  ;;  %v2464_v54 = vpop.f32.mrf.mxu3  ;;  %v1834_v31 = vadd.f32 %v6164_v50, %v6135_v41 }
 0x854   :  { %v2507_v61 = vadd.f32 %v6133_v13, %v2464_v54 }
 0x855   :  { %v4432_v44 = vmul.f32 -1.442695, %v2487_v62 }
 0x857   :  { %v4586_v40 = vpop.eup %4585  ;;  %4587 = vpow2.f32 %v4432_v44 }
 0x858   :  { %v2471_v43 = vadd.f32 1.0, %v4586_v40 }
 0x85a   :  { %4589 = vrcp.f32 %v2471_v43  ;;  %v2483_v26 = vand.u32 2147483648, %v2471_v43  ;;  %v2481_v17 = vand.u32 2147483647, %v2471_v43  ;;  %vm2477_vm9 = vweird.f32 %v2471_v43 }
 0x85c   :  { %v2484_v4 = vor.u32 1.1754944e-38, %v2483_v26  ;;  %vm2482_vm11 = vcmp.eq.f32.partialorder %v2481_v17, 8.507059e+37 }
 0x85d   :  { %v4588_v24 = vpop.eup %4587 }
 0x85e   :  { %v2491_v59 = vadd.f32 1.0, %v4588_v24 }
 0x860   :  { %v4590_v15 = vpop.eup %4589  ;;  %4591 = vrcp.f32 %v2491_v59  ;;  %v2503_v62 = vand.u32 2147483648, %v2491_v59  ;;  %v2501_v25 = vand.u32 2147483647, %v2491_v59  ;;  %vm2497_vm13 = vweird.f32 %v2491_v59 }
 0x861   :  { %v2473_v32 = vmul.f32 %v4590_v15, %v2471_v43  ;;  %vm2478_vm8 = vweird.f32 %v4590_v15 }
 0x862   :  { %vm2479_vm10 = vmor %vm2477_vm9, %vm2478_vm8  ;;  %v2504_v24 = vor.u32 1.1754944e-38, %v2503_v62  ;;  %vm2502_vm15 = vcmp.eq.f32.partialorder %v2501_v25, 8.507059e+37 }
 0x863   :  { %v2474_v47 = vsub.f32 1.0, %v2473_v32 }
 0x865   :  { %v2475_v2 = vmul.f32 %v4590_v15, %v2474_v47 }
 0x866   :  { %v4592_v51 = vpop.eup %4591 }
 0x867   :  { %v2493_v7 = vmul.f32 %v4592_v51, %v2491_v59  ;;  %v2476_v52 = vadd.f32 %v4590_v15, %v2475_v2  ;;  %vm2498_vm12 = vweird.f32 %v4592_v51 }
 0x868   :  { %vm2499_vm14 = vmor %vm2497_vm13, %vm2498_vm12 }
 0x869   :  { %v2494_v9 = vsub.f32 1.0, %v2493_v7  ;;  %v2480_v10 = vsel %vm2479_vm10, %v4590_v15, %v2476_v52 }
 0x86a   :  { %v2485_v56 = vsel %vm2482_vm11, %v2484_v4, %v2480_v10 }
 0x86b   :  { %v2495_v33 = vmul.f32 %v4592_v51, %v2494_v9  ;;  %v2508_v44 = vmul.f32 %v2507_v61, %v2485_v56 }
 0x86d   :  { %v2496_v40 = vadd.f32 %v4592_v51, %v2495_v33  ;;  %v2509_v43 = vadd.f32 %v2508_v44, %v1834_v31 }
 0x86f   :  { %v2500_v15 = vsel %vm2499_vm14, %v4592_v51, %v2496_v40  ;;  %4593 = vtanh.f32 %v2509_v43 }
 0x870   :  { %v2505_v50 = vsel %vm2502_vm15, %v2504_v24, %v2500_v15  ;;  %v1837_v24 = vadd.f32 %v6168_v57, %v6135_v41  ;;  %v1799_v57 = vadd.f32 %v6174_v8, %v6117_v48 }
 0x871   :  { %v2511_v5 = vsub.f32 1.0, %v2505_v50  ;;  %v2513_v32 = vmul.f32 %v2505_v50, %v6365_v22 }
 0x875   :  { %v4594_v34 = vpop.eup %4593 }
 0x876   :  { %v2512_v59 = vmul.f32 %v4594_v34, %v2511_v5 }
 0x878   :  { %v6477_v37 = vadd.f32 %v2513_v32, %v2512_v59 }
 0x87a   :  { %2583 = vmatmul.f32.vlgmr.msra.gmra.mxu0 %v6477_v37  ;;  %2603 = vmatmul.f32.vlgmr.msrb.gmra.mxu1 %v6477_v37 }
 0x87b   :  { %2623 = vmatmul.f32.vlgmr.msra.gmra.mxu2 %v6477_v37  ;;  %2927 = vmatpush.msra.mxu0 %v6391_v0 }
 0x87d   :  { %2928 = vmatpush.msra.mxu0 %v6395_v28 }
 0x87f   :  { %2929 = vmatpush.msra.mxu0 %v6399_v46 }
 0x881   :  { %2930 = vmatpush.msra.mxu0 %v6403_v30 }
 0x883   :  { %2931 = vmatpush.msra.mxu0 %v6407_v18 }
 0x885   :  { %2932 = vmatpush.msra.mxu0 %v6411_v36 }
 0x887   :  { %2933 = vmatpush.msra.mxu0 %v6415_v38 }
 0x889   :  { %2934 = vmatpush.msra.mxu0 %v6421_v19 }
 0x88b   :  { %2935 = vmatpush.msra.mxu0 %v6425_v1 }
 0x88d   :  { %2936 = vmatpush.msra.mxu0 %v6429_v39 }
 0x88f   :  { %2937 = vmatpush.msra.mxu0 %v6435_v58 }
 0x891   :  { %2938 = vmatpush.msra.mxu0 %v6439_v23 }
 0x893   :  { %2939 = vmatpush.msra.mxu0 %v6443_v55 }
 0x895   :  { %2940 = vmatpush.msra.mxu0 %v6447_v3 }
 0x897   :  { %2941 = vmatpush.msra.mxu0 %v6450_v42 }
 0x899   :  { %2942 = vmatpush.msra.mxu0 %v6453_v60 }
 0x8f7   :  { %v2584_v63 = vpop.f32.mrf.mxu0  ;;  %v2604_v20 = vpop.f32.mrf.mxu1 }
 0x8f8   :  { %v2627_v45 = vadd.f32 %v2584_v63, %v1755_v35  ;;  %v2647_v53 = vadd.f32 %v2604_v20, %v1796_v11 }
 0x8fa   :  { %v4433_v16 = vmul.f32 -1.442695, %v2627_v45  ;;  %v4434_v47 = vmul.f32 -1.442695, %v2647_v53  ;;  %v3185_v53 = vld [vmem:[#allocation12 + $0xa8] sm:$0xff] }
 0x8fc   :  { %4595 = vpow2.f32 %v4433_v16 }
 0x8fd   :  { %4597 = vpow2.f32 %v4434_v47  ;;  %v3179_v47 = vld [vmem:[#allocation12 + $0x78] sm:$0xff] }
 0x8fe   :  { %v2624_v56 = vpop.f32.mrf.mxu2 }
 0x8ff   :  { %v2667_v25 = vadd.f32 %v6133_v13, %v2624_v56 }
 0x902   :  { %v4596_v26 = vpop.eup %4595 }
 0x903   :  { %v4598_v2 = vpop.eup %4597  ;;  %v2631_v17 = vadd.f32 1.0, %v4596_v26 }
 0x904   :  { %v2651_v51 = vadd.f32 1.0, %v4598_v2  ;;  %v3176_v2 = vld [vmem:[#allocation12 + $0x60] sm:$0xff] }
 0x905   :  { %4599 = vrcp.f32 %v2631_v17  ;;  %v2643_v9 = vand.u32 2147483648, %v2631_v17  ;;  %v2641_v61 = vand.u32 2147483647, %v2631_v17  ;;  %vm2637_vm1 = vweird.f32 %v2631_v17 }
 0x906   :  { %4601 = vrcp.f32 %v2651_v51  ;;  %v2663_v15 = vand.u32 2147483648, %v2651_v51  ;;  %vm2657_vm5 = vweird.f32 %v2651_v51  ;;  %v2661_v5 = vand.u32 2147483647, %v2651_v51 }
 0x907   :  { %v2644_v62 = vor.u32 1.1754944e-38, %v2643_v9  ;;  %vm2642_vm3 = vcmp.eq.f32.partialorder %v2641_v61, 8.507059e+37 }
 0x908   :  { %v2664_v32 = vor.u32 1.1754944e-38, %v2663_v15  ;;  %vm2662_vm7 = vcmp.eq.f32.partialorder %v2661_v5, 8.507059e+37  ;;  %v1840_v5 = vadd.f32 %v6172_v14, %v6135_v41  ;;  %v3044_v14 = vld [vmem:[#allocation10 + $0x168] sm:$0xff] }
 0x909   :  { %3047 = vmatpush.msrb.mxu1 %v3044_v14 }
 0x90b   :  { %v4600_v54 = vpop.eup %4599 }
 0x90c   :  { %v4602_v7 = vpop.eup %4601  ;;  %v2633_v12 = vmul.f32 %v4600_v54, %v2631_v17  ;;  %vm2638_vm0 = vweird.f32 %v4600_v54 }
 0x90d   :  { %v2653_v52 = vmul.f32 %v4602_v7, %v2651_v51  ;;  %vm2639_vm2 = vmor %vm2637_vm1, %vm2638_vm0  ;;  %vm2658_vm4 = vweird.f32 %v4602_v7  ;;  %v3173_v51 = vld [vmem:[#allocation12 + $0x48] sm:$0xff] }
 0x90e   :  { %v2634_v4 = vsub.f32 1.0, %v2633_v12  ;;  %vm2659_vm6 = vmor %vm2657_vm5, %vm2658_vm4  ;;  %v3167_v12 = vld [vmem:[#allocation12 + $0x18] sm:$0xff] }
 0x90f   :  { %v2654_v29 = vsub.f32 1.0, %v2653_v52 }
 0x910   :  { %v2635_v10 = vmul.f32 %v4600_v54, %v2634_v4 }
 0x911   :  { %v2655_v31 = vmul.f32 %v4602_v7, %v2654_v29  ;;  %v3164_v29 = vld [vmem:[#allocation12] sm:$0xff] }
 0x912   :  { %v2636_v33 = vadd.f32 %v4600_v54, %v2635_v10 }
 0x913   :  { %v2656_v40 = vadd.f32 %v4602_v7, %v2655_v31 }
 0x914   :  { %v2640_v44 = vsel %vm2639_vm2, %v4600_v54, %v2636_v33  ;;  %v3170_v54 = vld [vmem:[#allocation12 + $0x30] sm:$0xff] }
 0x915   :  { %v2645_v43 = vsel %vm2642_vm3, %v2644_v62, %v2640_v44  ;;  %v2660_v59 = vsel %vm2659_vm6, %v4602_v7, %v2656_v40  ;;  %v6536_v40 = vld [vmem:[%s7384_s8] ss:$0 sm:$0xff] }
 0x916   :  { %v2668_v50 = vmul.f32 %v2667_v25, %v2645_v43  ;;  %v2665_v35 = vsel %vm2662_vm7, %v2664_v32, %v2660_v59 }
 0x917   :  { %v2671_v11 = vsub.f32 1.0, %v2665_v35  ;;  %v2673_v20 = vmul.f32 %v2665_v35, %v6477_v37 }
 0x918   :  { %v2669_v34 = vadd.f32 %v2668_v50, %v1837_v24 }
 0x91a   :  { %4603 = vtanh.f32 %v2669_v34 }
 0x920   :  { %v4604_v63 = vpop.eup %4603 }
 0x921   :  { %v2672_v13 = vmul.f32 %v4604_v63, %v2671_v11 }
 0x923   :  { %v6508_v45 = vadd.f32 %v2673_v20, %v2672_v13 }
 0x925   :  { %2743 = vmatmul.f32.vlgmr.msrb.gmra.mxu3 %v6508_v45  ;;  %2763 = vmatmul.f32.vlgmr.msrb.gmra.mxu0 %v6508_v45 }
 0x926   :  { %2783 = vmatmul.f32.vlgmr.msra.gmra.mxu1 %v6508_v45  ;;  %3087 = vmatpush.msrb.mxu3 %v6391_v0  ;;  %v3209_v0 = vld [vmem:[#allocation12 + $0x168] sm:$0xff] }
 0x927   :  { %3220 = vmatpush.msrb.mxu0 %v3209_v0 }
 0x928   :  { %3088 = vmatpush.msrb.mxu3 %v6395_v28 }
 0x92a   :  { %3089 = vmatpush.msrb.mxu3 %v6399_v46 }
 0x92c   :  { %3090 = vmatpush.msrb.mxu3 %v6403_v30  ;;  %v3206_v30 = vld [vmem:[#allocation12 + $0x150] sm:$0xff] }
 0x92d   :  { %3221 = vmatpush.msrb.mxu0 %v3206_v30  ;;  %v3045_v30 = vld [vmem:[#allocation10 + $0x170] sm:$0xff] }
 0x92e   :  { %3091 = vmatpush.msrb.mxu3 %v6407_v18  ;;  %3067 = vmatpush.msra.mxu2 %v3045_v30 }
 0x930   :  { %3092 = vmatpush.msrb.mxu3 %v6411_v36  ;;  %v3203_v36 = vld [vmem:[#allocation12 + $0x138] sm:$0xff] }
 0x931   :  { %3222 = vmatpush.msrb.mxu0 %v3203_v36  ;;  %v3042_v36 = vld [vmem:[#allocation10 + $0x158] sm:$0xff] }
 0x932   :  { %3093 = vmatpush.msrb.mxu3 %v6415_v38  ;;  %v1758_v38 = vadd.f32 %v6124_v6, %v6114_v49  ;;  %v3182_v6 = vld [vmem:[#allocation12 + $0x90] sm:$0xff]  ;;  %3068 = vmatpush.msra.mxu2 %v3042_v36  ;;  %v3199_v36 = vld [vmem:[#allocation12 + $0x118] sm:$0xff] }
 0x934   :  { %3094 = vmatpush.msrb.mxu3 %v6421_v19  ;;  %v3200_v19 = vld [vmem:[#allocation12 + $0x120] sm:$0xff] }
 0x935   :  { %3223 = vmatpush.msrb.mxu0 %v3200_v19  ;;  %v3039_v19 = vld [vmem:[#allocation10 + $0x140] sm:$0xff] }
 0x936   :  { %3095 = vmatpush.msrb.mxu3 %v6425_v1  ;;  %3069 = vmatpush.msra.mxu2 %v3039_v19 }
 0x938   :  { %3096 = vmatpush.msrb.mxu3 %v6429_v39 }
 0x93a   :  { %3097 = vmatpush.msrb.mxu3 %v6435_v58  ;;  %v3197_v58 = vld [vmem:[#allocation12 + $0x108] sm:$0xff] }
 0x93b   :  { %3224 = vmatpush.msrb.mxu0 %v3197_v58  ;;  %v3032_v58 = vld [vmem:[#allocation10 + $0x108] sm:$0xff] }
 0x93c   :  { %3098 = vmatpush.msrb.mxu3 %v6439_v23  ;;  %v3194_v23 = vld [vmem:[#allocation12 + $0xf0] sm:$0xff] }
 0x93d   :  { %3225 = vmatpush.msrb.mxu0 %v3194_v23  ;;  %v3029_v23 = vld [vmem:[#allocation10 + $0xf0] sm:$0xff] }
 0x93e   :  { %3099 = vmatpush.msrb.mxu3 %v6443_v55  ;;  %v3191_v55 = vld [vmem:[#allocation12 + $0xd8] sm:$0xff] }
 0x93f   :  { %3226 = vmatpush.msrb.mxu0 %v3191_v55  ;;  %v3030_v55 = vld [vmem:[#allocation10 + $0xf8] sm:$0xff] }
 0x940   :  { %3100 = vmatpush.msrb.mxu3 %v6447_v3 }
 0x942   :  { %3101 = vmatpush.msrb.mxu3 %v6450_v42  ;;  %v3188_v42 = vld [vmem:[#allocation12 + $0xc0] sm:$0xff] }
 0x943   :  { %3227 = vmatpush.msrb.mxu0 %v3188_v42  ;;  %v3027_v42 = vld [vmem:[#allocation10 + $0xe0] sm:$0xff] }
 0x944   :  { %3102 = vmatpush.msrb.mxu3 %v6453_v60 }
 0x945   :  { %3228 = vmatpush.msrb.mxu0 %v3185_v53  ;;  %v3024_v53 = vld [vmem:[#allocation10 + $0xc8] sm:$0xff] }
 0x947   :  { %3229 = vmatpush.msrb.mxu0 %v3182_v6  ;;  %v3020_v6 = vld [vmem:[#allocation10 + $0xa8] sm:$0xff] }
 0x949   :  { %3230 = vmatpush.msrb.mxu0 %v3179_v47  ;;  %v3017_v47 = vld [vmem:[#allocation10 + $0x90] sm:$0xff] }
 0x94b   :  { %3231 = vmatpush.msrb.mxu0 %v3176_v2  ;;  %v3014_v2 = vld [vmem:[#allocation10 + $0x78] sm:$0xff] }
 0x94d   :  { %3232 = vmatpush.msrb.mxu0 %v3173_v51  ;;  %v3011_v51 = vld [vmem:[#allocation10 + $0x60] sm:$0xff] }
 0x94f   :  { %3233 = vmatpush.msrb.mxu0 %v3170_v54  ;;  %v3012_v54 = vld [vmem:[#allocation10 + $0x68] sm:$0xff] }
 0x951   :  { %3234 = vmatpush.msrb.mxu0 %v3167_v12  ;;  %v3008_v12 = vld [vmem:[#allocation10 + $0x48] sm:$0xff] }
 0x953   :  { %3235 = vmatpush.msrb.mxu0 %v3164_v29  ;;  %v3005_v29 = vld [vmem:[#allocation10 + $0x30] sm:$0xff] }
 0x9a2   :  { %v2764_v28 = vpop.f32.mrf.mxu0 }
 0x9a3   :  { %v2807_v46 = vadd.f32 %v2764_v28, %v1799_v57  ;;  %v2784_v62 = vpop.f32.mrf.mxu1 }
 0x9a4   :  { %v2827_v43 = vadd.f32 %v6536_v40, %v2784_v62  ;;  %v3000_v62 = vld [vmem:[#allocation10 + $0x8] sm:$0xff] }
 0x9a5   :  { %v4436_v18 = vmul.f32 -1.442695, %v2807_v46 }
 0x9a7   :  { %4605 = vpow2.f32 %v4436_v18  ;;  %v3041_v18 = vld [vmem:[#allocation10 + $0x150] sm:$0xff] }
 0x9a8   :  { %v2744_v1 = vpop.f32.mrf.mxu3  ;;  %3048 = vmatpush.msrb.mxu1 %v3041_v18  ;;  %v3198_v18 = vld [vmem:[#allocation12 + $0x110] sm:$0xff] }
 0x9a9   :  { %v2787_v39 = vadd.f32 %v2744_v1, %v1758_v38  ;;  %v3038_v38 = vld [vmem:[#allocation10 + $0x138] sm:$0xff]  ;;  %v3035_v1 = vld [vmem:[#allocation10 + $0x120] sm:$0xff] }
 0x9aa   :  { %3049 = vmatpush.msrb.mxu1 %v3038_v38  ;;  %v6581_v38 = vld [vmem:[#allocation13 + $0xa8] sm:$0xff] }
 0x9ab   :  { %v4435_v8 = vmul.f32 -1.442695, %v2787_v39  ;;  %v3036_v39 = vld [vmem:[#allocation10 + $0x128] sm:$0xff] }
 0x9ac   :  { %3050 = vmatpush.msrb.mxu1 %v3035_v1  ;;  %3070 = vmatpush.msra.mxu2 %v3036_v39  ;;  %v3195_v39 = vld [vmem:[#allocation12 + $0xf8] sm:$0xff] }
 0x9ad   :  { %v4606_v3 = vpop.eup %4605  ;;  %4607 = vpow2.f32 %v4435_v8  ;;  %v3033_v8 = vld [vmem:[#allocation10 + $0x110] sm:$0xff] }
 0x9ae   :  { %v2811_v60 = vadd.f32 1.0, %v4606_v3  ;;  %3051 = vmatpush.msrb.mxu1 %v3032_v58  ;;  %3071 = vmatpush.msra.mxu2 %v3033_v8  ;;  %v3026_v3 = vld [vmem:[#allocation10 + $0xd8] sm:$0xff]  ;;  %v3196_v58 = vld [vmem:[#allocation12 + $0x100] sm:$0xff]  ;;  %v6584_v8 = vld [vmem:[#allocation13 + $0x90] sm:$0xff] }
 0x9b0   :  { %4609 = vrcp.f32 %v2811_v60  ;;  %v2823_v34 = vand.u32 2147483648, %v2811_v60  ;;  %vm2817_vm13 = vweird.f32 %v2811_v60  ;;  %v2821_v32 = vand.u32 2147483647, %v2811_v60  ;;  %3052 = vmatpush.msrb.mxu1 %v3029_v23  ;;  %3072 = vmatpush.msra.mxu2 %v3030_v55  ;;  %v3192_v23 = vld [vmem:[#allocation12 + $0xe0] sm:$0xff]  ;;  %v3193_v55 = vld [vmem:[#allocation12 + $0xe8] sm:$0xff] }
 0x9b2   :  { %v2824_v63 = vor.u32 1.1754944e-38, %v2823_v34  ;;  %vm2822_vm15 = vcmp.eq.f32.partialorder %v2821_v32, 8.507059e+37  ;;  %3053 = vmatpush.msrb.mxu1 %v3026_v3  ;;  %3073 = vmatpush.msra.mxu2 %v3027_v42  ;;  %v3205_v34 = vld [vmem:[#allocation12 + $0x148] sm:$0xff]  ;;  %v6587_v3 = vld [vmem:[#allocation13 + $0x78] sm:$0xff] }
 0x9b3   :  { %v4608_v16 = vpop.eup %4607  ;;  %v7451_v32 = vld [vmem:[#allocation26_spill] sm:$0xff] }
 0x9b4   :  { %v2791_v26 = vadd.f32 1.0, %v4608_v16  ;;  %3074 = vmatpush.msra.mxu2 %v3024_v53  ;;  %v3021_v16 = vld [vmem:[#allocation10 + $0xb0] sm:$0xff]  ;;  %v3189_v42 = vld [vmem:[#allocation12 + $0xc8] sm:$0xff]  ;;  %v6590_v53 = vld [vmem:[#allocation13 + $0x60] sm:$0xff] }
 0x9b6   :  { %4611 = vrcp.f32 %v2791_v26  ;;  %v4610_v17 = vpop.eup %4609  ;;  %v2803_v61 = vand.u32 2147483648, %v2791_v26  ;;  %v2801_v56 = vand.u32 2147483647, %v2791_v26  ;;  %vm2797_vm9 = vweird.f32 %v2791_v26  ;;  %3075 = vmatpush.msra.mxu2 %v3021_v16  ;;  %v3187_v16 = vld [vmem:[#allocation12 + $0xb8] sm:$0xff] }
 0x9b7   :  { %v2813_v7 = vmul.f32 %v4610_v17, %v2811_v60  ;;  %vm2818_vm12 = vweird.f32 %v4610_v17  ;;  %v3023_v60 = vld [vmem:[#allocation10 + $0xc0] sm:$0xff] }
 0x9b8   :  { %v2804_v25 = vor.u32 1.1754944e-38, %v2803_v61  ;;  %vm2802_vm11 = vcmp.eq.f32.partialorder %v2801_v56, 8.507059e+37  ;;  %vm2819_vm14 = vmor %vm2817_vm13, %vm2818_vm12  ;;  %3054 = vmatpush.msrb.mxu1 %v3023_v60  ;;  %v3002_v61 = vld [vmem:[#allocation10 + $0x18] sm:$0xff]  ;;  %v6562_v56 = vld [vmem:[#allocation13 + $0x120] sm:$0xff] }
 0x9b9   :  { %v2814_v9 = vsub.f32 1.0, %v2813_v7  ;;  %v6553_v7 = vld [vmem:[#allocation13 + $0x168] sm:$0xff]  ;;  %v3190_v60 = vld [vmem:[#allocation12 + $0xd0] sm:$0xff] }
 0x9ba   :  { %3055 = vmatpush.msrb.mxu1 %v3020_v6  ;;  %v3186_v6 = vld [vmem:[#allocation12 + $0xb0] sm:$0xff] }
 0x9bb   :  { %v2815_v33 = vmul.f32 %v4610_v17, %v2814_v9  ;;  %v3006_v9 = vld [vmem:[#allocation10 + $0x38] sm:$0xff] }
 0x9bc   :  { %v4612_v52 = vpop.eup %4611  ;;  %3056 = vmatpush.msrb.mxu1 %v3017_v47  ;;  %v6593_v47 = vld [vmem:[#allocation13 + $0x48] sm:$0xff] }
 0x9bd   :  { %v2793_v4 = vmul.f32 %v4612_v52, %v2791_v26  ;;  %vm2798_vm8 = vweird.f32 %v4612_v52  ;;  %v2816_v15 = vadd.f32 %v4610_v17, %v2815_v33  ;;  %v3018_v26 = vld [vmem:[#allocation10 + $0x98] sm:$0xff]  ;;  %v2999_v33 = vld [vmem:[#allocation10] sm:$0xff] }
 0x9be   :  { %vm2799_vm10 = vmor %vm2797_vm9, %vm2798_vm8  ;;  %3076 = vmatpush.msra.mxu2 %v3018_v26  ;;  %3057 = vmatpush.msrb.mxu1 %v3014_v2  ;;  %v3183_v2 = vld [vmem:[#allocation12 + $0x98] sm:$0xff] }
 0x9bf   :  { %v2794_v10 = vsub.f32 1.0, %v2793_v4  ;;  %v2820_v11 = vsel %vm2819_vm14, %v4610_v17, %v2816_v15  ;;  %v3015_v17 = vld [vmem:[#allocation10 + $0x80] sm:$0xff]  ;;  %v6556_v4 = vld [vmem:[#allocation13 + $0x150] sm:$0xff] }
 0x9c0   :  { %v2825_v13 = vsel %vm2822_vm15, %v2824_v63, %v2820_v11  ;;  %3077 = vmatpush.msra.mxu2 %v3015_v17  ;;  %3058 = vmatpush.msrb.mxu1 %v3011_v51  ;;  %v3208_v15 = vld [vmem:[#allocation12 + $0x160] sm:$0xff]  ;;  %v7452_v11 = vld [vmem:[#allocation28_spill] sm:$0xff]  ;;  %v6596_v51 = vld [vmem:[#allocation13 + $0x30] sm:$0xff] }
 0x9c1   :  { %v2795_v31 = vmul.f32 %v4612_v52, %v2794_v10  ;;  %v2831_v20 = vsub.f32 1.0, %v2825_v13  ;;  %v2833_v0 = vmul.f32 %v2825_v13, %v6508_v45  ;;  %v6559_v10 = vld [vmem:[#allocation13 + $0x138] sm:$0xff]  ;;  %v1802_v63 = vadd.f32 %v7452_v11, %v6117_v48  ;;  %v3201_v13 = vld [vmem:[#allocation12 + $0x128] sm:$0xff]  ;;  %v3184_v17 = vld [vmem:[#allocation12 + $0xa0] sm:$0xff] }
 0x9c2   :  { %3078 = vmatpush.msra.mxu2 %v3012_v54  ;;  %3059 = vmatpush.msrb.mxu1 %v3008_v12 }
 0x9c3   :  { %v2796_v44 = vadd.f32 %v4612_v52, %v2795_v31  ;;  %v3003_v31 = vld [vmem:[#allocation10 + $0x20] sm:$0xff] }
 0x9c4   :  { %3060 = vmatpush.msrb.mxu1 %v3005_v29  ;;  %v3181_v29 = vld [vmem:[#allocation12 + $0x88] sm:$0xff] }
 0x9c5   :  { %v2800_v24 = vsel %vm2799_vm10, %v4612_v52, %v2796_v44  ;;  %v3009_v52 = vld [vmem:[#allocation10 + $0x50] sm:$0xff] }
 0x9c6   :  { %v2805_v50 = vsel %vm2802_vm11, %v2804_v25, %v2800_v24  ;;  %3079 = vmatpush.msra.mxu2 %v3009_v52  ;;  %3061 = vmatpush.msrb.mxu1 %v3002_v61  ;;  %v3210_v44 = vld [vmem:[#allocation12 + $0x170] sm:$0xff]  ;;  %v3211_v25 = vld [vmem:[#allocation12 + $0x178] sm:$0xff]  ;;  %v3180_v52 = vld [vmem:[#allocation12 + $0x80] sm:$0xff] }
 0x9c7   :  { %v2828_v59 = vmul.f32 %v2827_v43, %v2805_v50  ;;  %v6565_v43 = vld [vmem:[#allocation13 + $0x108] sm:$0xff]  ;;  %v3207_v24 = vld [vmem:[#allocation12 + $0x158] sm:$0xff]  ;;  %v6568_v50 = vld [vmem:[#allocation13 + $0xf0] sm:$0xff] }
 0x9c8   :  { %3080 = vmatpush.msra.mxu2 %v3006_v9  ;;  %3062 = vmatpush.msrb.mxu1 %v2999_v33  ;;  %v6598_v9 = vld [vmem:[#allocation13 + $0x18] sm:$0xff]  ;;  %v3178_v33 = vld [vmem:[#allocation12 + $0x70] sm:$0xff] }
 0x9c9   :  { %v2829_v35 = vadd.f32 %v2828_v59, %v1840_v5  ;;  %v3204_v5 = vld [vmem:[#allocation12 + $0x140] sm:$0xff]  ;;  %v6571_v59 = vld [vmem:[#allocation13 + $0xd8] sm:$0xff] }
 0x9ca   :  { %3081 = vmatpush.msra.mxu2 %v3003_v31  ;;  %3261 = vmatpush.msra.mxu1 %v3210_v44  ;;  %v3177_v31 = vld [vmem:[#allocation12 + $0x68] sm:$0xff]  ;;  %v3174_v44 = vld [vmem:[#allocation12 + $0x50] sm:$0xff] }
 0x9cb   :  { %4613 = vtanh.f32 %v2829_v35  ;;  %v1761_v35 = vadd.f32 %v7451_v32, %v6114_v49  ;;  %v3169_v32 = vld [vmem:[#allocation12 + $0x28] sm:$0xff] }
 0x9cc   :  { %3082 = vmatpush.msra.mxu2 %v3000_v62  ;;  %3262 = vmatpush.msra.mxu1 %v3207_v24  ;;  %v6601_v62 = vld [vmem:[#allocation13] sm:$0xff]  ;;  %v3171_v24 = vld [vmem:[#allocation12 + $0x38] sm:$0xff] }
 0x9ce   :  { %3263 = vmatpush.msra.mxu1 %v3204_v5 }
 0x9d0   :  { %3264 = vmatpush.msra.mxu1 %v3201_v13  ;;  %v3165_v13 = vld [vmem:[#allocation12 + $0x8] sm:$0xff] }
 0x9d1   :  { %v4614_v57 = vpop.eup %4613 }
 0x9d2   :  { %v2832_v28 = vmul.f32 %v4614_v57, %v2831_v20  ;;  %v3202_v20 = vld [vmem:[#allocation12 + $0x130] sm:$0xff]  ;;  %v6578_v57 = vld [vmem:[#allocation13 + $0xc0] sm:$0xff]  ;;  %3265 = vmatpush.msra.mxu1 %v3198_v18 }
 0x9d4   :  { %v6542_v46 = vadd.f32 %v2833_v0, %v2832_v28  ;;  %3266 = vmatpush.msra.mxu1 %v3195_v39 }
 0x9d6   :  { %2903 = vmatmul.f32.vlgmr.msrb.gmra.mxu2 %v6542_v46  ;;  %2923 = vmatmul.f32.vlgmr.msra.gmra.mxu3 %v6542_v46 }
 0x9d7   :  { %2943 = vmatmul.f32.vlgmr.msra.gmra.mxu0 %v6542_v46  ;;  %3419 = vmatpush.msra.mxu3 %v6553_v7 }
 0x9d8   :  { %3302 = vmatpush.msrb.mxu2 %v3211_v25  ;;  %3267 = vmatpush.msra.mxu1 %v3192_v23  ;;  %v3175_v25 = vld [vmem:[#allocation12 + $0x58] sm:$0xff] }
 0x9d9   :  { %3420 = vmatpush.msra.mxu3 %v6556_v4 }
 0x9da   :  { %3303 = vmatpush.msrb.mxu2 %v3208_v15  ;;  %3268 = vmatpush.msra.mxu1 %v3189_v42  ;;  %v3172_v15 = vld [vmem:[#allocation12 + $0x40] sm:$0xff] }
 0x9db   :  { %3421 = vmatpush.msra.mxu3 %v6559_v10 }
 0x9dc   :  { %3304 = vmatpush.msrb.mxu2 %v3205_v34  ;;  %3269 = vmatpush.msra.mxu1 %v3186_v6  ;;  %v3168_v34 = vld [vmem:[#allocation12 + $0x20] sm:$0xff] }
 0x9dd   :  { %3422 = vmatpush.msra.mxu3 %v6562_v56 }
 0x9de   :  { %3305 = vmatpush.msrb.mxu2 %v3202_v20  ;;  %3270 = vmatpush.msra.mxu1 %v3183_v2  ;;  %v3166_v20 = vld [vmem:[#allocation12 + $0x10] sm:$0xff] }
 0x9df   :  { %3236 = vmatmul.f32.vlgmr.msrb.gmra.mxu0 %v6139_v27  ;;  %3423 = vmatpush.msra.mxu3 %v6565_v43 }
 0x9e0   :  { %3306 = vmatpush.msrb.mxu2 %v3199_v36  ;;  %3271 = vmatpush.msra.mxu1 %v3180_v52 }
 0x9e1   :  { %3424 = vmatpush.msra.mxu3 %v6568_v50 }
 0x9e2   :  { %3307 = vmatpush.msrb.mxu2 %v3196_v58  ;;  %3272 = vmatpush.msra.mxu1 %v3177_v31 }
 0x9e3   :  { %3425 = vmatpush.msra.mxu3 %v6571_v59 }
 0x9e4   :  { %3308 = vmatpush.msrb.mxu2 %v3193_v55  ;;  %3273 = vmatpush.msra.mxu1 %v3174_v44 }
 0x9e5   :  { %3426 = vmatpush.msra.mxu3 %v6578_v57 }
 0x9e6   :  { %3309 = vmatpush.msrb.mxu2 %v3190_v60  ;;  %3274 = vmatpush.msra.mxu1 %v3171_v24  ;;  %v7453_v60 = vld [vmem:[#allocation22_spill] sm:$0xff]  ;;  %v6611_v24 = vld [vmem:[#allocation13 + $0x170] sm:$0xff] }
 0x9e7   :  { %3239 = vmatmul.f32.gmra.mxu0 %v6190_v21  ;;  %3427 = vmatpush.msra.mxu3 %v6581_v38  ;;  %v1843_v6 = vadd.f32 %v7453_v60, %v6135_v41  ;;  %v6762_v60 = vld [vmem:[#allocation13 + $0xd0] sm:$0xff] }
 0x9e8   :  { %3310 = vmatpush.msrb.mxu2 %v3187_v16  ;;  %3275 = vmatpush.msra.mxu1 %v3168_v34  ;;  %v6631_v34 = vld [vmem:[#allocation13 + $0x110] sm:$0xff] }
 0x9e9   :  { %3428 = vmatpush.msra.mxu3 %v6584_v8 }
 0x9ea   :  { %3311 = vmatpush.msrb.mxu2 %v3184_v17  ;;  %3276 = vmatpush.msra.mxu1 %v3165_v13  ;;  %v6658_v13 = vld [vmem:[#allocation13 + $0x98] sm:$0xff] }
 0x9eb   :  { %3429 = vmatpush.msra.mxu3 %v6587_v3 }
 0x9ec   :  { %3312 = vmatpush.msrb.mxu2 %v3181_v29 }
 0x9ed   :  { %3430 = vmatpush.msra.mxu3 %v6590_v53 }
 0x9ee   :  { %3313 = vmatpush.msrb.mxu2 %v3178_v33 }
 0x9ef   :  { %3242 = vmatmul.f32.gmra.mxu0 %v6365_v22  ;;  %3431 = vmatpush.msra.mxu3 %v6593_v47 }
 0x9f0   :  { %3314 = vmatpush.msrb.mxu2 %v3175_v25 }
 0x9f1   :  { %3432 = vmatpush.msra.mxu3 %v6596_v51 }
 0x9f2   :  { %3315 = vmatpush.msrb.mxu2 %v3172_v15  ;;  %v6621_v15 = vld [vmem:[#allocation13 + $0x140] sm:$0xff] }
 0x9f3   :  { %3433 = vmatpush.msra.mxu3 %v6598_v9 }
 0x9f4   :  { %3316 = vmatpush.msrb.mxu2 %v3169_v32  ;;  %v7454_v32 = vmov 0.0  }
 0x9f5   :  { %3434 = vmatpush.msra.mxu3 %v6601_v62 }
 0x9f6   :  { %3317 = vmatpush.msrb.mxu2 %v3166_v20  ;;  %v6663_v20 = vld [vmem:[#allocation13 + $0x80] sm:$0xff] }
 0x9f7   :  { %3245 = vmatmul.f32.gmra.mxu0 %v6477_v37 }
 0x9ff   :  { %3248 = vmatmul.f32.gmra.mxu0 %v6508_v45 }
 0xa07   :  { %3251 = vmatmul.f32.gmra.mxu0 %v6542_v46 }
 0xa54   :  { %v2944_v36 = vpop.f32.mrf.mxu0 }
 0xa55   :  { %v2987_v58 = vadd.f32 %v6536_v40, %v2944_v36  ;;  %v6690_v36 = vld [vmem:[#allocation13 + $0x148] sm:$0xff] }
 0xa59   :  { %v2904_v0 = vpop.f32.mrf.mxu2  ;;  %v2924_v28 = vpop.f32.mrf.mxu3 }
 0xa5a   :  { %v2947_v14 = vadd.f32 %v2904_v0, %v1761_v35  ;;  %v2967_v30 = vadd.f32 %v2924_v28, %v1802_v63 }
 0xa5c   :  { %v4437_v19 = vmul.f32 -1.442695, %v2947_v14  ;;  %v4438_v1 = vmul.f32 -1.442695, %v2967_v30 }
 0xa5e   :  { %4615 = vpow2.f32 %v4437_v19 }
 0xa5f   :  { %4617 = vpow2.f32 %v4438_v1 }
 0xa64   :  { %v4616_v26 = vpop.eup %4615 }
 0xa65   :  { %v4618_v54 = vpop.eup %4617  ;;  %v2951_v12 = vadd.f32 1.0, %v4616_v26 }
 0xa66   :  { %v2971_v61 = vadd.f32 1.0, %v4618_v54 }
 0xa67   :  { %4619 = vrcp.f32 %v2951_v12  ;;  %v2963_v28 = vand.u32 2147483648, %v2951_v12  ;;  %v2961_v18 = vand.u32 2147483647, %v2951_v12  ;;  %vm2957_vm1 = vweird.f32 %v2951_v12 }
 0xa68   :  { %4621 = vrcp.f32 %v2971_v61  ;;  %v2983_v26 = vand.u32 2147483648, %v2971_v61  ;;  %vm2977_vm5 = vweird.f32 %v2971_v61  ;;  %v2981_v2 = vand.u32 2147483647, %v2971_v61 }
 0xa69   :  { %v2964_v39 = vor.u32 1.1754944e-38, %v2963_v28  ;;  %vm2962_vm3 = vcmp.eq.f32.partialorder %v2961_v18, 8.507059e+37  ;;  %v6679_v28 = vld [vmem:[#allocation13 + $0x38] sm:$0xff]  ;;  %v6688_v18 = vld [vmem:[#allocation13 + $0x20] sm:$0xff] }
 0xa6a   :  { %vm2982_vm7 = vcmp.eq.f32.partialorder %v2981_v2, 8.507059e+37  ;;  %v6772_v2 = vld [vmem:[#allocation13 + $0xa0] sm:$0xff] }
 0xa6d   :  { %v4620_v5 = vpop.eup %4619 }
 0xa6e   :  { %v4622_v35 = vpop.eup %4621  ;;  %v2953_v11 = vmul.f32 %v4620_v5, %v2951_v12  ;;  %vm2958_vm0 = vweird.f32 %v4620_v5  ;;  %v2984_v12 = vor.u32 1.1754944e-38, %v2983_v26  ;;  %v6767_v26 = vld [vmem:[#allocation13 + $0xb8] sm:$0xff] }
 0xa6f   :  { %v2973_v63 = vmul.f32 %v4622_v35, %v2971_v61  ;;  %vm2959_vm2 = vmor %vm2957_vm1, %vm2958_vm0  ;;  %vm2978_vm4 = vweird.f32 %v4622_v35  ;;  %v6617_v61 = vld [vmem:[#allocation13 + $0x158] sm:$0xff] }
 0xa70   :  { %v2954_v0 = vsub.f32 1.0, %v2953_v11  ;;  %vm2979_vm6 = vmor %vm2977_vm5, %vm2978_vm4  ;;  %v6642_v11 = vld [vmem:[#allocation13 + $0xe0] sm:$0xff] }
 0xa71   :  { %v2974_v14 = vsub.f32 1.0, %v2973_v63  ;;  %v6647_v63 = vld [vmem:[#allocation13 + $0xc8] sm:$0xff] }
 0xa72   :  { %v2955_v30 = vmul.f32 %v4620_v5, %v2954_v0  ;;  %v6668_v0 = vld [vmem:[#allocation13 + $0x68] sm:$0xff] }
 0xa73   :  { %v2975_v19 = vmul.f32 %v4622_v35, %v2974_v14  ;;  %v6681_v14 = vld [vmem:[#allocation13 + $0x178] sm:$0xff] }
 0xa74   :  { %v2956_v1 = vadd.f32 %v4620_v5, %v2955_v30  ;;  %v6683_v30 = vld [vmem:[#allocation13 + $0x160] sm:$0xff]  ;;  %3459 = vmatpush.msra.mxu0 %v6681_v14 }
 0xa75   :  { %v2976_v42 = vadd.f32 %v4622_v35, %v2975_v19 }
 0xa76   :  { %v2960_v23 = vsel %vm2959_vm2, %v4620_v5, %v2956_v1  ;;  %v6626_v5 = vld [vmem:[#allocation13 + $0x128] sm:$0xff]  ;;  %3460 = vmatpush.msra.mxu0 %v6683_v30 }
 0xa77   :  { %v2965_v55 = vsel %vm2962_vm3, %v2964_v39, %v2960_v23  ;;  %v2980_v54 = vsel %vm2979_vm6, %v4622_v35, %v2976_v42  ;;  %v6638_v35 = vld [vmem:[#allocation13 + $0xf8] sm:$0xff]  ;;  %v6753_v23 = vld [vmem:[#allocation13 + $0x100] sm:$0xff] }
 0xa78   :  { %v2988_v16 = vmul.f32 %v2987_v58, %v2965_v55  ;;  %v2985_v52 = vsel %vm2982_vm7, %v2984_v12, %v2980_v54  ;;  %3461 = vmatpush.msra.mxu0 %v6690_v36  ;;  %v6749_v39 = vld [vmem:[#allocation13 + $0x118] sm:$0xff]  ;;  %v6755_v55 = vld [vmem:[#allocation13 + $0xe8] sm:$0xff] }
 0xa79   :  { %v2991_v29 = vsub.f32 1.0, %v2985_v52  ;;  %v2993_v44 = vmul.f32 %v2985_v52, %v6542_v46  ;;  %v6777_v54 = vld [vmem:[#allocation13 + $0x88] sm:$0xff]  ;;  %v6782_v52 = vld [vmem:[#allocation13 + $0x70] sm:$0xff] }
 0xa7a   :  { %v2989_v17 = vadd.f32 %v2988_v16, %v1843_v6  ;;  %7458 = vst [vmem:[#allocation30_spill] sm:$0xff] %v6782_v52 }
 0xa7c   :  { %4623 = vtanh.f32 %v2989_v17 }
 0xa82   :  { %v4624_v31 = vpop.eup %4623 }
 0xa83   :  { %v2992_v33 = vmul.f32 %v4624_v31, %v2991_v29  ;;  %v6790_v31 = vld [vmem:[#allocation13 + $0x58] sm:$0xff] }
 0xa84   :  { %7459 = vst [vmem:[#allocation31_spill] sm:$0xff] %v6790_v31 }
 0xa85   :  { %v6609_v25 = vadd.f32 %v2993_v44, %v2992_v33  ;;  %v6795_v44 = vld [vmem:[#allocation13 + $0x40] sm:$0xff] }
 0xa86   :  { %7460 = vst [vmem:[#allocation32_spill] sm:$0xff] %v6795_v44 }
 0xa87   :  { %3063 = vmatmul.f32.vlgmr.msrb.gmra.mxu1 %v6609_v25  ;;  %3083 = vmatmul.f32.vlgmr.msra.gmra.mxu2 %v6609_v25 }
 0xa88   :  { %3103 = vmatmul.f32.vlgmr.msrb.gmra.mxu3 %v6609_v25  ;;  %3254 = vmatmul.f32.gmra.mxu0 %v6609_v25 }
 0xa89   :  { %3439 = vmatpush.msrb.mxu3 %v6611_v24  ;;  %3533 = vmatpush.msrb.mxu1 %v6553_v7 }
 0xa8a   :  { %3553 = vmatpush.msra.mxu2 %v6611_v24 }
 0xa8b   :  { %3440 = vmatpush.msrb.mxu3 %v6617_v61  ;;  %3534 = vmatpush.msrb.mxu1 %v6556_v4 }
 0xa8c   :  { %3554 = vmatpush.msra.mxu2 %v6617_v61 }
 0xa8d   :  { %3441 = vmatpush.msrb.mxu3 %v6621_v15  ;;  %3535 = vmatpush.msrb.mxu1 %v6559_v10 }
 0xa8e   :  { %3555 = vmatpush.msra.mxu2 %v6621_v15 }
 0xa8f   :  { %3442 = vmatpush.msrb.mxu3 %v6626_v5  ;;  %3277 = vmatmul.f32.vlgmr.msra.gmra.mxu1 %v6139_v27 }
 0xa90   :  { %3318 = vmatmul.f32.vlgmr.msrb.gmra.mxu2 %v6139_v27  ;;  %3435 = vmatmul.f32.vlgmr.msra.gmra.mxu3 %v7454_v32  ;;  %v6652_v27 = vld [vmem:[#allocation13 + $0xb0] sm:$0xff] }
 0xa91   :  { %3443 = vmatpush.msrb.mxu3 %v6631_v34  ;;  %3536 = vmatpush.msrb.mxu1 %v6562_v56 }
 0xa92   :  { %3556 = vmatpush.msra.mxu2 %v6626_v5 }
 0xa93   :  { %3444 = vmatpush.msrb.mxu3 %v6638_v35  ;;  %3537 = vmatpush.msrb.mxu1 %v6565_v43 }
 0xa94   :  { %3557 = vmatpush.msra.mxu2 %v6631_v34 }
 0xa95   :  { %3445 = vmatpush.msrb.mxu3 %v6642_v11  ;;  %3538 = vmatpush.msrb.mxu1 %v6568_v50 }
 0xa96   :  { %3558 = vmatpush.msra.mxu2 %v6638_v35 }
 0xa97   :  { %3446 = vmatpush.msrb.mxu3 %v6647_v63  ;;  %3280 = vmatmul.f32.gmra.mxu1 %v6190_v21 }
 0xa98   :  { %3321 = vmatmul.f32.gmra.mxu2 %v6190_v21  ;;  %3539 = vmatpush.msrb.mxu1 %v6571_v59  ;;  %v6673_v21 = vld [vmem:[#allocation13 + $0x50] sm:$0xff] }
 0xa99   :  { %3447 = vmatpush.msrb.mxu3 %v6652_v27  ;;  %3559 = vmatpush.msra.mxu2 %v6642_v11 }
 0xa9a   :  { %3540 = vmatpush.msrb.mxu1 %v6578_v57 }
 0xa9b   :  { %3448 = vmatpush.msrb.mxu3 %v6658_v13  ;;  %3560 = vmatpush.msra.mxu2 %v6647_v63 }
 0xa9c   :  { %3541 = vmatpush.msrb.mxu1 %v6581_v38 }
 0xa9d   :  { %3449 = vmatpush.msrb.mxu3 %v6663_v20  ;;  %3561 = vmatpush.msra.mxu2 %v6652_v27 }
 0xa9e   :  { %3542 = vmatpush.msrb.mxu1 %v6584_v8 }
 0xa9f   :  { %3450 = vmatpush.msrb.mxu3 %v6668_v0  ;;  %3283 = vmatmul.f32.gmra.mxu1 %v6365_v22 }
 0xaa0   :  { %3324 = vmatmul.f32.gmra.mxu2 %v6365_v22  ;;  %3543 = vmatpush.msrb.mxu1 %v6587_v3  ;;  %v6696_v22 = vld [vmem:[#allocation13 + $0x8] sm:$0xff] }
 0xaa1   :  { %3451 = vmatpush.msrb.mxu3 %v6673_v21  ;;  %3562 = vmatpush.msra.mxu2 %v6658_v13  ;;  %7455 = vst [vmem:[#allocation23_spill] sm:$0xff] %v6696_v22 }
 0xaa2   :  { %3544 = vmatpush.msrb.mxu1 %v6590_v53 }
 0xaa3   :  { %3452 = vmatpush.msrb.mxu3 %v6679_v28  ;;  %3563 = vmatpush.msra.mxu2 %v6663_v20 }
 0xaa4   :  { %3545 = vmatpush.msrb.mxu1 %v6593_v47 }
 0xaa5   :  { %3453 = vmatpush.msrb.mxu3 %v6688_v18  ;;  %3564 = vmatpush.msra.mxu2 %v6668_v0 }
 0xaa6   :  { %3546 = vmatpush.msrb.mxu1 %v6596_v51 }
 0xaa7   :  { %3454 = vmatpush.msrb.mxu3 %v6696_v22  ;;  %3286 = vmatmul.f32.gmra.mxu1 %v6477_v37 }
 0xaa8   :  { %3455 = vmatmul.f32.vlgmr.msrb.gmra.mxu3 %v7454_v32  ;;  %3327 = vmatmul.f32.gmra.mxu2 %v6477_v37  ;;  %v6742_v37 = vld [vmem:[#allocation13 + $0x130] sm:$0xff] }
 0xaa9   :  { %3573 = vmatpush.msra.mxu3 %v6681_v14  ;;  %3565 = vmatpush.msra.mxu2 %v6673_v21 }
 0xaaa   :  { %3547 = vmatpush.msrb.mxu1 %v6598_v9  ;;  %3462 = vmatpush.msra.mxu0 %v6742_v37 }
 0xaab   :  { %3574 = vmatpush.msra.mxu3 %v6683_v30  ;;  %3566 = vmatpush.msra.mxu2 %v6679_v28 }
 0xaac   :  { %3548 = vmatpush.msrb.mxu1 %v6601_v62  ;;  %3463 = vmatpush.msra.mxu0 %v6749_v39 }
 0xaad   :  { %3575 = vmatpush.msra.mxu3 %v6690_v36  ;;  %3567 = vmatpush.msra.mxu2 %v6688_v18 }
 0xaae   :  { %3664 = vmatpush.msra.mxu1 %v6611_v24  ;;  %3464 = vmatpush.msra.mxu0 %v6753_v23 }
 0xaaf   :  { %3289 = vmatmul.f32.gmra.mxu1 %v6508_v45  ;;  %3568 = vmatpush.msra.mxu2 %v6696_v22 }
 0xab0   :  { %3330 = vmatmul.f32.gmra.mxu2 %v6508_v45  ;;  %3665 = vmatpush.msra.mxu1 %v6617_v61  ;;  %v7456_v45 = vld [vmem:[#allocation27_spill] sm:$0xff] }
 0xab1   :  { %3684 = vmatpush.msrb.mxu2 %v6681_v14  ;;  %3576 = vmatpush.msra.mxu3 %v6742_v37 }
 0xab2   :  { %3666 = vmatpush.msra.mxu1 %v6621_v15  ;;  %3465 = vmatpush.msra.mxu0 %v6755_v55 }
 0xab3   :  { %3685 = vmatpush.msrb.mxu2 %v6683_v30  ;;  %3577 = vmatpush.msra.mxu3 %v6749_v39 }
 0xab4   :  { %3667 = vmatpush.msra.mxu1 %v6626_v5  ;;  %3466 = vmatpush.msra.mxu0 %v6762_v60 }
 0xab5   :  { %3686 = vmatpush.msrb.mxu2 %v6690_v36  ;;  %3578 = vmatpush.msra.mxu3 %v6753_v23 }
 0xab6   :  { %3668 = vmatpush.msra.mxu1 %v6631_v34  ;;  %3467 = vmatpush.msra.mxu0 %v6767_v26 }
 0xab7   :  { %3292 = vmatmul.f32.gmra.mxu1 %v6542_v46  ;;  %3687 = vmatpush.msrb.mxu2 %v6742_v37 }
 0xab8   :  { %3333 = vmatmul.f32.gmra.mxu2 %v6542_v46  ;;  %3669 = vmatpush.msra.mxu1 %v6638_v35  ;;  %v1764_v46 = vadd.f32 %v7456_v45, %v6114_v49  ;;  %v7457_v49 = vld [vmem:[#allocation25_spill] sm:$0xff] }
 0xab9   :  { %3688 = vmatpush.msrb.mxu2 %v6749_v39  ;;  %v1805_v42 = vadd.f32 %v7457_v49, %v6117_v48  ;;  %3579 = vmatpush.msra.mxu3 %v6755_v55 }
 0xaba   :  { %3670 = vmatpush.msra.mxu1 %v6642_v11  ;;  %3468 = vmatpush.msra.mxu0 %v6772_v2 }
 0xabb   :  { %3689 = vmatpush.msrb.mxu2 %v6753_v23  ;;  %3580 = vmatpush.msra.mxu3 %v6762_v60 }
 0xabc   :  { %3671 = vmatpush.msra.mxu1 %v6647_v63  ;;  %3469 = vmatpush.msra.mxu0 %v6777_v54 }
 0xabd   :  { %3690 = vmatpush.msrb.mxu2 %v6755_v55  ;;  %3581 = vmatpush.msra.mxu3 %v6767_v26 }
 0xabe   :  { %3672 = vmatpush.msra.mxu1 %v6652_v27  ;;  %3470 = vmatpush.msra.mxu0 %v6782_v52 }
 0xabf   :  { %3295 = vmatmul.f32.gmra.mxu1 %v6609_v25  ;;  %3691 = vmatpush.msrb.mxu2 %v6762_v60 }
 0xac0   :  { %3336 = vmatmul.f32.gmra.mxu2 %v6609_v25  ;;  %3673 = vmatpush.msra.mxu1 %v6658_v13 }
 0xac1   :  { %3692 = vmatpush.msrb.mxu2 %v6767_v26  ;;  %3582 = vmatpush.msra.mxu3 %v6772_v2 }
 0xac2   :  { %3674 = vmatpush.msra.mxu1 %v6663_v20  ;;  %3471 = vmatpush.msra.mxu0 %v6790_v31 }
 0xac3   :  { %3693 = vmatpush.msrb.mxu2 %v6772_v2  ;;  %3583 = vmatpush.msra.mxu3 %v6777_v54 }
 0xac4   :  { %3675 = vmatpush.msra.mxu1 %v6668_v0  ;;  %3472 = vmatpush.msra.mxu0 %v6795_v44 }
 0xac5   :  { %3694 = vmatpush.msrb.mxu2 %v6777_v54  ;;  %3584 = vmatpush.msra.mxu3 %v6782_v52 }
 0xac6   :  { %3676 = vmatpush.msra.mxu1 %v6673_v21 }
 0xac7   :  { %3695 = vmatpush.msrb.mxu2 %v6782_v52  ;;  %3585 = vmatpush.msra.mxu3 %v6790_v31 }
 0xac8   :  { %3677 = vmatpush.msra.mxu1 %v6679_v28 }
 0xac9   :  { %3696 = vmatpush.msrb.mxu2 %v6790_v31  ;;  %3586 = vmatpush.msra.mxu3 %v6795_v44 }
 0xaca   :  { %3678 = vmatpush.msra.mxu1 %v6688_v18 }
 0xacb   :  { %3697 = vmatpush.msrb.mxu2 %v6795_v44 }
 0xacc   :  { %3679 = vmatpush.msra.mxu1 %v6696_v22 }
 0xb04   :  { %v3064_v19 = vpop.f32.mrf.mxu1 }
 0xb05   :  { %v3107_v1 = vadd.f32 %v3064_v19, %v1764_v46  ;;  %v6800_v19 = vld [vmem:[#allocation13 + $0x28] sm:$0xff] }
 0xb06   :  { %7461 = vst [vmem:[#allocation24_spill] sm:$0xff] %v6800_v19  ;;  %3473 = vmatpush.msra.mxu0 %v6800_v19  ;;  %3587 = vmatpush.msra.mxu3 %v6800_v19 }
 0xb07   :  { %v4439_v58 = vmul.f32 -1.442695, %v3107_v1  ;;  %3698 = vmatpush.msrb.mxu2 %v6800_v19 }
 0xb09   :  { %4625 = vpow2.f32 %v4439_v58  ;;  %v6805_v58 = vld [vmem:[#allocation13 + $0x10] sm:$0xff] }
 0xb0a   :  { %v3084_v6 = vpop.f32.mrf.mxu2  ;;  %7462 = vst [vmem:[#allocation33_spill] sm:$0xff] %v6805_v58  ;;  %3474 = vmatpush.msra.mxu0 %v6805_v58  ;;  %3588 = vmatpush.msra.mxu3 %v6805_v58 }
 0xb0b   :  { %v3127_v16 = vadd.f32 %v3084_v6, %v1805_v42  ;;  %3699 = vmatpush.msrb.mxu2 %v6805_v58  ;;  %v7463_v58 = vld [vmem:[#allocation29_spill] sm:$0xff] }
 0xb0c   :  { %3644 = vmatpush.msrb.mxu0 %v6553_v7  ;;  %3755 = vmatpush.msrb.mxu3 %v6553_v7  ;;  %v1846_v31 = vadd.f32 %v7463_v58, %v6135_v41 }
 0xb0d   :  { %v4440_v48 = vmul.f32 -1.442695, %v3127_v16 }
 0xb0e   :  { %3645 = vmatpush.msrb.mxu0 %v6556_v4  ;;  %3756 = vmatpush.msrb.mxu3 %v6556_v4 }
 0xb0f   :  { %v4626_v17 = vpop.eup %4625  ;;  %4627 = vpow2.f32 %v4440_v48  ;;  %v3104_v48 = vpop.f32.mrf.mxu3 }
 0xb10   :  { %v3111_v12 = vadd.f32 1.0, %v4626_v17  ;;  %v3147_v44 = vadd.f32 %v6536_v40, %v3104_v48  ;;  %3646 = vmatpush.msrb.mxu0 %v6559_v10  ;;  %3757 = vmatpush.msrb.mxu3 %v6559_v10 }
 0xb12   :  { %4629 = vrcp.f32 %v3111_v12  ;;  %v3123_v49 = vand.u32 2147483648, %v3111_v12  ;;  %v3121_v6 = vand.u32 2147483647, %v3111_v12  ;;  %vm3117_vm9 = vweird.f32 %v3111_v12  ;;  %3647 = vmatpush.msrb.mxu0 %v6562_v56  ;;  %3758 = vmatpush.msrb.mxu3 %v6562_v56 }
 0xb14   :  { %vm3122_vm11 = vcmp.eq.f32.partialorder %v3121_v6, 8.507059e+37  ;;  %3648 = vmatpush.msrb.mxu0 %v6565_v43  ;;  %3759 = vmatpush.msrb.mxu3 %v6565_v43 }
 0xb15   :  { %v4628_v29 = vpop.eup %4627 }
 0xb16   :  { %v3131_v33 = vadd.f32 1.0, %v4628_v29  ;;  %3649 = vmatpush.msrb.mxu0 %v6568_v50  ;;  %3760 = vmatpush.msrb.mxu3 %v6568_v50 }
 0xb18   :  { %v4630_v45 = vpop.eup %4629  ;;  %4631 = vrcp.f32 %v3131_v33  ;;  %v3143_v52 = vand.u32 2147483648, %v3131_v33  ;;  %vm3137_vm13 = vweird.f32 %v3131_v33  ;;  %3650 = vmatpush.msrb.mxu0 %v6571_v59  ;;  %3761 = vmatpush.msrb.mxu3 %v6571_v59 }
 0xb19   :  { %v3113_v46 = vmul.f32 %v4630_v45, %v3111_v12  ;;  %vm3118_vm8 = vweird.f32 %v4630_v45 }
 0xb1a   :  { %vm3119_vm10 = vmor %vm3117_vm9, %vm3118_vm8  ;;  %v3144_v40 = vor.u32 1.1754944e-38, %v3143_v52  ;;  %3651 = vmatpush.msrb.mxu0 %v6578_v57  ;;  %3762 = vmatpush.msrb.mxu3 %v6578_v57 }
 0xb1b   :  { %v3114_v1 = vsub.f32 1.0, %v3113_v46  ;;  %v3124_v46 = vor.u32 1.1754944e-38, %v3123_v49  ;;  %v3141_v49 = vand.u32 2147483647, %v3131_v33 }
 0xb1c   :  { %3652 = vmatpush.msrb.mxu0 %v6581_v38  ;;  %3763 = vmatpush.msrb.mxu3 %v6581_v38 }
 0xb1d   :  { %v3115_v42 = vmul.f32 %v4630_v45, %v3114_v1  ;;  %vm3142_vm15 = vcmp.eq.f32.partialorder %v3141_v49, 8.507059e+37 }
 0xb1e   :  { %v4632_v16 = vpop.eup %4631  ;;  %3653 = vmatpush.msrb.mxu0 %v6584_v8  ;;  %3764 = vmatpush.msrb.mxu3 %v6584_v8 }
 0xb1f   :  { %v3133_v17 = vmul.f32 %v4632_v16, %v3131_v33  ;;  %v3116_v29 = vadd.f32 %v4630_v45, %v3115_v42  ;;  %vm3138_vm12 = vweird.f32 %v4632_v16 }
 0xb20   :  { %vm3139_vm14 = vmor %vm3137_vm13, %vm3138_vm12  ;;  %3654 = vmatpush.msrb.mxu0 %v6587_v3  ;;  %3765 = vmatpush.msrb.mxu3 %v6587_v3 }
 0xb21   :  { %v3134_v1 = vsub.f32 1.0, %v3133_v17  ;;  %v3120_v19 = vsel %vm3119_vm10, %v4630_v45, %v3116_v29  ;;  %v3436_v29 = vpop.f32.mrf.mxu3 }
 0xb22   :  { %v3125_v7 = vsel %vm3122_vm11, %v3124_v46, %v3120_v19  ;;  %3655 = vmatpush.msrb.mxu0 %v6590_v53  ;;  %3766 = vmatpush.msrb.mxu3 %v6590_v53 }
 0xb23   :  { %v3148_v12 = vmul.f32 %v3147_v44, %v3125_v7  ;;  %v3135_v42 = vmul.f32 %v4632_v16, %v3134_v1 }
 0xb24   :  { %3656 = vmatpush.msrb.mxu0 %v6593_v47  ;;  %3767 = vmatpush.msrb.mxu3 %v6593_v47 }
 0xb25   :  { %v3149_v45 = vadd.f32 %v3148_v12, %v1846_v31  ;;  %v3136_v6 = vadd.f32 %v4632_v16, %v3135_v42  ;;  %v3278_v12 = vpop.f32.mrf.mxu1 }
 0xb26   :  { %3657 = vmatpush.msrb.mxu0 %v6596_v51  ;;  %3768 = vmatpush.msrb.mxu3 %v6596_v51 }
 0xb27   :  { %4633 = vtanh.f32 %v3149_v45  ;;  %v3140_v41 = vsel %vm3139_vm14, %v4632_v16, %v3136_v6  ;;  %v3212_v16 = vld [vmem:[%s7387_s11] sm:$0x7] }
 0xb28   :  { %v3145_v44 = vsel %vm3142_vm15, %v3144_v40, %v3140_v41  ;;  %3658 = vmatpush.msrb.mxu0 %v6598_v9  ;;  %3769 = vmatpush.msrb.mxu3 %v6598_v9  ;;  %v6871_v17 = vperm.slane %v3212_v16, 0  ;;  %v6874_v7 = vperm.slane %v3212_v16, 1 }
 0xb29   :  { %v3151_v31 = vsub.f32 1.0, %v3145_v44  ;;  %v3153_v52 = vmul.f32 %v3145_v44, %v6609_v25  ;;  %v3237_v25 = vpop.f32.mrf.mxu0 }
 0xb2a   :  { %3659 = vmatpush.msrb.mxu0 %v6601_v62  ;;  %3770 = vmatpush.msrb.mxu3 %v6601_v62  ;;  %7466 = vst [vmem:[#allocation22_spill] sm:$0xff] %v6871_v17  ;;  %v3238_v46 = vadd.f32 %v3237_v25, %v6871_v17  ;;  %v3279_v6 = vadd.f32 %v3278_v12, %v6874_v7 }
 0xb2b   :  { %7467 = vst [vmem:[#allocation27_spill] sm:$0xff] %v6874_v7  ;;  %v3456_v45 = vpop.f32.mrf.mxu3 }
 0xb2c   :  { %v3479_v1 = vadd.f32 %v3436_v29, %v3238_v46  ;;  %v3499_v41 = vadd.f32 %v3456_v45, %v3279_v6 }
 0xb2d   :  { %v4634_v33 = vpop.eup %4633 }
 0xb2e   :  { %v3152_v19 = vmul.f32 %v4634_v33, %v3151_v31  ;;  %v4441_v49 = vmul.f32 -1.442695, %v3479_v1  ;;  %v4442_v40 = vmul.f32 -1.442695, %v3499_v41 }
 0xb30   :  { %v3154_v58 = vadd.f32 %v3153_v52, %v3152_v19  ;;  %4635 = vpow2.f32 %v4441_v49 }
 0xb31   :  { %4637 = vpow2.f32 %v4442_v40 }
 0xb32   :  { %3257 = vmatmul.f32.gmra.mxu0 %v3154_v58  ;;  %3298 = vmatmul.f32.gmra.mxu1 %v3154_v58 }
 0xb33   :  { %3339 = vmatmul.f32.gmra.mxu2 %v3154_v58 }
 0xb36   :  { %v4636_v31 = vpop.eup %4635 }
 0xb37   :  { %v3483_v33 = vadd.f32 1.0, %v4636_v31  ;;  %v4638_v19 = vpop.eup %4637 }
 0xb38   :  { %v3503_v58 = vadd.f32 1.0, %v4638_v19  ;;  %v6890_v19 = vld [vmem:[%s7388_s12] ss:$0 sm:$0xff] }
 0xb39   :  { %4639 = vrcp.f32 %v3483_v33  ;;  %v3495_v40 = vand.u32 2147483648, %v3483_v33  ;;  %vm3489_vm1 = vweird.f32 %v3483_v33  ;;  %v3493_v31 = vand.u32 2147483647, %v3483_v33 }
 0xb3a   :  { %3475 = vmatmul.f32.vlgmr.msra.gmra.mxu0 %v7454_v32  ;;  %v6864_v32 = vpop.f32.mrf.mxu0  ;;  %4641 = vrcp.f32 %v3503_v58  ;;  %v3515_v7 = vand.u32 2147483648, %v3503_v58  ;;  %vm3509_vm5 = vweird.f32 %v3503_v58  ;;  %v3513_v17 = vand.u32 2147483647, %v3503_v58 }
 0xb3b   :  { %3775 = vmatpush.msra.mxu0 %v6611_v24  ;;  %7464 = vst [vmem:[#allocation26_spill] sm:$0xff] %v6864_v32  ;;  %vm3494_vm3 = vcmp.eq.f32.partialorder %v3493_v31, 8.507059e+37 }
 0xb3c   :  { %vm3514_vm7 = vcmp.eq.f32.partialorder %v3513_v17, 8.507059e+37 }
 0xb3d   :  { %3776 = vmatpush.msra.mxu0 %v6617_v61 }
 0xb3f   :  { %3777 = vmatpush.msra.mxu0 %v6621_v15  ;;  %v4640_v25 = vpop.eup %4639 }
 0xb40   :  { %v3485_v29 = vmul.f32 %v4640_v25, %v3483_v33  ;;  %v4642_v1 = vpop.eup %4641  ;;  %vm3490_vm0 = vweird.f32 %v4640_v25 }
 0xb41   :  { %3778 = vmatpush.msra.mxu0 %v6626_v5  ;;  %v3505_v45 = vmul.f32 %v4642_v1, %v3503_v58  ;;  %vm3491_vm2 = vmor %vm3489_vm1, %vm3490_vm0  ;;  %vm3510_vm4 = vweird.f32 %v4642_v1  ;;  %v7488_v58 = vld [vmem:[#allocation22_spill] sm:$0xff] }
 0xb42   :  { %v6869_v48 = vpop.f32.mrf.mxu0  ;;  %v3486_v12 = vsub.f32 1.0, %v3485_v29  ;;  %vm3511_vm6 = vmor %vm3509_vm5, %vm3510_vm4 }
 0xb43   :  { %3779 = vmatpush.msra.mxu0 %v6631_v34  ;;  %7465 = vst [vmem:[#allocation28_spill] sm:$0xff] %v6869_v48  ;;  %v3506_v41 = vsub.f32 1.0, %v3505_v45  ;;  %v3496_v48 = vor.u32 1.1754944e-38, %v3495_v40 }
 0xb44   :  { %v3487_v49 = vmul.f32 %v4640_v25, %v3486_v12 }
 0xb45   :  { %3780 = vmatpush.msra.mxu0 %v6638_v35 }
 0xb47   :  { %3781 = vmatpush.msra.mxu0 %v6642_v11 }
 0xb49   :  { %3782 = vmatpush.msra.mxu0 %v6647_v63 }
 0xb4a   :  { %v6876_v42 = vpop.f32.mrf.mxu0 }
 0xb4b   :  { %3783 = vmatpush.msra.mxu0 %v6652_v27  ;;  %7468 = vst [vmem:[#allocation25_spill] sm:$0xff] %v6876_v42  ;;  %v3319_v42 = vpop.f32.mrf.mxu2 }
 0xb4d   :  { %3784 = vmatpush.msra.mxu0 %v6658_v13 }
 0xb4f   :  { %3785 = vmatpush.msra.mxu0 %v6663_v20 }
 0xb51   :  { %3786 = vmatpush.msra.mxu0 %v6668_v0 }
 0xb52   :  { %v6879_v44 = vpop.f32.mrf.mxu0 }
 0xb53   :  { %3787 = vmatpush.msra.mxu0 %v6673_v21  ;;  %7469 = vst [vmem:[#allocation29_spill] sm:$0xff] %v6879_v44  ;;  %v3488_v44 = vadd.f32 %v4640_v25, %v3487_v49 }
 0xb55   :  { %3788 = vmatpush.msra.mxu0 %v6679_v28  ;;  %v3492_v29 = vsel %vm3491_vm2, %v4640_v25, %v3488_v44 }
 0xb57   :  { %3789 = vmatpush.msra.mxu0 %v6688_v18 }
 0xb59   :  { %3790 = vmatpush.msra.mxu0 %v6696_v22  ;;  %v3516_v22 = vor.u32 1.1754944e-38, %v3515_v7 }
 0xb5a   :  { %v6881_v52 = vpop.f32.mrf.mxu0 }
 0xb5b   :  { %7470 = vst [vmem:[#allocation34_spill] sm:$0xff] %v6881_v52  ;;  %v3507_v52 = vmul.f32 %v4642_v1, %v3506_v41 }
 0xb5d   :  { %v3508_v49 = vadd.f32 %v4642_v1, %v3507_v52 }
 0xb62   :  { %v6883_v46 = vpop.f32.mrf.mxu0 }
 0xb63   :  { %7471 = vst [vmem:[#allocation35_spill] sm:$0xff] %v6883_v46  ;;  %v6892_v46 = vperm.slane %v3212_v16, 2  ;;  %v3512_v16 = vsel %vm3511_vm6, %v4642_v1, %v3508_v49  ;;  %v7489_v1 = vld [vmem:[#allocation26_spill] sm:$0xff] }
 0xb64   :  { %v3517_v44 = vsel %vm3514_vm7, %v3516_v22, %v3512_v16 }
 0xb65   :  { %v3320_v33 = vadd.f32 %v3319_v42, %v6892_v46  ;;  %v3526_v25 = vsub.f32 1.0, %v3517_v44 }
 0xbaf   :  { %v6885_v6 = vpop.f32.mrf.mxu0 }
 0xbb0   :  { %7472 = vst [vmem:[#allocation36_spill] sm:$0xff] %v6885_v6  ;;  %v3497_v6 = vsel %vm3494_vm3, %v3496_v48, %v3492_v29 }
 0xbb7   :  { %v3476_v12 = vpop.f32.mrf.mxu0 }
 0xbb8   :  { %v3522_v45 = vadd.f32 %v6890_v19, %v3476_v12  ;;  %v3528_v12 = vmul.f32 0.0, %v3517_v44 }
 0xbba   :  { %v3523_v32 = vmul.f32 %v3522_v45, %v3497_v6  ;;  %v3241_v6 = vadd.f32 %v7489_v1, %v7488_v58 }
 0xbbc   :  { %v3524_v41 = vadd.f32 %v3523_v32, %v3320_v33  ;;  %v6902_v32 = vld [vmem:[#allocation13 + $0x168] sm:$0xff]  ;;  %v7490_v33 = vld [vmem:[#allocation27_spill] sm:$0xff] }
 0xbbe   :  { %4643 = vtanh.f32 %v3524_v41 }
 0xbc4   :  { %v4644_v40 = vpop.eup %4643 }
 0xbc5   :  { %v3527_v31 = vmul.f32 %v4644_v40, %v3526_v25 }
 0xbc7   :  { %v6896_v52 = vadd.f32 %v3528_v12, %v3527_v31 }
 0xbc9   :  { %3549 = vmatmul.f32.vlgmr.msrb.gmra.mxu1 %v6896_v52  ;;  %3569 = vmatmul.f32.vlgmr.msra.gmra.mxu2 %v6896_v52 }
 0xbca   :  { %3589 = vmatmul.f32.vlgmr.msra.gmra.mxu3 %v6896_v52  ;;  %3795 = vmatpush.msrb.mxu1 %v6681_v14 }
 0xbcb   :  { %3866 = vmatpush.msra.mxu2 %v6902_v32  ;;  %3886 = vmatpush.msra.mxu3 %v6611_v24 }
 0xbcc   :  { %3796 = vmatpush.msrb.mxu1 %v6683_v30 }
 0xbcd   :  { %3867 = vmatpush.msra.mxu2 %v6556_v4  ;;  %3887 = vmatpush.msra.mxu3 %v6617_v61  ;;  %v7473_v4 = vld [vmem:[#allocation30_spill] sm:$0xff] }
 0xbce   :  { %3797 = vmatpush.msrb.mxu1 %v6690_v36 }
 0xbcf   :  { %3868 = vmatpush.msra.mxu2 %v6559_v10  ;;  %3888 = vmatpush.msra.mxu3 %v6621_v15  ;;  %v7474_v10 = vld [vmem:[#allocation31_spill] sm:$0xff] }
 0xbd0   :  { %3798 = vmatpush.msrb.mxu1 %v6742_v37 }
 0xbd1   :  { %3869 = vmatpush.msra.mxu2 %v6562_v56  ;;  %3889 = vmatpush.msra.mxu3 %v6626_v5  ;;  %v7475_v56 = vld [vmem:[#allocation32_spill] sm:$0xff] }
 0xbd2   :  { %3799 = vmatpush.msrb.mxu1 %v6749_v39 }
 0xbd3   :  { %3870 = vmatpush.msra.mxu2 %v6565_v43  ;;  %3890 = vmatpush.msra.mxu3 %v6631_v34  ;;  %v7476_v43 = vld [vmem:[#allocation24_spill] sm:$0xff] }
 0xbd4   :  { %3800 = vmatpush.msrb.mxu1 %v6753_v23 }
 0xbd5   :  { %3871 = vmatpush.msra.mxu2 %v6568_v50  ;;  %3891 = vmatpush.msra.mxu3 %v6638_v35  ;;  %v7477_v50 = vld [vmem:[#allocation33_spill] sm:$0xff] }
 0xbd6   :  { %3801 = vmatpush.msrb.mxu1 %v6755_v55 }
 0xbd7   :  { %3872 = vmatpush.msra.mxu2 %v6571_v59  ;;  %3892 = vmatpush.msra.mxu3 %v6642_v11  ;;  %v7478_v59 = vld [vmem:[#allocation23_spill] sm:$0xff] }
 0xbd8   :  { %3802 = vmatpush.msrb.mxu1 %v6762_v60 }
 0xbd9   :  { %3873 = vmatpush.msra.mxu2 %v6578_v57  ;;  %3893 = vmatpush.msra.mxu3 %v6647_v63  ;;  %v3281_v57 = vpop.f32.mrf.mxu1 }
 0xbda   :  { %3803 = vmatpush.msrb.mxu1 %v6767_v26  ;;  %v3282_v41 = vadd.f32 %v3281_v57, %v7490_v33 }
 0xbdb   :  { %3874 = vmatpush.msra.mxu2 %v6581_v38  ;;  %3894 = vmatpush.msra.mxu3 %v6652_v27  ;;  %v3322_v38 = vpop.f32.mrf.mxu2 }
 0xbdc   :  { %3804 = vmatpush.msrb.mxu1 %v6772_v2 }
 0xbdd   :  { %3875 = vmatpush.msra.mxu2 %v6584_v8  ;;  %3895 = vmatpush.msra.mxu3 %v6658_v13 }
 0xbde   :  { %3805 = vmatpush.msrb.mxu1 %v6777_v54 }
 0xbdf   :  { %3876 = vmatpush.msra.mxu2 %v6587_v3  ;;  %3896 = vmatpush.msra.mxu3 %v6663_v20 }
 0xbe0   :  { %3806 = vmatpush.msrb.mxu1 %v7473_v4 }
 0xbe1   :  { %3877 = vmatpush.msra.mxu2 %v6590_v53  ;;  %3897 = vmatpush.msra.mxu3 %v6668_v0  ;;  %v6951_v8 = vpop.f32.mrf.mxu1 }
 0xbe2   :  { %3807 = vmatpush.msrb.mxu1 %v7474_v10 }
 0xbe3   :  { %3878 = vmatpush.msra.mxu2 %v6593_v47  ;;  %3898 = vmatpush.msra.mxu3 %v6673_v21  ;;  %v6953_v3 = vpop.f32.mrf.mxu2 }
 0xbe4   :  { %3808 = vmatpush.msrb.mxu1 %v7475_v56 }
 0xbe5   :  { %3879 = vmatpush.msra.mxu2 %v6596_v51  ;;  %3899 = vmatpush.msra.mxu3 %v6679_v28 }
 0xbe6   :  { %3809 = vmatpush.msrb.mxu1 %v7476_v43 }
 0xbe7   :  { %3880 = vmatpush.msra.mxu2 %v6598_v9  ;;  %3900 = vmatpush.msra.mxu3 %v6688_v18 }
 0xbe8   :  { %3810 = vmatpush.msrb.mxu1 %v7477_v50 }
 0xbe9   :  { %3881 = vmatpush.msra.mxu2 %v6601_v62  ;;  %3901 = vmatpush.msra.mxu3 %v7478_v59  ;;  %v6955_v53 = vpop.f32.mrf.mxu1 }
 0xbeb   :  { %v6957_v47 = vpop.f32.mrf.mxu2 }
 0xbec   :  { %7479 = vst [vmem:[#allocation30_spill] sm:$0xff] %v6957_v47 }
 0xbf1   :  { %v6959_v51 = vpop.f32.mrf.mxu1 }
 0xbf2   :  { %7480 = vst [vmem:[#allocation31_spill] sm:$0xff] %v6959_v51 }
 0xbf3   :  { %v6961_v9 = vpop.f32.mrf.mxu2 }
 0xbf4   :  { %7481 = vst [vmem:[#allocation32_spill] sm:$0xff] %v6961_v9 }
 0xbf9   :  { %v6963_v22 = vpop.f32.mrf.mxu1 }
 0xbfa   :  { %7482 = vst [vmem:[#allocation24_spill] sm:$0xff] %v6963_v22 }
 0xbfb   :  { %v6965_v48 = vpop.f32.mrf.mxu2 }
 0xbfc   :  { %7483 = vst [vmem:[#allocation33_spill] sm:$0xff] %v6965_v48 }
 0xc01   :  { %v6967_v62 = vpop.f32.mrf.mxu1 }
 0xc02   :  { %7484 = vst [vmem:[#allocation23_spill] sm:$0xff] %v6967_v62 }
 0xc03   :  { %v6969_v17 = vpop.f32.mrf.mxu2 }
 0xc04   :  { %7485 = vst [vmem:[#allocation37_spill] sm:$0xff] %v6969_v17 }
 0xc09   :  { %v6971_v7 = vpop.f32.mrf.mxu1 }
 0xc0a   :  { %7486 = vst [vmem:[#allocation38_spill] sm:$0xff] %v6971_v7 }
 0xc0b   :  { %v6973_v42 = vpop.f32.mrf.mxu2 }
 0xc0c   :  { %7487 = vst [vmem:[#allocation39_spill] sm:$0xff] %v6973_v42 }
 0xc46   :  { %v3550_v29 = vpop.f32.mrf.mxu1 }
 0xc47   :  { %v3593_v45 = vadd.f32 %v3550_v29, %v3241_v6 }
 0xc49   :  { %v4443_v49 = vmul.f32 -1.442695, %v3593_v45 }
 0xc4b   :  { %4645 = vpow2.f32 %v4443_v49 }
 0xc4c   :  { %v3570_v16 = vpop.f32.mrf.mxu2 }
 0xc4d   :  { %v3613_v44 = vadd.f32 %v3570_v16, %v3282_v41  ;;  %v3590_v57 = vpop.f32.mrf.mxu3 }
 0xc4f   :  { %v4444_v25 = vmul.f32 -1.442695, %v3613_v44 }
 0xc51   :  { %v4646_v40 = vpop.eup %4645  ;;  %4647 = vpow2.f32 %v4444_v25  ;;  %v3633_v25 = vadd.f32 %v6890_v19, %v3590_v57 }
 0xc52   :  { %v3597_v31 = vadd.f32 1.0, %v4646_v40  ;;  %v3323_v40 = vadd.f32 %v3322_v38, %v6892_v46 }
 0xc54   :  { %4649 = vrcp.f32 %v3597_v31  ;;  %v3609_v1 = vand.u32 2147483648, %v3597_v31  ;;  %v3607_v6 = vand.u32 2147483647, %v3597_v31  ;;  %vm3603_vm9 = vweird.f32 %v3597_v31 }
 0xc56   :  { %v3610_v41 = vor.u32 1.1754944e-38, %v3609_v1  ;;  %vm3608_vm11 = vcmp.eq.f32.partialorder %v3607_v6, 8.507059e+37 }
 0xc57   :  { %v4648_v12 = vpop.eup %4647 }
 0xc58   :  { %v3617_v7 = vadd.f32 1.0, %v4648_v12 }
 0xc5a   :  { %v4650_v17 = vpop.eup %4649  ;;  %4651 = vrcp.f32 %v3617_v7  ;;  %v3627_v9 = vand.u32 2147483647, %v3617_v7  ;;  %vm3623_vm13 = vweird.f32 %v3617_v7 }
 0xc5b   :  { %v3599_v42 = vmul.f32 %v4650_v17, %v3597_v31  ;;  %vm3604_vm8 = vweird.f32 %v4650_v17 }
 0xc5c   :  { %vm3605_vm10 = vmor %vm3603_vm9, %vm3604_vm8  ;;  %vm3628_vm15 = vcmp.eq.f32.partialorder %v3627_v9, 8.507059e+37 }
 0xc5d   :  { %v3600_v62 = vsub.f32 1.0, %v3599_v42 }
 0xc5f   :  { %v3601_v48 = vmul.f32 %v4650_v17, %v3600_v62  ;;  %v3629_v62 = vand.u32 2147483648, %v3617_v7 }
 0xc60   :  { %v4652_v29 = vpop.eup %4651 }
 0xc61   :  { %v3619_v45 = vmul.f32 %v4652_v29, %v3617_v7  ;;  %v3602_v49 = vadd.f32 %v4650_v17, %v3601_v48  ;;  %vm3624_vm12 = vweird.f32 %v4652_v29  ;;  %v3630_v48 = vor.u32 1.1754944e-38, %v3629_v62 }
 0xc62   :  { %vm3625_vm14 = vmor %vm3623_vm13, %vm3624_vm12 }
 0xc63   :  { %v3620_v16 = vsub.f32 1.0, %v3619_v45  ;;  %v3606_v44 = vsel %vm3605_vm10, %v4650_v17, %v3602_v49 }
 0xc64   :  { %v3611_v12 = vsel %vm3608_vm11, %v3610_v41, %v3606_v44 }
 0xc65   :  { %v3621_v42 = vmul.f32 %v4652_v29, %v3620_v16  ;;  %v3634_v22 = vmul.f32 %v3633_v25, %v3611_v12 }
 0xc67   :  { %v3622_v51 = vadd.f32 %v4652_v29, %v3621_v42  ;;  %v3635_v47 = vadd.f32 %v3634_v22, %v3323_v40 }
 0xc69   :  { %v3626_v31 = vsel %vm3625_vm14, %v4652_v29, %v3622_v51  ;;  %4653 = vtanh.f32 %v3635_v47  ;;  %v6990_v47 = vld [vmem:[#allocation13 + $0x150] sm:$0xff] }
 0xc6a   :  { %v3631_v17 = vsel %vm3628_vm15, %v3630_v48, %v3626_v31 }
 0xc6b   :  { %v3637_v1 = vsub.f32 1.0, %v3631_v17  ;;  %v3639_v38 = vmul.f32 %v3631_v17, %v6896_v52  ;;  %v6995_v52 = vld [vmem:[#allocation13 + $0x138] sm:$0xff] }
 0xc6f   :  { %v4654_v6 = vpop.eup %4653 }
 0xc70   :  { %v3638_v57 = vmul.f32 %v4654_v6, %v3637_v1 }
 0xc72   :  { %v6981_v45 = vadd.f32 %v3639_v38, %v3638_v57 }
 0xc74   :  { %3660 = vmatmul.f32.vlgmr.msrb.gmra.mxu0 %v6981_v45  ;;  %3680 = vmatmul.f32.vlgmr.msra.gmra.mxu1 %v6981_v45 }
 0xc75   :  { %3700 = vmatmul.f32.vlgmr.msrb.gmra.mxu2 %v6981_v45  ;;  %3906 = vmatpush.msrb.mxu0 %v6681_v14  ;;  %v7000_v14 = vld [vmem:[#allocation13 + $0x120] sm:$0xff] }
 0xc76   :  { %3977 = vmatpush.msra.mxu1 %v6902_v32  ;;  %3997 = vmatpush.msrb.mxu2 %v6611_v24  ;;  %v7005_v24 = vld [vmem:[#allocation13 + $0x108] sm:$0xff] }
 0xc77   :  { %3907 = vmatpush.msrb.mxu0 %v6683_v30 }
 0xc78   :  { %3978 = vmatpush.msra.mxu1 %v6990_v47  ;;  %3998 = vmatpush.msrb.mxu2 %v6617_v61  ;;  %v7010_v61 = vld [vmem:[#allocation13 + $0xf0] sm:$0xff] }
 0xc79   :  { %3908 = vmatpush.msrb.mxu0 %v6690_v36 }
 0xc7a   :  { %3979 = vmatpush.msra.mxu1 %v6995_v52  ;;  %3999 = vmatpush.msrb.mxu2 %v6621_v15  ;;  %v7015_v15 = vld [vmem:[#allocation13 + $0xd8] sm:$0xff] }
 0xc7b   :  { %3909 = vmatpush.msrb.mxu0 %v6742_v37 }
 0xc7c   :  { %3980 = vmatpush.msra.mxu1 %v7000_v14  ;;  %4000 = vmatpush.msrb.mxu2 %v6626_v5  ;;  %v7020_v5 = vld [vmem:[#allocation13 + $0xc0] sm:$0xff] }
 0xc7d   :  { %3910 = vmatpush.msrb.mxu0 %v6749_v39 }
 0xc7e   :  { %3981 = vmatpush.msra.mxu1 %v7005_v24  ;;  %4001 = vmatpush.msrb.mxu2 %v6631_v34  ;;  %v7025_v34 = vld [vmem:[#allocation13 + $0xa8] sm:$0xff] }
 0xc7f   :  { %3911 = vmatpush.msrb.mxu0 %v6753_v23 }
 0xc80   :  { %3982 = vmatpush.msra.mxu1 %v7010_v61  ;;  %4002 = vmatpush.msrb.mxu2 %v6638_v35  ;;  %v7030_v35 = vld [vmem:[#allocation13 + $0x90] sm:$0xff] }
 0xc81   :  { %3912 = vmatpush.msrb.mxu0 %v6755_v55 }
 0xc82   :  { %3983 = vmatpush.msra.mxu1 %v7015_v15  ;;  %4003 = vmatpush.msrb.mxu2 %v6642_v11  ;;  %v7035_v11 = vld [vmem:[#allocation13 + $0x78] sm:$0xff] }
 0xc83   :  { %3913 = vmatpush.msrb.mxu0 %v6762_v60 }
 0xc84   :  { %3984 = vmatpush.msra.mxu1 %v7020_v5  ;;  %4004 = vmatpush.msrb.mxu2 %v6647_v63  ;;  %v7040_v63 = vld [vmem:[#allocation13 + $0x60] sm:$0xff] }
 0xc85   :  { %3914 = vmatpush.msrb.mxu0 %v6767_v26 }
 0xc86   :  { %3985 = vmatpush.msra.mxu1 %v7025_v34  ;;  %4005 = vmatpush.msrb.mxu2 %v6652_v27  ;;  %v7045_v27 = vld [vmem:[#allocation13 + $0x48] sm:$0xff] }
 0xc87   :  { %3915 = vmatpush.msrb.mxu0 %v6772_v2 }
 0xc88   :  { %3986 = vmatpush.msra.mxu1 %v7030_v35  ;;  %4006 = vmatpush.msrb.mxu2 %v6658_v13  ;;  %v7050_v13 = vld [vmem:[#allocation13 + $0x30] sm:$0xff] }
 0xc89   :  { %3916 = vmatpush.msrb.mxu0 %v6777_v54 }
 0xc8a   :  { %3987 = vmatpush.msra.mxu1 %v7035_v11  ;;  %4007 = vmatpush.msrb.mxu2 %v6663_v20  ;;  %v7055_v20 = vld [vmem:[#allocation13 + $0x18] sm:$0xff] }
 0xc8b   :  { %3917 = vmatpush.msrb.mxu0 %v7473_v4 }
 0xc8c   :  { %3988 = vmatpush.msra.mxu1 %v7040_v63  ;;  %4008 = vmatpush.msrb.mxu2 %v6668_v0  ;;  %v7060_v0 = vld [vmem:[#allocation13] sm:$0xff] }
 0xc8d   :  { %3918 = vmatpush.msrb.mxu0 %v7474_v10 }
 0xc8e   :  { %3989 = vmatpush.msra.mxu1 %v7045_v27  ;;  %4009 = vmatpush.msrb.mxu2 %v6673_v21  ;;  %v7491_v21 = vld [vmem:[#allocation28_spill] sm:$0xff] }
 0xc8f   :  { %3919 = vmatpush.msrb.mxu0 %v7475_v56  ;;  %v3244_v30 = vadd.f32 %v7491_v21, %v7488_v58 }
 0xc90   :  { %3990 = vmatpush.msra.mxu1 %v7050_v13  ;;  %4010 = vmatpush.msrb.mxu2 %v6679_v28  ;;  %v3285_v28 = vadd.f32 %v6951_v8, %v7490_v33 }
 0xc91   :  { %3920 = vmatpush.msrb.mxu0 %v7476_v43 }
 0xc92   :  { %3991 = vmatpush.msra.mxu1 %v7055_v20  ;;  %4011 = vmatpush.msrb.mxu2 %v6688_v18 }
 0xc93   :  { %3921 = vmatpush.msrb.mxu0 %v7477_v50 }
 0xc94   :  { %3992 = vmatpush.msra.mxu1 %v7060_v0  ;;  %4012 = vmatpush.msrb.mxu2 %v7478_v59 }
 0xcf1   :  { %v3661_v36 = vpop.f32.mrf.mxu0  ;;  %v3681_v51 = vpop.f32.mrf.mxu1 }
 0xcf2   :  { %v3704_v9 = vadd.f32 %v3661_v36, %v3244_v30  ;;  %v3724_v22 = vadd.f32 %v3681_v51, %v3285_v28  ;;  %v3326_v28 = vadd.f32 %v6953_v3, %v6892_v46  ;;  %v7077_v3 = vld [vmem:[#allocation13 + $0x178] sm:$0xff] }
 0xcf4   :  { %v4445_v7 = vmul.f32 -1.442695, %v3704_v9  ;;  %v4446_v18 = vmul.f32 -1.442695, %v3724_v22 }
 0xcf6   :  { %4655 = vpow2.f32 %v4445_v7 }
 0xcf7   :  { %4657 = vpow2.f32 %v4446_v18 }
 0xcf8   :  { %v3701_v17 = vpop.f32.mrf.mxu2 }
 0xcf9   :  { %v3744_v38 = vadd.f32 %v6890_v19, %v3701_v17 }
 0xcfc   :  { %v4656_v29 = vpop.eup %4655 }
 0xcfd   :  { %v4658_v49 = vpop.eup %4657  ;;  %v3708_v41 = vadd.f32 1.0, %v4656_v29 }
 0xcfe   :  { %v3728_v16 = vadd.f32 1.0, %v4658_v49 }
 0xcff   :  { %4659 = vrcp.f32 %v3708_v41  ;;  %v3720_v42 = vand.u32 2147483648, %v3708_v41  ;;  %v3718_v48 = vand.u32 2147483647, %v3708_v41  ;;  %vm3714_vm1 = vweird.f32 %v3708_v41 }
 0xd00   :  { %4661 = vrcp.f32 %v3728_v16  ;;  %v3740_v36 = vand.u32 2147483648, %v3728_v16  ;;  %vm3734_vm5 = vweird.f32 %v3728_v16  ;;  %v3738_v9 = vand.u32 2147483647, %v3728_v16 }
 0xd01   :  { %v3721_v6 = vor.u32 1.1754944e-38, %v3720_v42  ;;  %vm3719_vm3 = vcmp.eq.f32.partialorder %v3718_v48, 8.507059e+37  ;;  %v7100_v42 = vld [vmem:[#allocation13 + $0x128] sm:$0xff]  ;;  %v7110_v48 = vld [vmem:[#allocation13 + $0xf8] sm:$0xff] }
 0xd02   :  { %v3741_v18 = vor.u32 1.1754944e-38, %v3740_v36  ;;  %vm3739_vm7 = vcmp.eq.f32.partialorder %v3738_v9, 8.507059e+37 }
 0xd05   :  { %v4660_v59 = vpop.eup %4659 }
 0xd06   :  { %v4662_v44 = vpop.eup %4661  ;;  %v3710_v25 = vmul.f32 %v4660_v59, %v3708_v41  ;;  %vm3715_vm0 = vweird.f32 %v4660_v59 }
 0xd07   :  { %v3730_v40 = vmul.f32 %v4662_v44, %v3728_v16  ;;  %vm3716_vm2 = vmor %vm3714_vm1, %vm3715_vm0  ;;  %vm3735_vm4 = vweird.f32 %v4662_v44  ;;  %v7081_v16 = vld [vmem:[#allocation13 + $0x170] sm:$0xff] }
 0xd08   :  { %v3711_v12 = vsub.f32 1.0, %v3710_v25  ;;  %vm3736_vm6 = vmor %vm3734_vm5, %vm3735_vm4 }
 0xd09   :  { %v3731_v8 = vsub.f32 1.0, %v3730_v40 }
 0xd0a   :  { %v3712_v62 = vmul.f32 %v4660_v59, %v3711_v12  ;;  %v7091_v12 = vld [vmem:[#allocation13 + $0x148] sm:$0xff] }
 0xd0b   :  { %v3732_v31 = vmul.f32 %v4662_v44, %v3731_v8  ;;  %v7095_v8 = vld [vmem:[#allocation13 + $0x140] sm:$0xff] }
 0xd0c   :  { %v3713_v1 = vadd.f32 %v4660_v59, %v3712_v62  ;;  %v7105_v62 = vld [vmem:[#allocation13 + $0x110] sm:$0xff] }
 0xd0d   :  { %v3733_v21 = vadd.f32 %v4662_v44, %v3732_v31 }
 0xd0e   :  { %v3717_v57 = vsel %vm3716_vm2, %v4660_v59, %v3713_v1  ;;  %v7492_v1 = vld [vmem:[#allocation25_spill] sm:$0xff] }
 0xd0f   :  { %v3722_v30 = vsel %vm3719_vm3, %v3721_v6, %v3717_v57  ;;  %v3737_v7 = vsel %vm3736_vm6, %v4662_v44, %v3733_v21  ;;  %v7084_v44 = vld [vmem:[#allocation13 + $0x160] sm:$0xff]  ;;  %v3247_v6 = vadd.f32 %v7492_v1, %v7488_v58 }
 0xd10   :  { %v3745_v51 = vmul.f32 %v3744_v38, %v3722_v30  ;;  %v3742_v29 = vsel %vm3739_vm7, %v3741_v18, %v3737_v7 }
 0xd11   :  { %v3748_v49 = vsub.f32 1.0, %v3742_v29  ;;  %v3750_v25 = vmul.f32 %v3742_v29, %v6981_v45  ;;  %v7088_v45 = vld [vmem:[#allocation13 + $0x158] sm:$0xff] }
 0xd12   :  { %v3746_v22 = vadd.f32 %v3745_v51, %v3326_v28 }
 0xd14   :  { %4663 = vtanh.f32 %v3746_v22 }
 0xd1a   :  { %v4664_v41 = vpop.eup %4663 }
 0xd1b   :  { %v3749_v59 = vmul.f32 %v4664_v41, %v3748_v49 }
 0xd1d   :  { %v7072_v40 = vadd.f32 %v3750_v25, %v3749_v59 }
 0xd1f   :  { %3771 = vmatmul.f32.vlgmr.msrb.gmra.mxu3 %v7072_v40  ;;  %3791 = vmatmul.f32.vlgmr.msra.gmra.mxu0 %v7072_v40 }
 0xd20   :  { %3811 = vmatmul.f32.vlgmr.msrb.gmra.mxu1 %v7072_v40  ;;  %4017 = vmatpush.msrb.mxu3 %v7077_v3 }
 0xd21   :  { %4088 = vmatpush.msra.mxu0 %v6902_v32  ;;  %4108 = vmatpush.msrb.mxu1 %v7081_v16 }
 0xd22   :  { %4018 = vmatpush.msrb.mxu3 %v7084_v44 }
 0xd23   :  { %4089 = vmatpush.msra.mxu0 %v6990_v47  ;;  %4109 = vmatpush.msrb.mxu1 %v7088_v45 }
 0xd24   :  { %4019 = vmatpush.msrb.mxu3 %v7091_v12 }
 0xd25   :  { %4090 = vmatpush.msra.mxu0 %v6995_v52  ;;  %4110 = vmatpush.msrb.mxu1 %v7095_v8 }
 0xd26   :  { %4020 = vmatpush.msrb.mxu3 %v6742_v37  ;;  %v7115_v37 = vld [vmem:[#allocation13 + $0xe0] sm:$0xff] }
 0xd27   :  { %4091 = vmatpush.msra.mxu0 %v7000_v14  ;;  %4111 = vmatpush.msrb.mxu1 %v7100_v42 }
 0xd28   :  { %4021 = vmatpush.msrb.mxu3 %v6749_v39  ;;  %v7120_v39 = vld [vmem:[#allocation13 + $0xc8] sm:$0xff] }
 0xd29   :  { %4092 = vmatpush.msra.mxu0 %v7005_v24  ;;  %4112 = vmatpush.msrb.mxu1 %v7105_v62 }
 0xd2a   :  { %4022 = vmatpush.msrb.mxu3 %v6753_v23  ;;  %v7125_v23 = vld [vmem:[#allocation13 + $0xb0] sm:$0xff] }
 0xd2b   :  { %4093 = vmatpush.msra.mxu0 %v7010_v61  ;;  %4113 = vmatpush.msrb.mxu1 %v7110_v48 }
 0xd2c   :  { %4023 = vmatpush.msrb.mxu3 %v6755_v55  ;;  %v7130_v55 = vld [vmem:[#allocation13 + $0x98] sm:$0xff] }
 0xd2d   :  { %4094 = vmatpush.msra.mxu0 %v7015_v15  ;;  %4114 = vmatpush.msrb.mxu1 %v7115_v37 }
 0xd2e   :  { %4024 = vmatpush.msrb.mxu3 %v6762_v60  ;;  %v7135_v60 = vld [vmem:[#allocation13 + $0x80] sm:$0xff] }
 0xd2f   :  { %4095 = vmatpush.msra.mxu0 %v7020_v5  ;;  %4115 = vmatpush.msrb.mxu1 %v7120_v39 }
 0xd30   :  { %4025 = vmatpush.msrb.mxu3 %v6767_v26  ;;  %v7140_v26 = vld [vmem:[#allocation13 + $0x68] sm:$0xff] }
 0xd31   :  { %4096 = vmatpush.msra.mxu0 %v7025_v34  ;;  %4116 = vmatpush.msrb.mxu1 %v7125_v23 }
 0xd32   :  { %4026 = vmatpush.msrb.mxu3 %v6772_v2  ;;  %v7145_v2 = vld [vmem:[#allocation13 + $0x50] sm:$0xff] }
 0xd33   :  { %4097 = vmatpush.msra.mxu0 %v7030_v35  ;;  %4117 = vmatpush.msrb.mxu1 %v7130_v55 }
 0xd34   :  { %4027 = vmatpush.msrb.mxu3 %v6777_v54  ;;  %v7150_v54 = vld [vmem:[#allocation13 + $0x38] sm:$0xff] }
 0xd35   :  { %4098 = vmatpush.msra.mxu0 %v7035_v11  ;;  %4118 = vmatpush.msrb.mxu1 %v7135_v60 }
 0xd36   :  { %4028 = vmatpush.msrb.mxu3 %v7473_v4  ;;  %v7155_v4 = vld [vmem:[#allocation13 + $0x20] sm:$0xff] }
 0xd37   :  { %4099 = vmatpush.msra.mxu0 %v7040_v63  ;;  %4119 = vmatpush.msrb.mxu1 %v7140_v26 }
 0xd38   :  { %4029 = vmatpush.msrb.mxu3 %v7474_v10  ;;  %v7160_v10 = vld [vmem:[#allocation13 + $0x8] sm:$0xff] }
 0xd39   :  { %4100 = vmatpush.msra.mxu0 %v7045_v27  ;;  %4120 = vmatpush.msrb.mxu1 %v7145_v2 }
 0xd3a   :  { %4030 = vmatpush.msrb.mxu3 %v7475_v56  ;;  %v3288_v56 = vadd.f32 %v6955_v53, %v7490_v33 }
 0xd3b   :  { %4101 = vmatpush.msra.mxu0 %v7050_v13  ;;  %4121 = vmatpush.msrb.mxu1 %v7150_v54 }
 0xd3c   :  { %4031 = vmatpush.msrb.mxu3 %v7476_v43 }
 0xd3d   :  { %4102 = vmatpush.msra.mxu0 %v7055_v20  ;;  %4122 = vmatpush.msrb.mxu1 %v7155_v4 }
 0xd3e   :  { %4032 = vmatpush.msrb.mxu3 %v7477_v50 }
 0xd3f   :  { %4103 = vmatpush.msra.mxu0 %v7060_v0  ;;  %4123 = vmatpush.msrb.mxu1 %v7160_v10 }
 0xd9c   :  { %v3792_v31 = vpop.f32.mrf.mxu0 }
 0xd9d   :  { %v3835_v17 = vadd.f32 %v3792_v31, %v3288_v56  ;;  %v3812_v25 = vpop.f32.mrf.mxu1 }
 0xd9f   :  { %v4448_v43 = vmul.f32 -1.442695, %v3835_v17  ;;  %v3855_v17 = vadd.f32 %v6890_v19, %v3812_v25 }
 0xda1   :  { %4665 = vpow2.f32 %v4448_v43 }
 0xda2   :  { %v3772_v57 = vpop.f32.mrf.mxu3 }
 0xda3   :  { %v3815_v38 = vadd.f32 %v3772_v57, %v3247_v6  ;;  %v7493_v57 = vld [vmem:[#allocation30_spill] sm:$0xff] }
 0xda5   :  { %v4447_v21 = vmul.f32 -1.442695, %v3815_v38  ;;  %v3329_v38 = vadd.f32 %v7493_v57, %v6892_v46 }
 0xda7   :  { %v4666_v50 = vpop.eup %4665  ;;  %4667 = vpow2.f32 %v4447_v21 }
 0xda8   :  { %v3839_v30 = vadd.f32 1.0, %v4666_v50 }
 0xdaa   :  { %4669 = vrcp.f32 %v3839_v30  ;;  %v3851_v21 = vand.u32 2147483648, %v3839_v30  ;;  %vm3845_vm13 = vweird.f32 %v3839_v30 }
 0xdad   :  { %v4668_v28 = vpop.eup %4667 }
 0xdae   :  { %v3819_v36 = vadd.f32 1.0, %v4668_v28  ;;  %v3849_v28 = vand.u32 2147483647, %v3839_v30 }
 0xdb0   :  { %4671 = vrcp.f32 %v3819_v36  ;;  %v4670_v51 = vpop.eup %4669  ;;  %v3831_v29 = vand.u32 2147483648, %v3819_v36  ;;  %v3829_v41 = vand.u32 2147483647, %v3819_v36  ;;  %vm3825_vm9 = vweird.f32 %v3819_v36 }
 0xdb1   :  { %v3841_v9 = vmul.f32 %v4670_v51, %v3839_v30  ;;  %vm3846_vm12 = vweird.f32 %v4670_v51  ;;  %vm3850_vm15 = vcmp.eq.f32.partialorder %v3849_v28, 8.507059e+37 }
 0xdb2   :  { %v3832_v31 = vor.u32 1.1754944e-38, %v3831_v29  ;;  %vm3830_vm11 = vcmp.eq.f32.partialorder %v3829_v41, 8.507059e+37  ;;  %vm3847_vm14 = vmor %vm3845_vm13, %vm3846_vm12 }
 0xdb3   :  { %v3842_v7 = vsub.f32 1.0, %v3841_v9 }
 0xdb5   :  { %v3843_v59 = vmul.f32 %v4670_v51, %v3842_v7 }
 0xdb6   :  { %v4672_v53 = vpop.eup %4671 }
 0xdb7   :  { %v3821_v22 = vmul.f32 %v4672_v53, %v3819_v36  ;;  %vm3826_vm8 = vweird.f32 %v4672_v53  ;;  %v3844_v1 = vadd.f32 %v4670_v51, %v3843_v59  ;;  %v3852_v36 = vor.u32 1.1754944e-38, %v3851_v21 }
 0xdb8   :  { %vm3827_vm10 = vmor %vm3825_vm9, %vm3826_vm8 }
 0xdb9   :  { %v3822_v18 = vsub.f32 1.0, %v3821_v22  ;;  %v3848_v22 = vsel %vm3847_vm14, %v4670_v51, %v3844_v1 }
 0xdba   :  { %v3853_v7 = vsel %vm3850_vm15, %v3852_v36, %v3848_v22 }
 0xdbb   :  { %v3823_v49 = vmul.f32 %v4672_v53, %v3822_v18  ;;  %v3859_v18 = vsub.f32 1.0, %v3853_v7 }
 0xdbd   :  { %v3824_v56 = vadd.f32 %v4672_v53, %v3823_v49  ;;  %v3861_v49 = vmul.f32 %v3853_v7, %v7072_v40  ;;  %v7185_v40 = vld [vmem:[#allocation13 + $0x130] sm:$0xff] }
 0xdbf   :  { %v3828_v43 = vsel %vm3827_vm10, %v4672_v53, %v3824_v56 }
 0xdc0   :  { %v3833_v6 = vsel %vm3830_vm11, %v3832_v31, %v3828_v43 }
 0xdc1   :  { %v3856_v50 = vmul.f32 %v3855_v17, %v3833_v6 }
 0xdc3   :  { %v3857_v9 = vadd.f32 %v3856_v50, %v3329_v38  ;;  %v7496_v38 = vld [vmem:[#allocation32_spill] sm:$0xff] }
 0xdc4   :  { %v3332_v21 = vadd.f32 %v7496_v38, %v6892_v46 }
 0xdc5   :  { %4673 = vtanh.f32 %v3857_v9 }
 0xdcb   :  { %v4674_v53 = vpop.eup %4673 }
 0xdcc   :  { %v3860_v29 = vmul.f32 %v4674_v53, %v3859_v18 }
 0xdce   :  { %v7171_v41 = vadd.f32 %v3861_v49, %v3860_v29 }
 0xdd0   :  { %3882 = vmatmul.f32.vlgmr.msra.gmra.mxu2 %v7171_v41  ;;  %3902 = vmatmul.f32.vlgmr.msra.gmra.mxu3 %v7171_v41 }
 0xdd1   :  { %3922 = vmatmul.f32.vlgmr.msrb.gmra.mxu0 %v7171_v41  ;;  %4128 = vmatpush.msra.mxu2 %v7077_v3 }
 0xdd2   :  { %4199 = vmatpush.msra.mxu3 %v6902_v32  ;;  %4219 = vmatpush.msrb.mxu0 %v7081_v16  ;;  %v7190_v32 = vld [vmem:[#allocation13 + $0x118] sm:$0xff]  ;;  %v7495_v16 = vld [vmem:[#allocation31_spill] sm:$0xff] }
 0xdd3   :  { %4129 = vmatpush.msra.mxu2 %v7084_v44 }
 0xdd4   :  { %4200 = vmatpush.msra.mxu3 %v6990_v47  ;;  %4220 = vmatpush.msrb.mxu0 %v7088_v45  ;;  %v7195_v47 = vld [vmem:[#allocation13 + $0x100] sm:$0xff]  ;;  %v3291_v45 = vadd.f32 %v7495_v16, %v7490_v33 }
 0xdd5   :  { %4130 = vmatpush.msra.mxu2 %v7091_v12 }
 0xdd6   :  { %4201 = vmatpush.msra.mxu3 %v6995_v52  ;;  %4221 = vmatpush.msrb.mxu0 %v7095_v8  ;;  %v7200_v52 = vld [vmem:[#allocation13 + $0xe8] sm:$0xff] }
 0xdd7   :  { %4131 = vmatpush.msra.mxu2 %v7185_v40 }
 0xdd8   :  { %4202 = vmatpush.msra.mxu3 %v7000_v14  ;;  %4222 = vmatpush.msrb.mxu0 %v7100_v42  ;;  %v7205_v14 = vld [vmem:[#allocation13 + $0xd0] sm:$0xff] }
 0xdd9   :  { %4132 = vmatpush.msra.mxu2 %v7190_v32 }
 0xdda   :  { %4203 = vmatpush.msra.mxu3 %v7005_v24  ;;  %4223 = vmatpush.msrb.mxu0 %v7105_v62  ;;  %v7210_v24 = vld [vmem:[#allocation13 + $0xb8] sm:$0xff] }
 0xddb   :  { %4133 = vmatpush.msra.mxu2 %v7195_v47 }
 0xddc   :  { %4204 = vmatpush.msra.mxu3 %v7010_v61  ;;  %4224 = vmatpush.msrb.mxu0 %v7110_v48  ;;  %v7215_v61 = vld [vmem:[#allocation13 + $0xa0] sm:$0xff] }
 0xddd   :  { %4134 = vmatpush.msra.mxu2 %v7200_v52 }
 0xdde   :  { %4205 = vmatpush.msra.mxu3 %v7015_v15  ;;  %4225 = vmatpush.msrb.mxu0 %v7115_v37  ;;  %v7220_v15 = vld [vmem:[#allocation13 + $0x88] sm:$0xff] }
 0xddf   :  { %4135 = vmatpush.msra.mxu2 %v7205_v14 }
 0xde0   :  { %4206 = vmatpush.msra.mxu3 %v7020_v5  ;;  %4226 = vmatpush.msrb.mxu0 %v7120_v39  ;;  %v7225_v5 = vld [vmem:[#allocation13 + $0x70] sm:$0xff] }
 0xde1   :  { %4136 = vmatpush.msra.mxu2 %v7210_v24 }
 0xde2   :  { %4207 = vmatpush.msra.mxu3 %v7025_v34  ;;  %4227 = vmatpush.msrb.mxu0 %v7125_v23  ;;  %v7230_v34 = vld [vmem:[#allocation13 + $0x58] sm:$0xff] }
 0xde3   :  { %4137 = vmatpush.msra.mxu2 %v7215_v61 }
 0xde4   :  { %4208 = vmatpush.msra.mxu3 %v7030_v35  ;;  %4228 = vmatpush.msrb.mxu0 %v7130_v55  ;;  %v7235_v35 = vld [vmem:[#allocation13 + $0x40] sm:$0xff] }
 0xde5   :  { %4138 = vmatpush.msra.mxu2 %v7220_v15 }
 0xde6   :  { %4209 = vmatpush.msra.mxu3 %v7035_v11  ;;  %4229 = vmatpush.msrb.mxu0 %v7135_v60  ;;  %v7240_v11 = vld [vmem:[#allocation13 + $0x28] sm:$0xff] }
 0xde7   :  { %4139 = vmatpush.msra.mxu2 %v7225_v5 }
 0xde8   :  { %4210 = vmatpush.msra.mxu3 %v7040_v63  ;;  %4230 = vmatpush.msrb.mxu0 %v7140_v26  ;;  %v7245_v63 = vld [vmem:[#allocation13 + $0x10] sm:$0xff] }
 0xde9   :  { %4140 = vmatpush.msra.mxu2 %v7230_v34 }
 0xdea   :  { %4211 = vmatpush.msra.mxu3 %v7045_v27  ;;  %4231 = vmatpush.msrb.mxu0 %v7145_v2  ;;  %v7494_v27 = vld [vmem:[#allocation29_spill] sm:$0xff] }
 0xdeb   :  { %4141 = vmatpush.msra.mxu2 %v7235_v35 }
 0xdec   :  { %4212 = vmatpush.msra.mxu3 %v7050_v13  ;;  %4232 = vmatpush.msrb.mxu0 %v7150_v54  ;;  %v3250_v13 = vadd.f32 %v7494_v27, %v7488_v58 }
 0xded   :  { %4142 = vmatpush.msra.mxu2 %v7240_v11 }
 0xdee   :  { %4213 = vmatpush.msra.mxu3 %v7055_v20  ;;  %4233 = vmatpush.msrb.mxu0 %v7155_v4 }
 0xdef   :  { %4143 = vmatpush.msra.mxu2 %v7245_v63 }
 0xdf0   :  { %4214 = vmatpush.msra.mxu3 %v7060_v0  ;;  %4234 = vmatpush.msrb.mxu0 %v7160_v10 }
 0xe4e   :  { %v3923_v25 = vpop.f32.mrf.mxu0 }
 0xe4f   :  { %v3966_v43 = vadd.f32 %v6890_v19, %v3923_v25 }
 0xe53   :  { %v3883_v8 = vpop.f32.mrf.mxu2  ;;  %v3903_v42 = vpop.f32.mrf.mxu3 }
 0xe54   :  { %v3926_v62 = vadd.f32 %v3883_v8, %v3250_v13  ;;  %v3946_v20 = vadd.f32 %v3903_v42, %v3291_v45 }
 0xe56   :  { %v4449_v48 = vmul.f32 -1.442695, %v3926_v62  ;;  %v4450_v37 = vmul.f32 -1.442695, %v3946_v20 }
 0xe58   :  { %4675 = vpow2.f32 %v4449_v48 }
 0xe59   :  { %4677 = vpow2.f32 %v4450_v37 }
 0xe5e   :  { %v4676_v39 = vpop.eup %4675 }
 0xe5f   :  { %v4678_v23 = vpop.eup %4677  ;;  %v3930_v55 = vadd.f32 1.0, %v4676_v39 }
 0xe60   :  { %v3950_v0 = vadd.f32 1.0, %v4678_v23  ;;  %v7286_v23 = vld [vmem:[%s7388_s12] ss:$0 sm:$0xff] }
 0xe61   :  { %4679 = vrcp.f32 %v3930_v55  ;;  %v3942_v10 = vand.u32 2147483648, %v3930_v55  ;;  %v3940_v59 = vand.u32 2147483647, %v3930_v55  ;;  %vm3936_vm1 = vweird.f32 %v3930_v55 }
 0xe62   :  { %4681 = vrcp.f32 %v3950_v0  ;;  %v3962_v28 = vand.u32 2147483648, %v3950_v0  ;;  %vm3956_vm5 = vweird.f32 %v3950_v0  ;;  %v3960_v9 = vand.u32 2147483647, %v3950_v0 }
 0xe63   :  { %v3943_v17 = vor.u32 1.1754944e-38, %v3942_v10  ;;  %vm3941_vm3 = vcmp.eq.f32.partialorder %v3940_v59, 8.507059e+37 }
 0xe64   :  { %v3963_v7 = vor.u32 1.1754944e-38, %v3962_v28  ;;  %vm3961_vm7 = vcmp.eq.f32.partialorder %v3960_v9, 8.507059e+37 }
 0xe67   :  { %v4680_v60 = vpop.eup %4679 }
 0xe68   :  { %v4682_v26 = vpop.eup %4681  ;;  %v3932_v2 = vmul.f32 %v4680_v60, %v3930_v55  ;;  %vm3937_vm0 = vweird.f32 %v4680_v60 }
 0xe69   :  { %v3952_v54 = vmul.f32 %v4682_v26, %v3950_v0  ;;  %vm3938_vm2 = vmor %vm3936_vm1, %vm3937_vm0  ;;  %vm3957_vm4 = vweird.f32 %v4682_v26  ;;  %v7499_v0 = vld [vmem:[#allocation33_spill] sm:$0xff] }
 0xe6a   :  { %v3933_v4 = vsub.f32 1.0, %v3932_v2  ;;  %vm3958_vm6 = vmor %vm3956_vm5, %vm3957_vm4 }
 0xe6b   :  { %v3953_v30 = vsub.f32 1.0, %v3952_v54 }
 0xe6c   :  { %v3934_v51 = vmul.f32 %v4680_v60, %v3933_v4 }
 0xe6d   :  { %v3954_v56 = vmul.f32 %v4682_v26, %v3953_v30 }
 0xe6e   :  { %v3935_v31 = vadd.f32 %v4680_v60, %v3934_v51 }
 0xe6f   :  { %v3955_v57 = vadd.f32 %v4682_v26, %v3954_v56 }
 0xe70   :  { %v3939_v1 = vsel %vm3938_vm2, %v4680_v60, %v3935_v31  ;;  %v3335_v60 = vadd.f32 %v7499_v0, %v6892_v46 }
 0xe71   :  { %v3944_v6 = vsel %vm3941_vm3, %v3943_v17, %v3939_v1  ;;  %v3959_v36 = vsel %vm3958_vm6, %v4682_v26, %v3955_v57  ;;  %v7500_v57 = vld [vmem:[#allocation35_spill] sm:$0xff] }
 0xe72   :  { %v3967_v50 = vmul.f32 %v3966_v43, %v3944_v6  ;;  %v3964_v18 = vsel %vm3961_vm7, %v3963_v7, %v3959_v36  ;;  %v3256_v38 = vadd.f32 %v7500_v57, %v7488_v58  ;;  %v4314_v57 = vld [vmem:[#allocation15 + $0x38] sm:$0xff] }
 0xe73   :  { %v3970_v19 = vsub.f32 1.0, %v3964_v18  ;;  %v3972_v49 = vmul.f32 %v3964_v18, %v7171_v41 }
 0xe74   :  { %v3968_v22 = vadd.f32 %v3967_v50, %v3332_v21  ;;  %v7501_v21 = vld [vmem:[#allocation23_spill] sm:$0xff] }
 0xe75   :  { %v3297_v50 = vadd.f32 %v7501_v21, %v7490_v33 }
 0xe76   :  { %4683 = vtanh.f32 %v3968_v22 }
 0xe7c   :  { %v4684_v53 = vpop.eup %4683 }
 0xe7d   :  { %v3971_v29 = vmul.f32 %v4684_v53, %v3970_v19 }
 0xe7f   :  { %v7258_v27 = vadd.f32 %v3972_v49, %v3971_v29 }
 0xe81   :  { %3993 = vmatmul.f32.vlgmr.msra.gmra.mxu1 %v7258_v27  ;;  %4013 = vmatmul.f32.vlgmr.msrb.gmra.mxu2 %v7258_v27 }
 0xe82   :  { %4033 = vmatmul.f32.vlgmr.msrb.gmra.mxu3 %v7258_v27  ;;  %4239 = vmatpush.msra.mxu1 %v7077_v3  ;;  %v7497_v3 = vld [vmem:[#allocation34_spill] sm:$0xff] }
 0xe84   :  { %4240 = vmatpush.msra.mxu1 %v7084_v44  ;;  %v3253_v44 = vadd.f32 %v7497_v3, %v7488_v58 }
 0xe86   :  { %4241 = vmatpush.msra.mxu1 %v7091_v12 }
 0xe88   :  { %4242 = vmatpush.msra.mxu1 %v7185_v40 }
 0xe8a   :  { %4243 = vmatpush.msra.mxu1 %v7190_v32  ;;  %v7498_v32 = vld [vmem:[#allocation24_spill] sm:$0xff] }
 0xe8c   :  { %4244 = vmatpush.msra.mxu1 %v7195_v47  ;;  %v3294_v47 = vadd.f32 %v7498_v32, %v7490_v33 }
 0xe8e   :  { %4245 = vmatpush.msra.mxu1 %v7200_v52 }
 0xe90   :  { %4246 = vmatpush.msra.mxu1 %v7205_v14 }
 0xe92   :  { %4247 = vmatpush.msra.mxu1 %v7210_v24 }
 0xe94   :  { %4248 = vmatpush.msra.mxu1 %v7215_v61 }
 0xe96   :  { %4249 = vmatpush.msra.mxu1 %v7220_v15 }
 0xe98   :  { %4250 = vmatpush.msra.mxu1 %v7225_v5 }
 0xe9a   :  { %4251 = vmatpush.msra.mxu1 %v7230_v34 }
 0xe9c   :  { %4252 = vmatpush.msra.mxu1 %v7235_v35 }
 0xe9e   :  { %4253 = vmatpush.msra.mxu1 %v7240_v11 }
 0xea0   :  { %4254 = vmatpush.msra.mxu1 %v7245_v63 }
 0xefe   :  { %v3994_v12 = vpop.f32.mrf.mxu1 }
 0xeff   :  { %v4037_v41 = vadd.f32 %v3994_v12, %v3253_v44 }
 0xf01   :  { %v4451_v40 = vmul.f32 -1.442695, %v4037_v41 }
 0xf03   :  { %4685 = vpow2.f32 %v4451_v40 }
 0xf04   :  { %v4014_v52 = vpop.f32.mrf.mxu2 }
 0xf05   :  { %v4057_v14 = vadd.f32 %v4014_v52, %v3294_v47  ;;  %v4034_v42 = vpop.f32.mrf.mxu3 }
 0xf06   :  { %v4077_v55 = vadd.f32 %v7286_v23, %v4034_v42 }
 0xf07   :  { %v4452_v24 = vmul.f32 -1.442695, %v4057_v14 }
 0xf09   :  { %v4686_v61 = vpop.eup %4685  ;;  %4687 = vpow2.f32 %v4452_v24 }
 0xf0a   :  { %v4041_v15 = vadd.f32 1.0, %v4686_v61 }
 0xf0c   :  { %4689 = vrcp.f32 %v4041_v15  ;;  %v4053_v13 = vand.u32 2147483648, %v4041_v15  ;;  %v4051_v45 = vand.u32 2147483647, %v4041_v15  ;;  %vm4047_vm9 = vweird.f32 %v4041_v15 }
 0xf0e   :  { %v4054_v48 = vor.u32 1.1754944e-38, %v4053_v13  ;;  %vm4052_vm11 = vcmp.eq.f32.partialorder %v4051_v45, 8.507059e+37 }
 0xf0f   :  { %v4688_v5 = vpop.eup %4687 }
 0xf10   :  { %v4061_v34 = vadd.f32 1.0, %v4688_v5 }
 0xf12   :  { %v4690_v35 = vpop.eup %4689  ;;  %4691 = vrcp.f32 %v4061_v34  ;;  %v4073_v54 = vand.u32 2147483648, %v4061_v34  ;;  %v4071_v10 = vand.u32 2147483647, %v4061_v34  ;;  %vm4067_vm13 = vweird.f32 %v4061_v34 }
 0xf13   :  { %v4043_v11 = vmul.f32 %v4690_v35, %v4041_v15  ;;  %vm4048_vm8 = vweird.f32 %v4690_v35 }
 0xf14   :  { %vm4049_vm10 = vmor %vm4047_vm9, %vm4048_vm8  ;;  %v4074_v59 = vor.u32 1.1754944e-38, %v4073_v54  ;;  %vm4072_vm15 = vcmp.eq.f32.partialorder %v4071_v10, 8.507059e+37  ;;  %v4320_v54 = vld [vmem:[#allocation15 + $0x68] sm:$0xff] }
 0xf15   :  { %v4044_v63 = vsub.f32 1.0, %v4043_v11  ;;  %v7503_v10 = vld [vmem:[#allocation38_spill] sm:$0xff] }
 0xf17   :  { %v4045_v16 = vmul.f32 %v4690_v35, %v4044_v63  ;;  %v7502_v63 = vld [vmem:[#allocation37_spill] sm:$0xff] }
 0xf18   :  { %v4692_v8 = vpop.eup %4691  ;;  %v3338_v13 = vadd.f32 %v7502_v63, %v6892_v46  ;;  %v4356_v63 = vld [vmem:[%s7391_s15 + $0x40] sm:$0xff] }
 0xf19   :  { %v4063_v62 = vmul.f32 %v4692_v8, %v4061_v34  ;;  %v4046_v20 = vadd.f32 %v4690_v35, %v4045_v16  ;;  %vm4068_vm12 = vweird.f32 %v4692_v8 }
 0xf1a   :  { %vm4069_vm14 = vmor %vm4067_vm13, %vm4068_vm12 }
 0xf1b   :  { %v4064_v37 = vsub.f32 1.0, %v4063_v62  ;;  %v4050_v39 = vsel %vm4049_vm10, %v4690_v35, %v4046_v20 }
 0xf1c   :  { %v4055_v26 = vsel %vm4052_vm11, %v4054_v48, %v4050_v39 }
 0xf1d   :  { %v4065_v2 = vmul.f32 %v4692_v8, %v4064_v37  ;;  %v4078_v4 = vmul.f32 %v4077_v55, %v4055_v26  ;;  %v4322_v26 = vld [vmem:[#allocation15 + $0x78] sm:$0xff] }
 0xf1e   :  { %4327 = vmatpush.msrb.mxu2 %v4322_v26  ;;  %v4353_v26 = vld [vmem:[%s7391_s15 + $0x28] sm:$0xff] }
 0xf1f   :  { %v4066_v30 = vadd.f32 %v4692_v8, %v4065_v2  ;;  %v4079_v51 = vadd.f32 %v4078_v4, %v3335_v60  ;;  %v4321_v2 = vld [vmem:[#allocation15 + $0x70] sm:$0xff]  ;;  %v4319_v4 = vld [vmem:[#allocation15 + $0x60] sm:$0xff] }
 0xf20   :  { %4328 = vmatpush.msrb.mxu2 %v4321_v2 }
 0xf21   :  { %v4070_v25 = vsel %vm4069_vm14, %v4692_v8, %v4066_v30  ;;  %4693 = vtanh.f32 %v4079_v51  ;;  %v3300_v30 = vadd.f32 %v7503_v10, %v7490_v33  ;;  %v4318_v51 = vld [vmem:[#allocation15 + $0x58] sm:$0xff] }
 0xf22   :  { %v4075_v56 = vsel %vm4072_vm15, %v4074_v59, %v4070_v25  ;;  %4329 = vmatpush.msrb.mxu2 %v4320_v54  ;;  %v4351_v10 = vld [vmem:[%s7391_s15 + $0x18] sm:$0xff] }
 0xf23   :  { %v4081_v31 = vsub.f32 1.0, %v4075_v56  ;;  %v4083_v1 = vmul.f32 %v4075_v56, %v7258_v27  ;;  %v4317_v56 = vld [vmem:[#allocation15 + $0x50] sm:$0xff] }
 0xf24   :  { %4330 = vmatpush.msrb.mxu2 %v4319_v4 }
 0xf26   :  { %4331 = vmatpush.msrb.mxu2 %v4318_v51 }
 0xf27   :  { %v4694_v17 = vpop.eup %4693 }
 0xf28   :  { %v4082_v43 = vmul.f32 %v4694_v17, %v4081_v31  ;;  %4332 = vmatpush.msrb.mxu2 %v4317_v56  ;;  %v4316_v17 = vld [vmem:[#allocation15 + $0x48] sm:$0xff] }
 0xf2a   :  { %v4084_v6 = vadd.f32 %v4083_v1, %v4082_v43  ;;  %4333 = vmatpush.msrb.mxu2 %v4316_v17  ;;  %v7504_v43 = vld [vmem:[#allocation36_spill] sm:$0xff]  ;;  %v4350_v17 = vld [vmem:[%s7391_s15 + $0x10] sm:$0xff] }
 0xf2b   :  { %v3259_v1 = vadd.f32 %v7504_v43, %v7488_v58  ;;  %v4309_v58 = vld [vmem:[#allocation15 + $0x10] sm:$0xff]  ;;  %v4349_v43 = vld [vmem:[%s7391_s15 + $0x8] sm:$0xff] }
 0xf2c   :  { %4104 = vmatmul.f32.vlgmr.msra.gmra.mxu0 %v4084_v6  ;;  %4124 = vmatmul.f32.vlgmr.msrb.gmra.mxu1 %v4084_v6 }
 0xf2d   :  { %4144 = vmatmul.f32.vlgmr.msra.gmra.mxu2 %v4084_v6 }
 0xfa9   :  { %v4105_v28 = vpop.f32.mrf.mxu0  ;;  %v4125_v9 = vpop.f32.mrf.mxu1 }
 0xfaa   :  { %v4148_v22 = vadd.f32 %v4105_v28, %v3256_v38  ;;  %v4168_v36 = vadd.f32 %v4125_v9, %v3297_v50  ;;  %v4313_v50 = vld [vmem:[#allocation15 + $0x30] sm:$0xff]  ;;  %v4312_v28 = vld [vmem:[#allocation15 + $0x28] sm:$0xff] }
 0xfac   :  { %v4453_v7 = vmul.f32 -1.442695, %v4148_v22  ;;  %v4454_v18 = vmul.f32 -1.442695, %v4168_v36  ;;  %v4311_v22 = vld [vmem:[#allocation15 + $0x20] sm:$0xff] }
 0xfae   :  { %4695 = vpow2.f32 %v4453_v7  ;;  %v4310_v7 = vld [vmem:[#allocation15 + $0x18] sm:$0xff] }
 0xfaf   :  { %4697 = vpow2.f32 %v4454_v18 }
 0xfb0   :  { %v4145_v24 = vpop.f32.mrf.mxu2 }
 0xfb1   :  { %v4188_v34 = vadd.f32 %v7286_v23, %v4145_v24 }
 0xfb4   :  { %v4696_v19 = vpop.eup %4695 }
 0xfb5   :  { %v4698_v53 = vpop.eup %4697  ;;  %v4152_v29 = vadd.f32 1.0, %v4696_v19  ;;  %v4308_v19 = vld [vmem:[#allocation15 + $0x8] sm:$0xff] }
 0xfb6   :  { %v4172_v49 = vadd.f32 1.0, %v4698_v53 }
 0xfb7   :  { %4699 = vrcp.f32 %v4152_v29  ;;  %v4164_v32 = vand.u32 2147483648, %v4152_v29  ;;  %v4162_v52 = vand.u32 2147483647, %v4152_v29  ;;  %vm4158_vm1 = vweird.f32 %v4152_v29 }
 0xfb8   :  { %4701 = vrcp.f32 %v4172_v49  ;;  %v4184_v16 = vand.u32 2147483648, %v4172_v49  ;;  %vm4178_vm5 = vweird.f32 %v4172_v49  ;;  %v4182_v8 = vand.u32 2147483647, %v4172_v49 }
 0xfb9   :  { %v4165_v15 = vor.u32 1.1754944e-38, %v4164_v32  ;;  %vm4163_vm3 = vcmp.eq.f32.partialorder %v4162_v52, 8.507059e+37  ;;  %v4359_v32 = vld [vmem:[%s7391_s15 + $0x58] sm:$0xff] }
 0xfba   :  { %v4185_v20 = vor.u32 1.1754944e-38, %v4184_v16  ;;  %vm4183_vm7 = vcmp.eq.f32.partialorder %v4182_v8, 8.507059e+37 }
 0xfbd   :  { %v4700_v27 = vpop.eup %4699 }
 0xfbe   :  { %v4702_v3 = vpop.eup %4701  ;;  %v4154_v44 = vmul.f32 %v4700_v27, %v4152_v29  ;;  %vm4159_vm0 = vweird.f32 %v4700_v27  ;;  %v4307_v29 = vld [vmem:[#allocation15] sm:$0xff] }
 0xfbf   :  { %v4174_v12 = vmul.f32 %v4702_v3, %v4172_v49  ;;  %vm4160_vm2 = vmor %vm4158_vm1, %vm4159_vm0  ;;  %vm4179_vm4 = vweird.f32 %v4702_v3  ;;  %v4363_v49 = vld [vmem:[%s7391_s15 + $0x78] sm:$0xff] }
 0xfc0   :  { %v4155_v41 = vsub.f32 1.0, %v4154_v44  ;;  %vm4180_vm6 = vmor %vm4178_vm5, %vm4179_vm4  ;;  %4368 = vmatpush.msrb.mxu3 %v4363_v49  ;;  %v4361_v44 = vld [vmem:[%s7391_s15 + $0x68] sm:$0xff] }
 0xfc1   :  { %v4175_v40 = vsub.f32 1.0, %v4174_v12 }
 0xfc2   :  { %v4156_v47 = vmul.f32 %v4700_v27, %v4155_v41  ;;  %v4360_v41 = vld [vmem:[%s7391_s15 + $0x60] sm:$0xff] }
 0xfc3   :  { %v4176_v14 = vmul.f32 %v4702_v3, %v4175_v40 }
 0xfc4   :  { %v4157_v61 = vadd.f32 %v4700_v27, %v4156_v47 }
 0xfc5   :  { %v4177_v35 = vadd.f32 %v4702_v3, %v4176_v14  ;;  %v4358_v14 = vld [vmem:[%s7391_s15 + $0x50] sm:$0xff] }
 0xfc6   :  { %v4161_v5 = vsel %vm4160_vm2, %v4700_v27, %v4157_v61  ;;  %v4362_v27 = vld [vmem:[%s7391_s15 + $0x70] sm:$0xff] }
 0xfc7   :  { %v4166_v11 = vsel %vm4163_vm3, %v4165_v15, %v4161_v5  ;;  %v4181_v62 = vsel %vm4180_vm6, %v4702_v3, %v4177_v35  ;;  %4369 = vmatpush.msrb.mxu3 %v4362_v27  ;;  %v4357_v15 = vld [vmem:[%s7391_s15 + $0x48] sm:$0xff] }
 0xfc8   :  { %v4189_v45 = vmul.f32 %v4188_v34, %v4166_v11  ;;  %v4186_v48 = vsel %vm4183_vm7, %v4185_v20, %v4181_v62 }
 0xfc9   :  { %v4192_v37 = vsub.f32 1.0, %v4186_v48  ;;  %v4194_v0 = vmul.f32 %v4186_v48, %v4084_v6  ;;  %v4315_v6 = vld [vmem:[#allocation15 + $0x40] sm:$0xff]  ;;  %4370 = vmatpush.msrb.mxu3 %v4361_v44  ;;  %v4354_v48 = vld [vmem:[%s7391_s15 + $0x30] sm:$0xff] }
 0xfca   :  { %v4190_v42 = vadd.f32 %v4189_v45, %v3338_v13  ;;  %4334 = vmatpush.msrb.mxu2 %v4315_v6  ;;  %v4355_v45 = vld [vmem:[%s7391_s15 + $0x38] sm:$0xff] }
 0xfcb   :  { %4371 = vmatpush.msrb.mxu3 %v4360_v41 }
 0xfcc   :  { %4703 = vtanh.f32 %v4190_v42  ;;  %4335 = vmatpush.msrb.mxu2 %v4314_v57 }
 0xfcd   :  { %4372 = vmatpush.msrb.mxu3 %v4359_v32 }
 0xfce   :  { %4336 = vmatpush.msrb.mxu2 %v4313_v50 }
 0xfcf   :  { %4373 = vmatpush.msrb.mxu3 %v4358_v14 }
 0xfd0   :  { %4337 = vmatpush.msrb.mxu2 %v4312_v28 }
 0xfd1   :  { %4374 = vmatpush.msrb.mxu3 %v4357_v15 }
 0xfd2   :  { %v4704_v39 = vpop.eup %4703  ;;  %4338 = vmatpush.msrb.mxu2 %v4311_v22 }
 0xfd3   :  { %v4193_v55 = vmul.f32 %v4704_v39, %v4192_v37  ;;  %4375 = vmatpush.msrb.mxu3 %v4356_v63  ;;  %v7505_v37 = vld [vmem:[#allocation39_spill] sm:$0xff] }
 0xfd4   :  { %4339 = vmatpush.msrb.mxu2 %v4310_v7  ;;  %v3341_v39 = vadd.f32 %v7505_v37, %v6892_v46  ;;  %v4352_v46 = vld [vmem:[%s7391_s15 + $0x20] sm:$0xff] }
 0xfd5   :  { %v7299_v60 = vadd.f32 %v4194_v0, %v4193_v55  ;;  %4376 = vmatpush.msrb.mxu3 %v4355_v45 }
 0xfd6   :  { %4340 = vmatpush.msrb.mxu2 %v4309_v58 }
 0xfd7   :  { %4215 = vmatmul.f32.vlgmr.msra.gmra.mxu3 %v7299_v60  ;;  %4235 = vmatmul.f32.vlgmr.msrb.gmra.mxu0 %v7299_v60 }
 0xfd8   :  { %4255 = vmatmul.f32.vlgmr.msra.gmra.mxu1 %v7299_v60  ;;  %4341 = vmatpush.msrb.mxu2 %v4308_v19 }
 0xfd9   :  { %4377 = vmatpush.msrb.mxu3 %v4354_v48 }
 0xfda   :  { %4342 = vmatpush.msrb.mxu2 %v4307_v29 }
 0xfdb   :  { %4378 = vmatpush.msrb.mxu3 %v4353_v26 }
 0xfdd   :  { %4379 = vmatpush.msrb.mxu3 %v4352_v46 }
 0xfdf   :  { %4380 = vmatpush.msrb.mxu3 %v4351_v10 }
 0xfe1   :  { %4381 = vmatpush.msrb.mxu3 %v4350_v17 }
 0xfe3   :  { %4382 = vmatpush.msrb.mxu3 %v4349_v43 }
0x1054   :  { %v4236_v59 = vpop.f32.mrf.mxu0 }
0x1055   :  { %v4279_v25 = vadd.f32 %v4236_v59, %v3300_v30  ;;  %v4256_v11 = vpop.f32.mrf.mxu1 }
0x1056   :  { %v4299_v8 = vadd.f32 %v7286_v23, %v4256_v11 }
0x1057   :  { %v4456_v31 = vmul.f32 -1.442695, %v4279_v25 }
0x1059   :  { %4705 = vpow2.f32 %v4456_v31 }
0x105a   :  { %v4216_v38 = vpop.f32.mrf.mxu3 }
0x105b   :  { %v4259_v21 = vadd.f32 %v4216_v38, %v3259_v1  ;;  %v4348_v1 = vld [vmem:[%s7391_s15] sm:$0xff]  ;;  %s4396_s15 = sshll.u32 %s7393_s17, 4  ;;  %s4397_s15 = int_to_ptr.hbm [resolvable:$true] %s4396_s15 }
0x105c   :  { %4383 = vmatpush.msrb.mxu3 %v4348_v1 }
0x105d   :  { %v4455_v33 = vmul.f32 -1.442695, %v4259_v21  ;;  %v4474_v21 = vld [vmem:[%s7392_s16] ss:$0 sm:$0xff] }
0x105f   :  { %v4706_v9 = vpop.eup %4705  ;;  %4707 = vpow2.f32 %v4455_v33 }
0x1060   :  { %v7308_v36 = vadd.f32 1.0, %v4706_v9 }
0x1062   :  { %4709 = vrcp.f32 %v7308_v36  ;;  %v4295_v55 = vand.u32 2147483648, %v7308_v36  ;;  %vm4289_vm13 = vweird.f32 %v7308_v36  ;;  %v4293_v23 = vand.u32 2147483647, %v7308_v36 }
0x1064   :  { %v4296_v4 = vor.u32 1.1754944e-38, %v4295_v55  ;;  %vm4294_vm15 = vcmp.eq.f32.partialorder %v4293_v23, 8.507059e+37 }
0x1065   :  { %v4708_v18 = vpop.eup %4707 }
0x1066   :  { %v4263_v53 = vadd.f32 1.0, %v4708_v18 }
0x1068   :  { %4711 = vrcp.f32 %v4263_v53  ;;  %v4710_v3 = vpop.eup %4709  ;;  %v4275_v61 = vand.u32 2147483648, %v4263_v53  ;;  %v4273_v34 = vand.u32 2147483647, %v4263_v53  ;;  %vm4269_vm9 = vweird.f32 %v4263_v53 }
0x1069   :  { %v4285_v12 = vmul.f32 %v4710_v3, %v7308_v36  ;;  %vm4290_vm12 = vweird.f32 %v4710_v3 }
0x106a   :  { %v4276_v16 = vor.u32 1.1754944e-38, %v4275_v61  ;;  %vm4274_vm11 = vcmp.eq.f32.partialorder %v4273_v34, 8.507059e+37  ;;  %vm4291_vm14 = vmor %vm4289_vm13, %vm4290_vm12 }
0x106b   :  { %v4286_v52 = vsub.f32 1.0, %v4285_v12 }
0x106d   :  { %v4287_v35 = vmul.f32 %v4710_v3, %v4286_v52 }
0x106e   :  { %v4712_v40 = vpop.eup %4711 }
0x106f   :  { %v4265_v47 = vmul.f32 %v4712_v40, %v4263_v53  ;;  %vm4270_vm8 = vweird.f32 %v4712_v40  ;;  %v4288_v62 = vadd.f32 %v4710_v3, %v4287_v35 }
0x1070   :  { %vm4271_vm10 = vmor %vm4269_vm9, %vm4270_vm8 }
0x1071   :  { %v4266_v24 = vsub.f32 1.0, %v4265_v47  ;;  %v4292_v54 = vsel %vm4291_vm14, %v4710_v3, %v4288_v62 }
0x1072   :  { %v4297_v30 = vsel %vm4294_vm15, %v4296_v4, %v4292_v54 }
0x1073   :  { %v4267_v5 = vmul.f32 %v4712_v40, %v4266_v24  ;;  %v4303_v51 = vsub.f32 1.0, %v4297_v30  ;;  %v4305_v56 = vmul.f32 %v4297_v30, %v7299_v60  ;;  %v4473_v60 = vld [vmem:[%s7390_s14] ss:$0 sm:$0xff] }
0x1075   :  { %v4268_v13 = vadd.f32 %v4712_v40, %v4267_v5 }
0x1077   :  { %v4272_v42 = vsel %vm4271_vm10, %v4712_v40, %v4268_v13 }
0x1078   :  { %v4277_v20 = vsel %vm4274_vm11, %v4276_v16, %v4272_v42 }
0x1079   :  { %v4300_v0 = vmul.f32 %v4299_v8, %v4277_v20 }
0x107b   :  { %v4301_v2 = vadd.f32 %v4300_v0, %v3341_v39 }
0x107d   :  { %4713 = vtanh.f32 %v4301_v2 }
0x1083   :  { %v4714_v59 = vpop.eup %4713 }
0x1084   :  { %v4304_v25 = vmul.f32 %v4714_v59, %v4303_v51 }
0x1086   :  { %v4306_v31 = vadd.f32 %v4305_v56, %v4304_v25 }
0x1088   :  { %4343 = vmatmul.f32.vlgmr.msrb.gmra.mxu2 %v4306_v31 }
0x110b   :  { %v4344_v6 = vpop.f32.mrf.mxu2 }
0x110c   :  { %v4345_v57 = vadd.f32 %v4473_v60, %v4344_v6 }
0x110e   :  { %v4347_v38 = vmax.f32 %v4345_v57, 0.0 }
0x1110   :  { %4384 = vmatmul.f32.vlgmr.msrb.gmra.mxu3 %v4347_v38 }
0x1193   :  { %v4385_v50 = vpop.f32.mrf.mxu3 }
0x1194   :  { %v4386_v33 = vadd.f32 %v4474_v21, %v4385_v50 }
0x1196   :  { %4388 = vst [vmem:[#allocation16] sm:$0xff] %v4386_v33 }
0x1197   :  { %4399 = dma.vmem_to_hbm [thread:$0]  %s4395_s25, 128, %s4397_s15, [#allocation6]  }
0x1198   :  { %4966 = dma.done.wait [#allocation6], 128  }
0x1199   :  { %4967 = vsyncadd [#allocation6], 4294967168 }
0x119a   :  { %4404 = vsyncpa [#allocation5], 1 }
0x119b   :  { %4405 = vsyncpa [#allocation8], 1 }
0x119c   :  { %4406 = vsyncpa [#allocation11], 1 }
0x119d   :  { %4407 = vsyncpa [#allocation14], 1 }
0x119e   :  { %4408 = vsyncpa [#allocation6], 1 }

</bundles_post_ra>
